<compile_context>
chip_gen: v7x
topology: tpu7x:2x2x1
jax: 0.10.0
libtpu: 0.0.40
codegen_flags: <defaults>
</compile_context>

<pallas_src>
import jax
import jax.numpy as jnp
from jax.experimental import pallas as pl
from jax.experimental.pallas import tpu as pltpu

IN_FEATURES = 512 * 4 * 4   # 8192
H1 = 512
H2 = 256
OUT = 1


def mlp_kernel(x_ref, w1_ref, b1_ref, w2_ref, b2_ref, w3t_ref, b3_ref, o_ref):
    # fc1: (B, 8192) @ (8192, 512) on the MXU, f32 accumulate, bias + ReLU in f32.
    h1 = jnp.dot(x_ref[...], w1_ref[...], preferred_element_type=jnp.float32)
    h1 = jnp.maximum(h1 + b1_ref[...], 0.0)

    # fc2: (B, 512) @ (512, 256) on the MXU, f32 accumulate, bias + ReLU in f32.
    h2 = jnp.dot(h1.astype(jnp.bfloat16), w2_ref[...],
                 preferred_element_type=jnp.float32)
    h2 = jnp.maximum(h2 + b2_ref[...], 0.0)

    # fc3 has N=1: VPU multiply + lane reduction beats a wasteful 256x1 MXU matmul.
    y = jnp.sum(h2 * w3t_ref[...], axis=-1, keepdims=True)
    o_ref[...] = (y + b3_ref[...]).astype(o_ref.dtype)


def prepare_params(w1, b1, w2, b2, w3, b3):
    """One-time (init-time) parameter prep — keeps the per-call path cast-free.

    W1/W2 persist as bf16 (the HBM-streamed operands), biases as (1, N) f32,
    W3 as a (1, 256) f32 row for the VPU reduction.
    """
    assert w1.shape == (IN_FEATURES, H1), w1.shape
    assert w2.shape == (H1, H2), w2.shape
    assert w3.size == H2 * OUT, w3.shape
    return dict(
        w1=jnp.asarray(w1, jnp.bfloat16),
        b1=jnp.asarray(b1, jnp.float32).reshape(1, H1),
        w2=jnp.asarray(w2, jnp.bfloat16),
        b2=jnp.asarray(b2, jnp.float32).reshape(1, H2),
        w3t=jnp.asarray(w3, jnp.float32).reshape(OUT, H2),
        b3=jnp.asarray(b3, jnp.float32).reshape(1, OUT),
    )


def vehicle_affordance_regressor(x, params):
    B, K = x.shape
    assert K == IN_FEATURES

    # TODO(synk): produce x as bf16 upstream (or fuse into the encoder kernel)
    # so this cast disappears too; weights are already persisted as bf16.
    x_bf16 = x.astype(jnp.bfloat16)

    flops = 2 * B * (IN_FEATURES * H1 + H1 * H2 + H2 * OUT)
    bytes_accessed = (
        B * IN_FEATURES * 2          # x  (bf16)
        + IN_FEATURES * H1 * 2       # W1 (bf16)
        + H1 * 4                     # b1 (f32)
        + H1 * H2 * 2                # W2 (bf16)
        + H2 * 4                     # b2 (f32)
        + OUT * H2 * 4               # W3 row (f32)
        + OUT * 4                    # b3 (f32)
        + B * OUT * 4                # out (f32)
    )

    return pl.pallas_call(
        mlp_kernel,
        out_shape=jax.ShapeDtypeStruct((B, OUT), jnp.float32),
        grid_spec=pltpu.PrefetchScalarGridSpec(
            num_scalar_prefetch=0,
            grid=(1,),  # single step: whole fc1/fc2/fc3 fused, no K reduction axis
            in_specs=[
                pl.BlockSpec((B, IN_FEATURES),  lambda i: (0, 0)),   # x
                pl.BlockSpec((IN_FEATURES, H1), lambda i: (0, 0)),   # W1 (8 MiB bf16)
                pl.BlockSpec((1, H1),           lambda i: (0, 0)),   # b1
                pl.BlockSpec((H1, H2),          lambda i: (0, 0)),   # W2
                pl.BlockSpec((1, H2),           lambda i: (0, 0)),   # b2
                pl.BlockSpec((1, H2),           lambda i: (0, 0)),   # W3^T row
                pl.BlockSpec((1, OUT),          lambda i: (0, 0)),   # b3
            ],
            out_specs=pl.BlockSpec((B, OUT), lambda i: (0, 0)),
        ),
        compiler_params=pltpu.CompilerParams(
            dimension_semantics=("arbitrary",),
            # W1 block is 8 MiB (double-buffered by the pipeline -> 16 MiB),
            # which exceeds the v5e/v6e scoped-VMEM defaults; stay explicit
            # and keep headroom under v7x's 64 MiB physical VMEM.
            vmem_limit_bytes=48 * 1024 * 1024,
        ),
        cost_estimate=pl.CostEstimate(
            flops=flops, transcendentals=0, bytes_accessed=bytes_accessed),
    )(x_bf16, params["w1"], params["b1"], params["w2"], params["b2"],
      params["w3t"], params["b3"])


def init_linear_params(key, fan_in, fan_out):
    """PyTorch nn.Linear default init: U(-1/sqrt(fan_in), 1/sqrt(fan_in))."""
    kw, kb = jax.random.split(key)
    bound = 1.0 / jnp.sqrt(jnp.float32(fan_in))
    # stored as (in, out) so the kernel does x @ W
    w = jax.random.uniform(kw, (fan_in, fan_out), jnp.float32, -bound, bound)
    b = jax.random.uniform(kb, (1, fan_out), jnp.float32, -bound, bound)
    return w, b


def reference_forward_f32(x, w1, b1, w2, b2, w3, b3):
    h = jnp.maximum(x @ w1 + b1, 0.0)
    h = jnp.maximum(h @ w2 + b2, 0.0)
    return h @ w3 + b3


def reference_forward_bf16(x, w1, b1, w2, b2, w3, b3):
    """Same bf16-streamed operands / f32 accumulation as the kernel."""
    h = jnp.dot(x.astype(jnp.bfloat16), w1.astype(jnp.bfloat16),
                preferred_element_type=jnp.float32) + b1
    h = jnp.maximum(h, 0.0)
    h = jnp.dot(h.astype(jnp.bfloat16), w2.astype(jnp.bfloat16),
                preferred_element_type=jnp.float32) + b2
    h = jnp.maximum(h, 0.0)
    return h @ w3 + b3


if __name__ == "__main__":
    key = jax.random.PRNGKey(0)
    kx, k1, k2, k3 = jax.random.split(key, 4)

    B = 2
    x = jax.random.normal(kx, (B, IN_FEATURES), jnp.float32)

    w1, b1 = init_linear_params(k1, IN_FEATURES, H1)
    w2, b2 = init_linear_params(k2, H1, H2)
    w3, b3 = init_linear_params(k3, H2, OUT)

    # One-time param prep (bf16 weights persist outside the hot path).
    params = prepare_params(w1, b1, w2, b2, w3, b3)

    out = vehicle_affordance_regressor(x, params)
    out = jax.block_until_ready(out)
    assert out.shape == (B, OUT)

    # Tight check against a reference using identical bf16-streamed operands.
    ref_bf16 = reference_forward_bf16(x, w1, b1, w2, b2, w3, b3)
    assert jnp.allclose(out, ref_bf16, atol=2e-3, rtol=2e-3), (out, ref_bf16)

    # Loose check against the pure-f32 PyTorch semantics (bf16 streaming error).
    ref_f32 = reference_forward_f32(x, w1, b1, w2, b2, w3, b3)
    assert jnp.allclose(out, ref_f32, atol=3e-2, rtol=3e-2), (out, ref_f32)

    print("KERNEL_OK")
</pallas_src>

<mosaic_0001>
module attributes {stable_mosaic.version = 11 : i64} {
  func.func @mlp_kernel(%arg0: i32, %arg1: memref<2x8192xbf16, #tpu.memory_space<vmem>>, %arg2: memref<8192x512xbf16, #tpu.memory_space<vmem>>, %arg3: memref<1x512xf32, #tpu.memory_space<vmem>>, %arg4: memref<512x256xbf16, #tpu.memory_space<vmem>>, %arg5: memref<1x256xf32, #tpu.memory_space<vmem>>, %arg6: memref<1x256xf32, #tpu.memory_space<vmem>>, %arg7: memref<1x1xf32, #tpu.memory_space<vmem>>, %arg8: memref<2x1xf32, #tpu.memory_space<vmem>>) attributes {dimension_semantics = [#tpu.dimension_semantics<arbitrary>], iteration_bounds = array<i64: 1>, scalar_prefetch = 0 : i64, scratch_operands = 0 : i64, tpu.core_type = #tpu.core_type<tc>, window_params = [{pipeline_mode = #tpu.pipeline_mode<synchronous>, transform_indices = @transform_0, window_bounds = array<i64: 2, 8192>}, {pipeline_mode = #tpu.pipeline_mode<synchronous>, transform_indices = @transform_1, window_bounds = array<i64: 8192, 512>}, {pipeline_mode = #tpu.pipeline_mode<synchronous>, transform_indices = @transform_2, window_bounds = array<i64: 1, 512>}, {pipeline_mode = #tpu.pipeline_mode<synchronous>, transform_indices = @transform_3, window_bounds = array<i64: 512, 256>}, {pipeline_mode = #tpu.pipeline_mode<synchronous>, transform_indices = @transform_4, window_bounds = array<i64: 1, 256>}, {pipeline_mode = #tpu.pipeline_mode<synchronous>, transform_indices = @transform_5, window_bounds = array<i64: 1, 256>}, {pipeline_mode = #tpu.pipeline_mode<synchronous>, transform_indices = @transform_6, window_bounds = array<i64: 1, 1>}, {pipeline_mode = #tpu.pipeline_mode<synchronous>, transform_indices = @transform_7, window_bounds = array<i64: 2, 1>}]} {
    %c0 = arith.constant 0 : index
    %c0_0 = arith.constant 0 : index
    %0 = vector.load %arg1[%c0, %c0_0] : memref<2x8192xbf16, #tpu.memory_space<vmem>>, vector<2x8192xbf16>
    %c0_1 = arith.constant 0 : index
    %c0_2 = arith.constant 0 : index
    %1 = vector.load %arg2[%c0_1, %c0_2] : memref<8192x512xbf16, #tpu.memory_space<vmem>>, vector<8192x512xbf16>
    %cst = arith.constant dense<0.000000e+00> : vector<2x512xf32>
    %2 = tpu.matmul %0, %1, %cst {dimension_numbers = #tpu.dot_dimension_numbers<[1], [0], [0], [1], [0, 0, 1, 1], [], []>} : vector<2x8192xbf16>, vector<8192x512xbf16>, vector<2x512xf32> -> vector<2x512xf32>
    %c0_3 = arith.constant 0 : index
    %c0_4 = arith.constant 0 : index
    %3 = vector.load %arg3[%c0_3, %c0_4] : memref<1x512xf32, #tpu.memory_space<vmem>>, vector<1x512xf32>
    %4 = vector.broadcast %3 : vector<1x512xf32> to vector<2x512xf32>
    %5 = arith.addf %2, %4 : vector<2x512xf32>
    %cst_5 = arith.constant 0.000000e+00 : f32
    %6 = vector.broadcast %cst_5 : f32 to vector<2x512xf32>
    %7 = arith.maximumf %5, %6 : vector<2x512xf32>
    %8 = arith.truncf %7 : vector<2x512xf32> to vector<2x512xbf16>
    %c0_6 = arith.constant 0 : index
    %c0_7 = arith.constant 0 : index
    %9 = vector.load %arg4[%c0_6, %c0_7] : memref<512x256xbf16, #tpu.memory_space<vmem>>, vector<512x256xbf16>
    %cst_8 = arith.constant dense<0.000000e+00> : vector<2x256xf32>
    %10 = tpu.matmul %8, %9, %cst_8 {dimension_numbers = #tpu.dot_dimension_numbers<[1], [0], [0], [1], [0, 0, 1, 1], [], []>} : vector<2x512xbf16>, vector<512x256xbf16>, vector<2x256xf32> -> vector<2x256xf32>
    %c0_9 = arith.constant 0 : index
    %c0_10 = arith.constant 0 : index
    %11 = vector.load %arg5[%c0_9, %c0_10] : memref<1x256xf32, #tpu.memory_space<vmem>>, vector<1x256xf32>
    %12 = vector.broadcast %11 : vector<1x256xf32> to vector<2x256xf32>
    %13 = arith.addf %10, %12 : vector<2x256xf32>
    %cst_11 = arith.constant 0.000000e+00 : f32
    %14 = vector.broadcast %cst_11 : f32 to vector<2x256xf32>
    %15 = arith.maximumf %13, %14 : vector<2x256xf32>
    %c0_12 = arith.constant 0 : index
    %c0_13 = arith.constant 0 : index
    %16 = vector.load %arg6[%c0_12, %c0_13] : memref<1x256xf32, #tpu.memory_space<vmem>>, vector<1x256xf32>
    %17 = vector.broadcast %16 : vector<1x256xf32> to vector<2x256xf32>
    %18 = arith.mulf %15, %17 : vector<2x256xf32>
    %cst_14 = arith.constant dense<0.000000e+00> : vector<2xf32>
    %19 = vector.multi_reduction <add>, %18, %cst_14 [1] : vector<2x256xf32> to vector<2xf32>
    %20 = vector.shape_cast %19 : vector<2xf32> to vector<2x1xf32>
    %c0_15 = arith.constant 0 : index
    %c0_16 = arith.constant 0 : index
    %21 = vector.load %arg7[%c0_15, %c0_16] : memref<1x1xf32, #tpu.memory_space<vmem>>, vector<1x1xf32>
    %22 = vector.broadcast %21 : vector<1x1xf32> to vector<2x1xf32>
    %23 = arith.addf %20, %22 : vector<2x1xf32>
    %c0_17 = arith.constant 0 : index
    %c0_18 = arith.constant 0 : index
    %24 = vector.load %arg8[%c0_17, %c0_18] : memref<2x1xf32, #tpu.memory_space<vmem>>, vector<2x1xf32>
    tpu.vector_store %arg8[%c0_17, %c0_18], %23 {strides = array<i32>} : memref<2x1xf32, #tpu.memory_space<vmem>>, vector<2x1xf32>,
    return
  }
  func.func @transform_0(%arg0: i32) -> (i32, i32) {
    %c0_i32 = arith.constant 0 : i32
    %c0_i32_0 = arith.constant 0 : i32
    %c0_i32_1 = arith.constant 0 : i32
    return %c0_i32, %c0_i32_0 : i32, i32
  }
  func.func @transform_1(%arg0: i32) -> (i32, i32) {
    %c0_i32 = arith.constant 0 : i32
    %c0_i32_0 = arith.constant 0 : i32
    %c0_i32_1 = arith.constant 0 : i32
    return %c0_i32, %c0_i32_0 : i32, i32
  }
  func.func @transform_2(%arg0: i32) -> (i32, i32) {
    %c0_i32 = arith.constant 0 : i32
    %c0_i32_0 = arith.constant 0 : i32
    %c0_i32_1 = arith.constant 0 : i32
    return %c0_i32, %c0_i32_0 : i32, i32
  }
  func.func @transform_3(%arg0: i32) -> (i32, i32) {
    %c0_i32 = arith.constant 0 : i32
    %c0_i32_0 = arith.constant 0 : i32
    %c0_i32_1 = arith.constant 0 : i32
    return %c0_i32, %c0_i32_0 : i32, i32
  }
  func.func @transform_4(%arg0: i32) -> (i32, i32) {
    %c0_i32 = arith.constant 0 : i32
    %c0_i32_0 = arith.constant 0 : i32
    %c0_i32_1 = arith.constant 0 : i32
    return %c0_i32, %c0_i32_0 : i32, i32
  }
  func.func @transform_5(%arg0: i32) -> (i32, i32) {
    %c0_i32 = arith.constant 0 : i32
    %c0_i32_0 = arith.constant 0 : i32
    %c0_i32_1 = arith.constant 0 : i32
    return %c0_i32, %c0_i32_0 : i32, i32
  }
  func.func @transform_6(%arg0: i32) -> (i32, i32) {
    %c0_i32 = arith.constant 0 : i32
    %c0_i32_0 = arith.constant 0 : i32
    %c0_i32_1 = arith.constant 0 : i32
    return %c0_i32, %c0_i32_0 : i32, i32
  }
  func.func @transform_7(%arg0: i32) -> (i32, i32) {
    %c0_i32 = arith.constant 0 : i32
    %c0_i32_0 = arith.constant 0 : i32
    %c0_i32_1 = arith.constant 0 : i32
    return %c0_i32, %c0_i32_0 : i32, i32
  }
}

</mosaic_0001>

<bundles_post_ra>
// kernel: tpu_custom_call.1
= control target key start
LH: loop header
LB: loop body
LE: loop exit
PB: predicated region body
PF: predicated region fallthrough
CT: control target
= control target key end

     0   :  { %s22350_s0 = inlined_call_operand.hbm [shape: bf16[2,8192], index: 0, kind: input, shape index: {}]   ;;  %s22351_s1 = inlined_call_operand.hbm [shape: bf16[8192,512], index: 1, kind: input, shape index: {}]   ;;  %s22352_s2 = inlined_call_operand.hbm [shape: f32[1,512], index: 2, kind: input, shape index: {}]   ;;  %s22353_s3 = inlined_call_operand.hbm [shape: bf16[512,256], index: 3, kind: input, shape index: {}]   ;;  %s22354_s4 = inlined_call_operand.hbm [shape: f32[1,256], index: 4, kind: input, shape index: {}]   ;;  %s22355_s5 = inlined_call_operand.hbm [shape: f32[1,256], index: 5, kind: input, shape index: {}]   ;;  %s22356_s6 = inlined_call_operand.<no memory space> [shape: f32[1,1], index: 6, kind: input, shape index: {}]   ;;  %s22357_s7 = inlined_call_operand.vmem [shape: f32[2,1], index: 7, kind: output, shape index: {}]  }
   0x1   :  { %v12_v0 = vstv %s22356_s6 }
   0x2   :  { %13 = vst [vmem:[#allocation2] sm:$0x1] %v12_v0 }
   0x3   :  { %14 = vsyncpa [#allocation4], 0 }
   0x4   :  { %15 = vsyncpa [#allocation6], 0 }
   0x5   :  { %16 = vsyncpa [#allocation9], 0 }
   0x6   :  { %17 = vsyncpa [#allocation12], 0  ;;  %s21736_s26 = smov [#allocation5]   ;;  %s21596_s30 = scalar_lea.hbm %s22351_s1, 262144 }
   0x7   :  { %s33_s27 = sshll.u32 %s21736_s26, 4  ;;  %p21597_p0 = scmp.ne.s32.totalorder %s22351_s1, %s21596_s30  ;;  %s34_s27 = int_to_ptr.vmem [resolvable:$true] %s33_s27 }
   0x8   :  { %p21600_p1 = scmp.lt.u32.totalorder %s21596_s30, %s22351_s1 }
   0xa   :  { %p21602_p2 = pnand %p21600_p1, %p21597_p0 }
   0xc   :  { %21605 = shalt.err (!%p21602_p2)
}
   0xd   :  { %s21606_s6 = scalar_lea.vmem %s34_s27, 262144  ;;  %p21611_p4 = scmp.lt.s32.totalorder %s34_s27, %s34_s27 }
   0xe   :  { %p21607_p3 = scmp.ne.s32.totalorder %s34_s27, %s21606_s6  ;;  %p21612_p5 = scmp.lt.s32.totalorder %s21606_s6, %s21606_s6 }
  0x10   :  { %p21613_p6 = por %p21612_p5, %p21611_p4 }
  0x12   :  { %p21614_p7 = pnand %p21613_p6, %p21607_p3 }
  0x14   :  { %21617 = shalt.err (!%p21614_p7)
}
  0x15   :  { %s21737_s12 = smov 256   ;;  %s21738_s13 = smov 16  }
  0x16   :  { %39 = dma.hbm_to_vmem [thread:$0]  %s22351_s1, 262144, %s34_s27, [#allocation6], %s21737_s12, %s21737_s12, %s21738_s13  }
  0x17   :  { %s21739_s16 = smov [#allocation8]   ;;  %s21618_s20 = scalar_lea.hbm %s22353_s3, 8192 }
  0x18   :  { %s55_s17 = sshll.u32 %s21739_s16, 4  ;;  %p21619_p8 = scmp.ne.s32.totalorder %s22353_s3, %s21618_s20  ;;  %s56_s17 = int_to_ptr.vmem [resolvable:$true] %s55_s17 }
  0x19   :  { %p21622_p9 = scmp.lt.u32.totalorder %s21618_s20, %s22353_s3 }
  0x1b   :  { %p21624_p10 = pnand %p21622_p9, %p21619_p8 }
  0x1d   :  { %21627 = shalt.err (!%p21624_p10)
}
  0x1e   :  { %s21628_s25 = scalar_lea.vmem %s56_s17, 8192  ;;  %p21633_p12 = scmp.lt.s32.totalorder %s56_s17, %s56_s17 }
  0x1f   :  { %p21629_p11 = scmp.ne.s32.totalorder %s56_s17, %s21628_s25  ;;  %p21634_p13 = scmp.lt.s32.totalorder %s21628_s25, %s21628_s25 }
  0x21   :  { %p21635_p0 = por %p21634_p13, %p21633_p12 }
  0x23   :  { %p21636_p1 = pnand %p21635_p0, %p21629_p11 }
  0x25   :  { %21639 = shalt.err (!%p21636_p1)
}
  0x26   :  { %s21740_s1 = smov 128   ;;  %s21741_s26 = smov 8  }
  0x27   :  { %61 = dma.hbm_to_vmem [thread:$0]  %s22353_s3, 8192, %s56_s17, [#allocation9], %s21740_s1, %s21740_s1, %s21741_s26  }
  0x28   :  { %s21742_s29 = smov [#allocation3]   ;;  %s21743_s8 = smov [#allocation7]  }
  0x29   :  { %s24_s30 = sshll.u32 %s21742_s29, 4  ;;  %s46_s9 = sshll.u32 %s21743_s8, 4  ;;  %s25_s30 = int_to_ptr.vmem [resolvable:$true] %s24_s30  ;;  %s47_s9 = int_to_ptr.vmem [resolvable:$true] %s46_s9 }
  0x2a   :  { %s21640_s6 = scalar_lea.hbm %s22350_s0, 1024 }
  0x2b   :  { %p21641_p2 = scmp.ne.s32.totalorder %s22350_s0, %s21640_s6  ;;  %p21644_p3 = scmp.lt.u32.totalorder %s21640_s6, %s22350_s0 }
  0x2d   :  { %p21646_p4 = pnand %p21644_p3, %p21641_p2 }
  0x2f   :  { %21649 = shalt.err (!%p21646_p4)
}
  0x30   :  { %s21650_s3 = scalar_lea.vmem %s25_s30, 1024  ;;  %p21655_p6 = scmp.lt.s32.totalorder %s25_s30, %s25_s30 }
  0x31   :  { %p21651_p5 = scmp.ne.s32.totalorder %s25_s30, %s21650_s3  ;;  %p21656_p7 = scmp.lt.s32.totalorder %s21650_s3, %s21650_s3 }
  0x33   :  { %p21657_p8 = por %p21656_p7, %p21655_p6 }
  0x35   :  { %p21658_p9 = pnand %p21657_p8, %p21651_p5 }
  0x37   :  { %21661 = shalt.err (!%p21658_p9)
}
  0x38   :  { %27 = dma.hbm_to_vmem [thread:$0]  %s22350_s0, 1024, %s25_s30, [#allocation4]  }
  0x39   :  { %s21662_s20 = scalar_lea.hbm %s22352_s2, 64 }
  0x3a   :  { %p21663_p10 = scmp.ne.s32.totalorder %s22352_s2, %s21662_s20  ;;  %p21666_p11 = scmp.lt.u32.totalorder %s21662_s20, %s22352_s2 }
  0x3c   :  { %p21668_p12 = pnand %p21666_p11, %p21663_p10 }
  0x3e   :  { %21671 = shalt.err (!%p21668_p12)
}
  0x3f   :  { %s21672_s25 = scalar_lea.vmem %s47_s9, 64  ;;  %p21677_p0 = scmp.lt.s32.totalorder %s47_s9, %s47_s9 }
  0x40   :  { %p21673_p13 = scmp.ne.s32.totalorder %s47_s9, %s21672_s25  ;;  %p21678_p1 = scmp.lt.s32.totalorder %s21672_s25, %s21672_s25 }
  0x42   :  { %p21679_p2 = por %p21678_p1, %p21677_p0 }
  0x44   :  { %p21680_p3 = pnand %p21679_p2, %p21673_p13 }
  0x46   :  { %21683 = shalt.err (!%p21680_p3)
}
  0x47   :  { %49 = dma.hbm_to_vmem [thread:$0]  %s22352_s2, 64, %s47_s9, [#allocation6]  }
  0x48   :  { %s21744_s26 = smov [#allocation10]   ;;  %s21745_s28 = smov [#allocation11]  }
  0x49   :  { %s68_s27 = sshll.u32 %s21744_s26, 4  ;;  %s78_s29 = sshll.u32 %s21745_s28, 4  ;;  %s69_s27 = int_to_ptr.vmem [resolvable:$true] %s68_s27  ;;  %s79_s29 = int_to_ptr.vmem [resolvable:$true] %s78_s29 }
  0x4a   :  { %s21684_s10 = scalar_lea.hbm %s22354_s4, 32 }
  0x4b   :  { %p21685_p4 = scmp.ne.s32.totalorder %s22354_s4, %s21684_s10  ;;  %p21688_p5 = scmp.lt.u32.totalorder %s21684_s10, %s22354_s4 }
  0x4d   :  { %p21690_p6 = pnand %p21688_p5, %p21685_p4 }
  0x4f   :  { %21693 = shalt.err (!%p21690_p6)
}
  0x50   :  { %s21694_s2 = scalar_lea.vmem %s69_s27, 32  ;;  %p21699_p8 = scmp.lt.s32.totalorder %s69_s27, %s69_s27 }
  0x51   :  { %p21695_p7 = scmp.ne.s32.totalorder %s69_s27, %s21694_s2  ;;  %p21700_p9 = scmp.lt.s32.totalorder %s21694_s2, %s21694_s2 }
  0x53   :  { %p21701_p10 = por %p21700_p9, %p21699_p8 }
  0x55   :  { %p21702_p11 = pnand %p21701_p10, %p21695_p7 }
  0x57   :  { %21705 = shalt.err (!%p21702_p11)
}
  0x58   :  { %71 = dma.hbm_to_vmem [thread:$0]  %s22354_s4, 32, %s69_s27, [#allocation9]  }
  0x59   :  { %s21706_s16 = scalar_lea.hbm %s22355_s5, 32 }
  0x5a   :  { %p21707_p12 = scmp.ne.s32.totalorder %s22355_s5, %s21706_s16  ;;  %p21710_p13 = scmp.lt.u32.totalorder %s21706_s16, %s22355_s5 }
  0x5c   :  { %p21712_p0 = pnand %p21710_p13, %p21707_p12 }
  0x5e   :  { %21715 = shalt.err (!%p21712_p0)
}
  0x5f   :  { %s21716_s21 = scalar_lea.vmem %s79_s29, 32  ;;  %p21721_p2 = scmp.lt.s32.totalorder %s79_s29, %s79_s29 }
  0x60   :  { %p21717_p1 = scmp.ne.s32.totalorder %s79_s29, %s21716_s21  ;;  %p21722_p3 = scmp.lt.s32.totalorder %s21716_s21, %s21716_s21 }
  0x62   :  { %p21723_p4 = por %p21722_p3, %p21721_p2 }
  0x64   :  { %p21724_p5 = pnand %p21723_p4, %p21717_p1 }
  0x66   :  { %21727 = shalt.err (!%p21724_p5)
}
  0x67   :  { %81 = dma.hbm_to_vmem [thread:$0]  %s22355_s5, 32, %s79_s29, [#allocation12]  }
  0x68   :  { %21728 = dma.done.wait [#allocation4], 1024  }
  0x69   :  { %21729 = vsyncadd [#allocation4], 4294966272 }
  0x6a   :  { %21730 = dma.done.wait [#allocation6], 262208  }
  0x6b   :  { %21731 = vsyncadd [#allocation6], 4294705088 }
  0x6c   :  { %21732 = dma.done.wait [#allocation9], 8224  }
  0x6d   :  { %21733 = vsyncadd [#allocation9], 4294959072 }
  0x6e   :  { %21734 = dma.done.wait [#allocation12], 32  }
  0x6f   :  { %21735 = vsyncadd [#allocation12], 4294967264  ;;  %v18414_v1 = vld [vmem:[#allocation5 + $0x4] ss:$16 sps:$4 sm:$0xff]   ;;  %v18418_v3 = vld [vmem:[#allocation5] ss:$16 sps:$4 sm:$0xff]   ;;  %v2160_v37 = vlaneseq }
  0x70   :  { %v18416_v2 = vld [vmem:[#allocation5 + $0x204] ss:$16 sps:$4 sm:$0xff]   ;;  %12884 = vmatprep.subr.bf16.mxu1 %v18414_v1  ;;  %v18419_v4 = vld [vmem:[#allocation5 + $0x200] ss:$16 sps:$4 sm:$0xff]   ;;  %v21746_v38 = vmov 1966171168  }
  0x71   :  { %12925 = vmatprep.subr.bf16.mxu0 %v18416_v2  ;;  %v18420_v5 = vld [vmem:[#allocation5 + $0x24] ss:$16 sps:$4 sm:$0xff]   ;;  %12885 = vmatpush1.bf16.msra.mxu1 %v18418_v3  ;;  %v18424_v7 = vld [vmem:[#allocation5 + $0x20] ss:$16 sps:$4 sm:$0xff]   ;;  %v2190_v39 = vunpack.c.l.s4 %v21746_v38  ;;  %v21862_v43 = vshrl.u32 %v2160_v37, 7  ;;  %vm16010_vm0 = vcmask 1041408  }
  0x72   :  { %12926 = vmatpush1.bf16.msra.mxu0 %v18419_v4  ;;  %v18422_v6 = vld [vmem:[#allocation5 + $0x224] ss:$16 sps:$4 sm:$0xff]   ;;  %12886 = vmatprep.subr.bf16.mxu1 %v18420_v5  ;;  %v18425_v8 = vld [vmem:[#allocation5 + $0x220] ss:$16 sps:$4 sm:$0xff]   ;;  %v18537_v37 = vld [vmem:[#allocation5 + $0x88] ss:$16 sps:$4 sm:$0xff]  }
  0x73   :  { %12927 = vmatprep.subr.bf16.mxu0 %v18422_v6  ;;  %v18426_v9 = vld [vmem:[#allocation5 + $0x44] ss:$16 sps:$4 sm:$0xff]   ;;  %v18430_v11 = vld [vmem:[#allocation5 + $0x40] ss:$16 sps:$4 sm:$0xff]   ;;  %v2191_v44 = vunpack.c.0.s8 %v2190_v39  ;;  %v18545_v39 = vld [vmem:[#allocation5 + $0xac] ss:$16 sps:$4 sm:$0xff]  }
  0x74   :  { %v18428_v10 = vld [vmem:[#allocation5 + $0x244] ss:$16 sps:$4 sm:$0xff]   ;;  %v18431_v12 = vld [vmem:[#allocation5 + $0x240] ss:$16 sps:$4 sm:$0xff]   ;;  %vm16024_vm1 = vcmask 1024  }
  0x75   :  { %12887 = vmatpush1.bf16.msra.mxu1 %v18424_v7  ;;  %v18432_v13 = vld [vmem:[#allocation5 + $0x64] ss:$16 sps:$4 sm:$0xff]   ;;  %v18436_v15 = vld [vmem:[#allocation5 + $0x60] ss:$16 sps:$4 sm:$0xff]   ;;  %v21865_v50 = vsub.s32 %v2191_v44, %v21862_v43  ;;  %v18551_v44 = vld [vmem:[#allocation5 + $0xcc] ss:$16 sps:$4 sm:$0xff]  }
  0x76   :  { %12928 = vmatpush1.bf16.msra.mxu0 %v18425_v8  ;;  %12888 = vmatprep.subr.bf16.mxu1 %v18426_v9  ;;  %v18434_v14 = vld [vmem:[#allocation5 + $0x264] ss:$16 sps:$4 sm:$0xff]   ;;  %v18437_v16 = vld [vmem:[#allocation5 + $0x260] ss:$16 sps:$4 sm:$0xff]  }
  0x77   :  { %12929 = vmatprep.subr.bf16.mxu0 %v18428_v10  ;;  %v18438_v17 = vld [vmem:[#allocation5 + $0x84] ss:$16 sps:$4 sm:$0xff]   ;;  %v18442_v19 = vld [vmem:[#allocation5 + $0x80] ss:$16 sps:$4 sm:$0xff]  }
  0x78   :  { %v18440_v18 = vld [vmem:[#allocation5 + $0x284] ss:$16 sps:$4 sm:$0xff]   ;;  %v18443_v20 = vld [vmem:[#allocation5 + $0x280] ss:$16 sps:$4 sm:$0xff]  }
  0x79   :  { %12889 = vmatpush1.bf16.msra.mxu1 %v18430_v11  ;;  %v18444_v21 = vld [vmem:[#allocation5 + $0xa4] ss:$16 sps:$4 sm:$0xff]   ;;  %v18448_v23 = vld [vmem:[#allocation5 + $0xa0] ss:$16 sps:$4 sm:$0xff]  }
  0x7a   :  { %12930 = vmatpush1.bf16.msra.mxu0 %v18431_v12  ;;  %12890 = vmatprep.subr.bf16.mxu1 %v18432_v13  ;;  %v18446_v22 = vld [vmem:[#allocation5 + $0x2a4] ss:$16 sps:$4 sm:$0xff]   ;;  %v18449_v24 = vld [vmem:[#allocation5 + $0x2a0] ss:$16 sps:$4 sm:$0xff]  }
  0x7b   :  { %12931 = vmatprep.subr.bf16.mxu0 %v18434_v14  ;;  %v18450_v25 = vld [vmem:[#allocation5 + $0xc4] ss:$16 sps:$4 sm:$0xff]   ;;  %v18454_v27 = vld [vmem:[#allocation5 + $0xc0] ss:$16 sps:$4 sm:$0xff]  }
  0x7c   :  { %v18452_v26 = vld [vmem:[#allocation5 + $0x2c4] ss:$16 sps:$4 sm:$0xff]   ;;  %v18455_v28 = vld [vmem:[#allocation5 + $0x2c0] ss:$16 sps:$4 sm:$0xff]  }
  0x7d   :  { %12891 = vmatpush1.bf16.msra.mxu1 %v18436_v15  ;;  %v18456_v29 = vld [vmem:[#allocation5 + $0xe4] ss:$16 sps:$4 sm:$0xff]   ;;  %v18460_v31 = vld [vmem:[#allocation5 + $0xe0] ss:$16 sps:$4 sm:$0xff]  }
  0x7e   :  { %12932 = vmatpush1.bf16.msra.mxu0 %v18437_v16  ;;  %12892 = vmatprep.subr.bf16.mxu1 %v18438_v17  ;;  %v18458_v30 = vld [vmem:[#allocation5 + $0x2e4] ss:$16 sps:$4 sm:$0xff]   ;;  %v18461_v32 = vld [vmem:[#allocation5 + $0x2e0] ss:$16 sps:$4 sm:$0xff]   ;;  %v18515_v16 = vld [vmem:[#allocation5 + $0xc] ss:$16 sps:$4 sm:$0xff]  }
  0x7f   :  { %12933 = vmatprep.subr.bf16.mxu0 %v18440_v18  ;;  %v18462_v33 = vld [vmem:[#allocation5 + $0x104] ss:$16 sps:$4 sm:$0xff]   ;;  %v18466_v35 = vld [vmem:[#allocation5 + $0x100] ss:$16 sps:$4 sm:$0xff]  }
  0x80   :  { %v18464_v34 = vld [vmem:[#allocation5 + $0x304] ss:$16 sps:$4 sm:$0xff]   ;;  %v18467_v36 = vld [vmem:[#allocation5 + $0x300] ss:$16 sps:$4 sm:$0xff]  }
  0x81   :  { %12893 = vmatpush1.bf16.msra.mxu1 %v18442_v19  ;;  %v18468_v40 = vld [vmem:[#allocation5 + $0x124] ss:$16 sps:$4 sm:$0xff]   ;;  %v18472_v42 = vld [vmem:[#allocation5 + $0x120] ss:$16 sps:$4 sm:$0xff]  }
  0x82   :  { %12934 = vmatpush1.bf16.msra.mxu0 %v18443_v20  ;;  %12894 = vmatprep.subr.bf16.mxu1 %v18444_v21  ;;  %v18470_v41 = vld [vmem:[#allocation5 + $0x324] ss:$16 sps:$4 sm:$0xff]   ;;  %v18473_v45 = vld [vmem:[#allocation5 + $0x320] ss:$16 sps:$4 sm:$0xff]   ;;  %v18513_v20 = vld [vmem:[#allocation5 + $0x8] ss:$16 sps:$4 sm:$0xff]  }
  0x83   :  { %12935 = vmatprep.subr.bf16.mxu0 %v18446_v22  ;;  %v18474_v46 = vld [vmem:[#allocation5 + $0x144] ss:$16 sps:$4 sm:$0xff]   ;;  %v18478_v48 = vld [vmem:[#allocation5 + $0x140] ss:$16 sps:$4 sm:$0xff]   ;;  %v18521_v22 = vld [vmem:[#allocation5 + $0x2c] ss:$16 sps:$4 sm:$0xff]  }
  0x84   :  { %v18476_v47 = vld [vmem:[#allocation5 + $0x344] ss:$16 sps:$4 sm:$0xff]   ;;  %v18479_v49 = vld [vmem:[#allocation5 + $0x340] ss:$16 sps:$4 sm:$0xff]  }
  0x85   :  { %12895 = vmatpush1.bf16.msra.mxu1 %v18448_v23  ;;  %v18480_v51 = vld [vmem:[#allocation5 + $0x164] ss:$16 sps:$4 sm:$0xff]   ;;  %v18484_v54 = vld [vmem:[#allocation5 + $0x160] ss:$16 sps:$4 sm:$0xff]  }
  0x86   :  { %12936 = vmatpush1.bf16.msra.mxu0 %v18449_v24  ;;  %12896 = vmatprep.subr.bf16.mxu1 %v18450_v25  ;;  %v18482_v52 = vld [vmem:[#allocation5 + $0x364] ss:$16 sps:$4 sm:$0xff]   ;;  %v18485_v56 = vld [vmem:[#allocation5 + $0x360] ss:$16 sps:$4 sm:$0xff]   ;;  %v18519_v25 = vld [vmem:[#allocation5 + $0x28] ss:$16 sps:$4 sm:$0xff]  }
  0x87   :  { %12937 = vmatprep.subr.bf16.mxu0 %v18452_v26  ;;  %v102_v53 = vld [vmem:[#allocation3] sm:$0xff] }
  0x88   :  { %v2195_v55 = vrot.slane %v102_v53, %v21865_v50  ;;  %v18486_v57 = vld [vmem:[#allocation5 + $0x184] ss:$16 sps:$4 sm:$0xff]   ;;  %v18490_v60 = vld [vmem:[#allocation5 + $0x180] ss:$16 sps:$4 sm:$0xff]   ;;  %v2188_v6 = vcombine.high %v102_v53, %v102_v53  ;;  %v18563_v53 = vld [vmem:[#allocation5 + $0x10c] ss:$16 sps:$4 sm:$0xff]  }
  0x89   :  { %12897 = vmatpush1.bf16.msra.mxu1 %v18454_v27  ;;  %v18488_v58 = vld [vmem:[#allocation5 + $0x384] ss:$16 sps:$4 sm:$0xff]   ;;  %v18491_v62 = vld [vmem:[#allocation5 + $0x380] ss:$16 sps:$4 sm:$0xff]   ;;  %v18527_v27 = vld [vmem:[#allocation5 + $0x4c] ss:$16 sps:$4 sm:$0xff]  }
  0x8a   :  { %12938 = vmatpush1.bf16.msra.mxu0 %v18455_v28  ;;  %12898 = vmatprep.subr.bf16.mxu1 %v18456_v29  ;;  %v2203_v59 = vcombine.high %v2195_v55, %v2195_v55  ;;  %v18492_v63 = vld [vmem:[#allocation5 + $0x1a4] ss:$16 sps:$4 sm:$0xff]   ;;  %v18496_v2 = vld [vmem:[#allocation5 + $0x1a0] ss:$16 sps:$4 sm:$0xff]   ;;  %v21873_v11 = vrot.slane %v2188_v6, %v21865_v50  ;;  %v21876_v13 = vrot.slane %v2195_v55, %v21865_v50  ;;  %v18525_v29 = vld [vmem:[#allocation5 + $0x48] ss:$16 sps:$4 sm:$0xff]  }
  0x8b   :  { %12939 = vmatprep.subr.bf16.mxu0 %v18458_v30  ;;  %v18494_v0 = vld [vmem:[#allocation5 + $0x3a4] ss:$16 sps:$4 sm:$0xff]   ;;  %v18497_v3 = vld [vmem:[#allocation5 + $0x3a0] ss:$16 sps:$4 sm:$0xff]   ;;  %v18561_v55 = vld [vmem:[#allocation5 + $0x108] ss:$16 sps:$4 sm:$0xff]  }
  0x8c   :  { %v2225_v61 = vrot.slane %v2203_v59, %v21865_v50  ;;  %v18498_v4 = vld [vmem:[#allocation5 + $0x1c4] ss:$16 sps:$4 sm:$0xff]   ;;  %v18502_v7 = vld [vmem:[#allocation5 + $0x1c0] ss:$16 sps:$4 sm:$0xff]   ;;  %v2204_v17 = vcombine.high %v21873_v11, %v21873_v11  ;;  %v21882_v19 = vcombine.high %v21876_v13, %v21876_v13  ;;  %v18567_v59 = vld [vmem:[#allocation5 + $0x128] ss:$16 sps:$4 sm:$0xff]  }
  0x8d   :  { %12899 = vmatpush1.bf16.msra.mxu1 %v18460_v31  ;;  %v18500_v5 = vld [vmem:[#allocation5 + $0x3c4] ss:$16 sps:$4 sm:$0xff]   ;;  %v18503_v8 = vld [vmem:[#allocation5 + $0x3c0] ss:$16 sps:$4 sm:$0xff]   ;;  %v18533_v31 = vld [vmem:[#allocation5 + $0x6c] ss:$16 sps:$4 sm:$0xff]  }
  0x8e   :  { %12940 = vmatpush1.bf16.msra.mxu0 %v18461_v32  ;;  %12900 = vmatprep.subr.bf16.mxu1 %v18462_v33  ;;  %v21869_v1 = vcombine.high %v2225_v61, %v2225_v61  ;;  %v18504_v9 = vld [vmem:[#allocation5 + $0x1e4] ss:$16 sps:$4 sm:$0xff]   ;;  %v18508_v12 = vld [vmem:[#allocation5 + $0x1e0] ss:$16 sps:$4 sm:$0xff]   ;;  %v21885_v23 = vrot.slane %v2204_v17, %v21865_v50  ;;  %v18531_v33 = vld [vmem:[#allocation5 + $0x68] ss:$16 sps:$4 sm:$0xff]  }
  0x8f   :  { %12941 = vmatprep.subr.bf16.mxu0 %v18464_v34  ;;  %12916 = vmatprep.mubr.bf16.mxu1 %v2225_v61  ;;  %v18506_v10 = vld [vmem:[#allocation5 + $0x3e4] ss:$16 sps:$4 sm:$0xff]   ;;  %v18509_v14 = vld [vmem:[#allocation5 + $0x3e0] ss:$16 sps:$4 sm:$0xff]   ;;  %v18587_v6 = vld [vmem:[#allocation5 + $0x18c] ss:$16 sps:$4 sm:$0xff]  }
  0x90   :  { %12957 = vmatprep.mubr.bf16.mxu0 %v21869_v1  ;;  %v18512_v15 = vld [vmem:[#allocation5 + $0x404] ss:$16 sps:$4 sm:$0xff]   ;;  %v18510_v18 = vld [vmem:[#allocation5 + $0x400] ss:$16 sps:$4 sm:$0xff]  }
  0x91   :  { %12901 = vmatpush1.bf16.msra.mxu1 %v18466_v35  ;;  %v18518_v21 = vld [vmem:[#allocation5 + $0x424] ss:$16 sps:$4 sm:$0xff]   ;;  %v18516_v24 = vld [vmem:[#allocation5 + $0x420] ss:$16 sps:$4 sm:$0xff]   ;;  %v18539_v35 = vld [vmem:[#allocation5 + $0x8c] ss:$16 sps:$4 sm:$0xff]  }
  0x92   :  { %12942 = vmatpush1.bf16.msra.mxu0 %v18467_v36  ;;  %12902 = vmatprep.subr.bf16.mxu1 %v18468_v40  ;;  %v18524_v26 = vld [vmem:[#allocation5 + $0x444] ss:$16 sps:$4 sm:$0xff]   ;;  %v18522_v28 = vld [vmem:[#allocation5 + $0x440] ss:$16 sps:$4 sm:$0xff]  }
  0x93   :  { %12943 = vmatprep.subr.bf16.mxu0 %v18470_v41  ;;  %v18530_v30 = vld [vmem:[#allocation5 + $0x464] ss:$16 sps:$4 sm:$0xff]   ;;  %v18528_v32 = vld [vmem:[#allocation5 + $0x460] ss:$16 sps:$4 sm:$0xff]   ;;  %v18543_v41 = vld [vmem:[#allocation5 + $0xa8] ss:$16 sps:$4 sm:$0xff]  }
  0x94   :  { %v18536_v34 = vld [vmem:[#allocation5 + $0x484] ss:$16 sps:$4 sm:$0xff]   ;;  %v18534_v36 = vld [vmem:[#allocation5 + $0x480] ss:$16 sps:$4 sm:$0xff]  }
  0x95   :  { %12903 = vmatpush1.bf16.msra.mxu1 %v18472_v42  ;;  %v18542_v38 = vld [vmem:[#allocation5 + $0x4a4] ss:$16 sps:$4 sm:$0xff]   ;;  %v18540_v40 = vld [vmem:[#allocation5 + $0x4a0] ss:$16 sps:$4 sm:$0xff]  }
  0x96   :  { %12944 = vmatpush1.bf16.msra.mxu0 %v18473_v45  ;;  %12904 = vmatprep.subr.bf16.mxu1 %v18474_v46  ;;  %v18548_v42 = vld [vmem:[#allocation5 + $0x4c4] ss:$16 sps:$4 sm:$0xff]   ;;  %v18546_v45 = vld [vmem:[#allocation5 + $0x4c0] ss:$16 sps:$4 sm:$0xff]   ;;  %v18549_v46 = vld [vmem:[#allocation5 + $0xc8] ss:$16 sps:$4 sm:$0xff]  }
  0x97   :  { %12945 = vmatprep.subr.bf16.mxu0 %v18476_v47  ;;  %v18554_v47 = vld [vmem:[#allocation5 + $0x4e4] ss:$16 sps:$4 sm:$0xff]   ;;  %v18594_v17 = vld [vmem:[#allocation5 + $0x5c0] ss:$16 sps:$4 sm:$0xff]  }
  0x99   :  { %12905 = vmatpush1.bf16.msra.mxu1 %v18478_v48  ;;  %v18557_v48 = vld [vmem:[#allocation5 + $0xec] ss:$16 sps:$4 sm:$0xff]  }
  0x9a   :  { %12946 = vmatpush1.bf16.msra.mxu0 %v18479_v49  ;;  %12906 = vmatprep.subr.bf16.mxu1 %v18480_v51  ;;  %v18552_v49 = vld [vmem:[#allocation5 + $0x4e0] ss:$16 sps:$4 sm:$0xff]   ;;  %v18555_v51 = vld [vmem:[#allocation5 + $0xe8] ss:$16 sps:$4 sm:$0xff]  }
  0x9b   :  { %12947 = vmatprep.subr.bf16.mxu0 %v18482_v52  ;;  %v18560_v52 = vld [vmem:[#allocation5 + $0x504] ss:$16 sps:$4 sm:$0xff]  }
  0x9d   :  { %12907 = vmatpush1.bf16.msra.mxu1 %v18484_v54  ;;  %v18558_v54 = vld [vmem:[#allocation5 + $0x500] ss:$16 sps:$4 sm:$0xff]  }
  0x9e   :  { %12948 = vmatpush1.bf16.msra.mxu0 %v18485_v56  ;;  %12908 = vmatprep.subr.bf16.mxu1 %v18486_v57  ;;  %v18566_v56 = vld [vmem:[#allocation5 + $0x524] ss:$16 sps:$4 sm:$0xff]   ;;  %v18569_v57 = vld [vmem:[#allocation5 + $0x12c] ss:$16 sps:$4 sm:$0xff]  }
  0x9f   :  { %12949 = vmatprep.subr.bf16.mxu0 %v18488_v58  ;;  %v18564_v58 = vld [vmem:[#allocation5 + $0x520] ss:$16 sps:$4 sm:$0xff]  }
  0xa1   :  { %12909 = vmatpush1.bf16.msra.mxu1 %v18490_v60  ;;  %v18572_v60 = vld [vmem:[#allocation5 + $0x544] ss:$16 sps:$4 sm:$0xff]  }
  0xa2   :  { %12950 = vmatpush1.bf16.msra.mxu0 %v18491_v62  ;;  %12910 = vmatprep.subr.bf16.mxu1 %v18492_v63  ;;  %v18570_v62 = vld [vmem:[#allocation5 + $0x540] ss:$16 sps:$4 sm:$0xff]   ;;  %v18573_v63 = vld [vmem:[#allocation5 + $0x148] ss:$16 sps:$4 sm:$0xff]  }
  0xa3   :  { %12951 = vmatprep.subr.bf16.mxu0 %v18494_v0  ;;  %v18578_v0 = vld [vmem:[#allocation5 + $0x564] ss:$16 sps:$4 sm:$0xff]  }
  0xa5   :  { %12911 = vmatpush1.bf16.msra.mxu1 %v18496_v2  ;;  %v18581_v2 = vld [vmem:[#allocation5 + $0x16c] ss:$16 sps:$4 sm:$0xff]  }
  0xa6   :  { %12952 = vmatpush1.bf16.msra.mxu0 %v18497_v3  ;;  %12912 = vmatprep.subr.bf16.mxu1 %v18498_v4  ;;  %v18576_v3 = vld [vmem:[#allocation5 + $0x560] ss:$16 sps:$4 sm:$0xff]   ;;  %v18579_v4 = vld [vmem:[#allocation5 + $0x168] ss:$16 sps:$4 sm:$0xff]  }
  0xa7   :  { %12953 = vmatprep.subr.bf16.mxu0 %v18500_v5  ;;  %v18584_v5 = vld [vmem:[#allocation5 + $0x584] ss:$16 sps:$4 sm:$0xff]  }
  0xa9   :  { %12913 = vmatpush1.bf16.msra.mxu1 %v18502_v7  ;;  %v18582_v7 = vld [vmem:[#allocation5 + $0x580] ss:$16 sps:$4 sm:$0xff]  }
  0xaa   :  { %12954 = vmatpush1.bf16.msra.mxu0 %v18503_v8  ;;  %12914 = vmatprep.subr.bf16.mxu1 %v18504_v9  ;;  %v18585_v8 = vld [vmem:[#allocation5 + $0x188] ss:$16 sps:$4 sm:$0xff]   ;;  %v18590_v9 = vld [vmem:[#allocation5 + $0x5a4] ss:$16 sps:$4 sm:$0xff]  }
  0xab   :  { %12955 = vmatprep.subr.bf16.mxu0 %v18506_v10  ;;  %v18593_v10 = vld [vmem:[#allocation5 + $0x1ac] ss:$16 sps:$4 sm:$0xff]  }
  0xad   :  { %12915 = vmatpush1.bf16.msra.mxu1 %v18508_v12  ;;  %v18588_v12 = vld [vmem:[#allocation5 + $0x5a0] ss:$16 sps:$4 sm:$0xff]  }
  0xae   :  { %12956 = vmatpush1.bf16.msra.mxu0 %v18509_v14  ;;  %14196 = vmatprep.subr.bf16.mxu1 %v18515_v16  ;;  %v18591_v14 = vld [vmem:[#allocation5 + $0x1a8] ss:$16 sps:$4 sm:$0xff]   ;;  %v18599_v16 = vld [vmem:[#allocation5 + $0x1cc] ss:$16 sps:$4 sm:$0xff]  }
  0xaf   :  { %12966 = vmatprep.subr.bf16.mxu0 %v18512_v15  ;;  %v18596_v15 = vld [vmem:[#allocation5 + $0x5c4] ss:$16 sps:$4 sm:$0xff]  }
  0xb0   :  { %12917 = vmatmul.mubr.bf16.vlgmr.msra.gmra.mrb[0].mxu1 %v21876_v13 }
  0xb1   :  { %12958 = vmatmul.mubr.bf16.vlgmr.msra.gmra.mrb[0].mxu0 %v21882_v19  ;;  %14197 = vmatpush1.bf16.msra.mxu1 %v18513_v20  ;;  %v18602_v20 = vld [vmem:[#allocation5 + $0x5e4] ss:$16 sps:$4 sm:$0xff]  }
  0xb2   :  { %12967 = vmatpush1.bf16.msra.mxu0 %v18510_v18  ;;  %14198 = vmatprep.subr.bf16.mxu1 %v18521_v22  ;;  %v18597_v18 = vld [vmem:[#allocation5 + $0x1c8] ss:$16 sps:$4 sm:$0xff]   ;;  %v18600_v22 = vld [vmem:[#allocation5 + $0x5e0] ss:$16 sps:$4 sm:$0xff]  }
  0xb3   :  { %12968 = vmatprep.subr.bf16.mxu0 %v18518_v21  ;;  %12998 = vmatprep.mubr.bf16.mxu0 %v21885_v23  ;;  %v18605_v21 = vld [vmem:[#allocation5 + $0x1ec] ss:$16 sps:$4 sm:$0xff]  }
  0xb4   :  { %14228 = vmatprep.mubr.bf16.mxu1 %v2225_v61  ;;  %v18575_v61 = vld [vmem:[#allocation5 + $0x14c] ss:$16 sps:$4 sm:$0xff]  }
  0xb5   :  { %14199 = vmatpush1.bf16.msra.mxu1 %v18519_v25  ;;  %v18609_v25 = vld [vmem:[#allocation5 + $0x604] ss:$16 sps:$4 sm:$0xff]  }
  0xb6   :  { %12969 = vmatpush1.bf16.msra.mxu0 %v18516_v24  ;;  %14200 = vmatprep.subr.bf16.mxu1 %v18527_v27  ;;  %v18603_v24 = vld [vmem:[#allocation5 + $0x1e8] ss:$16 sps:$4 sm:$0xff]   ;;  %v18607_v27 = vld [vmem:[#allocation5 + $0x600] ss:$16 sps:$4 sm:$0xff]  }
  0xb7   :  { %12970 = vmatprep.subr.bf16.mxu0 %v18524_v26  ;;  %v18612_v26 = vld [vmem:[#allocation5 + $0x20c] ss:$16 sps:$4 sm:$0xff]  }
  0xb9   :  { %14201 = vmatpush1.bf16.msra.mxu1 %v18525_v29  ;;  %v18610_v29 = vld [vmem:[#allocation5 + $0x208] ss:$16 sps:$4 sm:$0xff]  }
  0xba   :  { %12971 = vmatpush1.bf16.msra.mxu0 %v18522_v28  ;;  %14202 = vmatprep.subr.bf16.mxu1 %v18533_v31  ;;  %v21892_v28 = vrot.slane %v21873_v11, %v21865_v50  ;;  %v18618_v31 = vld [vmem:[#allocation5 + $0x22c] ss:$16 sps:$4 sm:$0xff]   ;;  %v18616_v11 = vld [vmem:[#allocation5 + $0x228] ss:$16 sps:$4 sm:$0xff]  }
  0xbb   :  { %12972 = vmatprep.subr.bf16.mxu0 %v18530_v30  ;;  %v18615_v30 = vld [vmem:[#allocation5 + $0x624] ss:$16 sps:$4 sm:$0xff]  }
  0xbd   :  { %14203 = vmatpush1.bf16.msra.mxu1 %v18531_v33  ;;  %v18613_v33 = vld [vmem:[#allocation5 + $0x620] ss:$16 sps:$4 sm:$0xff]  }
  0xbe   :  { %12973 = vmatpush1.bf16.msra.mxu0 %v18528_v32  ;;  %14204 = vmatprep.subr.bf16.mxu1 %v18539_v35  ;;  %v21896_v32 = vcombine.high %v21885_v23, %v21885_v23  ;;  %v18624_v35 = vld [vmem:[#allocation5 + $0x24c] ss:$16 sps:$4 sm:$0xff]  }
  0xbf   :  { %12974 = vmatprep.subr.bf16.mxu0 %v18536_v34  ;;  %v18621_v34 = vld [vmem:[#allocation5 + $0x644] ss:$16 sps:$4 sm:$0xff]  }
  0xc1   :  { %14205 = vmatpush1.bf16.msra.mxu1 %v18537_v37  ;;  %v18622_v37 = vld [vmem:[#allocation5 + $0x248] ss:$16 sps:$4 sm:$0xff]  }
  0xc2   :  { %12975 = vmatpush1.bf16.msra.mxu0 %v18534_v36  ;;  %14206 = vmatprep.subr.bf16.mxu1 %v18545_v39  ;;  %v18619_v36 = vld [vmem:[#allocation5 + $0x640] ss:$16 sps:$4 sm:$0xff]  }
  0xc3   :  { %12976 = vmatprep.subr.bf16.mxu0 %v18542_v38  ;;  %v18627_v38 = vld [vmem:[#allocation5 + $0x664] ss:$16 sps:$4 sm:$0xff]   ;;  %v18625_v39 = vld [vmem:[#allocation5 + $0x660] ss:$16 sps:$4 sm:$0xff]  }
  0xc5   :  { %14207 = vmatpush1.bf16.msra.mxu1 %v18543_v41  ;;  %v18633_v41 = vld [vmem:[#allocation5 + $0x684] ss:$16 sps:$4 sm:$0xff]  }
  0xc6   :  { %12977 = vmatpush1.bf16.msra.mxu0 %v18540_v40  ;;  %14208 = vmatprep.subr.bf16.mxu1 %v18551_v44  ;;  %v18628_v40 = vld [vmem:[#allocation5 + $0x268] ss:$16 sps:$4 sm:$0xff]   ;;  %v18631_v44 = vld [vmem:[#allocation5 + $0x680] ss:$16 sps:$4 sm:$0xff]  }
  0xc7   :  { %12978 = vmatprep.subr.bf16.mxu0 %v18548_v42  ;;  %v18636_v42 = vld [vmem:[#allocation5 + $0x28c] ss:$16 sps:$4 sm:$0xff]  }
  0xc9   :  { %14209 = vmatpush1.bf16.msra.mxu1 %v18549_v46  ;;  %v18642_v46 = vld [vmem:[#allocation5 + $0x2ac] ss:$16 sps:$4 sm:$0xff]  }
  0xca   :  { %12979 = vmatpush1.bf16.msra.mxu0 %v18546_v45  ;;  %14210 = vmatprep.subr.bf16.mxu1 %v18557_v48  ;;  %v18639_v45 = vld [vmem:[#allocation5 + $0x6a4] ss:$16 sps:$4 sm:$0xff]   ;;  %v18640_v48 = vld [vmem:[#allocation5 + $0x2a8] ss:$16 sps:$4 sm:$0xff]  }
  0xcb   :  { %12980 = vmatprep.subr.bf16.mxu0 %v18554_v47  ;;  %v18637_v47 = vld [vmem:[#allocation5 + $0x6a0] ss:$16 sps:$4 sm:$0xff]  }
  0xcd   :  { %14211 = vmatpush1.bf16.msra.mxu1 %v18555_v51  ;;  %v18648_v51 = vld [vmem:[#allocation5 + $0x2cc] ss:$16 sps:$4 sm:$0xff]  }
  0xce   :  { %12981 = vmatpush1.bf16.msra.mxu0 %v18552_v49  ;;  %14212 = vmatprep.subr.bf16.mxu1 %v18563_v53  ;;  %v18645_v49 = vld [vmem:[#allocation5 + $0x6c4] ss:$16 sps:$4 sm:$0xff]   ;;  %v18646_v53 = vld [vmem:[#allocation5 + $0x2c8] ss:$16 sps:$4 sm:$0xff]  }
  0xcf   :  { %12982 = vmatprep.subr.bf16.mxu0 %v18560_v52  ;;  %v18643_v52 = vld [vmem:[#allocation5 + $0x6c0] ss:$16 sps:$4 sm:$0xff]  }
  0xd1   :  { %14213 = vmatpush1.bf16.msra.mxu1 %v18561_v55  ;;  %v18654_v55 = vld [vmem:[#allocation5 + $0x2ec] ss:$16 sps:$4 sm:$0xff]  }
  0xd2   :  { %12983 = vmatpush1.bf16.msra.mxu0 %v18558_v54  ;;  %14214 = vmatprep.subr.bf16.mxu1 %v18569_v57  ;;  %v18651_v54 = vld [vmem:[#allocation5 + $0x6e4] ss:$16 sps:$4 sm:$0xff]   ;;  %v18652_v57 = vld [vmem:[#allocation5 + $0x2e8] ss:$16 sps:$4 sm:$0xff]  }
  0xd3   :  { %12984 = vmatprep.subr.bf16.mxu0 %v18566_v56  ;;  %v18649_v56 = vld [vmem:[#allocation5 + $0x6e0] ss:$16 sps:$4 sm:$0xff]  }
  0xd5   :  { %14215 = vmatpush1.bf16.msra.mxu1 %v18567_v59  ;;  %v18660_v59 = vld [vmem:[#allocation5 + $0x30c] ss:$16 sps:$4 sm:$0xff]  }
  0xd6   :  { %12985 = vmatpush1.bf16.msra.mxu0 %v18564_v58  ;;  %14216 = vmatprep.subr.bf16.mxu1 %v18575_v61  ;;  %v18657_v58 = vld [vmem:[#allocation5 + $0x704] ss:$16 sps:$4 sm:$0xff]   ;;  %v18658_v61 = vld [vmem:[#allocation5 + $0x308] ss:$16 sps:$4 sm:$0xff]  }
  0xd7   :  { %12986 = vmatprep.subr.bf16.mxu0 %v18572_v60  ;;  %v18655_v60 = vld [vmem:[#allocation5 + $0x700] ss:$16 sps:$4 sm:$0xff]  }
  0xd9   :  { %14217 = vmatpush1.bf16.msra.mxu1 %v18573_v63  ;;  %v18666_v63 = vld [vmem:[#allocation5 + $0x32c] ss:$16 sps:$4 sm:$0xff]  }
  0xda   :  { %12987 = vmatpush1.bf16.msra.mxu0 %v18570_v62  ;;  %14218 = vmatprep.subr.bf16.mxu1 %v18581_v2  ;;  %v18663_v62 = vld [vmem:[#allocation5 + $0x724] ss:$16 sps:$4 sm:$0xff]   ;;  %v18664_v2 = vld [vmem:[#allocation5 + $0x328] ss:$16 sps:$4 sm:$0xff]  }
  0xdb   :  { %12988 = vmatprep.subr.bf16.mxu0 %v18578_v0  ;;  %v18661_v0 = vld [vmem:[#allocation5 + $0x720] ss:$16 sps:$4 sm:$0xff]  }
  0xdd   :  { %14219 = vmatpush1.bf16.msra.mxu1 %v18579_v4  ;;  %v18672_v4 = vld [vmem:[#allocation5 + $0x34c] ss:$16 sps:$4 sm:$0xff]  }
  0xde   :  { %12989 = vmatpush1.bf16.msra.mxu0 %v18576_v3  ;;  %14220 = vmatprep.subr.bf16.mxu1 %v18587_v6  ;;  %v18669_v3 = vld [vmem:[#allocation5 + $0x744] ss:$16 sps:$4 sm:$0xff]   ;;  %v18670_v6 = vld [vmem:[#allocation5 + $0x348] ss:$16 sps:$4 sm:$0xff]  }
  0xdf   :  { %12990 = vmatprep.subr.bf16.mxu0 %v18584_v5  ;;  %v18667_v5 = vld [vmem:[#allocation5 + $0x740] ss:$16 sps:$4 sm:$0xff]  }
  0xe1   :  { %14221 = vmatpush1.bf16.msra.mxu1 %v18585_v8  ;;  %v18678_v8 = vld [vmem:[#allocation5 + $0x36c] ss:$16 sps:$4 sm:$0xff]  }
  0xe2   :  { %12991 = vmatpush1.bf16.msra.mxu0 %v18582_v7  ;;  %14222 = vmatprep.subr.bf16.mxu1 %v18593_v10  ;;  %v18675_v7 = vld [vmem:[#allocation5 + $0x764] ss:$16 sps:$4 sm:$0xff]   ;;  %v18676_v10 = vld [vmem:[#allocation5 + $0x368] ss:$16 sps:$4 sm:$0xff]  }
  0xe3   :  { %12992 = vmatprep.subr.bf16.mxu0 %v18590_v9  ;;  %v18673_v9 = vld [vmem:[#allocation5 + $0x760] ss:$16 sps:$4 sm:$0xff]  }
  0xe5   :  { %14223 = vmatpush1.bf16.msra.mxu1 %v18591_v14  ;;  %v18684_v14 = vld [vmem:[#allocation5 + $0x38c] ss:$16 sps:$4 sm:$0xff]  }
  0xe6   :  { %12993 = vmatpush1.bf16.msra.mxu0 %v18588_v12  ;;  %14224 = vmatprep.subr.bf16.mxu1 %v18599_v16  ;;  %v18681_v12 = vld [vmem:[#allocation5 + $0x784] ss:$16 sps:$4 sm:$0xff]   ;;  %v18682_v16 = vld [vmem:[#allocation5 + $0x388] ss:$16 sps:$4 sm:$0xff]  }
  0xe7   :  { %12994 = vmatprep.subr.bf16.mxu0 %v18596_v15  ;;  %v18679_v15 = vld [vmem:[#allocation5 + $0x780] ss:$16 sps:$4 sm:$0xff]  }
  0xe9   :  { %14225 = vmatpush1.bf16.msra.mxu1 %v18597_v18  ;;  %v18690_v18 = vld [vmem:[#allocation5 + $0x3ac] ss:$16 sps:$4 sm:$0xff]  }
  0xea   :  { %12995 = vmatpush1.bf16.msra.mxu0 %v18594_v17  ;;  %14226 = vmatprep.subr.bf16.mxu1 %v18605_v21  ;;  %v18687_v17 = vld [vmem:[#allocation5 + $0x7a4] ss:$16 sps:$4 sm:$0xff]   ;;  %v18688_v21 = vld [vmem:[#allocation5 + $0x3a8] ss:$16 sps:$4 sm:$0xff]  }
  0xeb   :  { %12996 = vmatprep.subr.bf16.mxu0 %v18602_v20  ;;  %v18685_v20 = vld [vmem:[#allocation5 + $0x7a0] ss:$16 sps:$4 sm:$0xff]  }
  0xed   :  { %14227 = vmatpush1.bf16.msra.mxu1 %v18603_v24  ;;  %v18696_v24 = vld [vmem:[#allocation5 + $0x3cc] ss:$16 sps:$4 sm:$0xff]  }
  0xee   :  { %12997 = vmatpush1.bf16.msra.mxu0 %v18600_v22  ;;  %14237 = vmatprep.subr.bf16.mxu1 %v18612_v26  ;;  %v18693_v22 = vld [vmem:[#allocation5 + $0x7c4] ss:$16 sps:$4 sm:$0xff]   ;;  %v18691_v26 = vld [vmem:[#allocation5 + $0x7c0] ss:$16 sps:$4 sm:$0xff]  }
  0xef   :  { %13007 = vmatprep.subr.bf16.mxu0 %v18609_v25  ;;  %v21902_v25 = vld [vmem:[#allocation3 + $0x8] sm:$0xff] }
  0xf0   :  { %14229 = vmatmul.mubr.bf16.vlgmr.msra.gmra.mrb[4].mxu1 %v21876_v13  ;;  %v18630_v13 = vld [vmem:[#allocation5 + $0x26c] ss:$16 sps:$4 sm:$0xff]  }
  0xf1   :  { %12999 = vmatmul.mubr.bf16.vlgmr.msra.gmra.mrb[0].mxu0 %v21892_v28  ;;  %14238 = vmatpush1.bf16.msra.mxu1 %v18610_v29  ;;  %v18699_v29 = vld [vmem:[#allocation5 + $0x7e4] ss:$16 sps:$4 sm:$0xff]  }
  0xf2   :  { %13008 = vmatpush1.bf16.msra.mxu0 %v18607_v27  ;;  %14239 = vmatprep.subr.bf16.mxu1 %v18618_v31  ;;  %v18694_v27 = vld [vmem:[#allocation5 + $0x3c8] ss:$16 sps:$4 sm:$0xff]   ;;  %v21906_v31 = vrot.slane %v21902_v25, %v21865_v50 }
  0xf3   :  { %13009 = vmatprep.subr.bf16.mxu0 %v18615_v30  ;;  %13039 = vmatprep.mubr.bf16.mxu0 %v21896_v32  ;;  %v18702_v30 = vld [vmem:[#allocation5 + $0x3ec] ss:$16 sps:$4 sm:$0xff]  }
  0xf4   :  { %14269 = vmatprep.mubr.bf16.mxu1 %v21869_v1  ;;  %v18634_v1 = vld [vmem:[#allocation5 + $0x288] ss:$16 sps:$4 sm:$0xff]  }
  0xf5   :  { %14240 = vmatpush1.bf16.msra.mxu1 %v18616_v11  ;;  %v18700_v11 = vld [vmem:[#allocation5 + $0x3e8] ss:$16 sps:$4 sm:$0xff]  }
  0xf6   :  { %13010 = vmatpush1.bf16.msra.mxu0 %v18613_v33  ;;  %14241 = vmatprep.subr.bf16.mxu1 %v18624_v35  ;;  %v18697_v33 = vld [vmem:[#allocation5 + $0x7e0] ss:$16 sps:$4 sm:$0xff]   ;;  %v18708_v35 = vld [vmem:[#allocation5 + $0x40c] ss:$16 sps:$4 sm:$0xff]  }
  0xf7   :  { %13011 = vmatprep.subr.bf16.mxu0 %v18621_v34  ;;  %v18705_v34 = vld [vmem:[#allocation5 + $0x804] ss:$16 sps:$4 sm:$0xff]  }
  0xf9   :  { %14242 = vmatpush1.bf16.msra.mxu1 %v18622_v37  ;;  %v18703_v37 = vld [vmem:[#allocation5 + $0x800] ss:$16 sps:$4 sm:$0xff]  }
  0xfa   :  { %13012 = vmatpush1.bf16.msra.mxu0 %v18619_v36  ;;  %14243 = vmatprep.subr.bf16.mxu1 %v18630_v13  ;;  %v2252_v36 = vcombine.high %v21906_v31, %v21906_v31  ;;  %v18706_v13 = vld [vmem:[#allocation5 + $0x408] ss:$16 sps:$4 sm:$0xff]  }
  0xfb   :  { %13013 = vmatprep.subr.bf16.mxu0 %v18627_v38  ;;  %v21912_v38 = vcombine.high %v21892_v28, %v21892_v28 }
  0xfd   :  { %14244 = vmatpush1.bf16.msra.mxu1 %v18628_v40  ;;  %v18714_v40 = vld [vmem:[#allocation5 + $0x42c] ss:$16 sps:$4 sm:$0xff]  }
  0xfe   :  { %13014 = vmatpush1.bf16.msra.mxu0 %v18625_v39  ;;  %14245 = vmatprep.subr.bf16.mxu1 %v18636_v42  ;;  %v18711_v39 = vld [vmem:[#allocation5 + $0x824] ss:$16 sps:$4 sm:$0xff]   ;;  %v18709_v42 = vld [vmem:[#allocation5 + $0x820] ss:$16 sps:$4 sm:$0xff]  }
  0xff   :  { %13015 = vmatprep.subr.bf16.mxu0 %v18633_v41  ;;  %v21915_v41 = vrot.slane %v2252_v36, %v21865_v50  ;;  %v18792_v36 = vld [vmem:[#allocation5 + $0x5cc] ss:$16 sps:$4 sm:$0xff]  }
 0x101   :  { %14246 = vmatpush1.bf16.msra.mxu1 %v18634_v1  ;;  %v18717_v1 = vld [vmem:[#allocation5 + $0x844] ss:$16 sps:$4 sm:$0xff]  }
 0x102   :  { %13016 = vmatpush1.bf16.msra.mxu0 %v18631_v44  ;;  %14247 = vmatprep.subr.bf16.mxu1 %v18642_v46  ;;  %v18712_v44 = vld [vmem:[#allocation5 + $0x428] ss:$16 sps:$4 sm:$0xff]   ;;  %v18715_v46 = vld [vmem:[#allocation5 + $0x840] ss:$16 sps:$4 sm:$0xff]  }
 0x103   :  { %13017 = vmatprep.subr.bf16.mxu0 %v18639_v45  ;;  %v18720_v45 = vld [vmem:[#allocation5 + $0x44c] ss:$16 sps:$4 sm:$0xff]  }
 0x105   :  { %14248 = vmatpush1.bf16.msra.mxu1 %v18640_v48  ;;  %v18723_v48 = vld [vmem:[#allocation5 + $0x864] ss:$16 sps:$4 sm:$0xff]  }
 0x106   :  { %13018 = vmatpush1.bf16.msra.mxu0 %v18637_v47  ;;  %14249 = vmatprep.subr.bf16.mxu1 %v18648_v51  ;;  %v18718_v47 = vld [vmem:[#allocation5 + $0x448] ss:$16 sps:$4 sm:$0xff]  }
 0x107   :  { %13019 = vmatprep.subr.bf16.mxu0 %v18645_v49  ;;  %v18721_v49 = vld [vmem:[#allocation5 + $0x860] ss:$16 sps:$4 sm:$0xff]   ;;  %v18724_v51 = vld [vmem:[#allocation5 + $0x468] ss:$16 sps:$4 sm:$0xff]  }
 0x109   :  { %14250 = vmatpush1.bf16.msra.mxu1 %v18646_v53  ;;  %v18732_v53 = vld [vmem:[#allocation5 + $0x48c] ss:$16 sps:$4 sm:$0xff]  }
 0x10a   :  { %13020 = vmatpush1.bf16.msra.mxu0 %v18643_v52  ;;  %14251 = vmatprep.subr.bf16.mxu1 %v18654_v55  ;;  %v18729_v52 = vld [vmem:[#allocation5 + $0x884] ss:$16 sps:$4 sm:$0xff]  }
 0x10b   :  { %13021 = vmatprep.subr.bf16.mxu0 %v18651_v54  ;;  %v18727_v54 = vld [vmem:[#allocation5 + $0x880] ss:$16 sps:$4 sm:$0xff]   ;;  %v18735_v55 = vld [vmem:[#allocation5 + $0x8a4] ss:$16 sps:$4 sm:$0xff]  }
 0x10d   :  { %14252 = vmatpush1.bf16.msra.mxu1 %v18652_v57  ;;  %v18733_v57 = vld [vmem:[#allocation5 + $0x8a0] ss:$16 sps:$4 sm:$0xff]  }
 0x10e   :  { %13022 = vmatpush1.bf16.msra.mxu0 %v18649_v56  ;;  %14253 = vmatprep.subr.bf16.mxu1 %v18660_v59  ;;  %v18738_v56 = vld [vmem:[#allocation5 + $0x4ac] ss:$16 sps:$4 sm:$0xff]   ;;  %v18741_v59 = vld [vmem:[#allocation5 + $0x8c4] ss:$16 sps:$4 sm:$0xff]  }
 0x10f   :  { %13023 = vmatprep.subr.bf16.mxu0 %v18657_v58  ;;  %v18736_v58 = vld [vmem:[#allocation5 + $0x4a8] ss:$16 sps:$4 sm:$0xff]  }
 0x111   :  { %14254 = vmatpush1.bf16.msra.mxu1 %v18658_v61  ;;  %v18739_v61 = vld [vmem:[#allocation5 + $0x8c0] ss:$16 sps:$4 sm:$0xff]  }
 0x112   :  { %13024 = vmatpush1.bf16.msra.mxu0 %v18655_v60  ;;  %14255 = vmatprep.subr.bf16.mxu1 %v18666_v63  ;;  %v18744_v60 = vld [vmem:[#allocation5 + $0x4cc] ss:$16 sps:$4 sm:$0xff]   ;;  %v18747_v63 = vld [vmem:[#allocation5 + $0x8e4] ss:$16 sps:$4 sm:$0xff]  }
 0x113   :  { %13025 = vmatprep.subr.bf16.mxu0 %v18663_v62  ;;  %v18742_v62 = vld [vmem:[#allocation5 + $0x4c8] ss:$16 sps:$4 sm:$0xff]  }
 0x115   :  { %14256 = vmatpush1.bf16.msra.mxu1 %v18664_v2  ;;  %v18745_v2 = vld [vmem:[#allocation5 + $0x8e0] ss:$16 sps:$4 sm:$0xff]  }
 0x116   :  { %13026 = vmatpush1.bf16.msra.mxu0 %v18661_v0  ;;  %14257 = vmatprep.subr.bf16.mxu1 %v18672_v4  ;;  %v18750_v0 = vld [vmem:[#allocation5 + $0x4ec] ss:$16 sps:$4 sm:$0xff]   ;;  %v18753_v4 = vld [vmem:[#allocation5 + $0x904] ss:$16 sps:$4 sm:$0xff]  }
 0x117   :  { %13027 = vmatprep.subr.bf16.mxu0 %v18669_v3  ;;  %v18748_v3 = vld [vmem:[#allocation5 + $0x4e8] ss:$16 sps:$4 sm:$0xff]  }
 0x119   :  { %14258 = vmatpush1.bf16.msra.mxu1 %v18670_v6  ;;  %v18751_v6 = vld [vmem:[#allocation5 + $0x900] ss:$16 sps:$4 sm:$0xff]  }
 0x11a   :  { %13028 = vmatpush1.bf16.msra.mxu0 %v18667_v5  ;;  %14259 = vmatprep.subr.bf16.mxu1 %v18678_v8  ;;  %v18756_v5 = vld [vmem:[#allocation5 + $0x50c] ss:$16 sps:$4 sm:$0xff]   ;;  %v18759_v8 = vld [vmem:[#allocation5 + $0x924] ss:$16 sps:$4 sm:$0xff]  }
 0x11b   :  { %13029 = vmatprep.subr.bf16.mxu0 %v18675_v7  ;;  %v18754_v7 = vld [vmem:[#allocation5 + $0x508] ss:$16 sps:$4 sm:$0xff]  }
 0x11d   :  { %14260 = vmatpush1.bf16.msra.mxu1 %v18676_v10  ;;  %v18757_v10 = vld [vmem:[#allocation5 + $0x920] ss:$16 sps:$4 sm:$0xff]  }
 0x11e   :  { %13030 = vmatpush1.bf16.msra.mxu0 %v18673_v9  ;;  %14261 = vmatprep.subr.bf16.mxu1 %v18684_v14  ;;  %v18762_v9 = vld [vmem:[#allocation5 + $0x52c] ss:$16 sps:$4 sm:$0xff]   ;;  %v18765_v14 = vld [vmem:[#allocation5 + $0x944] ss:$16 sps:$4 sm:$0xff]  }
 0x11f   :  { %13031 = vmatprep.subr.bf16.mxu0 %v18681_v12  ;;  %v18760_v12 = vld [vmem:[#allocation5 + $0x528] ss:$16 sps:$4 sm:$0xff]  }
 0x121   :  { %14262 = vmatpush1.bf16.msra.mxu1 %v18682_v16  ;;  %v18763_v16 = vld [vmem:[#allocation5 + $0x940] ss:$16 sps:$4 sm:$0xff]  }
 0x122   :  { %13032 = vmatpush1.bf16.msra.mxu0 %v18679_v15  ;;  %14263 = vmatprep.subr.bf16.mxu1 %v18690_v18  ;;  %v18768_v15 = vld [vmem:[#allocation5 + $0x54c] ss:$16 sps:$4 sm:$0xff]   ;;  %v18771_v18 = vld [vmem:[#allocation5 + $0x964] ss:$16 sps:$4 sm:$0xff]  }
 0x123   :  { %13033 = vmatprep.subr.bf16.mxu0 %v18687_v17  ;;  %v18766_v17 = vld [vmem:[#allocation5 + $0x548] ss:$16 sps:$4 sm:$0xff]  }
 0x125   :  { %14264 = vmatpush1.bf16.msra.mxu1 %v18688_v21  ;;  %v18769_v21 = vld [vmem:[#allocation5 + $0x960] ss:$16 sps:$4 sm:$0xff]  }
 0x126   :  { %13034 = vmatpush1.bf16.msra.mxu0 %v18685_v20  ;;  %14265 = vmatprep.subr.bf16.mxu1 %v18696_v24  ;;  %v18774_v20 = vld [vmem:[#allocation5 + $0x56c] ss:$16 sps:$4 sm:$0xff]   ;;  %v18777_v24 = vld [vmem:[#allocation5 + $0x984] ss:$16 sps:$4 sm:$0xff]  }
 0x127   :  { %13035 = vmatprep.subr.bf16.mxu0 %v18693_v22  ;;  %v18772_v22 = vld [vmem:[#allocation5 + $0x568] ss:$16 sps:$4 sm:$0xff]  }
 0x129   :  { %14266 = vmatpush1.bf16.msra.mxu1 %v18694_v27  ;;  %v18775_v27 = vld [vmem:[#allocation5 + $0x980] ss:$16 sps:$4 sm:$0xff]  }
 0x12a   :  { %13036 = vmatpush1.bf16.msra.mxu0 %v18691_v26  ;;  %14267 = vmatprep.subr.bf16.mxu1 %v18702_v30  ;;  %v18780_v26 = vld [vmem:[#allocation5 + $0x58c] ss:$16 sps:$4 sm:$0xff]   ;;  %v18783_v30 = vld [vmem:[#allocation5 + $0x9a4] ss:$16 sps:$4 sm:$0xff]  }
 0x12b   :  { %13037 = vmatprep.subr.bf16.mxu0 %v18699_v29  ;;  %v18778_v29 = vld [vmem:[#allocation5 + $0x588] ss:$16 sps:$4 sm:$0xff]  }
 0x12d   :  { %14268 = vmatpush1.bf16.msra.mxu1 %v18700_v11  ;;  %v18781_v11 = vld [vmem:[#allocation5 + $0x9a0] ss:$16 sps:$4 sm:$0xff]  }
 0x12e   :  { %13038 = vmatpush1.bf16.msra.mxu0 %v18697_v33  ;;  %14278 = vmatprep.subr.bf16.mxu1 %v18708_v35  ;;  %v18786_v33 = vld [vmem:[#allocation5 + $0x5ac] ss:$16 sps:$4 sm:$0xff]   ;;  %v18789_v35 = vld [vmem:[#allocation5 + $0x9c4] ss:$16 sps:$4 sm:$0xff]  }
 0x12f   :  { %13048 = vmatprep.subr.bf16.mxu0 %v18705_v34  ;;  %v18784_v34 = vld [vmem:[#allocation5 + $0x5a8] ss:$16 sps:$4 sm:$0xff]  }
 0x130   :  { %14270 = vmatmul.mubr.bf16.vlgmr.msra.gmra.mrb[4].mxu1 %v21882_v19  ;;  %v18726_v19 = vld [vmem:[#allocation5 + $0x46c] ss:$16 sps:$4 sm:$0xff]  }
 0x131   :  { %13040 = vmatmul.mubr.bf16.vlgmr.msra.gmra.mrb[0].mxu0 %v21912_v38  ;;  %14279 = vmatpush1.bf16.msra.mxu1 %v18706_v13  ;;  %v18790_v13 = vld [vmem:[#allocation5 + $0x5c8] ss:$16 sps:$4 sm:$0xff]  }
 0x132   :  { %13049 = vmatpush1.bf16.msra.mxu0 %v18703_v37  ;;  %14280 = vmatprep.subr.bf16.mxu1 %v18714_v40  ;;  %v18787_v37 = vld [vmem:[#allocation5 + $0x9c0] ss:$16 sps:$4 sm:$0xff]   ;;  %v18798_v40 = vld [vmem:[#allocation5 + $0x5ec] ss:$16 sps:$4 sm:$0xff]  }
 0x133   :  { %13050 = vmatprep.subr.bf16.mxu0 %v18711_v39  ;;  %13080 = vmatprep.mubr.bf16.mxu0 %v21915_v41  ;;  %v18795_v39 = vld [vmem:[#allocation5 + $0x9e4] ss:$16 sps:$4 sm:$0xff]  }
 0x134   :  { %14310 = vmatprep.mubr.bf16.mxu1 %v21885_v23  ;;  %v18730_v23 = vld [vmem:[#allocation5 + $0x488] ss:$16 sps:$4 sm:$0xff]  }
 0x135   :  { %14281 = vmatpush1.bf16.msra.mxu1 %v18712_v44  ;;  %v18796_v44 = vld [vmem:[#allocation5 + $0x5e8] ss:$16 sps:$4 sm:$0xff]  }
 0x136   :  { %13051 = vmatpush1.bf16.msra.mxu0 %v18709_v42  ;;  %14282 = vmatprep.subr.bf16.mxu1 %v18720_v45  ;;  %v18793_v42 = vld [vmem:[#allocation5 + $0x9e0] ss:$16 sps:$4 sm:$0xff]   ;;  %v18804_v45 = vld [vmem:[#allocation5 + $0x60c] ss:$16 sps:$4 sm:$0xff]  }
 0x137   :  { %13052 = vmatprep.subr.bf16.mxu0 %v18717_v1  ;;  %v18801_v1 = vld [vmem:[#allocation5 + $0xa04] ss:$16 sps:$4 sm:$0xff]  }
 0x139   :  { %14283 = vmatpush1.bf16.msra.mxu1 %v18718_v47  ;;  %v21923_v47 = vrot.slane %v21906_v31, %v21865_v50  ;;  %v18808_v31 = vld [vmem:[#allocation5 + $0x628] ss:$16 sps:$4 sm:$0xff]  }
 0x13a   :  { %13053 = vmatpush1.bf16.msra.mxu0 %v18715_v46  ;;  %14284 = vmatprep.subr.bf16.mxu1 %v18726_v19  ;;  %v18799_v46 = vld [vmem:[#allocation5 + $0xa00] ss:$16 sps:$4 sm:$0xff]   ;;  %v18807_v19 = vld [vmem:[#allocation5 + $0xa24] ss:$16 sps:$4 sm:$0xff]  }
 0x13b   :  { %13054 = vmatprep.subr.bf16.mxu0 %v18723_v48  ;;  %v18802_v48 = vld [vmem:[#allocation5 + $0x608] ss:$16 sps:$4 sm:$0xff]  }
 0x13d   :  { %14285 = vmatpush1.bf16.msra.mxu1 %v18724_v51  ;;  %v21927_v51 = vcombine.high %v21915_v41, %v21915_v41 }
 0x13e   :  { %13055 = vmatpush1.bf16.msra.mxu0 %v18721_v49  ;;  %14286 = vmatprep.subr.bf16.mxu1 %v18732_v53  ;;  %v18810_v49 = vld [vmem:[#allocation5 + $0x62c] ss:$16 sps:$4 sm:$0xff]   ;;  %v18813_v53 = vld [vmem:[#allocation5 + $0xa44] ss:$16 sps:$4 sm:$0xff]  }
 0x13f   :  { %13056 = vmatprep.subr.bf16.mxu0 %v18729_v52  ;;  %v18805_v52 = vld [vmem:[#allocation5 + $0xa20] ss:$16 sps:$4 sm:$0xff]  }
 0x141   :  { %14287 = vmatpush1.bf16.msra.mxu1 %v18730_v23  ;;  %v18811_v23 = vld [vmem:[#allocation5 + $0xa40] ss:$16 sps:$4 sm:$0xff]  }
 0x142   :  { %13057 = vmatpush1.bf16.msra.mxu0 %v18727_v54  ;;  %14288 = vmatprep.subr.bf16.mxu1 %v18738_v56  ;;  %v18816_v54 = vld [vmem:[#allocation5 + $0x64c] ss:$16 sps:$4 sm:$0xff]   ;;  %v18819_v56 = vld [vmem:[#allocation5 + $0xa64] ss:$16 sps:$4 sm:$0xff]  }
 0x143   :  { %13058 = vmatprep.subr.bf16.mxu0 %v18735_v55  ;;  %v18814_v55 = vld [vmem:[#allocation5 + $0x648] ss:$16 sps:$4 sm:$0xff]  }
 0x145   :  { %14289 = vmatpush1.bf16.msra.mxu1 %v18736_v58  ;;  %v18820_v58 = vld [vmem:[#allocation5 + $0x668] ss:$16 sps:$4 sm:$0xff]  }
 0x146   :  { %13059 = vmatpush1.bf16.msra.mxu0 %v18733_v57  ;;  %14290 = vmatprep.subr.bf16.mxu1 %v18744_v60  ;;  %v18817_v57 = vld [vmem:[#allocation5 + $0xa60] ss:$16 sps:$4 sm:$0xff]   ;;  %v18828_v60 = vld [vmem:[#allocation5 + $0x68c] ss:$16 sps:$4 sm:$0xff]  }
 0x147   :  { %13060 = vmatprep.subr.bf16.mxu0 %v18741_v59  ;;  %v18825_v59 = vld [vmem:[#allocation5 + $0xa84] ss:$16 sps:$4 sm:$0xff]  }
 0x149   :  { %14291 = vmatpush1.bf16.msra.mxu1 %v18742_v62  ;;  %v18831_v62 = vld [vmem:[#allocation5 + $0xaa4] ss:$16 sps:$4 sm:$0xff]  }
 0x14a   :  { %13061 = vmatpush1.bf16.msra.mxu0 %v18739_v61  ;;  %14292 = vmatprep.subr.bf16.mxu1 %v18750_v0  ;;  %v18823_v61 = vld [vmem:[#allocation5 + $0xa80] ss:$16 sps:$4 sm:$0xff]  }
 0x14b   :  { %13062 = vmatprep.subr.bf16.mxu0 %v18747_v63  ;;  %v18834_v63 = vld [vmem:[#allocation5 + $0x6ac] ss:$16 sps:$4 sm:$0xff]   ;;  %v18829_v0 = vld [vmem:[#allocation5 + $0xaa0] ss:$16 sps:$4 sm:$0xff]  }
 0x14d   :  { %14293 = vmatpush1.bf16.msra.mxu1 %v18748_v3  ;;  %v18837_v3 = vld [vmem:[#allocation5 + $0xac4] ss:$16 sps:$4 sm:$0xff]  }
 0x14e   :  { %13063 = vmatpush1.bf16.msra.mxu0 %v18745_v2  ;;  %14294 = vmatprep.subr.bf16.mxu1 %v18756_v5  ;;  %v18832_v2 = vld [vmem:[#allocation5 + $0x6a8] ss:$16 sps:$4 sm:$0xff]  }
 0x14f   :  { %13064 = vmatprep.subr.bf16.mxu0 %v18753_v4  ;;  %v18840_v4 = vld [vmem:[#allocation5 + $0x6cc] ss:$16 sps:$4 sm:$0xff]  }
 0x151   :  { %14295 = vmatpush1.bf16.msra.mxu1 %v18754_v7 }
 0x152   :  { %13065 = vmatpush1.bf16.msra.mxu0 %v18751_v6  ;;  %14296 = vmatprep.subr.bf16.mxu1 %v18762_v9  ;;  %v18838_v9 = vld [vmem:[#allocation5 + $0x6c8] ss:$16 sps:$4 sm:$0xff]  }
 0x153   :  { %13066 = vmatprep.subr.bf16.mxu0 %v18759_v8  ;;  %v18835_v8 = vld [vmem:[#allocation5 + $0xac0] ss:$16 sps:$4 sm:$0xff]  }
 0x155   :  { %14297 = vmatpush1.bf16.msra.mxu1 %v18760_v12  ;;  %v18843_v12 = vld [vmem:[#allocation5 + $0xae4] ss:$16 sps:$4 sm:$0xff]  }
 0x156   :  { %13067 = vmatpush1.bf16.msra.mxu0 %v18757_v10  ;;  %14298 = vmatprep.subr.bf16.mxu1 %v18768_v15  ;;  %v18841_v15 = vld [vmem:[#allocation5 + $0xae0] ss:$16 sps:$4 sm:$0xff]  }
 0x157   :  { %13068 = vmatprep.subr.bf16.mxu0 %v18765_v14  ;;  %v18846_v14 = vld [vmem:[#allocation5 + $0x6ec] ss:$16 sps:$4 sm:$0xff]  }
 0x159   :  { %14299 = vmatpush1.bf16.msra.mxu1 %v18766_v17  ;;  %v18849_v17 = vld [vmem:[#allocation5 + $0xb04] ss:$16 sps:$4 sm:$0xff]  }
 0x15a   :  { %13069 = vmatpush1.bf16.msra.mxu0 %v18763_v16  ;;  %14300 = vmatprep.subr.bf16.mxu1 %v18774_v20  ;;  %v18844_v16 = vld [vmem:[#allocation5 + $0x6e8] ss:$16 sps:$4 sm:$0xff]   ;;  %v18847_v20 = vld [vmem:[#allocation5 + $0xb00] ss:$16 sps:$4 sm:$0xff]  }
 0x15b   :  { %13070 = vmatprep.subr.bf16.mxu0 %v18771_v18  ;;  %v18852_v18 = vld [vmem:[#allocation5 + $0x70c] ss:$16 sps:$4 sm:$0xff]  }
 0x15d   :  { %14301 = vmatpush1.bf16.msra.mxu1 %v18772_v22  ;;  %v18855_v22 = vld [vmem:[#allocation5 + $0xb24] ss:$16 sps:$4 sm:$0xff]  }
 0x15e   :  { %13071 = vmatpush1.bf16.msra.mxu0 %v18769_v21  ;;  %14302 = vmatprep.subr.bf16.mxu1 %v18780_v26  ;;  %v18850_v21 = vld [vmem:[#allocation5 + $0x708] ss:$16 sps:$4 sm:$0xff]   ;;  %v18853_v26 = vld [vmem:[#allocation5 + $0xb20] ss:$16 sps:$4 sm:$0xff]  }
 0x15f   :  { %13072 = vmatprep.subr.bf16.mxu0 %v18777_v24  ;;  %v18858_v24 = vld [vmem:[#allocation5 + $0x72c] ss:$16 sps:$4 sm:$0xff]  }
 0x161   :  { %14303 = vmatpush1.bf16.msra.mxu1 %v18778_v29  ;;  %v18861_v29 = vld [vmem:[#allocation5 + $0xb44] ss:$16 sps:$4 sm:$0xff]  }
 0x162   :  { %13073 = vmatpush1.bf16.msra.mxu0 %v18775_v27  ;;  %14304 = vmatprep.subr.bf16.mxu1 %v18786_v33  ;;  %v18856_v27 = vld [vmem:[#allocation5 + $0x728] ss:$16 sps:$4 sm:$0xff]   ;;  %v18859_v33 = vld [vmem:[#allocation5 + $0xb40] ss:$16 sps:$4 sm:$0xff]  }
 0x163   :  { %13074 = vmatprep.subr.bf16.mxu0 %v18783_v30  ;;  %v18864_v30 = vld [vmem:[#allocation5 + $0x74c] ss:$16 sps:$4 sm:$0xff]  }
 0x165   :  { %14305 = vmatpush1.bf16.msra.mxu1 %v18784_v34  ;;  %v18867_v34 = vld [vmem:[#allocation5 + $0xb64] ss:$16 sps:$4 sm:$0xff]  }
 0x166   :  { %13075 = vmatpush1.bf16.msra.mxu0 %v18781_v11  ;;  %14306 = vmatprep.subr.bf16.mxu1 %v18792_v36  ;;  %v18862_v11 = vld [vmem:[#allocation5 + $0x748] ss:$16 sps:$4 sm:$0xff]   ;;  %v18865_v36 = vld [vmem:[#allocation5 + $0xb60] ss:$16 sps:$4 sm:$0xff]  }
 0x167   :  { %13076 = vmatprep.subr.bf16.mxu0 %v18789_v35  ;;  %v18870_v35 = vld [vmem:[#allocation5 + $0x76c] ss:$16 sps:$4 sm:$0xff]  }
 0x169   :  { %14307 = vmatpush1.bf16.msra.mxu1 %v18790_v13  ;;  %v18873_v13 = vld [vmem:[#allocation5 + $0xb84] ss:$16 sps:$4 sm:$0xff]  }
 0x16a   :  { %13077 = vmatpush1.bf16.msra.mxu0 %v18787_v37  ;;  %14308 = vmatprep.subr.bf16.mxu1 %v18798_v40  ;;  %v18868_v37 = vld [vmem:[#allocation5 + $0x768] ss:$16 sps:$4 sm:$0xff]   ;;  %v18871_v40 = vld [vmem:[#allocation5 + $0xb80] ss:$16 sps:$4 sm:$0xff]  }
 0x16b   :  { %13078 = vmatprep.subr.bf16.mxu0 %v18795_v39  ;;  %v18876_v39 = vld [vmem:[#allocation5 + $0x78c] ss:$16 sps:$4 sm:$0xff]  }
 0x16d   :  { %14309 = vmatpush1.bf16.msra.mxu1 %v18796_v44  ;;  %v18879_v44 = vld [vmem:[#allocation5 + $0xba4] ss:$16 sps:$4 sm:$0xff]  }
 0x16e   :  { %13079 = vmatpush1.bf16.msra.mxu0 %v18793_v42  ;;  %14319 = vmatprep.subr.bf16.mxu1 %v18804_v45  ;;  %v18874_v42 = vld [vmem:[#allocation5 + $0x788] ss:$16 sps:$4 sm:$0xff]   ;;  %v18877_v45 = vld [vmem:[#allocation5 + $0xba0] ss:$16 sps:$4 sm:$0xff]  }
 0x16f   :  { %13089 = vmatprep.subr.bf16.mxu0 %v18801_v1  ;;  %v18882_v1 = vld [vmem:[#allocation5 + $0x7ac] ss:$16 sps:$4 sm:$0xff]  }
 0x170   :  { %14311 = vmatmul.mubr.bf16.vlgmr.msra.gmra.mrb[4].mxu1 %v21892_v28  ;;  %v18822_v28 = vld [vmem:[#allocation5 + $0x66c] ss:$16 sps:$4 sm:$0xff]  }
 0x171   :  { %13081 = vmatmul.mubr.bf16.vlgmr.msra.gmra.mrb[0].mxu0 %v21923_v47  ;;  %14320 = vmatpush1.bf16.msra.mxu1 %v18802_v48  ;;  %v18885_v48 = vld [vmem:[#allocation5 + $0xbc4] ss:$16 sps:$4 sm:$0xff]  }
 0x172   :  { %13090 = vmatpush1.bf16.msra.mxu0 %v18799_v46  ;;  %14321 = vmatprep.subr.bf16.mxu1 %v18810_v49  ;;  %v18880_v46 = vld [vmem:[#allocation5 + $0x7a8] ss:$16 sps:$4 sm:$0xff]   ;;  %v2237_v49 = vcombine.high %v21902_v25, %v21902_v25 }
 0x173   :  { %13091 = vmatprep.subr.bf16.mxu0 %v18807_v19  ;;  %13121 = vmatprep.mubr.bf16.mxu0 %v21927_v51  ;;  %v18888_v19 = vld [vmem:[#allocation5 + $0x7cc] ss:$16 sps:$4 sm:$0xff]  }
 0x174   :  { %14351 = vmatprep.mubr.bf16.mxu1 %v21896_v32  ;;  %v18826_v32 = vld [vmem:[#allocation5 + $0x688] ss:$16 sps:$4 sm:$0xff]  }
 0x175   :  { %14322 = vmatpush1.bf16.msra.mxu1 %v18808_v31  ;;  %v18886_v31 = vld [vmem:[#allocation5 + $0x7c8] ss:$16 sps:$4 sm:$0xff]  }
 0x176   :  { %13092 = vmatpush1.bf16.msra.mxu0 %v18805_v52  ;;  %14323 = vmatprep.subr.bf16.mxu1 %v18816_v54  ;;  %v18883_v52 = vld [vmem:[#allocation5 + $0xbc0] ss:$16 sps:$4 sm:$0xff]   ;;  %v18894_v54 = vld [vmem:[#allocation5 + $0x7ec] ss:$16 sps:$4 sm:$0xff]  }
 0x177   :  { %13093 = vmatprep.subr.bf16.mxu0 %v18813_v53  ;;  %v18891_v53 = vld [vmem:[#allocation5 + $0xbe4] ss:$16 sps:$4 sm:$0xff]  }
 0x179   :  { %14324 = vmatpush1.bf16.msra.mxu1 %v18814_v55  ;;  %v18889_v55 = vld [vmem:[#allocation5 + $0xbe0] ss:$16 sps:$4 sm:$0xff]  }
 0x17a   :  { %13094 = vmatpush1.bf16.msra.mxu0 %v18811_v23  ;;  %14325 = vmatprep.subr.bf16.mxu1 %v18822_v28  ;;  %v21940_v23 = vrot.slane %v2237_v49, %v21865_v50  ;;  %v18897_v28 = vld [vmem:[#allocation5 + $0xc04] ss:$16 sps:$4 sm:$0xff]   ;;  %v18964_v49 = vld [vmem:[#allocation5 + $0x968] ss:$16 sps:$4 sm:$0xff]  }
 0x17b   :  { %13095 = vmatprep.subr.bf16.mxu0 %v18819_v56  ;;  %v18892_v56 = vld [vmem:[#allocation5 + $0x7e8] ss:$16 sps:$4 sm:$0xff]  }
 0x17c   :  { %v2253_v25 = vcombine.high %v21940_v23, %v21940_v23 }
 0x17d   :  { %14326 = vmatpush1.bf16.msra.mxu1 %v18820_v58  ;;  %v21946_v58 = vcombine.high %v21923_v47, %v21923_v47 }
 0x17e   :  { %13096 = vmatpush1.bf16.msra.mxu0 %v18817_v57  ;;  %14327 = vmatprep.subr.bf16.mxu1 %v18828_v60  ;;  %v18900_v57 = vld [vmem:[#allocation5 + $0x80c] ss:$16 sps:$4 sm:$0xff]   ;;  %v18898_v60 = vld [vmem:[#allocation5 + $0x808] ss:$16 sps:$4 sm:$0xff]  }
 0x17f   :  { %13097 = vmatprep.subr.bf16.mxu0 %v18825_v59  ;;  %v18895_v59 = vld [vmem:[#allocation5 + $0xc00] ss:$16 sps:$4 sm:$0xff]  }
 0x181   :  { %14328 = vmatpush1.bf16.msra.mxu1 %v18826_v32  ;;  %v18906_v32 = vld [vmem:[#allocation5 + $0x82c] ss:$16 sps:$4 sm:$0xff]  }
 0x182   :  { %13098 = vmatpush1.bf16.msra.mxu0 %v18823_v61  ;;  %14329 = vmatprep.subr.bf16.mxu1 %v18834_v63  ;;  %v18903_v61 = vld [vmem:[#allocation5 + $0xc24] ss:$16 sps:$4 sm:$0xff]   ;;  %v18901_v63 = vld [vmem:[#allocation5 + $0xc20] ss:$16 sps:$4 sm:$0xff]  }
 0x183   :  { %13099 = vmatprep.subr.bf16.mxu0 %v18831_v62  ;;  %v21933_v5 = vpop.f32.mrb[0].mxu1  ;;  %v21949_v62 = vrot.slane %v2253_v25, %v21865_v50  ;;  %v18981_v25 = vld [vmem:[#allocation5 + $0xdc4] ss:$16 sps:$4 sm:$0xff]  }
 0x184   :  { %v21935_v6 = vpop.f32.mrb[1].mxu1 }
 0x185   :  { %v12922_v7 = vpop.f32.mrb[2].mxu1  ;;  %14330 = vmatpush1.bf16.msra.mxu1 %v18832_v2  ;;  %v18909_v2 = vld [vmem:[#allocation5 + $0xc44] ss:$16 sps:$4 sm:$0xff]  }
 0x186   :  { %13100 = vmatpush1.bf16.msra.mxu0 %v18829_v0  ;;  %v12923_v10 = vpop.f32.mrb[3].mxu1  ;;  %14331 = vmatprep.subr.bf16.mxu1 %v18840_v4  ;;  %v18904_v0 = vld [vmem:[#allocation5 + $0x828] ss:$16 sps:$4 sm:$0xff]   ;;  %v18907_v4 = vld [vmem:[#allocation5 + $0xc40] ss:$16 sps:$4 sm:$0xff]  }
 0x187   :  { %13101 = vmatprep.subr.bf16.mxu0 %v18837_v3  ;;  %v18912_v3 = vld [vmem:[#allocation5 + $0x84c] ss:$16 sps:$4 sm:$0xff]   ;;  %v18910_v7 = vld [vmem:[#allocation5 + $0x848] ss:$16 sps:$4 sm:$0xff]  }
 0x188   :  { %v18916_v10 = vld [vmem:[#allocation5 + $0x868] ss:$16 sps:$4 sm:$0xff]  }
 0x189   :  { %14332 = vmatpush1.bf16.msra.mxu1 %v18838_v9  ;;  %v18913_v9 = vld [vmem:[#allocation5 + $0xc60] ss:$16 sps:$4 sm:$0xff]  }
 0x18a   :  { %13102 = vmatpush1.bf16.msra.mxu0 %v18835_v8  ;;  %14333 = vmatprep.subr.bf16.mxu1 %v18846_v14  ;;  %v18915_v8 = vld [vmem:[#allocation5 + $0xc64] ss:$16 sps:$4 sm:$0xff]   ;;  %v18924_v14 = vld [vmem:[#allocation5 + $0x88c] ss:$16 sps:$4 sm:$0xff]  }
 0x18b   :  { %13103 = vmatprep.subr.bf16.mxu0 %v18843_v12  ;;  %v18921_v12 = vld [vmem:[#allocation5 + $0xc84] ss:$16 sps:$4 sm:$0xff]  }
 0x18d   :  { %14334 = vmatpush1.bf16.msra.mxu1 %v18844_v16  ;;  %v18927_v16 = vld [vmem:[#allocation5 + $0xca4] ss:$16 sps:$4 sm:$0xff]  }
 0x18e   :  { %13104 = vmatpush1.bf16.msra.mxu0 %v18841_v15  ;;  %14335 = vmatprep.subr.bf16.mxu1 %v18852_v18  ;;  %v18919_v15 = vld [vmem:[#allocation5 + $0xc80] ss:$16 sps:$4 sm:$0xff]  }
 0x18f   :  { %13105 = vmatprep.subr.bf16.mxu0 %v18849_v17  ;;  %v18930_v17 = vld [vmem:[#allocation5 + $0x8ac] ss:$16 sps:$4 sm:$0xff]   ;;  %v18925_v18 = vld [vmem:[#allocation5 + $0xca0] ss:$16 sps:$4 sm:$0xff]  }
 0x191   :  { %14336 = vmatpush1.bf16.msra.mxu1 %v18850_v21  ;;  %v18933_v21 = vld [vmem:[#allocation5 + $0xcc4] ss:$16 sps:$4 sm:$0xff]  }
 0x192   :  { %13106 = vmatpush1.bf16.msra.mxu0 %v18847_v20  ;;  %14337 = vmatprep.subr.bf16.mxu1 %v18858_v24  ;;  %v18928_v20 = vld [vmem:[#allocation5 + $0x8a8] ss:$16 sps:$4 sm:$0xff]   ;;  %v18931_v24 = vld [vmem:[#allocation5 + $0xcc0] ss:$16 sps:$4 sm:$0xff]  }
 0x193   :  { %13107 = vmatprep.subr.bf16.mxu0 %v18855_v22  ;;  %v18936_v22 = vld [vmem:[#allocation5 + $0x8cc] ss:$16 sps:$4 sm:$0xff]  }
 0x195   :  { %14338 = vmatpush1.bf16.msra.mxu1 %v18856_v27  ;;  %v18939_v27 = vld [vmem:[#allocation5 + $0xce4] ss:$16 sps:$4 sm:$0xff]  }
 0x196   :  { %13108 = vmatpush1.bf16.msra.mxu0 %v18853_v26  ;;  %14339 = vmatprep.subr.bf16.mxu1 %v18864_v30  ;;  %v18934_v26 = vld [vmem:[#allocation5 + $0x8c8] ss:$16 sps:$4 sm:$0xff]   ;;  %v18937_v30 = vld [vmem:[#allocation5 + $0xce0] ss:$16 sps:$4 sm:$0xff]  }
 0x197   :  { %13109 = vmatprep.subr.bf16.mxu0 %v18861_v29  ;;  %v18942_v29 = vld [vmem:[#allocation5 + $0x8ec] ss:$16 sps:$4 sm:$0xff]  }
 0x199   :  { %14340 = vmatpush1.bf16.msra.mxu1 %v18862_v11  ;;  %v18945_v11 = vld [vmem:[#allocation5 + $0xd04] ss:$16 sps:$4 sm:$0xff]  }
 0x19a   :  { %13110 = vmatpush1.bf16.msra.mxu0 %v18859_v33  ;;  %14341 = vmatprep.subr.bf16.mxu1 %v18870_v35  ;;  %v18940_v33 = vld [vmem:[#allocation5 + $0x8e8] ss:$16 sps:$4 sm:$0xff]   ;;  %v18943_v35 = vld [vmem:[#allocation5 + $0xd00] ss:$16 sps:$4 sm:$0xff]  }
 0x19b   :  { %13111 = vmatprep.subr.bf16.mxu0 %v18867_v34  ;;  %v18948_v34 = vld [vmem:[#allocation5 + $0x90c] ss:$16 sps:$4 sm:$0xff]  }
 0x19d   :  { %14342 = vmatpush1.bf16.msra.mxu1 %v18868_v37  ;;  %v18951_v37 = vld [vmem:[#allocation5 + $0xd24] ss:$16 sps:$4 sm:$0xff]  }
 0x19e   :  { %13112 = vmatpush1.bf16.msra.mxu0 %v18865_v36  ;;  %14343 = vmatprep.subr.bf16.mxu1 %v18876_v39  ;;  %v18946_v36 = vld [vmem:[#allocation5 + $0x908] ss:$16 sps:$4 sm:$0xff]   ;;  %v18949_v39 = vld [vmem:[#allocation5 + $0xd20] ss:$16 sps:$4 sm:$0xff]  }
 0x19f   :  { %13113 = vmatprep.subr.bf16.mxu0 %v18873_v13  ;;  %v18954_v13 = vld [vmem:[#allocation5 + $0x92c] ss:$16 sps:$4 sm:$0xff]  }
 0x1a1   :  { %14344 = vmatpush1.bf16.msra.mxu1 %v18874_v42  ;;  %v18957_v42 = vld [vmem:[#allocation5 + $0xd44] ss:$16 sps:$4 sm:$0xff]  }
 0x1a2   :  { %13114 = vmatpush1.bf16.msra.mxu0 %v18871_v40  ;;  %14345 = vmatprep.subr.bf16.mxu1 %v18882_v1  ;;  %v18952_v40 = vld [vmem:[#allocation5 + $0x928] ss:$16 sps:$4 sm:$0xff]   ;;  %v18955_v1 = vld [vmem:[#allocation5 + $0xd40] ss:$16 sps:$4 sm:$0xff]  }
 0x1a3   :  { %13115 = vmatprep.subr.bf16.mxu0 %v18879_v44  ;;  %v18960_v44 = vld [vmem:[#allocation5 + $0x94c] ss:$16 sps:$4 sm:$0xff]  }
 0x1a5   :  { %14346 = vmatpush1.bf16.msra.mxu1 %v18880_v46  ;;  %v18963_v46 = vld [vmem:[#allocation5 + $0xd64] ss:$16 sps:$4 sm:$0xff]  }
 0x1a6   :  { %13116 = vmatpush1.bf16.msra.mxu0 %v18877_v45  ;;  %14347 = vmatprep.subr.bf16.mxu1 %v18888_v19  ;;  %v18958_v45 = vld [vmem:[#allocation5 + $0x948] ss:$16 sps:$4 sm:$0xff]   ;;  %v18961_v19 = vld [vmem:[#allocation5 + $0xd60] ss:$16 sps:$4 sm:$0xff]  }
 0x1a7   :  { %13117 = vmatprep.subr.bf16.mxu0 %v18885_v48  ;;  %v18966_v48 = vld [vmem:[#allocation5 + $0x96c] ss:$16 sps:$4 sm:$0xff]  }
 0x1a9   :  { %14348 = vmatpush1.bf16.msra.mxu1 %v18886_v31  ;;  %v18972_v31 = vld [vmem:[#allocation5 + $0x98c] ss:$16 sps:$4 sm:$0xff]  }
 0x1aa   :  { %13118 = vmatpush1.bf16.msra.mxu0 %v18883_v52  ;;  %14349 = vmatprep.subr.bf16.mxu1 %v18894_v54  ;;  %v18969_v52 = vld [vmem:[#allocation5 + $0xd84] ss:$16 sps:$4 sm:$0xff]   ;;  %v18970_v54 = vld [vmem:[#allocation5 + $0x988] ss:$16 sps:$4 sm:$0xff]  }
 0x1ab   :  { %13119 = vmatprep.subr.bf16.mxu0 %v18891_v53  ;;  %v18967_v53 = vld [vmem:[#allocation5 + $0xd80] ss:$16 sps:$4 sm:$0xff]  }
 0x1ad   :  { %14350 = vmatpush1.bf16.msra.mxu1 %v18892_v56  ;;  %v18978_v56 = vld [vmem:[#allocation5 + $0x9ac] ss:$16 sps:$4 sm:$0xff]  }
 0x1ae   :  { %13120 = vmatpush1.bf16.msra.mxu0 %v18889_v55  ;;  %14360 = vmatprep.subr.bf16.mxu1 %v18900_v57  ;;  %v18975_v55 = vld [vmem:[#allocation5 + $0xda4] ss:$16 sps:$4 sm:$0xff]   ;;  %v18976_v57 = vld [vmem:[#allocation5 + $0x9a8] ss:$16 sps:$4 sm:$0xff]  }
 0x1af   :  { %13130 = vmatprep.subr.bf16.mxu0 %v18897_v28  ;;  %v18973_v28 = vld [vmem:[#allocation5 + $0xda0] ss:$16 sps:$4 sm:$0xff]  }
 0x1b0   :  { %14352 = vmatmul.mubr.bf16.vlgmr.msra.gmra.mrb[4].mxu1 %v21912_v38  ;;  %v18918_v38 = vld [vmem:[#allocation5 + $0x86c] ss:$16 sps:$4 sm:$0xff]  }
 0x1b1   :  { %13122 = vmatmul.mubr.bf16.vlgmr.msra.gmra.mrb[0].mxu0 %v21946_v58  ;;  %14361 = vmatpush1.bf16.msra.mxu1 %v18898_v60  ;;  %v18979_v60 = vld [vmem:[#allocation5 + $0xdc0] ss:$16 sps:$4 sm:$0xff]  }
 0x1b2   :  { %13131 = vmatpush1.bf16.msra.mxu0 %v18895_v59  ;;  %14362 = vmatprep.subr.bf16.mxu1 %v18906_v32  ;;  %v18984_v59 = vld [vmem:[#allocation5 + $0x9cc] ss:$16 sps:$4 sm:$0xff]   ;;  %v18987_v32 = vld [vmem:[#allocation5 + $0xde4] ss:$16 sps:$4 sm:$0xff]  }
 0x1b3   :  { %13132 = vmatprep.subr.bf16.mxu0 %v18903_v61  ;;  %13162 = vmatprep.mubr.bf16.mxu0 %v21949_v62  ;;  %v18982_v61 = vld [vmem:[#allocation5 + $0x9c8] ss:$16 sps:$4 sm:$0xff]  }
 0x1b4   :  { %14392 = vmatprep.mubr.bf16.mxu1 %v21915_v41  ;;  %v18922_v41 = vld [vmem:[#allocation5 + $0x888] ss:$16 sps:$4 sm:$0xff]  }
 0x1b5   :  { %14363 = vmatpush1.bf16.msra.mxu1 %v18904_v0  ;;  %v18985_v0 = vld [vmem:[#allocation5 + $0xde0] ss:$16 sps:$4 sm:$0xff]  }
 0x1b6   :  { %13133 = vmatpush1.bf16.msra.mxu0 %v18901_v63  ;;  %14364 = vmatprep.subr.bf16.mxu1 %v18912_v3  ;;  %v18990_v63 = vld [vmem:[#allocation5 + $0x9ec] ss:$16 sps:$4 sm:$0xff]   ;;  %v18994_v3 = vld [vmem:[#allocation5 + $0xe04] ss:$16 sps:$4 sm:$0xff]  }
 0x1b7   :  { %13134 = vmatprep.subr.bf16.mxu0 %v18909_v2  ;;  %v18988_v2 = vld [vmem:[#allocation5 + $0x9e8] ss:$16 sps:$4 sm:$0xff]  }
 0x1b9   :  { %14365 = vmatpush1.bf16.msra.mxu1 %v18910_v7  ;;  %v21957_v7 = vrot.slane %v21940_v23, %v21865_v50  ;;  %v18998_v23 = vld [vmem:[#allocation5 + $0xe20] ss:$16 sps:$4 sm:$0xff]  }
 0x1ba   :  { %13135 = vmatpush1.bf16.msra.mxu0 %v18907_v4  ;;  %14366 = vmatprep.subr.bf16.mxu1 %v18918_v38  ;;  %v18997_v4 = vld [vmem:[#allocation5 + $0xa0c] ss:$16 sps:$4 sm:$0xff]   ;;  %v18995_v38 = vld [vmem:[#allocation5 + $0xa08] ss:$16 sps:$4 sm:$0xff]  }
 0x1bb   :  { %13136 = vmatprep.subr.bf16.mxu0 %v18915_v8  ;;  %v18992_v8 = vld [vmem:[#allocation5 + $0xe00] ss:$16 sps:$4 sm:$0xff]  }
 0x1bd   :  { %14367 = vmatpush1.bf16.msra.mxu1 %v18916_v10  ;;  %v19003_v10 = vld [vmem:[#allocation5 + $0xa2c] ss:$16 sps:$4 sm:$0xff]  }
 0x1be   :  { %13137 = vmatpush1.bf16.msra.mxu0 %v18913_v9  ;;  %14368 = vmatprep.subr.bf16.mxu1 %v18924_v14  ;;  %v19000_v9 = vld [vmem:[#allocation5 + $0xe24] ss:$16 sps:$4 sm:$0xff]   ;;  %v19001_v14 = vld [vmem:[#allocation5 + $0xa28] ss:$16 sps:$4 sm:$0xff]  }
 0x1bf   :  { %13138 = vmatprep.subr.bf16.mxu0 %v18921_v12  ;;  %v21961_v12 = vcombine.high %v21949_v62, %v21949_v62 }
 0x1c1   :  { %14369 = vmatpush1.bf16.msra.mxu1 %v18922_v41  ;;  %v19009_v41 = vld [vmem:[#allocation5 + $0xa4c] ss:$16 sps:$4 sm:$0xff]  }
 0x1c2   :  { %13139 = vmatpush1.bf16.msra.mxu0 %v18919_v15  ;;  %14370 = vmatprep.subr.bf16.mxu1 %v18930_v17  ;;  %v19006_v15 = vld [vmem:[#allocation5 + $0xe44] ss:$16 sps:$4 sm:$0xff]   ;;  %v19007_v17 = vld [vmem:[#allocation5 + $0xa48] ss:$16 sps:$4 sm:$0xff]  }
 0x1c3   :  { %13140 = vmatprep.subr.bf16.mxu0 %v18927_v16  ;;  %v19004_v16 = vld [vmem:[#allocation5 + $0xe40] ss:$16 sps:$4 sm:$0xff]  }
 0x1c5   :  { %14371 = vmatpush1.bf16.msra.mxu1 %v18928_v20  ;;  %v19010_v20 = vld [vmem:[#allocation5 + $0xe60] ss:$16 sps:$4 sm:$0xff]  }
 0x1c6   :  { %13141 = vmatpush1.bf16.msra.mxu0 %v18925_v18  ;;  %14372 = vmatprep.subr.bf16.mxu1 %v18936_v22  ;;  %v19012_v18 = vld [vmem:[#allocation5 + $0xe64] ss:$16 sps:$4 sm:$0xff]  }
 0x1c7   :  { %13142 = vmatprep.subr.bf16.mxu0 %v18933_v21  ;;  %v19013_v21 = vld [vmem:[#allocation5 + $0xa68] ss:$16 sps:$4 sm:$0xff]   ;;  %v19018_v22 = vld [vmem:[#allocation5 + $0xe84] ss:$16 sps:$4 sm:$0xff]  }
 0x1c9   :  { %14373 = vmatpush1.bf16.msra.mxu1 %v18934_v26  ;;  %v19016_v26 = vld [vmem:[#allocation5 + $0xe80] ss:$16 sps:$4 sm:$0xff]  }
 0x1ca   :  { %13143 = vmatpush1.bf16.msra.mxu0 %v18931_v24  ;;  %14374 = vmatprep.subr.bf16.mxu1 %v18942_v29  ;;  %v19021_v24 = vld [vmem:[#allocation5 + $0xa8c] ss:$16 sps:$4 sm:$0xff]  }
 0x1cb   :  { %13144 = vmatprep.subr.bf16.mxu0 %v18939_v27  ;;  %v19024_v27 = vld [vmem:[#allocation5 + $0xea4] ss:$16 sps:$4 sm:$0xff]   ;;  %v19027_v29 = vld [vmem:[#allocation5 + $0xaac] ss:$16 sps:$4 sm:$0xff]  }
 0x1cd   :  { %14375 = vmatpush1.bf16.msra.mxu1 %v18940_v33  ;;  %v19025_v33 = vld [vmem:[#allocation5 + $0xaa8] ss:$16 sps:$4 sm:$0xff]  }
 0x1ce   :  { %13145 = vmatpush1.bf16.msra.mxu0 %v18937_v30  ;;  %14376 = vmatprep.subr.bf16.mxu1 %v18948_v34  ;;  %v19022_v30 = vld [vmem:[#allocation5 + $0xea0] ss:$16 sps:$4 sm:$0xff]   ;;  %v19033_v34 = vld [vmem:[#allocation5 + $0xacc] ss:$16 sps:$4 sm:$0xff]  }
 0x1cf   :  { %13146 = vmatprep.subr.bf16.mxu0 %v18945_v11  ;;  %v19030_v11 = vld [vmem:[#allocation5 + $0xec4] ss:$16 sps:$4 sm:$0xff]  }
 0x1d1   :  { %14377 = vmatpush1.bf16.msra.mxu1 %v18946_v36  ;;  %v19031_v36 = vld [vmem:[#allocation5 + $0xac8] ss:$16 sps:$4 sm:$0xff]  }
 0x1d2   :  { %13147 = vmatpush1.bf16.msra.mxu0 %v18943_v35  ;;  %14378 = vmatprep.subr.bf16.mxu1 %v18954_v13  ;;  %v19028_v35 = vld [vmem:[#allocation5 + $0xec0] ss:$16 sps:$4 sm:$0xff]   ;;  %v19039_v13 = vld [vmem:[#allocation5 + $0xaec] ss:$16 sps:$4 sm:$0xff]  }
 0x1d3   :  { %13148 = vmatprep.subr.bf16.mxu0 %v18951_v37  ;;  %v19036_v37 = vld [vmem:[#allocation5 + $0xee4] ss:$16 sps:$4 sm:$0xff]  }
 0x1d5   :  { %14379 = vmatpush1.bf16.msra.mxu1 %v18952_v40  ;;  %v19037_v40 = vld [vmem:[#allocation5 + $0xae8] ss:$16 sps:$4 sm:$0xff]  }
 0x1d6   :  { %13149 = vmatpush1.bf16.msra.mxu0 %v18949_v39  ;;  %14380 = vmatprep.subr.bf16.mxu1 %v18960_v44  ;;  %v19034_v39 = vld [vmem:[#allocation5 + $0xee0] ss:$16 sps:$4 sm:$0xff]   ;;  %v19045_v44 = vld [vmem:[#allocation5 + $0xb0c] ss:$16 sps:$4 sm:$0xff]  }
 0x1d7   :  { %13150 = vmatprep.subr.bf16.mxu0 %v18957_v42  ;;  %v19042_v42 = vld [vmem:[#allocation5 + $0xf04] ss:$16 sps:$4 sm:$0xff]  }
 0x1d9   :  { %14381 = vmatpush1.bf16.msra.mxu1 %v18958_v45  ;;  %v19043_v45 = vld [vmem:[#allocation5 + $0xb08] ss:$16 sps:$4 sm:$0xff]  }
 0x1da   :  { %13151 = vmatpush1.bf16.msra.mxu0 %v18955_v1  ;;  %14382 = vmatprep.subr.bf16.mxu1 %v18966_v48  ;;  %v19040_v1 = vld [vmem:[#allocation5 + $0xf00] ss:$16 sps:$4 sm:$0xff]   ;;  %v19051_v48 = vld [vmem:[#allocation5 + $0xb2c] ss:$16 sps:$4 sm:$0xff]  }
 0x1db   :  { %13152 = vmatprep.subr.bf16.mxu0 %v18963_v46  ;;  %v19048_v46 = vld [vmem:[#allocation5 + $0xf24] ss:$16 sps:$4 sm:$0xff]  }
 0x1dd   :  { %14383 = vmatpush1.bf16.msra.mxu1 %v18964_v49  ;;  %v19049_v49 = vld [vmem:[#allocation5 + $0xb28] ss:$16 sps:$4 sm:$0xff]  }
 0x1de   :  { %13153 = vmatpush1.bf16.msra.mxu0 %v18961_v19  ;;  %14384 = vmatprep.subr.bf16.mxu1 %v18972_v31  ;;  %v19046_v19 = vld [vmem:[#allocation5 + $0xf20] ss:$16 sps:$4 sm:$0xff]   ;;  %v19057_v31 = vld [vmem:[#allocation5 + $0xb4c] ss:$16 sps:$4 sm:$0xff]  }
 0x1df   :  { %13154 = vmatprep.subr.bf16.mxu0 %v18969_v52  ;;  %v19054_v52 = vld [vmem:[#allocation5 + $0xf44] ss:$16 sps:$4 sm:$0xff]  }
 0x1e1   :  { %14385 = vmatpush1.bf16.msra.mxu1 %v18970_v54  ;;  %v19055_v54 = vld [vmem:[#allocation5 + $0xb48] ss:$16 sps:$4 sm:$0xff]  }
 0x1e2   :  { %13155 = vmatpush1.bf16.msra.mxu0 %v18967_v53  ;;  %14386 = vmatprep.subr.bf16.mxu1 %v18978_v56  ;;  %v19052_v53 = vld [vmem:[#allocation5 + $0xf40] ss:$16 sps:$4 sm:$0xff]   ;;  %v19063_v56 = vld [vmem:[#allocation5 + $0xb6c] ss:$16 sps:$4 sm:$0xff]  }
 0x1e3   :  { %13156 = vmatprep.subr.bf16.mxu0 %v18975_v55  ;;  %v19060_v55 = vld [vmem:[#allocation5 + $0xf64] ss:$16 sps:$4 sm:$0xff]  }
 0x1e5   :  { %14387 = vmatpush1.bf16.msra.mxu1 %v18976_v57  ;;  %v19061_v57 = vld [vmem:[#allocation5 + $0xb68] ss:$16 sps:$4 sm:$0xff]  }
 0x1e6   :  { %13157 = vmatpush1.bf16.msra.mxu0 %v18973_v28  ;;  %14388 = vmatprep.subr.bf16.mxu1 %v18984_v59  ;;  %v19058_v28 = vld [vmem:[#allocation5 + $0xf60] ss:$16 sps:$4 sm:$0xff]   ;;  %v19069_v59 = vld [vmem:[#allocation5 + $0xb8c] ss:$16 sps:$4 sm:$0xff]  }
 0x1e7   :  { %13158 = vmatprep.subr.bf16.mxu0 %v18981_v25  ;;  %v19066_v25 = vld [vmem:[#allocation5 + $0xf84] ss:$16 sps:$4 sm:$0xff]  }
 0x1e9   :  { %14389 = vmatpush1.bf16.msra.mxu1 %v18982_v61  ;;  %v19067_v61 = vld [vmem:[#allocation5 + $0xb88] ss:$16 sps:$4 sm:$0xff]  }
 0x1ea   :  { %13159 = vmatpush1.bf16.msra.mxu0 %v18979_v60  ;;  %14390 = vmatprep.subr.bf16.mxu1 %v18990_v63  ;;  %v19064_v60 = vld [vmem:[#allocation5 + $0xf80] ss:$16 sps:$4 sm:$0xff]   ;;  %v19075_v63 = vld [vmem:[#allocation5 + $0xbac] ss:$16 sps:$4 sm:$0xff]  }
 0x1eb   :  { %13160 = vmatprep.subr.bf16.mxu0 %v18987_v32  ;;  %v19072_v32 = vld [vmem:[#allocation5 + $0xfa4] ss:$16 sps:$4 sm:$0xff]  }
 0x1ed   :  { %14391 = vmatpush1.bf16.msra.mxu1 %v18988_v2  ;;  %v19073_v2 = vld [vmem:[#allocation5 + $0xba8] ss:$16 sps:$4 sm:$0xff]  }
 0x1ee   :  { %13161 = vmatpush1.bf16.msra.mxu0 %v18985_v0  ;;  %14401 = vmatprep.subr.bf16.mxu1 %v18997_v4  ;;  %v19070_v0 = vld [vmem:[#allocation5 + $0xfa0] ss:$16 sps:$4 sm:$0xff]   ;;  %v19081_v4 = vld [vmem:[#allocation5 + $0xbcc] ss:$16 sps:$4 sm:$0xff]  }
 0x1ef   :  { %13171 = vmatprep.subr.bf16.mxu0 %v18994_v3  ;;  %v19078_v3 = vld [vmem:[#allocation5 + $0xfc4] ss:$16 sps:$4 sm:$0xff]  }
 0x1f0   :  { %14393 = vmatmul.mubr.bf16.vlgmr.msra.gmra.mrb[4].mxu1 %v21923_v47  ;;  %v19015_v47 = vld [vmem:[#allocation5 + $0xa6c] ss:$16 sps:$4 sm:$0xff]  }
 0x1f1   :  { %13163 = vmatmul.mubr.bf16.vlgmr.msra.gmra.mrb[0].mxu0 %v21957_v7  ;;  %14402 = vmatpush1.bf16.msra.mxu1 %v18995_v38  ;;  %v19076_v38 = vld [vmem:[#allocation5 + $0xfc0] ss:$16 sps:$4 sm:$0xff]  }
 0x1f2   :  { %13172 = vmatpush1.bf16.msra.mxu0 %v18992_v8  ;;  %14403 = vmatprep.subr.bf16.mxu1 %v19003_v10  ;;  %v21967_v8 = vld.sshfl [vmem:[#allocation3 + $0x10] sm:$0xff pattern:$0x75316420] }
 0x1f3   :  { %13173 = vmatprep.subr.bf16.mxu0 %v19000_v9  ;;  %13203 = vmatprep.mubr.bf16.mxu0 %v21961_v12  ;;  %v19079_v9 = vld [vmem:[#allocation5 + $0xbc8] ss:$16 sps:$4 sm:$0xff]   ;;  %v19084_v10 = vld [vmem:[#allocation5 + $0xfe4] ss:$16 sps:$4 sm:$0xff]  }
 0x1f4   :  { %14433 = vmatprep.mubr.bf16.mxu1 %v21927_v51  ;;  %v19019_v51 = vld [vmem:[#allocation5 + $0xa88] ss:$16 sps:$4 sm:$0xff]  }
 0x1f5   :  { %14404 = vmatpush1.bf16.msra.mxu1 %v19001_v14  ;;  %v19082_v14 = vld [vmem:[#allocation5 + $0xfe0] ss:$16 sps:$4 sm:$0xff]  }
 0x1f6   :  { %13174 = vmatpush1.bf16.msra.mxu0 %v18998_v23  ;;  %14405 = vmatprep.subr.bf16.mxu1 %v19009_v41  ;;  %v19087_v23 = vld [vmem:[#allocation5 + $0xbec] ss:$16 sps:$4 sm:$0xff]   ;;  %v19090_v41 = vld [vmem:[#allocation5 + $0x1004] ss:$16 sps:$4 sm:$0xff]  }
 0x1f7   :  { %13175 = vmatprep.subr.bf16.mxu0 %v19006_v15  ;;  %v19085_v15 = vld [vmem:[#allocation5 + $0xbe8] ss:$16 sps:$4 sm:$0xff]  }
 0x1f9   :  { %14406 = vmatpush1.bf16.msra.mxu1 %v19007_v17  ;;  %v2301_v17 = vcombine.high %v21967_v8, %v21967_v8 }
 0x1fa   :  { %13176 = vmatpush1.bf16.msra.mxu0 %v19004_v16  ;;  %14407 = vmatprep.subr.bf16.mxu1 %v19015_v47  ;;  %v19093_v16 = vld [vmem:[#allocation5 + $0xc0c] ss:$16 sps:$4 sm:$0xff]   ;;  %v19088_v47 = vld [vmem:[#allocation5 + $0x1000] ss:$16 sps:$4 sm:$0xff]  }
 0x1fb   :  { %13177 = vmatprep.subr.bf16.mxu0 %v19012_v18  ;;  %v21973_v18 = vcombine.high %v21957_v7, %v21957_v7 }
 0x1fd   :  { %14408 = vmatpush1.bf16.msra.mxu1 %v19013_v21  ;;  %v19096_v21 = vld [vmem:[#allocation5 + $0x1024] ss:$16 sps:$4 sm:$0xff]  }
 0x1fe   :  { %13178 = vmatpush1.bf16.msra.mxu0 %v19010_v20  ;;  %14409 = vmatprep.subr.bf16.mxu1 %v19021_v24  ;;  %v19091_v20 = vld [vmem:[#allocation5 + $0xc08] ss:$16 sps:$4 sm:$0xff]   ;;  %v21976_v24 = vrot.slane %v2301_v17, %v21865_v50  ;;  %v19174_v17 = vld [vmem:[#allocation5 + $0x11c4] ss:$16 sps:$4 sm:$0xff]  }
 0x1ff   :  { %13179 = vmatprep.subr.bf16.mxu0 %v19018_v22  ;;  %v19099_v22 = vld [vmem:[#allocation5 + $0xc2c] ss:$16 sps:$4 sm:$0xff]  }
 0x201   :  { %14410 = vmatpush1.bf16.msra.mxu1 %v19019_v51  ;;  %v19097_v51 = vld [vmem:[#allocation5 + $0xc28] ss:$16 sps:$4 sm:$0xff]  }
 0x202   :  { %13180 = vmatpush1.bf16.msra.mxu0 %v19016_v26  ;;  %14411 = vmatprep.subr.bf16.mxu1 %v19027_v29  ;;  %v19094_v26 = vld [vmem:[#allocation5 + $0x1020] ss:$16 sps:$4 sm:$0xff]   ;;  %v19105_v29 = vld [vmem:[#allocation5 + $0xc4c] ss:$16 sps:$4 sm:$0xff]  }
 0x203   :  { %13181 = vmatprep.subr.bf16.mxu0 %v19024_v27  ;;  %v19102_v27 = vld [vmem:[#allocation5 + $0x1044] ss:$16 sps:$4 sm:$0xff]  }
 0x205   :  { %14412 = vmatpush1.bf16.msra.mxu1 %v19025_v33  ;;  %v19103_v33 = vld [vmem:[#allocation5 + $0xc48] ss:$16 sps:$4 sm:$0xff]  }
 0x206   :  { %13182 = vmatpush1.bf16.msra.mxu0 %v19022_v30  ;;  %14413 = vmatprep.subr.bf16.mxu1 %v19033_v34  ;;  %v19100_v30 = vld [vmem:[#allocation5 + $0x1040] ss:$16 sps:$4 sm:$0xff]  }
 0x207   :  { %13183 = vmatprep.subr.bf16.mxu0 %v19030_v11  ;;  %v19108_v11 = vld [vmem:[#allocation5 + $0x1064] ss:$16 sps:$4 sm:$0xff]   ;;  %v19106_v34 = vld [vmem:[#allocation5 + $0x1060] ss:$16 sps:$4 sm:$0xff]  }
 0x209   :  { %14414 = vmatpush1.bf16.msra.mxu1 %v19031_v36  ;;  %v19114_v36 = vld [vmem:[#allocation5 + $0x1084] ss:$16 sps:$4 sm:$0xff]  }
 0x20a   :  { %13184 = vmatpush1.bf16.msra.mxu0 %v19028_v35  ;;  %14415 = vmatprep.subr.bf16.mxu1 %v19039_v13  ;;  %v19109_v35 = vld [vmem:[#allocation5 + $0xc68] ss:$16 sps:$4 sm:$0xff]   ;;  %v19112_v13 = vld [vmem:[#allocation5 + $0x1080] ss:$16 sps:$4 sm:$0xff]  }
 0x20b   :  { %13185 = vmatprep.subr.bf16.mxu0 %v19036_v37  ;;  %v19117_v37 = vld [vmem:[#allocation5 + $0xc8c] ss:$16 sps:$4 sm:$0xff]  }
 0x20d   :  { %14416 = vmatpush1.bf16.msra.mxu1 %v19037_v40  ;;  %v19123_v40 = vld [vmem:[#allocation5 + $0xcac] ss:$16 sps:$4 sm:$0xff]  }
 0x20e   :  { %13186 = vmatpush1.bf16.msra.mxu0 %v19034_v39  ;;  %14417 = vmatprep.subr.bf16.mxu1 %v19045_v44  ;;  %v19120_v39 = vld [vmem:[#allocation5 + $0x10a4] ss:$16 sps:$4 sm:$0xff]   ;;  %v19121_v44 = vld [vmem:[#allocation5 + $0xca8] ss:$16 sps:$4 sm:$0xff]  }
 0x20f   :  { %13187 = vmatprep.subr.bf16.mxu0 %v19042_v42  ;;  %v19118_v42 = vld [vmem:[#allocation5 + $0x10a0] ss:$16 sps:$4 sm:$0xff]  }
 0x211   :  { %14418 = vmatpush1.bf16.msra.mxu1 %v19043_v45  ;;  %v19129_v45 = vld [vmem:[#allocation5 + $0xccc] ss:$16 sps:$4 sm:$0xff]  }
 0x212   :  { %13188 = vmatpush1.bf16.msra.mxu0 %v19040_v1  ;;  %14419 = vmatprep.subr.bf16.mxu1 %v19051_v48  ;;  %v19126_v1 = vld [vmem:[#allocation5 + $0x10c4] ss:$16 sps:$4 sm:$0xff]   ;;  %v19127_v48 = vld [vmem:[#allocation5 + $0xcc8] ss:$16 sps:$4 sm:$0xff]  }
 0x213   :  { %13189 = vmatprep.subr.bf16.mxu0 %v19048_v46  ;;  %v19124_v46 = vld [vmem:[#allocation5 + $0x10c0] ss:$16 sps:$4 sm:$0xff]  }
 0x215   :  { %14420 = vmatpush1.bf16.msra.mxu1 %v19049_v49  ;;  %v19135_v49 = vld [vmem:[#allocation5 + $0xcec] ss:$16 sps:$4 sm:$0xff]  }
 0x216   :  { %13190 = vmatpush1.bf16.msra.mxu0 %v19046_v19  ;;  %14421 = vmatprep.subr.bf16.mxu1 %v19057_v31  ;;  %v19132_v19 = vld [vmem:[#allocation5 + $0x10e4] ss:$16 sps:$4 sm:$0xff]   ;;  %v19133_v31 = vld [vmem:[#allocation5 + $0xce8] ss:$16 sps:$4 sm:$0xff]  }
 0x217   :  { %13191 = vmatprep.subr.bf16.mxu0 %v19054_v52  ;;  %v19130_v52 = vld [vmem:[#allocation5 + $0x10e0] ss:$16 sps:$4 sm:$0xff]  }
 0x219   :  { %14422 = vmatpush1.bf16.msra.mxu1 %v19055_v54  ;;  %v19141_v54 = vld [vmem:[#allocation5 + $0xd0c] ss:$16 sps:$4 sm:$0xff]  }
 0x21a   :  { %13192 = vmatpush1.bf16.msra.mxu0 %v19052_v53  ;;  %14423 = vmatprep.subr.bf16.mxu1 %v19063_v56  ;;  %v19138_v53 = vld [vmem:[#allocation5 + $0x1104] ss:$16 sps:$4 sm:$0xff]   ;;  %v19139_v56 = vld [vmem:[#allocation5 + $0xd08] ss:$16 sps:$4 sm:$0xff]  }
 0x21b   :  { %13193 = vmatprep.subr.bf16.mxu0 %v19060_v55  ;;  %v19136_v55 = vld [vmem:[#allocation5 + $0x1100] ss:$16 sps:$4 sm:$0xff]  }
 0x21d   :  { %14424 = vmatpush1.bf16.msra.mxu1 %v19061_v57  ;;  %v19147_v57 = vld [vmem:[#allocation5 + $0xd2c] ss:$16 sps:$4 sm:$0xff]  }
 0x21e   :  { %13194 = vmatpush1.bf16.msra.mxu0 %v19058_v28  ;;  %14425 = vmatprep.subr.bf16.mxu1 %v19069_v59  ;;  %v19144_v28 = vld [vmem:[#allocation5 + $0x1124] ss:$16 sps:$4 sm:$0xff]   ;;  %v19145_v59 = vld [vmem:[#allocation5 + $0xd28] ss:$16 sps:$4 sm:$0xff]  }
 0x21f   :  { %13195 = vmatprep.subr.bf16.mxu0 %v19066_v25  ;;  %v19142_v25 = vld [vmem:[#allocation5 + $0x1120] ss:$16 sps:$4 sm:$0xff]  }
 0x221   :  { %14426 = vmatpush1.bf16.msra.mxu1 %v19067_v61  ;;  %v19153_v61 = vld [vmem:[#allocation5 + $0xd4c] ss:$16 sps:$4 sm:$0xff]  }
 0x222   :  { %13196 = vmatpush1.bf16.msra.mxu0 %v19064_v60  ;;  %14427 = vmatprep.subr.bf16.mxu1 %v19075_v63  ;;  %v19150_v60 = vld [vmem:[#allocation5 + $0x1144] ss:$16 sps:$4 sm:$0xff]   ;;  %v19151_v63 = vld [vmem:[#allocation5 + $0xd48] ss:$16 sps:$4 sm:$0xff]  }
 0x223   :  { %13197 = vmatprep.subr.bf16.mxu0 %v19072_v32  ;;  %v19148_v32 = vld [vmem:[#allocation5 + $0x1140] ss:$16 sps:$4 sm:$0xff]  }
 0x225   :  { %14428 = vmatpush1.bf16.msra.mxu1 %v19073_v2  ;;  %v19159_v2 = vld [vmem:[#allocation5 + $0xd6c] ss:$16 sps:$4 sm:$0xff]  }
 0x226   :  { %13198 = vmatpush1.bf16.msra.mxu0 %v19070_v0  ;;  %14429 = vmatprep.subr.bf16.mxu1 %v19081_v4  ;;  %v19156_v0 = vld [vmem:[#allocation5 + $0x1164] ss:$16 sps:$4 sm:$0xff]   ;;  %v19157_v4 = vld [vmem:[#allocation5 + $0xd68] ss:$16 sps:$4 sm:$0xff]  }
 0x227   :  { %13199 = vmatprep.subr.bf16.mxu0 %v19078_v3  ;;  %v19154_v3 = vld [vmem:[#allocation5 + $0x1160] ss:$16 sps:$4 sm:$0xff]  }
 0x229   :  { %14430 = vmatpush1.bf16.msra.mxu1 %v19079_v9  ;;  %v19165_v9 = vld [vmem:[#allocation5 + $0xd8c] ss:$16 sps:$4 sm:$0xff]  }
 0x22a   :  { %13200 = vmatpush1.bf16.msra.mxu0 %v19076_v38  ;;  %14431 = vmatprep.subr.bf16.mxu1 %v19087_v23  ;;  %v19162_v38 = vld [vmem:[#allocation5 + $0x1184] ss:$16 sps:$4 sm:$0xff]   ;;  %v19163_v23 = vld [vmem:[#allocation5 + $0xd88] ss:$16 sps:$4 sm:$0xff]  }
 0x22b   :  { %13201 = vmatprep.subr.bf16.mxu0 %v19084_v10  ;;  %v19160_v10 = vld [vmem:[#allocation5 + $0x1180] ss:$16 sps:$4 sm:$0xff]  }
 0x22d   :  { %14432 = vmatpush1.bf16.msra.mxu1 %v19085_v15  ;;  %v19171_v15 = vld [vmem:[#allocation5 + $0xdac] ss:$16 sps:$4 sm:$0xff]  }
 0x22e   :  { %13202 = vmatpush1.bf16.msra.mxu0 %v19082_v14  ;;  %14442 = vmatprep.subr.bf16.mxu1 %v19093_v16  ;;  %v19168_v14 = vld [vmem:[#allocation5 + $0x11a4] ss:$16 sps:$4 sm:$0xff]   ;;  %v19169_v16 = vld [vmem:[#allocation5 + $0xda8] ss:$16 sps:$4 sm:$0xff]  }
 0x22f   :  { %13212 = vmatprep.subr.bf16.mxu0 %v19090_v41  ;;  %v19166_v41 = vld [vmem:[#allocation5 + $0x11a0] ss:$16 sps:$4 sm:$0xff]  }
 0x230   :  { %14434 = vmatmul.mubr.bf16.vlgmr.msra.gmra.mrb[4].mxu1 %v21946_v58  ;;  %v19111_v58 = vld [vmem:[#allocation5 + $0xc6c] ss:$16 sps:$4 sm:$0xff]  }
 0x231   :  { %13204 = vmatmul.mubr.bf16.vlgmr.msra.gmra.mrb[0].mxu0 %v21973_v18  ;;  %14443 = vmatpush1.bf16.msra.mxu1 %v19091_v20  ;;  %v19172_v20 = vld [vmem:[#allocation5 + $0x11c0] ss:$16 sps:$4 sm:$0xff]  }
 0x232   :  { %13213 = vmatpush1.bf16.msra.mxu0 %v19088_v47  ;;  %14444 = vmatprep.subr.bf16.mxu1 %v19099_v22  ;;  %v19177_v47 = vld [vmem:[#allocation5 + $0xdcc] ss:$16 sps:$4 sm:$0xff]   ;;  %v19180_v22 = vld [vmem:[#allocation5 + $0x11e4] ss:$16 sps:$4 sm:$0xff]  }
 0x233   :  { %13214 = vmatprep.subr.bf16.mxu0 %v19096_v21  ;;  %13244 = vmatprep.mubr.bf16.mxu0 %v21976_v24  ;;  %v19175_v21 = vld [vmem:[#allocation5 + $0xdc8] ss:$16 sps:$4 sm:$0xff]  }
 0x234   :  { %14474 = vmatprep.mubr.bf16.mxu1 %v21949_v62  ;;  %v19115_v62 = vld [vmem:[#allocation5 + $0xc88] ss:$16 sps:$4 sm:$0xff]  }
 0x235   :  { %14445 = vmatpush1.bf16.msra.mxu1 %v19097_v51  ;;  %v19178_v51 = vld [vmem:[#allocation5 + $0x11e0] ss:$16 sps:$4 sm:$0xff]  }
 0x236   :  { %13215 = vmatpush1.bf16.msra.mxu0 %v19094_v26  ;;  %14446 = vmatprep.subr.bf16.mxu1 %v19105_v29  ;;  %v19183_v26 = vld [vmem:[#allocation5 + $0xdec] ss:$16 sps:$4 sm:$0xff]   ;;  %v19186_v29 = vld [vmem:[#allocation5 + $0x1204] ss:$16 sps:$4 sm:$0xff]  }
 0x237   :  { %13216 = vmatprep.subr.bf16.mxu0 %v19102_v27  ;;  %v19181_v27 = vld [vmem:[#allocation5 + $0xde8] ss:$16 sps:$4 sm:$0xff]  }
 0x239   :  { %14447 = vmatpush1.bf16.msra.mxu1 %v19103_v33  ;;  %v21984_v33 = vrot.slane %v21967_v8, %v21865_v50  ;;  %v19190_v8 = vld [vmem:[#allocation5 + $0x1220] ss:$16 sps:$4 sm:$0xff]  }
 0x23a   :  { %13217 = vmatpush1.bf16.msra.mxu0 %v19100_v30  ;;  %14448 = vmatprep.subr.bf16.mxu1 %v19111_v58  ;;  %v19189_v30 = vld [vmem:[#allocation5 + $0xe0c] ss:$16 sps:$4 sm:$0xff]   ;;  %v19187_v58 = vld [vmem:[#allocation5 + $0xe08] ss:$16 sps:$4 sm:$0xff]  }
 0x23b   :  { %13218 = vmatprep.subr.bf16.mxu0 %v19108_v11  ;;  %v19184_v11 = vld [vmem:[#allocation5 + $0x1200] ss:$16 sps:$4 sm:$0xff]  }
 0x23d   :  { %14449 = vmatpush1.bf16.msra.mxu1 %v19109_v35  ;;  %v19195_v35 = vld [vmem:[#allocation5 + $0xe2c] ss:$16 sps:$4 sm:$0xff]  }
 0x23e   :  { %13219 = vmatpush1.bf16.msra.mxu0 %v19106_v34  ;;  %14450 = vmatprep.subr.bf16.mxu1 %v19117_v37  ;;  %v19192_v34 = vld [vmem:[#allocation5 + $0x1224] ss:$16 sps:$4 sm:$0xff]   ;;  %v19193_v37 = vld [vmem:[#allocation5 + $0xe28] ss:$16 sps:$4 sm:$0xff]  }
 0x23f   :  { %13220 = vmatprep.subr.bf16.mxu0 %v19114_v36  ;;  %v21988_v36 = vcombine.high %v21976_v24, %v21976_v24 }
 0x241   :  { %14451 = vmatpush1.bf16.msra.mxu1 %v19115_v62  ;;  %v19201_v62 = vld [vmem:[#allocation5 + $0xe4c] ss:$16 sps:$4 sm:$0xff]  }
 0x242   :  { %13221 = vmatpush1.bf16.msra.mxu0 %v19112_v13  ;;  %14452 = vmatprep.subr.bf16.mxu1 %v19123_v40  ;;  %v19198_v13 = vld [vmem:[#allocation5 + $0x1244] ss:$16 sps:$4 sm:$0xff]   ;;  %v19199_v40 = vld [vmem:[#allocation5 + $0xe48] ss:$16 sps:$4 sm:$0xff]  }
 0x243   :  { %13222 = vmatprep.subr.bf16.mxu0 %v19120_v39  ;;  %v19196_v39 = vld [vmem:[#allocation5 + $0x1240] ss:$16 sps:$4 sm:$0xff]  }
 0x245   :  { %14453 = vmatpush1.bf16.msra.mxu1 %v19121_v44  ;;  %v19202_v44 = vld [vmem:[#allocation5 + $0x1260] ss:$16 sps:$4 sm:$0xff]  }
 0x246   :  { %13223 = vmatpush1.bf16.msra.mxu0 %v19118_v42  ;;  %14454 = vmatprep.subr.bf16.mxu1 %v19129_v45  ;;  %v19204_v42 = vld [vmem:[#allocation5 + $0x1264] ss:$16 sps:$4 sm:$0xff]  }
 0x247   :  { %13224 = vmatprep.subr.bf16.mxu0 %v19126_v1  ;;  %v19205_v1 = vld [vmem:[#allocation5 + $0xe68] ss:$16 sps:$4 sm:$0xff]   ;;  %v19210_v45 = vld [vmem:[#allocation5 + $0x1284] ss:$16 sps:$4 sm:$0xff]  }
 0x249   :  { %14455 = vmatpush1.bf16.msra.mxu1 %v19127_v48  ;;  %v19208_v48 = vld [vmem:[#allocation5 + $0x1280] ss:$16 sps:$4 sm:$0xff]  }
 0x24a   :  { %13225 = vmatpush1.bf16.msra.mxu0 %v19124_v46  ;;  %14456 = vmatprep.subr.bf16.mxu1 %v19135_v49  ;;  %v19213_v46 = vld [vmem:[#allocation5 + $0xe8c] ss:$16 sps:$4 sm:$0xff]  }
 0x24b   :  { %13226 = vmatprep.subr.bf16.mxu0 %v19132_v19  ;;  %v19216_v19 = vld [vmem:[#allocation5 + $0x12a4] ss:$16 sps:$4 sm:$0xff]   ;;  %v19219_v49 = vld [vmem:[#allocation5 + $0xeac] ss:$16 sps:$4 sm:$0xff]  }
 0x24d   :  { %14457 = vmatpush1.bf16.msra.mxu1 %v19133_v31  ;;  %v19217_v31 = vld [vmem:[#allocation5 + $0xea8] ss:$16 sps:$4 sm:$0xff]  }
 0x24e   :  { %13227 = vmatpush1.bf16.msra.mxu0 %v19130_v52  ;;  %14458 = vmatprep.subr.bf16.mxu1 %v19141_v54  ;;  %v19214_v52 = vld [vmem:[#allocation5 + $0x12a0] ss:$16 sps:$4 sm:$0xff]   ;;  %v19225_v54 = vld [vmem:[#allocation5 + $0xecc] ss:$16 sps:$4 sm:$0xff]  }
 0x24f   :  { %13228 = vmatprep.subr.bf16.mxu0 %v19138_v53  ;;  %v19222_v53 = vld [vmem:[#allocation5 + $0x12c4] ss:$16 sps:$4 sm:$0xff]  }
 0x251   :  { %14459 = vmatpush1.bf16.msra.mxu1 %v19139_v56  ;;  %v19223_v56 = vld [vmem:[#allocation5 + $0xec8] ss:$16 sps:$4 sm:$0xff]  }
 0x252   :  { %13229 = vmatpush1.bf16.msra.mxu0 %v19136_v55  ;;  %14460 = vmatprep.subr.bf16.mxu1 %v19147_v57  ;;  %v19220_v55 = vld [vmem:[#allocation5 + $0x12c0] ss:$16 sps:$4 sm:$0xff]   ;;  %v19231_v57 = vld [vmem:[#allocation5 + $0xeec] ss:$16 sps:$4 sm:$0xff]  }
 0x253   :  { %13230 = vmatprep.subr.bf16.mxu0 %v19144_v28  ;;  %v19228_v28 = vld [vmem:[#allocation5 + $0x12e4] ss:$16 sps:$4 sm:$0xff]  }
 0x255   :  { %14461 = vmatpush1.bf16.msra.mxu1 %v19145_v59  ;;  %v19229_v59 = vld [vmem:[#allocation5 + $0xee8] ss:$16 sps:$4 sm:$0xff]  }
 0x256   :  { %13231 = vmatpush1.bf16.msra.mxu0 %v19142_v25  ;;  %14462 = vmatprep.subr.bf16.mxu1 %v19153_v61  ;;  %v19226_v25 = vld [vmem:[#allocation5 + $0x12e0] ss:$16 sps:$4 sm:$0xff]   ;;  %v19237_v61 = vld [vmem:[#allocation5 + $0xf0c] ss:$16 sps:$4 sm:$0xff]  }
 0x257   :  { %13232 = vmatprep.subr.bf16.mxu0 %v19150_v60  ;;  %v19234_v60 = vld [vmem:[#allocation5 + $0x1304] ss:$16 sps:$4 sm:$0xff]  }
 0x259   :  { %14463 = vmatpush1.bf16.msra.mxu1 %v19151_v63  ;;  %v19235_v63 = vld [vmem:[#allocation5 + $0xf08] ss:$16 sps:$4 sm:$0xff]  }
 0x25a   :  { %13233 = vmatpush1.bf16.msra.mxu0 %v19148_v32  ;;  %14464 = vmatprep.subr.bf16.mxu1 %v19159_v2  ;;  %v19232_v32 = vld [vmem:[#allocation5 + $0x1300] ss:$16 sps:$4 sm:$0xff]   ;;  %v19243_v2 = vld [vmem:[#allocation5 + $0xf2c] ss:$16 sps:$4 sm:$0xff]  }
 0x25b   :  { %13234 = vmatprep.subr.bf16.mxu0 %v19156_v0  ;;  %v19240_v0 = vld [vmem:[#allocation5 + $0x1324] ss:$16 sps:$4 sm:$0xff]  }
 0x25d   :  { %14465 = vmatpush1.bf16.msra.mxu1 %v19157_v4  ;;  %v19241_v4 = vld [vmem:[#allocation5 + $0xf28] ss:$16 sps:$4 sm:$0xff]  }
 0x25e   :  { %13235 = vmatpush1.bf16.msra.mxu0 %v19154_v3  ;;  %14466 = vmatprep.subr.bf16.mxu1 %v19165_v9  ;;  %v19238_v3 = vld [vmem:[#allocation5 + $0x1320] ss:$16 sps:$4 sm:$0xff]   ;;  %v19249_v9 = vld [vmem:[#allocation5 + $0xf4c] ss:$16 sps:$4 sm:$0xff]  }
 0x25f   :  { %13236 = vmatprep.subr.bf16.mxu0 %v19162_v38  ;;  %v19246_v38 = vld [vmem:[#allocation5 + $0x1344] ss:$16 sps:$4 sm:$0xff]  }
 0x261   :  { %14467 = vmatpush1.bf16.msra.mxu1 %v19163_v23  ;;  %v19247_v23 = vld [vmem:[#allocation5 + $0xf48] ss:$16 sps:$4 sm:$0xff]  }
 0x262   :  { %13237 = vmatpush1.bf16.msra.mxu0 %v19160_v10  ;;  %14468 = vmatprep.subr.bf16.mxu1 %v19171_v15  ;;  %v19244_v10 = vld [vmem:[#allocation5 + $0x1340] ss:$16 sps:$4 sm:$0xff]   ;;  %v19255_v15 = vld [vmem:[#allocation5 + $0xf6c] ss:$16 sps:$4 sm:$0xff]  }
 0x263   :  { %13238 = vmatprep.subr.bf16.mxu0 %v19168_v14  ;;  %v19252_v14 = vld [vmem:[#allocation5 + $0x1364] ss:$16 sps:$4 sm:$0xff]  }
 0x265   :  { %14469 = vmatpush1.bf16.msra.mxu1 %v19169_v16  ;;  %v19253_v16 = vld [vmem:[#allocation5 + $0xf68] ss:$16 sps:$4 sm:$0xff]  }
 0x266   :  { %13239 = vmatpush1.bf16.msra.mxu0 %v19166_v41  ;;  %14470 = vmatprep.subr.bf16.mxu1 %v19177_v47  ;;  %v19250_v41 = vld [vmem:[#allocation5 + $0x1360] ss:$16 sps:$4 sm:$0xff]   ;;  %v19261_v47 = vld [vmem:[#allocation5 + $0xf8c] ss:$16 sps:$4 sm:$0xff]  }
 0x267   :  { %13240 = vmatprep.subr.bf16.mxu0 %v19174_v17  ;;  %v19258_v17 = vld [vmem:[#allocation5 + $0x1384] ss:$16 sps:$4 sm:$0xff]  }
 0x269   :  { %14471 = vmatpush1.bf16.msra.mxu1 %v19175_v21  ;;  %v19259_v21 = vld [vmem:[#allocation5 + $0xf88] ss:$16 sps:$4 sm:$0xff]  }
 0x26a   :  { %13241 = vmatpush1.bf16.msra.mxu0 %v19172_v20  ;;  %14472 = vmatprep.subr.bf16.mxu1 %v19183_v26  ;;  %v19256_v20 = vld [vmem:[#allocation5 + $0x1380] ss:$16 sps:$4 sm:$0xff]   ;;  %v19267_v26 = vld [vmem:[#allocation5 + $0xfac] ss:$16 sps:$4 sm:$0xff]  }
 0x26b   :  { %13242 = vmatprep.subr.bf16.mxu0 %v19180_v22  ;;  %v19264_v22 = vld [vmem:[#allocation5 + $0x13a4] ss:$16 sps:$4 sm:$0xff]  }
 0x26d   :  { %14473 = vmatpush1.bf16.msra.mxu1 %v19181_v27  ;;  %v19265_v27 = vld [vmem:[#allocation5 + $0xfa8] ss:$16 sps:$4 sm:$0xff]  }
 0x26e   :  { %13243 = vmatpush1.bf16.msra.mxu0 %v19178_v51  ;;  %14483 = vmatprep.subr.bf16.mxu1 %v19189_v30  ;;  %v19262_v51 = vld [vmem:[#allocation5 + $0x13a0] ss:$16 sps:$4 sm:$0xff]   ;;  %v19273_v30 = vld [vmem:[#allocation5 + $0xfcc] ss:$16 sps:$4 sm:$0xff]  }
 0x26f   :  { %13253 = vmatprep.subr.bf16.mxu0 %v19186_v29  ;;  %v19270_v29 = vld [vmem:[#allocation5 + $0x13c4] ss:$16 sps:$4 sm:$0xff]  }
 0x270   :  { %14475 = vmatmul.mubr.bf16.vlgmr.msra.gmra.mrb[4].mxu1 %v21957_v7  ;;  %v19207_v7 = vld [vmem:[#allocation5 + $0xe6c] ss:$16 sps:$4 sm:$0xff]  }
 0x271   :  { %13245 = vmatmul.mubr.bf16.vlgmr.msra.gmra.mrb[0].mxu0 %v21984_v33  ;;  %14484 = vmatpush1.bf16.msra.mxu1 %v19187_v58 }
 0x272   :  { %13254 = vmatpush1.bf16.msra.mxu0 %v19184_v11  ;;  %14485 = vmatprep.subr.bf16.mxu1 %v19195_v35  ;;  %v21590_v11 = vld [vmem:[#allocation3 + $0x10] sm:$0xff]  ;;  %v19271_v35 = vld [vmem:[#allocation5 + $0xfc8] ss:$16 sps:$4 sm:$0xff]  }
 0x273   :  { %13255 = vmatprep.subr.bf16.mxu0 %v19192_v34  ;;  %13285 = vmatprep.mubr.bf16.mxu0 %v21988_v36  ;;  %v2286_v58 = vcombine.high %v21590_v11, %v21590_v11  ;;  %v19268_v34 = vld [vmem:[#allocation5 + $0x13c0] ss:$16 sps:$4 sm:$0xff]  }
 0x274   :  { %14515 = vmatprep.mubr.bf16.mxu1 %v21961_v12  ;;  %v19211_v12 = vld [vmem:[#allocation5 + $0xe88] ss:$16 sps:$4 sm:$0xff]   ;;  %v19346_v11 = vld [vmem:[#allocation5 + $0x1560] ss:$16 sps:$4 sm:$0xff]  }
 0x275   :  { %14486 = vmatpush1.bf16.msra.mxu1 %v19193_v37  ;;  %v19279_v37 = vld [vmem:[#allocation5 + $0xfec] ss:$16 sps:$4 sm:$0xff]  }
 0x276   :  { %13256 = vmatpush1.bf16.msra.mxu0 %v19190_v8  ;;  %14487 = vmatprep.subr.bf16.mxu1 %v19201_v62  ;;  %v19276_v8 = vld [vmem:[#allocation5 + $0x13e4] ss:$16 sps:$4 sm:$0xff]   ;;  %v19274_v62 = vld [vmem:[#allocation5 + $0x13e0] ss:$16 sps:$4 sm:$0xff]  }
 0x277   :  { %13257 = vmatprep.subr.bf16.mxu0 %v19198_v13  ;;  %v21995_v13 = vrot.slane %v2286_v58, %v21865_v50  ;;  %v19349_v58 = vld [vmem:[#allocation5 + $0x1168] ss:$16 sps:$4 sm:$0xff]  }
 0x279   :  { %14488 = vmatpush1.bf16.msra.mxu1 %v19199_v40  ;;  %v19282_v40 = vld [vmem:[#allocation5 + $0x1404] ss:$16 sps:$4 sm:$0xff]  }
 0x27a   :  { %13258 = vmatpush1.bf16.msra.mxu0 %v19196_v39  ;;  %14489 = vmatprep.subr.bf16.mxu1 %v19207_v7  ;;  %v19277_v39 = vld [vmem:[#allocation5 + $0xfe8] ss:$16 sps:$4 sm:$0xff]   ;;  %v2302_v7 = vcombine.high %v21995_v13, %v21995_v13 }
 0x27b   :  { %13259 = vmatprep.subr.bf16.mxu0 %v19204_v42  ;;  %v19285_v42 = vld [vmem:[#allocation5 + $0x100c] ss:$16 sps:$4 sm:$0xff]  }
 0x27d   :  { %14490 = vmatpush1.bf16.msra.mxu1 %v19205_v1  ;;  %v19280_v1 = vld [vmem:[#allocation5 + $0x1400] ss:$16 sps:$4 sm:$0xff]  }
 0x27e   :  { %13260 = vmatpush1.bf16.msra.mxu0 %v19202_v44  ;;  %14491 = vmatprep.subr.bf16.mxu1 %v19213_v46  ;;  %v22001_v44 = vcombine.high %v21984_v33, %v21984_v33  ;;  %v19288_v46 = vld [vmem:[#allocation5 + $0x1424] ss:$16 sps:$4 sm:$0xff]  }
 0x27f   :  { %13261 = vmatprep.subr.bf16.mxu0 %v19210_v45  ;;  %v19283_v45 = vld [vmem:[#allocation5 + $0x1008] ss:$16 sps:$4 sm:$0xff]  }
 0x281   :  { %14492 = vmatpush1.bf16.msra.mxu1 %v19211_v12  ;;  %v22004_v12 = vrot.slane %v2302_v7, %v21865_v50  ;;  %v19366_v7 = vld [vmem:[#allocation5 + $0x15c4] ss:$16 sps:$4 sm:$0xff]  }
 0x282   :  { %13262 = vmatpush1.bf16.msra.mxu0 %v19208_v48  ;;  %14493 = vmatprep.subr.bf16.mxu1 %v19219_v49  ;;  %v19291_v48 = vld [vmem:[#allocation5 + $0x102c] ss:$16 sps:$4 sm:$0xff]   ;;  %v19289_v49 = vld [vmem:[#allocation5 + $0x1028] ss:$16 sps:$4 sm:$0xff]  }
 0x283   :  { %13263 = vmatprep.subr.bf16.mxu0 %v19216_v19  ;;  %v19286_v19 = vld [vmem:[#allocation5 + $0x1420] ss:$16 sps:$4 sm:$0xff]  }
 0x285   :  { %14494 = vmatpush1.bf16.msra.mxu1 %v19217_v31  ;;  %v19297_v31 = vld [vmem:[#allocation5 + $0x104c] ss:$16 sps:$4 sm:$0xff]  }
 0x286   :  { %13264 = vmatpush1.bf16.msra.mxu0 %v19214_v52  ;;  %14495 = vmatprep.subr.bf16.mxu1 %v19225_v54  ;;  %v19294_v52 = vld [vmem:[#allocation5 + $0x1444] ss:$16 sps:$4 sm:$0xff]   ;;  %v19295_v54 = vld [vmem:[#allocation5 + $0x1048] ss:$16 sps:$4 sm:$0xff]  }
 0x287   :  { %13265 = vmatprep.subr.bf16.mxu0 %v19222_v53  ;;  %v19292_v53 = vld [vmem:[#allocation5 + $0x1440] ss:$16 sps:$4 sm:$0xff]  }
 0x289   :  { %14496 = vmatpush1.bf16.msra.mxu1 %v19223_v56  ;;  %v19298_v56 = vld [vmem:[#allocation5 + $0x1460] ss:$16 sps:$4 sm:$0xff]  }
 0x28a   :  { %13266 = vmatpush1.bf16.msra.mxu0 %v19220_v55  ;;  %14497 = vmatprep.subr.bf16.mxu1 %v19231_v57  ;;  %v19300_v55 = vld [vmem:[#allocation5 + $0x1464] ss:$16 sps:$4 sm:$0xff]  }
 0x28b   :  { %13267 = vmatprep.subr.bf16.mxu0 %v19228_v28  ;;  %v19301_v28 = vld [vmem:[#allocation5 + $0x1068] ss:$16 sps:$4 sm:$0xff]   ;;  %v19306_v57 = vld [vmem:[#allocation5 + $0x1484] ss:$16 sps:$4 sm:$0xff]  }
 0x28d   :  { %14498 = vmatpush1.bf16.msra.mxu1 %v19229_v59  ;;  %v19304_v59 = vld [vmem:[#allocation5 + $0x1480] ss:$16 sps:$4 sm:$0xff]  }
 0x28e   :  { %13268 = vmatpush1.bf16.msra.mxu0 %v19226_v25  ;;  %14499 = vmatprep.subr.bf16.mxu1 %v19237_v61  ;;  %v19309_v25 = vld [vmem:[#allocation5 + $0x108c] ss:$16 sps:$4 sm:$0xff]  }
 0x28f   :  { %13269 = vmatprep.subr.bf16.mxu0 %v19234_v60  ;;  %v19312_v60 = vld [vmem:[#allocation5 + $0x14a4] ss:$16 sps:$4 sm:$0xff]   ;;  %v19315_v61 = vld [vmem:[#allocation5 + $0x10ac] ss:$16 sps:$4 sm:$0xff]  }
 0x291   :  { %14500 = vmatpush1.bf16.msra.mxu1 %v19235_v63  ;;  %v19313_v63 = vld [vmem:[#allocation5 + $0x10a8] ss:$16 sps:$4 sm:$0xff]  }
 0x292   :  { %13270 = vmatpush1.bf16.msra.mxu0 %v19232_v32  ;;  %14501 = vmatprep.subr.bf16.mxu1 %v19243_v2  ;;  %v19310_v32 = vld [vmem:[#allocation5 + $0x14a0] ss:$16 sps:$4 sm:$0xff]   ;;  %v19321_v2 = vld [vmem:[#allocation5 + $0x10cc] ss:$16 sps:$4 sm:$0xff]  }
 0x293   :  { %13271 = vmatprep.subr.bf16.mxu0 %v19240_v0  ;;  %v19318_v0 = vld [vmem:[#allocation5 + $0x14c4] ss:$16 sps:$4 sm:$0xff]  }
 0x295   :  { %14502 = vmatpush1.bf16.msra.mxu1 %v19241_v4  ;;  %v19319_v4 = vld [vmem:[#allocation5 + $0x10c8] ss:$16 sps:$4 sm:$0xff]  }
 0x296   :  { %13272 = vmatpush1.bf16.msra.mxu0 %v19238_v3  ;;  %14503 = vmatprep.subr.bf16.mxu1 %v19249_v9  ;;  %v19316_v3 = vld [vmem:[#allocation5 + $0x14c0] ss:$16 sps:$4 sm:$0xff]   ;;  %v19327_v9 = vld [vmem:[#allocation5 + $0x10ec] ss:$16 sps:$4 sm:$0xff]  }
 0x297   :  { %13273 = vmatprep.subr.bf16.mxu0 %v19246_v38  ;;  %v19324_v38 = vld [vmem:[#allocation5 + $0x14e4] ss:$16 sps:$4 sm:$0xff]  }
 0x299   :  { %14504 = vmatpush1.bf16.msra.mxu1 %v19247_v23  ;;  %v19325_v23 = vld [vmem:[#allocation5 + $0x10e8] ss:$16 sps:$4 sm:$0xff]  }
 0x29a   :  { %13274 = vmatpush1.bf16.msra.mxu0 %v19244_v10  ;;  %14505 = vmatprep.subr.bf16.mxu1 %v19255_v15  ;;  %v19322_v10 = vld [vmem:[#allocation5 + $0x14e0] ss:$16 sps:$4 sm:$0xff]   ;;  %v19333_v15 = vld [vmem:[#allocation5 + $0x110c] ss:$16 sps:$4 sm:$0xff]  }
 0x29b   :  { %13275 = vmatprep.subr.bf16.mxu0 %v19252_v14  ;;  %v19330_v14 = vld [vmem:[#allocation5 + $0x1504] ss:$16 sps:$4 sm:$0xff]  }
 0x29d   :  { %14506 = vmatpush1.bf16.msra.mxu1 %v19253_v16  ;;  %v19331_v16 = vld [vmem:[#allocation5 + $0x1108] ss:$16 sps:$4 sm:$0xff]  }
 0x29e   :  { %13276 = vmatpush1.bf16.msra.mxu0 %v19250_v41  ;;  %14507 = vmatprep.subr.bf16.mxu1 %v19261_v47  ;;  %v19328_v41 = vld [vmem:[#allocation5 + $0x1500] ss:$16 sps:$4 sm:$0xff]   ;;  %v19339_v47 = vld [vmem:[#allocation5 + $0x112c] ss:$16 sps:$4 sm:$0xff]  }
 0x29f   :  { %13277 = vmatprep.subr.bf16.mxu0 %v19258_v17  ;;  %v19336_v17 = vld [vmem:[#allocation5 + $0x1524] ss:$16 sps:$4 sm:$0xff]  }
 0x2a1   :  { %14508 = vmatpush1.bf16.msra.mxu1 %v19259_v21  ;;  %v19337_v21 = vld [vmem:[#allocation5 + $0x1128] ss:$16 sps:$4 sm:$0xff]  }
 0x2a2   :  { %13278 = vmatpush1.bf16.msra.mxu0 %v19256_v20  ;;  %14509 = vmatprep.subr.bf16.mxu1 %v19267_v26  ;;  %v19334_v20 = vld [vmem:[#allocation5 + $0x1520] ss:$16 sps:$4 sm:$0xff]   ;;  %v19345_v26 = vld [vmem:[#allocation5 + $0x114c] ss:$16 sps:$4 sm:$0xff]  }
 0x2a3   :  { %13279 = vmatprep.subr.bf16.mxu0 %v19264_v22  ;;  %v19342_v22 = vld [vmem:[#allocation5 + $0x1544] ss:$16 sps:$4 sm:$0xff]  }
 0x2a5   :  { %14510 = vmatpush1.bf16.msra.mxu1 %v19265_v27  ;;  %v19343_v27 = vld [vmem:[#allocation5 + $0x1148] ss:$16 sps:$4 sm:$0xff]  }
 0x2a6   :  { %13280 = vmatpush1.bf16.msra.mxu0 %v19262_v51  ;;  %14511 = vmatprep.subr.bf16.mxu1 %v19273_v30  ;;  %v19340_v51 = vld [vmem:[#allocation5 + $0x1540] ss:$16 sps:$4 sm:$0xff]   ;;  %v19351_v30 = vld [vmem:[#allocation5 + $0x116c] ss:$16 sps:$4 sm:$0xff]  }
 0x2a7   :  { %13281 = vmatprep.subr.bf16.mxu0 %v19270_v29  ;;  %v19348_v29 = vld [vmem:[#allocation5 + $0x1564] ss:$16 sps:$4 sm:$0xff]  }
 0x2a9   :  { %14512 = vmatpush1.bf16.msra.mxu1 %v19271_v35  ;;  %v19357_v35 = vld [vmem:[#allocation5 + $0x118c] ss:$16 sps:$4 sm:$0xff]  }
 0x2aa   :  { %13282 = vmatpush1.bf16.msra.mxu0 %v19268_v34  ;;  %14513 = vmatprep.subr.bf16.mxu1 %v19279_v37  ;;  %v19354_v34 = vld [vmem:[#allocation5 + $0x1584] ss:$16 sps:$4 sm:$0xff]   ;;  %v19355_v37 = vld [vmem:[#allocation5 + $0x1188] ss:$16 sps:$4 sm:$0xff]  }
 0x2ab   :  { %13283 = vmatprep.subr.bf16.mxu0 %v19276_v8  ;;  %v19352_v8 = vld [vmem:[#allocation5 + $0x1580] ss:$16 sps:$4 sm:$0xff]  }
 0x2ad   :  { %14514 = vmatpush1.bf16.msra.mxu1 %v19277_v39  ;;  %v19363_v39 = vld [vmem:[#allocation5 + $0x11ac] ss:$16 sps:$4 sm:$0xff]  }
 0x2ae   :  { %13284 = vmatpush1.bf16.msra.mxu0 %v19274_v62  ;;  %14524 = vmatprep.subr.bf16.mxu1 %v19285_v42  ;;  %v19360_v62 = vld [vmem:[#allocation5 + $0x15a4] ss:$16 sps:$4 sm:$0xff]   ;;  %v19361_v42 = vld [vmem:[#allocation5 + $0x11a8] ss:$16 sps:$4 sm:$0xff]  }
 0x2af   :  { %13294 = vmatprep.subr.bf16.mxu0 %v19282_v40  ;;  %v19358_v40 = vld [vmem:[#allocation5 + $0x15a0] ss:$16 sps:$4 sm:$0xff]  }
 0x2b0   :  { %14516 = vmatmul.mubr.bf16.vlgmr.msra.gmra.mrb[4].mxu1 %v21973_v18  ;;  %v19303_v18 = vld [vmem:[#allocation5 + $0x106c] ss:$16 sps:$4 sm:$0xff]  }
 0x2b1   :  { %13286 = vmatmul.mubr.bf16.vlgmr.msra.gmra.mrb[0].mxu0 %v22001_v44  ;;  %14525 = vmatpush1.bf16.msra.mxu1 %v19283_v45  ;;  %v19364_v45 = vld [vmem:[#allocation5 + $0x15c0] ss:$16 sps:$4 sm:$0xff]  }
 0x2b2   :  { %13295 = vmatpush1.bf16.msra.mxu0 %v19280_v1  ;;  %14526 = vmatprep.subr.bf16.mxu1 %v19291_v48  ;;  %v19369_v1 = vld [vmem:[#allocation5 + $0x11cc] ss:$16 sps:$4 sm:$0xff]   ;;  %v19372_v48 = vld [vmem:[#allocation5 + $0x15e4] ss:$16 sps:$4 sm:$0xff]  }
 0x2b3   :  { %13296 = vmatprep.subr.bf16.mxu0 %v19288_v46  ;;  %13326 = vmatprep.mubr.bf16.mxu0 %v22004_v12  ;;  %v19367_v46 = vld [vmem:[#allocation5 + $0x11c8] ss:$16 sps:$4 sm:$0xff]  }
 0x2b4   :  { %14556 = vmatprep.mubr.bf16.mxu1 %v21976_v24  ;;  %v19307_v24 = vld [vmem:[#allocation5 + $0x1088] ss:$16 sps:$4 sm:$0xff]  }
 0x2b5   :  { %14527 = vmatpush1.bf16.msra.mxu1 %v19289_v49  ;;  %v19370_v49 = vld [vmem:[#allocation5 + $0x15e0] ss:$16 sps:$4 sm:$0xff]  }
 0x2b6   :  { %13297 = vmatpush1.bf16.msra.mxu0 %v19286_v19  ;;  %14528 = vmatprep.subr.bf16.mxu1 %v19297_v31  ;;  %v19375_v19 = vld [vmem:[#allocation5 + $0x11ec] ss:$16 sps:$4 sm:$0xff]   ;;  %v19379_v31 = vld [vmem:[#allocation5 + $0x1604] ss:$16 sps:$4 sm:$0xff]  }
 0x2b7   :  { %13298 = vmatprep.subr.bf16.mxu0 %v19294_v52  ;;  %v19373_v52 = vld [vmem:[#allocation5 + $0x11e8] ss:$16 sps:$4 sm:$0xff]  }
 0x2b9   :  { %14529 = vmatpush1.bf16.msra.mxu1 %v19295_v54  ;;  %v22012_v54 = vrot.slane %v21995_v13, %v21865_v50  ;;  %v19383_v13 = vld [vmem:[#allocation5 + $0x1620] ss:$16 sps:$4 sm:$0xff]  }
 0x2ba   :  { %13299 = vmatpush1.bf16.msra.mxu0 %v19292_v53  ;;  %14530 = vmatprep.subr.bf16.mxu1 %v19303_v18  ;;  %v19382_v53 = vld [vmem:[#allocation5 + $0x120c] ss:$16 sps:$4 sm:$0xff]   ;;  %v19380_v18 = vld [vmem:[#allocation5 + $0x1208] ss:$16 sps:$4 sm:$0xff]  }
 0x2bb   :  { %13300 = vmatprep.subr.bf16.mxu0 %v19300_v55  ;;  %v19377_v55 = vld [vmem:[#allocation5 + $0x1600] ss:$16 sps:$4 sm:$0xff]  }
 0x2bd   :  { %14531 = vmatpush1.bf16.msra.mxu1 %v19301_v28  ;;  %v19388_v28 = vld [vmem:[#allocation5 + $0x122c] ss:$16 sps:$4 sm:$0xff]  }
 0x2be   :  { %13301 = vmatpush1.bf16.msra.mxu0 %v19298_v56  ;;  %14532 = vmatprep.subr.bf16.mxu1 %v19309_v25  ;;  %v19385_v56 = vld [vmem:[#allocation5 + $0x1624] ss:$16 sps:$4 sm:$0xff]   ;;  %v19386_v25 = vld [vmem:[#allocation5 + $0x1228] ss:$16 sps:$4 sm:$0xff]  }
 0x2bf   :  { %13302 = vmatprep.subr.bf16.mxu0 %v19306_v57  ;;  %v22016_v57 = vcombine.high %v22004_v12, %v22004_v12 }
 0x2c1   :  { %14533 = vmatpush1.bf16.msra.mxu1 %v19307_v24  ;;  %v19394_v24 = vld [vmem:[#allocation5 + $0x124c] ss:$16 sps:$4 sm:$0xff]  }
 0x2c2   :  { %13303 = vmatpush1.bf16.msra.mxu0 %v19304_v59  ;;  %14534 = vmatprep.subr.bf16.mxu1 %v19315_v61  ;;  %v19391_v59 = vld [vmem:[#allocation5 + $0x1644] ss:$16 sps:$4 sm:$0xff]   ;;  %v19392_v61 = vld [vmem:[#allocation5 + $0x1248] ss:$16 sps:$4 sm:$0xff]  }
 0x2c3   :  { %13304 = vmatprep.subr.bf16.mxu0 %v19312_v60  ;;  %v19389_v60 = vld [vmem:[#allocation5 + $0x1640] ss:$16 sps:$4 sm:$0xff]  }
 0x2c5   :  { %14535 = vmatpush1.bf16.msra.mxu1 %v19313_v63  ;;  %v19395_v63 = vld [vmem:[#allocation5 + $0x1660] ss:$16 sps:$4 sm:$0xff]  }
 0x2c6   :  { %13305 = vmatpush1.bf16.msra.mxu0 %v19310_v32  ;;  %14536 = vmatprep.subr.bf16.mxu1 %v19321_v2  ;;  %v19397_v32 = vld [vmem:[#allocation5 + $0x1664] ss:$16 sps:$4 sm:$0xff]  }
 0x2c7   :  { %13306 = vmatprep.subr.bf16.mxu0 %v19318_v0  ;;  %v19398_v0 = vld [vmem:[#allocation5 + $0x1268] ss:$16 sps:$4 sm:$0xff]   ;;  %v19403_v2 = vld [vmem:[#allocation5 + $0x1684] ss:$16 sps:$4 sm:$0xff]  }
 0x2c9   :  { %14537 = vmatpush1.bf16.msra.mxu1 %v19319_v4  ;;  %v19401_v4 = vld [vmem:[#allocation5 + $0x1680] ss:$16 sps:$4 sm:$0xff]  }
 0x2ca   :  { %13307 = vmatpush1.bf16.msra.mxu0 %v19316_v3  ;;  %14538 = vmatprep.subr.bf16.mxu1 %v19327_v9  ;;  %v19406_v3 = vld [vmem:[#allocation5 + $0x128c] ss:$16 sps:$4 sm:$0xff]  }
 0x2cb   :  { %13308 = vmatprep.subr.bf16.mxu0 %v19324_v38  ;;  %v19409_v38 = vld [vmem:[#allocation5 + $0x16a4] ss:$16 sps:$4 sm:$0xff]   ;;  %v19412_v9 = vld [vmem:[#allocation5 + $0x12ac] ss:$16 sps:$4 sm:$0xff]  }
 0x2cd   :  { %14539 = vmatpush1.bf16.msra.mxu1 %v19325_v23  ;;  %v19410_v23 = vld [vmem:[#allocation5 + $0x12a8] ss:$16 sps:$4 sm:$0xff]  }
 0x2ce   :  { %13309 = vmatpush1.bf16.msra.mxu0 %v19322_v10  ;;  %14540 = vmatprep.subr.bf16.mxu1 %v19333_v15  ;;  %v19407_v10 = vld [vmem:[#allocation5 + $0x16a0] ss:$16 sps:$4 sm:$0xff]   ;;  %v19418_v15 = vld [vmem:[#allocation5 + $0x12cc] ss:$16 sps:$4 sm:$0xff]  }
 0x2cf   :  { %13310 = vmatprep.subr.bf16.mxu0 %v19330_v14  ;;  %v19415_v14 = vld [vmem:[#allocation5 + $0x16c4] ss:$16 sps:$4 sm:$0xff]  }
 0x2d1   :  { %14541 = vmatpush1.bf16.msra.mxu1 %v19331_v16  ;;  %v19416_v16 = vld [vmem:[#allocation5 + $0x12c8] ss:$16 sps:$4 sm:$0xff]  }
 0x2d2   :  { %13311 = vmatpush1.bf16.msra.mxu0 %v19328_v41  ;;  %14542 = vmatprep.subr.bf16.mxu1 %v19339_v47  ;;  %v19413_v41 = vld [vmem:[#allocation5 + $0x16c0] ss:$16 sps:$4 sm:$0xff]   ;;  %v19424_v47 = vld [vmem:[#allocation5 + $0x12ec] ss:$16 sps:$4 sm:$0xff]  }
 0x2d3   :  { %13312 = vmatprep.subr.bf16.mxu0 %v19336_v17  ;;  %v19421_v17 = vld [vmem:[#allocation5 + $0x16e4] ss:$16 sps:$4 sm:$0xff]  }
 0x2d5   :  { %14543 = vmatpush1.bf16.msra.mxu1 %v19337_v21  ;;  %v19422_v21 = vld [vmem:[#allocation5 + $0x12e8] ss:$16 sps:$4 sm:$0xff]  }
 0x2d6   :  { %13313 = vmatpush1.bf16.msra.mxu0 %v19334_v20  ;;  %14544 = vmatprep.subr.bf16.mxu1 %v19345_v26  ;;  %v19419_v20 = vld [vmem:[#allocation5 + $0x16e0] ss:$16 sps:$4 sm:$0xff]   ;;  %v19430_v26 = vld [vmem:[#allocation5 + $0x130c] ss:$16 sps:$4 sm:$0xff]  }
 0x2d7   :  { %13314 = vmatprep.subr.bf16.mxu0 %v19342_v22  ;;  %v19427_v22 = vld [vmem:[#allocation5 + $0x1704] ss:$16 sps:$4 sm:$0xff]  }
 0x2d9   :  { %14545 = vmatpush1.bf16.msra.mxu1 %v19343_v27  ;;  %v19428_v27 = vld [vmem:[#allocation5 + $0x1308] ss:$16 sps:$4 sm:$0xff]  }
 0x2da   :  { %13315 = vmatpush1.bf16.msra.mxu0 %v19340_v51  ;;  %14546 = vmatprep.subr.bf16.mxu1 %v19351_v30  ;;  %v19425_v51 = vld [vmem:[#allocation5 + $0x1700] ss:$16 sps:$4 sm:$0xff]   ;;  %v19436_v30 = vld [vmem:[#allocation5 + $0x132c] ss:$16 sps:$4 sm:$0xff]  }
 0x2db   :  { %13316 = vmatprep.subr.bf16.mxu0 %v19348_v29  ;;  %v19433_v29 = vld [vmem:[#allocation5 + $0x1724] ss:$16 sps:$4 sm:$0xff]  }
 0x2dd   :  { %14547 = vmatpush1.bf16.msra.mxu1 %v19349_v58  ;;  %v19434_v58 = vld [vmem:[#allocation5 + $0x1328] ss:$16 sps:$4 sm:$0xff]  }
 0x2de   :  { %13317 = vmatpush1.bf16.msra.mxu0 %v19346_v11  ;;  %14548 = vmatprep.subr.bf16.mxu1 %v19357_v35  ;;  %v19431_v11 = vld [vmem:[#allocation5 + $0x1720] ss:$16 sps:$4 sm:$0xff]   ;;  %v19442_v35 = vld [vmem:[#allocation5 + $0x134c] ss:$16 sps:$4 sm:$0xff]  }
 0x2df   :  { %13318 = vmatprep.subr.bf16.mxu0 %v19354_v34  ;;  %v19439_v34 = vld [vmem:[#allocation5 + $0x1744] ss:$16 sps:$4 sm:$0xff]  }
 0x2e1   :  { %14549 = vmatpush1.bf16.msra.mxu1 %v19355_v37  ;;  %v19440_v37 = vld [vmem:[#allocation5 + $0x1348] ss:$16 sps:$4 sm:$0xff]  }
 0x2e2   :  { %13319 = vmatpush1.bf16.msra.mxu0 %v19352_v8  ;;  %14550 = vmatprep.subr.bf16.mxu1 %v19363_v39  ;;  %v19437_v8 = vld [vmem:[#allocation5 + $0x1740] ss:$16 sps:$4 sm:$0xff]   ;;  %v19448_v39 = vld [vmem:[#allocation5 + $0x136c] ss:$16 sps:$4 sm:$0xff]  }
 0x2e3   :  { %13320 = vmatprep.subr.bf16.mxu0 %v19360_v62  ;;  %v19445_v62 = vld [vmem:[#allocation5 + $0x1764] ss:$16 sps:$4 sm:$0xff]  }
 0x2e5   :  { %14551 = vmatpush1.bf16.msra.mxu1 %v19361_v42  ;;  %v19446_v42 = vld [vmem:[#allocation5 + $0x1368] ss:$16 sps:$4 sm:$0xff]  }
 0x2e6   :  { %13321 = vmatpush1.bf16.msra.mxu0 %v19358_v40  ;;  %14552 = vmatprep.subr.bf16.mxu1 %v19369_v1  ;;  %v19443_v40 = vld [vmem:[#allocation5 + $0x1760] ss:$16 sps:$4 sm:$0xff]   ;;  %v19454_v1 = vld [vmem:[#allocation5 + $0x138c] ss:$16 sps:$4 sm:$0xff]  }
 0x2e7   :  { %13322 = vmatprep.subr.bf16.mxu0 %v19366_v7  ;;  %v19451_v7 = vld [vmem:[#allocation5 + $0x1784] ss:$16 sps:$4 sm:$0xff]  }
 0x2e9   :  { %14553 = vmatpush1.bf16.msra.mxu1 %v19367_v46  ;;  %v19452_v46 = vld [vmem:[#allocation5 + $0x1388] ss:$16 sps:$4 sm:$0xff]  }
 0x2ea   :  { %13323 = vmatpush1.bf16.msra.mxu0 %v19364_v45  ;;  %14554 = vmatprep.subr.bf16.mxu1 %v19375_v19  ;;  %v19449_v45 = vld [vmem:[#allocation5 + $0x1780] ss:$16 sps:$4 sm:$0xff]   ;;  %v19460_v19 = vld [vmem:[#allocation5 + $0x13ac] ss:$16 sps:$4 sm:$0xff]  }
 0x2eb   :  { %13324 = vmatprep.subr.bf16.mxu0 %v19372_v48  ;;  %v19457_v48 = vld [vmem:[#allocation5 + $0x17a4] ss:$16 sps:$4 sm:$0xff]  }
 0x2ed   :  { %14555 = vmatpush1.bf16.msra.mxu1 %v19373_v52  ;;  %v19458_v52 = vld [vmem:[#allocation5 + $0x13a8] ss:$16 sps:$4 sm:$0xff]  }
 0x2ee   :  { %13325 = vmatpush1.bf16.msra.mxu0 %v19370_v49  ;;  %14565 = vmatprep.subr.bf16.mxu1 %v19382_v53  ;;  %v19455_v49 = vld [vmem:[#allocation5 + $0x17a0] ss:$16 sps:$4 sm:$0xff]   ;;  %v19466_v53 = vld [vmem:[#allocation5 + $0x13cc] ss:$16 sps:$4 sm:$0xff]  }
 0x2ef   :  { %13335 = vmatprep.subr.bf16.mxu0 %v19379_v31  ;;  %v19463_v31 = vld [vmem:[#allocation5 + $0x17c4] ss:$16 sps:$4 sm:$0xff]  }
 0x2f0   :  { %14557 = vmatmul.mubr.bf16.vlgmr.msra.gmra.mrb[4].mxu1 %v21984_v33  ;;  %v19400_v33 = vld [vmem:[#allocation5 + $0x126c] ss:$16 sps:$4 sm:$0xff]  }
 0x2f1   :  { %13327 = vmatmul.mubr.bf16.vlgmr.msra.gmra.mrb[0].mxu0 %v22012_v54  ;;  %14566 = vmatpush1.bf16.msra.mxu1 %v19380_v18  ;;  %v19461_v18 = vld [vmem:[#allocation5 + $0x17c0] ss:$16 sps:$4 sm:$0xff]  }
 0x2f2   :  { %13336 = vmatpush1.bf16.msra.mxu0 %v19377_v55  ;;  %14567 = vmatprep.subr.bf16.mxu1 %v19388_v28  ;;  %v22022_v55 = vld.sshfl [vmem:[#allocation3 + $0x18] sm:$0xff pattern:$0x75316420]  ;;  %v19469_v28 = vld [vmem:[#allocation5 + $0x17e4] ss:$16 sps:$4 sm:$0xff]  }
 0x2f3   :  { %13337 = vmatprep.subr.bf16.mxu0 %v19385_v56  ;;  %13367 = vmatprep.mubr.bf16.mxu0 %v22016_v57  ;;  %v19464_v56 = vld [vmem:[#allocation5 + $0x13c8] ss:$16 sps:$4 sm:$0xff]  }
 0x2f4   :  { %14597 = vmatprep.mubr.bf16.mxu1 %v21988_v36  ;;  %v19404_v36 = vld [vmem:[#allocation5 + $0x1288] ss:$16 sps:$4 sm:$0xff]  }
 0x2f5   :  { %14568 = vmatpush1.bf16.msra.mxu1 %v19386_v25  ;;  %v19467_v25 = vld [vmem:[#allocation5 + $0x17e0] ss:$16 sps:$4 sm:$0xff]  }
 0x2f6   :  { %13338 = vmatpush1.bf16.msra.mxu0 %v19383_v13  ;;  %14569 = vmatprep.subr.bf16.mxu1 %v19394_v24  ;;  %v19472_v13 = vld [vmem:[#allocation5 + $0x13ec] ss:$16 sps:$4 sm:$0xff]   ;;  %v19475_v24 = vld [vmem:[#allocation5 + $0x1804] ss:$16 sps:$4 sm:$0xff]  }
 0x2f7   :  { %13339 = vmatprep.subr.bf16.mxu0 %v19391_v59  ;;  %v19470_v59 = vld [vmem:[#allocation5 + $0x13e8] ss:$16 sps:$4 sm:$0xff]  }
 0x2f9   :  { %14570 = vmatpush1.bf16.msra.mxu1 %v19392_v61  ;;  %v2350_v61 = vcombine.high %v22022_v55, %v22022_v55 }
 0x2fa   :  { %13340 = vmatpush1.bf16.msra.mxu0 %v19389_v60  ;;  %14571 = vmatprep.subr.bf16.mxu1 %v19400_v33  ;;  %v19478_v60 = vld [vmem:[#allocation5 + $0x140c] ss:$16 sps:$4 sm:$0xff]   ;;  %v19473_v33 = vld [vmem:[#allocation5 + $0x1800] ss:$16 sps:$4 sm:$0xff]  }
 0x2fb   :  { %13341 = vmatprep.subr.bf16.mxu0 %v19397_v32  ;;  %v22028_v32 = vcombine.high %v22012_v54, %v22012_v54 }
 0x2fd   :  { %14572 = vmatpush1.bf16.msra.mxu1 %v19398_v0  ;;  %v19481_v0 = vld [vmem:[#allocation5 + $0x1824] ss:$16 sps:$4 sm:$0xff]  }
 0x2fe   :  { %13342 = vmatpush1.bf16.msra.mxu0 %v19395_v63  ;;  %14573 = vmatprep.subr.bf16.mxu1 %v19406_v3  ;;  %v19476_v63 = vld [vmem:[#allocation5 + $0x1408] ss:$16 sps:$4 sm:$0xff]   ;;  %v22031_v3 = vrot.slane %v2350_v61, %v21865_v50  ;;  %v19559_v61 = vld [vmem:[#allocation5 + $0x19c4] ss:$16 sps:$4 sm:$0xff]  }
 0x2ff   :  { %13343 = vmatprep.subr.bf16.mxu0 %v19403_v2  ;;  %v19484_v2 = vld [vmem:[#allocation5 + $0x142c] ss:$16 sps:$4 sm:$0xff]  }
 0x301   :  { %14574 = vmatpush1.bf16.msra.mxu1 %v19404_v36  ;;  %v19482_v36 = vld [vmem:[#allocation5 + $0x1428] ss:$16 sps:$4 sm:$0xff]  }
 0x302   :  { %13344 = vmatpush1.bf16.msra.mxu0 %v19401_v4  ;;  %14575 = vmatprep.subr.bf16.mxu1 %v19412_v9  ;;  %v19479_v4 = vld [vmem:[#allocation5 + $0x1820] ss:$16 sps:$4 sm:$0xff]   ;;  %v19490_v9 = vld [vmem:[#allocation5 + $0x144c] ss:$16 sps:$4 sm:$0xff]  }
 0x303   :  { %13345 = vmatprep.subr.bf16.mxu0 %v19409_v38  ;;  %v19487_v38 = vld [vmem:[#allocation5 + $0x1844] ss:$16 sps:$4 sm:$0xff]  }
 0x305   :  { %14576 = vmatpush1.bf16.msra.mxu1 %v19410_v23  ;;  %v19488_v23 = vld [vmem:[#allocation5 + $0x1448] ss:$16 sps:$4 sm:$0xff]  }
 0x306   :  { %13346 = vmatpush1.bf16.msra.mxu0 %v19407_v10  ;;  %14577 = vmatprep.subr.bf16.mxu1 %v19418_v15  ;;  %v19485_v10 = vld [vmem:[#allocation5 + $0x1840] ss:$16 sps:$4 sm:$0xff]  }
 0x307   :  { %13347 = vmatprep.subr.bf16.mxu0 %v19415_v14  ;;  %v19493_v14 = vld [vmem:[#allocation5 + $0x1864] ss:$16 sps:$4 sm:$0xff]   ;;  %v19491_v15 = vld [vmem:[#allocation5 + $0x1860] ss:$16 sps:$4 sm:$0xff]  }
 0x309   :  { %14578 = vmatpush1.bf16.msra.mxu1 %v19416_v16  ;;  %v19499_v16 = vld [vmem:[#allocation5 + $0x1884] ss:$16 sps:$4 sm:$0xff]  }
 0x30a   :  { %13348 = vmatpush1.bf16.msra.mxu0 %v19413_v41  ;;  %14579 = vmatprep.subr.bf16.mxu1 %v19424_v47  ;;  %v19494_v41 = vld [vmem:[#allocation5 + $0x1468] ss:$16 sps:$4 sm:$0xff]   ;;  %v19497_v47 = vld [vmem:[#allocation5 + $0x1880] ss:$16 sps:$4 sm:$0xff]  }
 0x30b   :  { %13349 = vmatprep.subr.bf16.mxu0 %v19421_v17  ;;  %v19502_v17 = vld [vmem:[#allocation5 + $0x148c] ss:$16 sps:$4 sm:$0xff]  }
 0x30d   :  { %14580 = vmatpush1.bf16.msra.mxu1 %v19422_v21  ;;  %v19508_v21 = vld [vmem:[#allocation5 + $0x14ac] ss:$16 sps:$4 sm:$0xff]  }
 0x30e   :  { %13350 = vmatpush1.bf16.msra.mxu0 %v19419_v20  ;;  %14581 = vmatprep.subr.bf16.mxu1 %v19430_v26  ;;  %v19505_v20 = vld [vmem:[#allocation5 + $0x18a4] ss:$16 sps:$4 sm:$0xff]   ;;  %v19506_v26 = vld [vmem:[#allocation5 + $0x14a8] ss:$16 sps:$4 sm:$0xff]  }
 0x30f   :  { %13351 = vmatprep.subr.bf16.mxu0 %v19427_v22  ;;  %v19503_v22 = vld [vmem:[#allocation5 + $0x18a0] ss:$16 sps:$4 sm:$0xff]  }
 0x311   :  { %14582 = vmatpush1.bf16.msra.mxu1 %v19428_v27  ;;  %v19514_v27 = vld [vmem:[#allocation5 + $0x14cc] ss:$16 sps:$4 sm:$0xff]  }
 0x312   :  { %13352 = vmatpush1.bf16.msra.mxu0 %v19425_v51  ;;  %14583 = vmatprep.subr.bf16.mxu1 %v19436_v30  ;;  %v19511_v51 = vld [vmem:[#allocation5 + $0x18c4] ss:$16 sps:$4 sm:$0xff]   ;;  %v19512_v30 = vld [vmem:[#allocation5 + $0x14c8] ss:$16 sps:$4 sm:$0xff]  }
 0x313   :  { %13353 = vmatprep.subr.bf16.mxu0 %v19433_v29  ;;  %v19509_v29 = vld [vmem:[#allocation5 + $0x18c0] ss:$16 sps:$4 sm:$0xff]  }
 0x315   :  { %14584 = vmatpush1.bf16.msra.mxu1 %v19434_v58  ;;  %v19520_v58 = vld [vmem:[#allocation5 + $0x14ec] ss:$16 sps:$4 sm:$0xff]  }
 0x316   :  { %13354 = vmatpush1.bf16.msra.mxu0 %v19431_v11  ;;  %14585 = vmatprep.subr.bf16.mxu1 %v19442_v35  ;;  %v19517_v11 = vld [vmem:[#allocation5 + $0x18e4] ss:$16 sps:$4 sm:$0xff]   ;;  %v19518_v35 = vld [vmem:[#allocation5 + $0x14e8] ss:$16 sps:$4 sm:$0xff]  }
 0x317   :  { %13355 = vmatprep.subr.bf16.mxu0 %v19439_v34  ;;  %v19515_v34 = vld [vmem:[#allocation5 + $0x18e0] ss:$16 sps:$4 sm:$0xff]  }
 0x319   :  { %14586 = vmatpush1.bf16.msra.mxu1 %v19440_v37  ;;  %v19526_v37 = vld [vmem:[#allocation5 + $0x150c] ss:$16 sps:$4 sm:$0xff]  }
 0x31a   :  { %13356 = vmatpush1.bf16.msra.mxu0 %v19437_v8  ;;  %14587 = vmatprep.subr.bf16.mxu1 %v19448_v39  ;;  %v19523_v8 = vld [vmem:[#allocation5 + $0x1904] ss:$16 sps:$4 sm:$0xff]   ;;  %v19524_v39 = vld [vmem:[#allocation5 + $0x1508] ss:$16 sps:$4 sm:$0xff]  }
 0x31b   :  { %13357 = vmatprep.subr.bf16.mxu0 %v19445_v62  ;;  %v19521_v62 = vld [vmem:[#allocation5 + $0x1900] ss:$16 sps:$4 sm:$0xff]  }
 0x31d   :  { %14588 = vmatpush1.bf16.msra.mxu1 %v19446_v42  ;;  %v19532_v42 = vld [vmem:[#allocation5 + $0x152c] ss:$16 sps:$4 sm:$0xff]  }
 0x31e   :  { %13358 = vmatpush1.bf16.msra.mxu0 %v19443_v40  ;;  %14589 = vmatprep.subr.bf16.mxu1 %v19454_v1  ;;  %v19529_v40 = vld [vmem:[#allocation5 + $0x1924] ss:$16 sps:$4 sm:$0xff]   ;;  %v19530_v1 = vld [vmem:[#allocation5 + $0x1528] ss:$16 sps:$4 sm:$0xff]  }
 0x31f   :  { %13359 = vmatprep.subr.bf16.mxu0 %v19451_v7  ;;  %v19527_v7 = vld [vmem:[#allocation5 + $0x1920] ss:$16 sps:$4 sm:$0xff]  }
 0x321   :  { %14590 = vmatpush1.bf16.msra.mxu1 %v19452_v46  ;;  %v19538_v46 = vld [vmem:[#allocation5 + $0x154c] ss:$16 sps:$4 sm:$0xff]  }
 0x322   :  { %13360 = vmatpush1.bf16.msra.mxu0 %v19449_v45  ;;  %14591 = vmatprep.subr.bf16.mxu1 %v19460_v19  ;;  %v19535_v45 = vld [vmem:[#allocation5 + $0x1944] ss:$16 sps:$4 sm:$0xff]   ;;  %v19536_v19 = vld [vmem:[#allocation5 + $0x1548] ss:$16 sps:$4 sm:$0xff]  }
 0x323   :  { %13361 = vmatprep.subr.bf16.mxu0 %v19457_v48  ;;  %v19533_v48 = vld [vmem:[#allocation5 + $0x1940] ss:$16 sps:$4 sm:$0xff]  }
 0x325   :  { %14592 = vmatpush1.bf16.msra.mxu1 %v19458_v52  ;;  %v19544_v52 = vld [vmem:[#allocation5 + $0x156c] ss:$16 sps:$4 sm:$0xff]  }
 0x326   :  { %13362 = vmatpush1.bf16.msra.mxu0 %v19455_v49  ;;  %14593 = vmatprep.subr.bf16.mxu1 %v19466_v53  ;;  %v19541_v49 = vld [vmem:[#allocation5 + $0x1964] ss:$16 sps:$4 sm:$0xff]   ;;  %v19542_v53 = vld [vmem:[#allocation5 + $0x1568] ss:$16 sps:$4 sm:$0xff]  }
 0x327   :  { %13363 = vmatprep.subr.bf16.mxu0 %v19463_v31  ;;  %v19539_v31 = vld [vmem:[#allocation5 + $0x1960] ss:$16 sps:$4 sm:$0xff]  }
 0x329   :  { %14594 = vmatpush1.bf16.msra.mxu1 %v19464_v56  ;;  %v19550_v56 = vld [vmem:[#allocation5 + $0x158c] ss:$16 sps:$4 sm:$0xff]  }
 0x32a   :  { %13364 = vmatpush1.bf16.msra.mxu0 %v19461_v18  ;;  %14595 = vmatprep.subr.bf16.mxu1 %v19472_v13  ;;  %v19547_v18 = vld [vmem:[#allocation5 + $0x1984] ss:$16 sps:$4 sm:$0xff]   ;;  %v19548_v13 = vld [vmem:[#allocation5 + $0x1588] ss:$16 sps:$4 sm:$0xff]  }
 0x32b   :  { %13365 = vmatprep.subr.bf16.mxu0 %v19469_v28  ;;  %v19545_v28 = vld [vmem:[#allocation5 + $0x1980] ss:$16 sps:$4 sm:$0xff]  }
 0x32d   :  { %14596 = vmatpush1.bf16.msra.mxu1 %v19470_v59  ;;  %v19556_v59 = vld [vmem:[#allocation5 + $0x15ac] ss:$16 sps:$4 sm:$0xff]  }
 0x32e   :  { %13366 = vmatpush1.bf16.msra.mxu0 %v19467_v25  ;;  %14606 = vmatprep.subr.bf16.mxu1 %v19478_v60  ;;  %v19553_v25 = vld [vmem:[#allocation5 + $0x19a4] ss:$16 sps:$4 sm:$0xff]   ;;  %v19554_v60 = vld [vmem:[#allocation5 + $0x15a8] ss:$16 sps:$4 sm:$0xff]  }
 0x32f   :  { %13376 = vmatprep.subr.bf16.mxu0 %v19475_v24  ;;  %v19551_v24 = vld [vmem:[#allocation5 + $0x19a0] ss:$16 sps:$4 sm:$0xff]  }
 0x330   :  { %14598 = vmatmul.mubr.bf16.vlgmr.msra.gmra.mrb[4].mxu1 %v22001_v44  ;;  %v19496_v44 = vld [vmem:[#allocation5 + $0x146c] ss:$16 sps:$4 sm:$0xff]  }
 0x331   :  { %13368 = vmatmul.mubr.bf16.vlgmr.msra.gmra.mrb[0].mxu0 %v22028_v32  ;;  %14607 = vmatpush1.bf16.msra.mxu1 %v19476_v63  ;;  %v19557_v63 = vld [vmem:[#allocation5 + $0x19c0] ss:$16 sps:$4 sm:$0xff]  }
 0x332   :  { %13377 = vmatpush1.bf16.msra.mxu0 %v19473_v33  ;;  %14608 = vmatprep.subr.bf16.mxu1 %v19484_v2  ;;  %v19562_v33 = vld [vmem:[#allocation5 + $0x15cc] ss:$16 sps:$4 sm:$0xff]   ;;  %v19565_v2 = vld [vmem:[#allocation5 + $0x19e4] ss:$16 sps:$4 sm:$0xff]  }
 0x333   :  { %13378 = vmatprep.subr.bf16.mxu0 %v19481_v0  ;;  %13408 = vmatprep.mubr.bf16.mxu0 %v22031_v3  ;;  %v19560_v0 = vld [vmem:[#allocation5 + $0x15c8] ss:$16 sps:$4 sm:$0xff]  }
 0x334   :  { %14638 = vmatprep.mubr.bf16.mxu1 %v22004_v12  ;;  %v19500_v12 = vld [vmem:[#allocation5 + $0x1488] ss:$16 sps:$4 sm:$0xff]  }
 0x335   :  { %14609 = vmatpush1.bf16.msra.mxu1 %v19482_v36  ;;  %v19563_v36 = vld [vmem:[#allocation5 + $0x19e0] ss:$16 sps:$4 sm:$0xff]  }
 0x336   :  { %13379 = vmatpush1.bf16.msra.mxu0 %v19479_v4  ;;  %14610 = vmatprep.subr.bf16.mxu1 %v19490_v9  ;;  %v19568_v4 = vld [vmem:[#allocation5 + $0x15ec] ss:$16 sps:$4 sm:$0xff]   ;;  %v19571_v9 = vld [vmem:[#allocation5 + $0x1a04] ss:$16 sps:$4 sm:$0xff]  }
 0x337   :  { %13380 = vmatprep.subr.bf16.mxu0 %v19487_v38  ;;  %v19566_v38 = vld [vmem:[#allocation5 + $0x15e8] ss:$16 sps:$4 sm:$0xff]  }
 0x339   :  { %14611 = vmatpush1.bf16.msra.mxu1 %v19488_v23  ;;  %v22039_v23 = vrot.slane %v22022_v55, %v21865_v50  ;;  %v19575_v55 = vld [vmem:[#allocation5 + $0x1a20] ss:$16 sps:$4 sm:$0xff]  }
 0x33a   :  { %13381 = vmatpush1.bf16.msra.mxu0 %v19485_v10  ;;  %14612 = vmatprep.subr.bf16.mxu1 %v19496_v44  ;;  %v19574_v10 = vld [vmem:[#allocation5 + $0x160c] ss:$16 sps:$4 sm:$0xff]   ;;  %v19572_v44 = vld [vmem:[#allocation5 + $0x1608] ss:$16 sps:$4 sm:$0xff]  }
 0x33b   :  { %13382 = vmatprep.subr.bf16.mxu0 %v19493_v14  ;;  %v19569_v14 = vld [vmem:[#allocation5 + $0x1a00] ss:$16 sps:$4 sm:$0xff]  }
 0x33d   :  { %14613 = vmatpush1.bf16.msra.mxu1 %v19494_v41  ;;  %v19580_v41 = vld [vmem:[#allocation5 + $0x162c] ss:$16 sps:$4 sm:$0xff]  }
 0x33e   :  { %13383 = vmatpush1.bf16.msra.mxu0 %v19491_v15  ;;  %14614 = vmatprep.subr.bf16.mxu1 %v19502_v17  ;;  %v19577_v15 = vld [vmem:[#allocation5 + $0x1a24] ss:$16 sps:$4 sm:$0xff]   ;;  %v19578_v17 = vld [vmem:[#allocation5 + $0x1628] ss:$16 sps:$4 sm:$0xff]  }
 0x33f   :  { %13384 = vmatprep.subr.bf16.mxu0 %v19499_v16  ;;  %v22043_v16 = vcombine.high %v22031_v3, %v22031_v3 }
 0x341   :  { %14615 = vmatpush1.bf16.msra.mxu1 %v19500_v12  ;;  %v19586_v12 = vld [vmem:[#allocation5 + $0x164c] ss:$16 sps:$4 sm:$0xff]  }
 0x342   :  { %13385 = vmatpush1.bf16.msra.mxu0 %v19497_v47  ;;  %14616 = vmatprep.subr.bf16.mxu1 %v19508_v21  ;;  %v19583_v47 = vld [vmem:[#allocation5 + $0x1a44] ss:$16 sps:$4 sm:$0xff]   ;;  %v19584_v21 = vld [vmem:[#allocation5 + $0x1648] ss:$16 sps:$4 sm:$0xff]  }
 0x343   :  { %13386 = vmatprep.subr.bf16.mxu0 %v19505_v20  ;;  %v19581_v20 = vld [vmem:[#allocation5 + $0x1a40] ss:$16 sps:$4 sm:$0xff]  }
 0x345   :  { %14617 = vmatpush1.bf16.msra.mxu1 %v19506_v26  ;;  %v19587_v26 = vld [vmem:[#allocation5 + $0x1a60] ss:$16 sps:$4 sm:$0xff]  }
 0x346   :  { %13387 = vmatpush1.bf16.msra.mxu0 %v19503_v22  ;;  %14618 = vmatprep.subr.bf16.mxu1 %v19514_v27  ;;  %v19589_v22 = vld [vmem:[#allocation5 + $0x1a64] ss:$16 sps:$4 sm:$0xff]  }
 0x347   :  { %13388 = vmatprep.subr.bf16.mxu0 %v19511_v51  ;;  %v19590_v51 = vld [vmem:[#allocation5 + $0x1668] ss:$16 sps:$4 sm:$0xff]   ;;  %v19595_v27 = vld [vmem:[#allocation5 + $0x1a84] ss:$16 sps:$4 sm:$0xff]  }
 0x349   :  { %14619 = vmatpush1.bf16.msra.mxu1 %v19512_v30  ;;  %v19593_v30 = vld [vmem:[#allocation5 + $0x1a80] ss:$16 sps:$4 sm:$0xff]  }
 0x34a   :  { %13389 = vmatpush1.bf16.msra.mxu0 %v19509_v29  ;;  %14620 = vmatprep.subr.bf16.mxu1 %v19520_v58  ;;  %v19598_v29 = vld [vmem:[#allocation5 + $0x168c] ss:$16 sps:$4 sm:$0xff]  }
 0x34b   :  { %13390 = vmatprep.subr.bf16.mxu0 %v19517_v11  ;;  %v19601_v11 = vld [vmem:[#allocation5 + $0x1aa4] ss:$16 sps:$4 sm:$0xff]   ;;  %v19604_v58 = vld [vmem:[#allocation5 + $0x16ac] ss:$16 sps:$4 sm:$0xff]  }
 0x34d   :  { %14621 = vmatpush1.bf16.msra.mxu1 %v19518_v35  ;;  %v19602_v35 = vld [vmem:[#allocation5 + $0x16a8] ss:$16 sps:$4 sm:$0xff]  }
 0x34e   :  { %13391 = vmatpush1.bf16.msra.mxu0 %v19515_v34  ;;  %14622 = vmatprep.subr.bf16.mxu1 %v19526_v37  ;;  %v19599_v34 = vld [vmem:[#allocation5 + $0x1aa0] ss:$16 sps:$4 sm:$0xff]   ;;  %v19610_v37 = vld [vmem:[#allocation5 + $0x16cc] ss:$16 sps:$4 sm:$0xff]  }
 0x34f   :  { %13392 = vmatprep.subr.bf16.mxu0 %v19523_v8  ;;  %v19607_v8 = vld [vmem:[#allocation5 + $0x1ac4] ss:$16 sps:$4 sm:$0xff]  }
 0x351   :  { %14623 = vmatpush1.bf16.msra.mxu1 %v19524_v39  ;;  %v19608_v39 = vld [vmem:[#allocation5 + $0x16c8] ss:$16 sps:$4 sm:$0xff]  }
 0x352   :  { %13393 = vmatpush1.bf16.msra.mxu0 %v19521_v62  ;;  %14624 = vmatprep.subr.bf16.mxu1 %v19532_v42  ;;  %v19605_v62 = vld [vmem:[#allocation5 + $0x1ac0] ss:$16 sps:$4 sm:$0xff]   ;;  %v19616_v42 = vld [vmem:[#allocation5 + $0x16ec] ss:$16 sps:$4 sm:$0xff]  }
 0x353   :  { %13394 = vmatprep.subr.bf16.mxu0 %v19529_v40  ;;  %v19613_v40 = vld [vmem:[#allocation5 + $0x1ae4] ss:$16 sps:$4 sm:$0xff]  }
 0x355   :  { %14625 = vmatpush1.bf16.msra.mxu1 %v19530_v1  ;;  %v19614_v1 = vld [vmem:[#allocation5 + $0x16e8] ss:$16 sps:$4 sm:$0xff]  }
 0x356   :  { %13395 = vmatpush1.bf16.msra.mxu0 %v19527_v7  ;;  %14626 = vmatprep.subr.bf16.mxu1 %v19538_v46  ;;  %v19611_v7 = vld [vmem:[#allocation5 + $0x1ae0] ss:$16 sps:$4 sm:$0xff]   ;;  %v19622_v46 = vld [vmem:[#allocation5 + $0x170c] ss:$16 sps:$4 sm:$0xff]  }
 0x357   :  { %13396 = vmatprep.subr.bf16.mxu0 %v19535_v45  ;;  %v19619_v45 = vld [vmem:[#allocation5 + $0x1b04] ss:$16 sps:$4 sm:$0xff]  }
 0x359   :  { %14627 = vmatpush1.bf16.msra.mxu1 %v19536_v19  ;;  %v19620_v19 = vld [vmem:[#allocation5 + $0x1708] ss:$16 sps:$4 sm:$0xff]  }
 0x35a   :  { %13397 = vmatpush1.bf16.msra.mxu0 %v19533_v48  ;;  %14628 = vmatprep.subr.bf16.mxu1 %v19544_v52  ;;  %v19617_v48 = vld [vmem:[#allocation5 + $0x1b00] ss:$16 sps:$4 sm:$0xff]   ;;  %v19628_v52 = vld [vmem:[#allocation5 + $0x172c] ss:$16 sps:$4 sm:$0xff]  }
 0x35b   :  { %13398 = vmatprep.subr.bf16.mxu0 %v19541_v49  ;;  %v19625_v49 = vld [vmem:[#allocation5 + $0x1b24] ss:$16 sps:$4 sm:$0xff]  }
 0x35d   :  { %14629 = vmatpush1.bf16.msra.mxu1 %v19542_v53  ;;  %v19626_v53 = vld [vmem:[#allocation5 + $0x1728] ss:$16 sps:$4 sm:$0xff]  }
 0x35e   :  { %13399 = vmatpush1.bf16.msra.mxu0 %v19539_v31  ;;  %14630 = vmatprep.subr.bf16.mxu1 %v19550_v56  ;;  %v19623_v31 = vld [vmem:[#allocation5 + $0x1b20] ss:$16 sps:$4 sm:$0xff]   ;;  %v19634_v56 = vld [vmem:[#allocation5 + $0x174c] ss:$16 sps:$4 sm:$0xff]  }
 0x35f   :  { %13400 = vmatprep.subr.bf16.mxu0 %v19547_v18  ;;  %v19631_v18 = vld [vmem:[#allocation5 + $0x1b44] ss:$16 sps:$4 sm:$0xff]  }
 0x361   :  { %14631 = vmatpush1.bf16.msra.mxu1 %v19548_v13  ;;  %v19632_v13 = vld [vmem:[#allocation5 + $0x1748] ss:$16 sps:$4 sm:$0xff]  }
 0x362   :  { %13401 = vmatpush1.bf16.msra.mxu0 %v19545_v28  ;;  %14632 = vmatprep.subr.bf16.mxu1 %v19556_v59  ;;  %v19629_v28 = vld [vmem:[#allocation5 + $0x1b40] ss:$16 sps:$4 sm:$0xff]   ;;  %v19640_v59 = vld [vmem:[#allocation5 + $0x176c] ss:$16 sps:$4 sm:$0xff]  }
 0x363   :  { %13402 = vmatprep.subr.bf16.mxu0 %v19553_v25  ;;  %v19637_v25 = vld [vmem:[#allocation5 + $0x1b64] ss:$16 sps:$4 sm:$0xff]  }
 0x365   :  { %14633 = vmatpush1.bf16.msra.mxu1 %v19554_v60  ;;  %v19638_v60 = vld [vmem:[#allocation5 + $0x1768] ss:$16 sps:$4 sm:$0xff]  }
 0x366   :  { %13403 = vmatpush1.bf16.msra.mxu0 %v19551_v24  ;;  %14634 = vmatprep.subr.bf16.mxu1 %v19562_v33  ;;  %v19635_v24 = vld [vmem:[#allocation5 + $0x1b60] ss:$16 sps:$4 sm:$0xff]   ;;  %v19646_v33 = vld [vmem:[#allocation5 + $0x178c] ss:$16 sps:$4 sm:$0xff]  }
 0x367   :  { %13404 = vmatprep.subr.bf16.mxu0 %v19559_v61  ;;  %v19643_v61 = vld [vmem:[#allocation5 + $0x1b84] ss:$16 sps:$4 sm:$0xff]  }
 0x369   :  { %14635 = vmatpush1.bf16.msra.mxu1 %v19560_v0  ;;  %v19644_v0 = vld [vmem:[#allocation5 + $0x1788] ss:$16 sps:$4 sm:$0xff]  }
 0x36a   :  { %13405 = vmatpush1.bf16.msra.mxu0 %v19557_v63  ;;  %14636 = vmatprep.subr.bf16.mxu1 %v19568_v4  ;;  %v19641_v63 = vld [vmem:[#allocation5 + $0x1b80] ss:$16 sps:$4 sm:$0xff]   ;;  %v19652_v4 = vld [vmem:[#allocation5 + $0x17ac] ss:$16 sps:$4 sm:$0xff]  }
 0x36b   :  { %13406 = vmatprep.subr.bf16.mxu0 %v19565_v2  ;;  %v19649_v2 = vld [vmem:[#allocation5 + $0x1ba4] ss:$16 sps:$4 sm:$0xff]  }
 0x36d   :  { %14637 = vmatpush1.bf16.msra.mxu1 %v19566_v38  ;;  %v19650_v38 = vld [vmem:[#allocation5 + $0x17a8] ss:$16 sps:$4 sm:$0xff]  }
 0x36e   :  { %13407 = vmatpush1.bf16.msra.mxu0 %v19563_v36  ;;  %14647 = vmatprep.subr.bf16.mxu1 %v19574_v10  ;;  %v19647_v36 = vld [vmem:[#allocation5 + $0x1ba0] ss:$16 sps:$4 sm:$0xff]   ;;  %v19658_v10 = vld [vmem:[#allocation5 + $0x17cc] ss:$16 sps:$4 sm:$0xff]  }
 0x36f   :  { %13417 = vmatprep.subr.bf16.mxu0 %v19571_v9  ;;  %v19655_v9 = vld [vmem:[#allocation5 + $0x1bc4] ss:$16 sps:$4 sm:$0xff]  }
 0x370   :  { %14639 = vmatmul.mubr.bf16.vlgmr.msra.gmra.mrb[4].mxu1 %v22012_v54  ;;  %v19592_v54 = vld [vmem:[#allocation5 + $0x166c] ss:$16 sps:$4 sm:$0xff]  }
 0x371   :  { %13409 = vmatmul.mubr.bf16.vlgmr.msra.gmra.mrb[0].mxu0 %v22039_v23  ;;  %14648 = vmatpush1.bf16.msra.mxu1 %v19572_v44 }
 0x372   :  { %13418 = vmatpush1.bf16.msra.mxu0 %v19569_v14  ;;  %14649 = vmatprep.subr.bf16.mxu1 %v19580_v41  ;;  %v21591_v14 = vld [vmem:[#allocation3 + $0x18] sm:$0xff] }
 0x373   :  { %13419 = vmatprep.subr.bf16.mxu0 %v19577_v15  ;;  %13449 = vmatprep.mubr.bf16.mxu0 %v22043_v16  ;;  %v2335_v44 = vcombine.high %v21591_v14, %v21591_v14  ;;  %v19653_v15 = vld [vmem:[#allocation5 + $0x1bc0] ss:$16 sps:$4 sm:$0xff]   ;;  %v19656_v41 = vld [vmem:[#allocation5 + $0x17c8] ss:$16 sps:$4 sm:$0xff]  }
 0x374   :  { %14679 = vmatprep.mubr.bf16.mxu1 %v22016_v57  ;;  %v19596_v57 = vld [vmem:[#allocation5 + $0x1688] ss:$16 sps:$4 sm:$0xff]   ;;  %v19731_v14 = vld [vmem:[#allocation5 + $0x1d60] ss:$16 sps:$4 sm:$0xff]  }
 0x375   :  { %14650 = vmatpush1.bf16.msra.mxu1 %v19578_v17  ;;  %v19664_v17 = vld [vmem:[#allocation5 + $0x17ec] ss:$16 sps:$4 sm:$0xff]  }
 0x376   :  { %13420 = vmatpush1.bf16.msra.mxu0 %v19575_v55  ;;  %14651 = vmatprep.subr.bf16.mxu1 %v19586_v12  ;;  %v19661_v55 = vld [vmem:[#allocation5 + $0x1be4] ss:$16 sps:$4 sm:$0xff]   ;;  %v19659_v12 = vld [vmem:[#allocation5 + $0x1be0] ss:$16 sps:$4 sm:$0xff]  }
 0x377   :  { %13421 = vmatprep.subr.bf16.mxu0 %v19583_v47  ;;  %v22050_v47 = vrot.slane %v2335_v44, %v21865_v50  ;;  %v19734_v44 = vld [vmem:[#allocation5 + $0x1968] ss:$16 sps:$4 sm:$0xff]  }
 0x379   :  { %14652 = vmatpush1.bf16.msra.mxu1 %v19584_v21  ;;  %v19667_v21 = vld [vmem:[#allocation5 + $0x1c04] ss:$16 sps:$4 sm:$0xff]  }
 0x37a   :  { %13422 = vmatpush1.bf16.msra.mxu0 %v19581_v20  ;;  %14653 = vmatprep.subr.bf16.mxu1 %v19592_v54  ;;  %v19662_v20 = vld [vmem:[#allocation5 + $0x17e8] ss:$16 sps:$4 sm:$0xff]   ;;  %v2351_v54 = vcombine.high %v22050_v47, %v22050_v47 }
 0x37b   :  { %13423 = vmatprep.subr.bf16.mxu0 %v19589_v22  ;;  %v19670_v22 = vld [vmem:[#allocation5 + $0x180c] ss:$16 sps:$4 sm:$0xff]  }
 0x37d   :  { %14654 = vmatpush1.bf16.msra.mxu1 %v19590_v51  ;;  %v19665_v51 = vld [vmem:[#allocation5 + $0x1c00] ss:$16 sps:$4 sm:$0xff]  }
 0x37e   :  { %13424 = vmatpush1.bf16.msra.mxu0 %v19587_v26  ;;  %14655 = vmatprep.subr.bf16.mxu1 %v19598_v29  ;;  %v22056_v26 = vcombine.high %v22039_v23, %v22039_v23  ;;  %v19673_v29 = vld [vmem:[#allocation5 + $0x1c24] ss:$16 sps:$4 sm:$0xff]  }
 0x37f   :  { %13425 = vmatprep.subr.bf16.mxu0 %v19595_v27  ;;  %v19668_v27 = vld [vmem:[#allocation5 + $0x1808] ss:$16 sps:$4 sm:$0xff]  }
 0x381   :  { %14656 = vmatpush1.bf16.msra.mxu1 %v19596_v57  ;;  %v22059_v57 = vrot.slane %v2351_v54, %v21865_v50  ;;  %v19751_v54 = vld [vmem:[#allocation5 + $0x1dc4] ss:$16 sps:$4 sm:$0xff]  }
 0x382   :  { %13426 = vmatpush1.bf16.msra.mxu0 %v19593_v30  ;;  %14657 = vmatprep.subr.bf16.mxu1 %v19604_v58  ;;  %v19676_v30 = vld [vmem:[#allocation5 + $0x182c] ss:$16 sps:$4 sm:$0xff]   ;;  %v19674_v58 = vld [vmem:[#allocation5 + $0x1828] ss:$16 sps:$4 sm:$0xff]  }
 0x383   :  { %13427 = vmatprep.subr.bf16.mxu0 %v19601_v11  ;;  %v19671_v11 = vld [vmem:[#allocation5 + $0x1c20] ss:$16 sps:$4 sm:$0xff]  }
 0x385   :  { %14658 = vmatpush1.bf16.msra.mxu1 %v19602_v35  ;;  %v19682_v35 = vld [vmem:[#allocation5 + $0x184c] ss:$16 sps:$4 sm:$0xff]  }
 0x386   :  { %13428 = vmatpush1.bf16.msra.mxu0 %v19599_v34  ;;  %14659 = vmatprep.subr.bf16.mxu1 %v19610_v37  ;;  %v19679_v34 = vld [vmem:[#allocation5 + $0x1c44] ss:$16 sps:$4 sm:$0xff]   ;;  %v19680_v37 = vld [vmem:[#allocation5 + $0x1848] ss:$16 sps:$4 sm:$0xff]  }
 0x387   :  { %13429 = vmatprep.subr.bf16.mxu0 %v19607_v8  ;;  %v19677_v8 = vld [vmem:[#allocation5 + $0x1c40] ss:$16 sps:$4 sm:$0xff]  }
 0x389   :  { %14660 = vmatpush1.bf16.msra.mxu1 %v19608_v39  ;;  %v19683_v39 = vld [vmem:[#allocation5 + $0x1c60] ss:$16 sps:$4 sm:$0xff]  }
 0x38a   :  { %13430 = vmatpush1.bf16.msra.mxu0 %v19605_v62  ;;  %14661 = vmatprep.subr.bf16.mxu1 %v19616_v42  ;;  %v19685_v62 = vld [vmem:[#allocation5 + $0x1c64] ss:$16 sps:$4 sm:$0xff]  }
 0x38b   :  { %13431 = vmatprep.subr.bf16.mxu0 %v19613_v40  ;;  %v19686_v40 = vld [vmem:[#allocation5 + $0x1868] ss:$16 sps:$4 sm:$0xff]   ;;  %v19691_v42 = vld [vmem:[#allocation5 + $0x1c84] ss:$16 sps:$4 sm:$0xff]  }
 0x38d   :  { %14662 = vmatpush1.bf16.msra.mxu1 %v19614_v1  ;;  %v19689_v1 = vld [vmem:[#allocation5 + $0x1c80] ss:$16 sps:$4 sm:$0xff]  }
 0x38e   :  { %13432 = vmatpush1.bf16.msra.mxu0 %v19611_v7  ;;  %14663 = vmatprep.subr.bf16.mxu1 %v19622_v46  ;;  %v19694_v7 = vld [vmem:[#allocation5 + $0x188c] ss:$16 sps:$4 sm:$0xff]  }
 0x38f   :  { %13433 = vmatprep.subr.bf16.mxu0 %v19619_v45  ;;  %v19697_v45 = vld [vmem:[#allocation5 + $0x1ca4] ss:$16 sps:$4 sm:$0xff]   ;;  %v19700_v46 = vld [vmem:[#allocation5 + $0x18ac] ss:$16 sps:$4 sm:$0xff]  }
 0x391   :  { %14664 = vmatpush1.bf16.msra.mxu1 %v19620_v19  ;;  %v19698_v19 = vld [vmem:[#allocation5 + $0x18a8] ss:$16 sps:$4 sm:$0xff]  }
 0x392   :  { %13434 = vmatpush1.bf16.msra.mxu0 %v19617_v48  ;;  %14665 = vmatprep.subr.bf16.mxu1 %v19628_v52  ;;  %v19695_v48 = vld [vmem:[#allocation5 + $0x1ca0] ss:$16 sps:$4 sm:$0xff]   ;;  %v19706_v52 = vld [vmem:[#allocation5 + $0x18cc] ss:$16 sps:$4 sm:$0xff]  }
 0x393   :  { %13435 = vmatprep.subr.bf16.mxu0 %v19625_v49  ;;  %v19703_v49 = vld [vmem:[#allocation5 + $0x1cc4] ss:$16 sps:$4 sm:$0xff]  }
 0x395   :  { %14666 = vmatpush1.bf16.msra.mxu1 %v19626_v53  ;;  %v19704_v53 = vld [vmem:[#allocation5 + $0x18c8] ss:$16 sps:$4 sm:$0xff]  }
 0x396   :  { %13436 = vmatpush1.bf16.msra.mxu0 %v19623_v31  ;;  %14667 = vmatprep.subr.bf16.mxu1 %v19634_v56  ;;  %v19701_v31 = vld [vmem:[#allocation5 + $0x1cc0] ss:$16 sps:$4 sm:$0xff]   ;;  %v19712_v56 = vld [vmem:[#allocation5 + $0x18ec] ss:$16 sps:$4 sm:$0xff]  }
 0x397   :  { %13437 = vmatprep.subr.bf16.mxu0 %v19631_v18  ;;  %v19709_v18 = vld [vmem:[#allocation5 + $0x1ce4] ss:$16 sps:$4 sm:$0xff]  }
 0x399   :  { %14668 = vmatpush1.bf16.msra.mxu1 %v19632_v13  ;;  %v19710_v13 = vld [vmem:[#allocation5 + $0x18e8] ss:$16 sps:$4 sm:$0xff]  }
 0x39a   :  { %13438 = vmatpush1.bf16.msra.mxu0 %v19629_v28  ;;  %14669 = vmatprep.subr.bf16.mxu1 %v19640_v59  ;;  %v19707_v28 = vld [vmem:[#allocation5 + $0x1ce0] ss:$16 sps:$4 sm:$0xff]   ;;  %v19718_v59 = vld [vmem:[#allocation5 + $0x190c] ss:$16 sps:$4 sm:$0xff]  }
 0x39b   :  { %13439 = vmatprep.subr.bf16.mxu0 %v19637_v25  ;;  %v19715_v25 = vld [vmem:[#allocation5 + $0x1d04] ss:$16 sps:$4 sm:$0xff]  }
 0x39d   :  { %14670 = vmatpush1.bf16.msra.mxu1 %v19638_v60  ;;  %v19716_v60 = vld [vmem:[#allocation5 + $0x1908] ss:$16 sps:$4 sm:$0xff]  }
 0x39e   :  { %13440 = vmatpush1.bf16.msra.mxu0 %v19635_v24  ;;  %14671 = vmatprep.subr.bf16.mxu1 %v19646_v33  ;;  %v19713_v24 = vld [vmem:[#allocation5 + $0x1d00] ss:$16 sps:$4 sm:$0xff]   ;;  %v19724_v33 = vld [vmem:[#allocation5 + $0x192c] ss:$16 sps:$4 sm:$0xff]  }
 0x39f   :  { %13441 = vmatprep.subr.bf16.mxu0 %v19643_v61  ;;  %v19721_v61 = vld [vmem:[#allocation5 + $0x1d24] ss:$16 sps:$4 sm:$0xff]  }
 0x3a1   :  { %14672 = vmatpush1.bf16.msra.mxu1 %v19644_v0  ;;  %v19722_v0 = vld [vmem:[#allocation5 + $0x1928] ss:$16 sps:$4 sm:$0xff]  }
 0x3a2   :  { %13442 = vmatpush1.bf16.msra.mxu0 %v19641_v63  ;;  %14673 = vmatprep.subr.bf16.mxu1 %v19652_v4  ;;  %v19719_v63 = vld [vmem:[#allocation5 + $0x1d20] ss:$16 sps:$4 sm:$0xff]   ;;  %v19730_v4 = vld [vmem:[#allocation5 + $0x194c] ss:$16 sps:$4 sm:$0xff]  }
 0x3a3   :  { %13443 = vmatprep.subr.bf16.mxu0 %v19649_v2  ;;  %v19727_v2 = vld [vmem:[#allocation5 + $0x1d44] ss:$16 sps:$4 sm:$0xff]  }
 0x3a5   :  { %14674 = vmatpush1.bf16.msra.mxu1 %v19650_v38  ;;  %v19728_v38 = vld [vmem:[#allocation5 + $0x1948] ss:$16 sps:$4 sm:$0xff]  }
 0x3a6   :  { %13444 = vmatpush1.bf16.msra.mxu0 %v19647_v36  ;;  %14675 = vmatprep.subr.bf16.mxu1 %v19658_v10  ;;  %v19725_v36 = vld [vmem:[#allocation5 + $0x1d40] ss:$16 sps:$4 sm:$0xff]   ;;  %v19736_v10 = vld [vmem:[#allocation5 + $0x196c] ss:$16 sps:$4 sm:$0xff]  }
 0x3a7   :  { %13445 = vmatprep.subr.bf16.mxu0 %v19655_v9  ;;  %v19733_v9 = vld [vmem:[#allocation5 + $0x1d64] ss:$16 sps:$4 sm:$0xff]  }
 0x3a9   :  { %14676 = vmatpush1.bf16.msra.mxu1 %v19656_v41  ;;  %v19742_v41 = vld [vmem:[#allocation5 + $0x198c] ss:$16 sps:$4 sm:$0xff]  }
 0x3aa   :  { %13446 = vmatpush1.bf16.msra.mxu0 %v19653_v15  ;;  %14677 = vmatprep.subr.bf16.mxu1 %v19664_v17  ;;  %v19739_v15 = vld [vmem:[#allocation5 + $0x1d84] ss:$16 sps:$4 sm:$0xff]   ;;  %v19740_v17 = vld [vmem:[#allocation5 + $0x1988] ss:$16 sps:$4 sm:$0xff]  }
 0x3ab   :  { %13447 = vmatprep.subr.bf16.mxu0 %v19661_v55  ;;  %v19737_v55 = vld [vmem:[#allocation5 + $0x1d80] ss:$16 sps:$4 sm:$0xff]  }
 0x3ad   :  { %14678 = vmatpush1.bf16.msra.mxu1 %v19662_v20  ;;  %v19748_v20 = vld [vmem:[#allocation5 + $0x19ac] ss:$16 sps:$4 sm:$0xff]  }
 0x3ae   :  { %13448 = vmatpush1.bf16.msra.mxu0 %v19659_v12  ;;  %14688 = vmatprep.subr.bf16.mxu1 %v19670_v22  ;;  %v19745_v12 = vld [vmem:[#allocation5 + $0x1da4] ss:$16 sps:$4 sm:$0xff]   ;;  %v19746_v22 = vld [vmem:[#allocation5 + $0x19a8] ss:$16 sps:$4 sm:$0xff]  }
 0x3af   :  { %13458 = vmatprep.subr.bf16.mxu0 %v19667_v21  ;;  %v19743_v21 = vld [vmem:[#allocation5 + $0x1da0] ss:$16 sps:$4 sm:$0xff]  }
 0x3b0   :  { %14680 = vmatmul.mubr.bf16.vlgmr.msra.gmra.mrb[4].mxu1 %v22028_v32  ;;  %v19688_v32 = vld [vmem:[#allocation5 + $0x186c] ss:$16 sps:$4 sm:$0xff]  }
 0x3b1   :  { %13450 = vmatmul.mubr.bf16.vlgmr.msra.gmra.mrb[0].mxu0 %v22056_v26  ;;  %14689 = vmatpush1.bf16.msra.mxu1 %v19668_v27  ;;  %v19749_v27 = vld [vmem:[#allocation5 + $0x1dc0] ss:$16 sps:$4 sm:$0xff]  }
 0x3b2   :  { %13459 = vmatpush1.bf16.msra.mxu0 %v19665_v51  ;;  %14690 = vmatprep.subr.bf16.mxu1 %v19676_v30  ;;  %v19754_v51 = vld [vmem:[#allocation5 + $0x19cc] ss:$16 sps:$4 sm:$0xff]   ;;  %v19757_v30 = vld [vmem:[#allocation5 + $0x1de4] ss:$16 sps:$4 sm:$0xff]  }
 0x3b3   :  { %13460 = vmatprep.subr.bf16.mxu0 %v19673_v29  ;;  %13490 = vmatprep.mubr.bf16.mxu0 %v22059_v57  ;;  %v19752_v29 = vld [vmem:[#allocation5 + $0x19c8] ss:$16 sps:$4 sm:$0xff]  }
 0x3b4   :  { %14720 = vmatprep.mubr.bf16.mxu1 %v22031_v3  ;;  %v19692_v3 = vld [vmem:[#allocation5 + $0x1888] ss:$16 sps:$4 sm:$0xff]  }
 0x3b5   :  { %14691 = vmatpush1.bf16.msra.mxu1 %v19674_v58  ;;  %v19755_v58 = vld [vmem:[#allocation5 + $0x1de0] ss:$16 sps:$4 sm:$0xff]  }
 0x3b6   :  { %13461 = vmatpush1.bf16.msra.mxu0 %v19671_v11  ;;  %14692 = vmatprep.subr.bf16.mxu1 %v19682_v35  ;;  %v19760_v11 = vld [vmem:[#allocation5 + $0x19ec] ss:$16 sps:$4 sm:$0xff]   ;;  %v19764_v35 = vld [vmem:[#allocation5 + $0x1e04] ss:$16 sps:$4 sm:$0xff]  }
 0x3b7   :  { %13462 = vmatprep.subr.bf16.mxu0 %v19679_v34  ;;  %v19758_v34 = vld [vmem:[#allocation5 + $0x19e8] ss:$16 sps:$4 sm:$0xff]  }
 0x3b9   :  { %14693 = vmatpush1.bf16.msra.mxu1 %v19680_v37  ;;  %v22067_v37 = vrot.slane %v22050_v47, %v21865_v50  ;;  %v19768_v47 = vld [vmem:[#allocation5 + $0x1e20] ss:$16 sps:$4 sm:$0xff]  }
 0x3ba   :  { %13463 = vmatpush1.bf16.msra.mxu0 %v19677_v8  ;;  %14694 = vmatprep.subr.bf16.mxu1 %v19688_v32  ;;  %v19767_v8 = vld [vmem:[#allocation5 + $0x1a0c] ss:$16 sps:$4 sm:$0xff]   ;;  %v19765_v32 = vld [vmem:[#allocation5 + $0x1a08] ss:$16 sps:$4 sm:$0xff]  }
 0x3bb   :  { %13464 = vmatprep.subr.bf16.mxu0 %v19685_v62  ;;  %v19762_v62 = vld [vmem:[#allocation5 + $0x1e00] ss:$16 sps:$4 sm:$0xff]  }
 0x3bd   :  { %14695 = vmatpush1.bf16.msra.mxu1 %v19686_v40  ;;  %v19773_v40 = vld [vmem:[#allocation5 + $0x1a2c] ss:$16 sps:$4 sm:$0xff]  }
 0x3be   :  { %13465 = vmatpush1.bf16.msra.mxu0 %v19683_v39  ;;  %14696 = vmatprep.subr.bf16.mxu1 %v19694_v7  ;;  %v19770_v39 = vld [vmem:[#allocation5 + $0x1e24] ss:$16 sps:$4 sm:$0xff]   ;;  %v19771_v7 = vld [vmem:[#allocation5 + $0x1a28] ss:$16 sps:$4 sm:$0xff]  }
 0x3bf   :  { %13466 = vmatprep.subr.bf16.mxu0 %v19691_v42  ;;  %v22071_v42 = vcombine.high %v22059_v57, %v22059_v57 }
 0x3c1   :  { %14697 = vmatpush1.bf16.msra.mxu1 %v19692_v3  ;;  %v19779_v3 = vld [vmem:[#allocation5 + $0x1a4c] ss:$16 sps:$4 sm:$0xff]  }
 0x3c2   :  { %13467 = vmatpush1.bf16.msra.mxu0 %v19689_v1  ;;  %14698 = vmatprep.subr.bf16.mxu1 %v19700_v46  ;;  %v19776_v1 = vld [vmem:[#allocation5 + $0x1e44] ss:$16 sps:$4 sm:$0xff]   ;;  %v19777_v46 = vld [vmem:[#allocation5 + $0x1a48] ss:$16 sps:$4 sm:$0xff]  }
 0x3c3   :  { %13468 = vmatprep.subr.bf16.mxu0 %v19697_v45  ;;  %v19774_v45 = vld [vmem:[#allocation5 + $0x1e40] ss:$16 sps:$4 sm:$0xff]  }
 0x3c5   :  { %14699 = vmatpush1.bf16.msra.mxu1 %v19698_v19  ;;  %v19780_v19 = vld [vmem:[#allocation5 + $0x1e60] ss:$16 sps:$4 sm:$0xff]  }
 0x3c6   :  { %13469 = vmatpush1.bf16.msra.mxu0 %v19695_v48  ;;  %14700 = vmatprep.subr.bf16.mxu1 %v19706_v52  ;;  %v19782_v48 = vld [vmem:[#allocation5 + $0x1e64] ss:$16 sps:$4 sm:$0xff]  }
 0x3c7   :  { %13470 = vmatprep.subr.bf16.mxu0 %v19703_v49  ;;  %v19783_v49 = vld [vmem:[#allocation5 + $0x1a68] ss:$16 sps:$4 sm:$0xff]   ;;  %v19788_v52 = vld [vmem:[#allocation5 + $0x1e84] ss:$16 sps:$4 sm:$0xff]  }
 0x3c9   :  { %14701 = vmatpush1.bf16.msra.mxu1 %v19704_v53  ;;  %v19786_v53 = vld [vmem:[#allocation5 + $0x1e80] ss:$16 sps:$4 sm:$0xff]  }
 0x3ca   :  { %13471 = vmatpush1.bf16.msra.mxu0 %v19701_v31  ;;  %14702 = vmatprep.subr.bf16.mxu1 %v19712_v56  ;;  %v19791_v31 = vld [vmem:[#allocation5 + $0x1a8c] ss:$16 sps:$4 sm:$0xff]  }
 0x3cb   :  { %13472 = vmatprep.subr.bf16.mxu0 %v19709_v18  ;;  %v19794_v18 = vld [vmem:[#allocation5 + $0x1ea4] ss:$16 sps:$4 sm:$0xff]   ;;  %v19797_v56 = vld [vmem:[#allocation5 + $0x1aac] ss:$16 sps:$4 sm:$0xff]  }
 0x3cd   :  { %14703 = vmatpush1.bf16.msra.mxu1 %v19710_v13  ;;  %v19795_v13 = vld [vmem:[#allocation5 + $0x1aa8] ss:$16 sps:$4 sm:$0xff]  }
 0x3ce   :  { %13473 = vmatpush1.bf16.msra.mxu0 %v19707_v28  ;;  %14704 = vmatprep.subr.bf16.mxu1 %v19718_v59  ;;  %v19792_v28 = vld [vmem:[#allocation5 + $0x1ea0] ss:$16 sps:$4 sm:$0xff]   ;;  %v19803_v59 = vld [vmem:[#allocation5 + $0x1acc] ss:$16 sps:$4 sm:$0xff]  }
 0x3cf   :  { %13474 = vmatprep.subr.bf16.mxu0 %v19715_v25  ;;  %v19800_v25 = vld [vmem:[#allocation5 + $0x1ec4] ss:$16 sps:$4 sm:$0xff]  }
 0x3d1   :  { %14705 = vmatpush1.bf16.msra.mxu1 %v19716_v60  ;;  %v19801_v60 = vld [vmem:[#allocation5 + $0x1ac8] ss:$16 sps:$4 sm:$0xff]  }
 0x3d2   :  { %13475 = vmatpush1.bf16.msra.mxu0 %v19713_v24  ;;  %14706 = vmatprep.subr.bf16.mxu1 %v19724_v33  ;;  %v19798_v24 = vld [vmem:[#allocation5 + $0x1ec0] ss:$16 sps:$4 sm:$0xff]   ;;  %v19809_v33 = vld [vmem:[#allocation5 + $0x1aec] ss:$16 sps:$4 sm:$0xff]  }
 0x3d3   :  { %13476 = vmatprep.subr.bf16.mxu0 %v19721_v61  ;;  %v19806_v61 = vld [vmem:[#allocation5 + $0x1ee4] ss:$16 sps:$4 sm:$0xff]  }
 0x3d5   :  { %14707 = vmatpush1.bf16.msra.mxu1 %v19722_v0  ;;  %v19807_v0 = vld [vmem:[#allocation5 + $0x1ae8] ss:$16 sps:$4 sm:$0xff]  }
 0x3d6   :  { %13477 = vmatpush1.bf16.msra.mxu0 %v19719_v63  ;;  %14708 = vmatprep.subr.bf16.mxu1 %v19730_v4  ;;  %v19804_v63 = vld [vmem:[#allocation5 + $0x1ee0] ss:$16 sps:$4 sm:$0xff]   ;;  %v19815_v4 = vld [vmem:[#allocation5 + $0x1b0c] ss:$16 sps:$4 sm:$0xff]  }
 0x3d7   :  { %13478 = vmatprep.subr.bf16.mxu0 %v19727_v2  ;;  %v19812_v2 = vld [vmem:[#allocation5 + $0x1f04] ss:$16 sps:$4 sm:$0xff]  }
 0x3d9   :  { %14709 = vmatpush1.bf16.msra.mxu1 %v19728_v38  ;;  %v19813_v38 = vld [vmem:[#allocation5 + $0x1b08] ss:$16 sps:$4 sm:$0xff]  }
 0x3da   :  { %13479 = vmatpush1.bf16.msra.mxu0 %v19725_v36  ;;  %14710 = vmatprep.subr.bf16.mxu1 %v19736_v10  ;;  %v19810_v36 = vld [vmem:[#allocation5 + $0x1f00] ss:$16 sps:$4 sm:$0xff]   ;;  %v19821_v10 = vld [vmem:[#allocation5 + $0x1b2c] ss:$16 sps:$4 sm:$0xff]  }
 0x3db   :  { %13480 = vmatprep.subr.bf16.mxu0 %v19733_v9  ;;  %v19818_v9 = vld [vmem:[#allocation5 + $0x1f24] ss:$16 sps:$4 sm:$0xff]  }
 0x3dd   :  { %14711 = vmatpush1.bf16.msra.mxu1 %v19734_v44  ;;  %v19819_v44 = vld [vmem:[#allocation5 + $0x1b28] ss:$16 sps:$4 sm:$0xff]  }
 0x3de   :  { %13481 = vmatpush1.bf16.msra.mxu0 %v19731_v14  ;;  %14712 = vmatprep.subr.bf16.mxu1 %v19742_v41  ;;  %v19816_v14 = vld [vmem:[#allocation5 + $0x1f20] ss:$16 sps:$4 sm:$0xff]   ;;  %v19827_v41 = vld [vmem:[#allocation5 + $0x1b4c] ss:$16 sps:$4 sm:$0xff]  }
 0x3df   :  { %13482 = vmatprep.subr.bf16.mxu0 %v19739_v15  ;;  %v19824_v15 = vld [vmem:[#allocation5 + $0x1f44] ss:$16 sps:$4 sm:$0xff]  }
 0x3e1   :  { %14713 = vmatpush1.bf16.msra.mxu1 %v19740_v17  ;;  %v19825_v17 = vld [vmem:[#allocation5 + $0x1b48] ss:$16 sps:$4 sm:$0xff]  }
 0x3e2   :  { %13483 = vmatpush1.bf16.msra.mxu0 %v19737_v55  ;;  %14714 = vmatprep.subr.bf16.mxu1 %v19748_v20  ;;  %v19822_v55 = vld [vmem:[#allocation5 + $0x1f40] ss:$16 sps:$4 sm:$0xff]   ;;  %v19833_v20 = vld [vmem:[#allocation5 + $0x1b6c] ss:$16 sps:$4 sm:$0xff]  }
 0x3e3   :  { %13484 = vmatprep.subr.bf16.mxu0 %v19745_v12  ;;  %v19830_v12 = vld [vmem:[#allocation5 + $0x1f64] ss:$16 sps:$4 sm:$0xff]  }
 0x3e5   :  { %14715 = vmatpush1.bf16.msra.mxu1 %v19746_v22  ;;  %v19831_v22 = vld [vmem:[#allocation5 + $0x1b68] ss:$16 sps:$4 sm:$0xff]  }
 0x3e6   :  { %13485 = vmatpush1.bf16.msra.mxu0 %v19743_v21  ;;  %14716 = vmatprep.subr.bf16.mxu1 %v19754_v51  ;;  %v19828_v21 = vld [vmem:[#allocation5 + $0x1f60] ss:$16 sps:$4 sm:$0xff]   ;;  %v19839_v51 = vld [vmem:[#allocation5 + $0x1b8c] ss:$16 sps:$4 sm:$0xff]  }
 0x3e7   :  { %13486 = vmatprep.subr.bf16.mxu0 %v19751_v54  ;;  %v19836_v54 = vld [vmem:[#allocation5 + $0x1f84] ss:$16 sps:$4 sm:$0xff]  }
 0x3e9   :  { %14717 = vmatpush1.bf16.msra.mxu1 %v19752_v29  ;;  %v19837_v29 = vld [vmem:[#allocation5 + $0x1b88] ss:$16 sps:$4 sm:$0xff]  }
 0x3ea   :  { %13487 = vmatpush1.bf16.msra.mxu0 %v19749_v27  ;;  %14718 = vmatprep.subr.bf16.mxu1 %v19760_v11  ;;  %v19834_v27 = vld [vmem:[#allocation5 + $0x1f80] ss:$16 sps:$4 sm:$0xff]   ;;  %v19845_v11 = vld [vmem:[#allocation5 + $0x1bac] ss:$16 sps:$4 sm:$0xff]  }
 0x3eb   :  { %13488 = vmatprep.subr.bf16.mxu0 %v19757_v30  ;;  %v19842_v30 = vld [vmem:[#allocation5 + $0x1fa4] ss:$16 sps:$4 sm:$0xff]  }
 0x3ed   :  { %14719 = vmatpush1.bf16.msra.mxu1 %v19758_v34  ;;  %v19843_v34 = vld [vmem:[#allocation5 + $0x1ba8] ss:$16 sps:$4 sm:$0xff]  }
 0x3ee   :  { %13489 = vmatpush1.bf16.msra.mxu0 %v19755_v58  ;;  %14729 = vmatprep.subr.bf16.mxu1 %v19767_v8  ;;  %v19840_v58 = vld [vmem:[#allocation5 + $0x1fa0] ss:$16 sps:$4 sm:$0xff]   ;;  %v19851_v8 = vld [vmem:[#allocation5 + $0x1bcc] ss:$16 sps:$4 sm:$0xff]  }
 0x3ef   :  { %13499 = vmatprep.subr.bf16.mxu0 %v19764_v35  ;;  %v19848_v35 = vld [vmem:[#allocation5 + $0x1fc4] ss:$16 sps:$4 sm:$0xff]  }
 0x3f0   :  { %14721 = vmatmul.mubr.bf16.vlgmr.msra.gmra.mrb[4].mxu1 %v22039_v23  ;;  %v19785_v23 = vld [vmem:[#allocation5 + $0x1a6c] ss:$16 sps:$4 sm:$0xff]  }
 0x3f1   :  { %13491 = vmatmul.mubr.bf16.vlgmr.msra.gmra.mrb[0].mxu0 %v22067_v37  ;;  %14730 = vmatpush1.bf16.msra.mxu1 %v19765_v32  ;;  %v19846_v32 = vld [vmem:[#allocation5 + $0x1fc0] ss:$16 sps:$4 sm:$0xff]  }
 0x3f2   :  { %13500 = vmatpush1.bf16.msra.mxu0 %v19762_v62  ;;  %14731 = vmatprep.subr.bf16.mxu1 %v19773_v40  ;;  %v22077_v62 = vld.sshfl [vmem:[#allocation3 + $0x20] sm:$0xff pattern:$0x75316420] }
 0x3f3   :  { %13501 = vmatprep.subr.bf16.mxu0 %v19770_v39  ;;  %13531 = vmatprep.mubr.bf16.mxu0 %v22071_v42  ;;  %v19849_v39 = vld [vmem:[#allocation5 + $0x1bc8] ss:$16 sps:$4 sm:$0xff]   ;;  %v19854_v40 = vld [vmem:[#allocation5 + $0x1fe4] ss:$16 sps:$4 sm:$0xff]  }
 0x3f4   :  { %14761 = vmatprep.mubr.bf16.mxu1 %v22043_v16  ;;  %v19789_v16 = vld [vmem:[#allocation5 + $0x1a88] ss:$16 sps:$4 sm:$0xff]  }
 0x3f5   :  { %14732 = vmatpush1.bf16.msra.mxu1 %v19771_v7  ;;  %v19852_v7 = vld [vmem:[#allocation5 + $0x1fe0] ss:$16 sps:$4 sm:$0xff]  }
 0x3f6   :  { %13502 = vmatpush1.bf16.msra.mxu0 %v19768_v47  ;;  %14733 = vmatprep.subr.bf16.mxu1 %v19779_v3  ;;  %v19857_v47 = vld [vmem:[#allocation5 + $0x1bec] ss:$16 sps:$4 sm:$0xff]   ;;  %v19860_v3 = vld [vmem:[#allocation5 + $0x2004] ss:$16 sps:$4 sm:$0xff]  }
 0x3f7   :  { %13503 = vmatprep.subr.bf16.mxu0 %v19776_v1  ;;  %v19855_v1 = vld [vmem:[#allocation5 + $0x1be8] ss:$16 sps:$4 sm:$0xff]  }
 0x3f9   :  { %14734 = vmatpush1.bf16.msra.mxu1 %v19777_v46  ;;  %v2399_v46 = vcombine.high %v22077_v62, %v22077_v62 }
 0x3fa   :  { %13504 = vmatpush1.bf16.msra.mxu0 %v19774_v45  ;;  %14735 = vmatprep.subr.bf16.mxu1 %v19785_v23  ;;  %v19863_v45 = vld [vmem:[#allocation5 + $0x1c0c] ss:$16 sps:$4 sm:$0xff]   ;;  %v19858_v23 = vld [vmem:[#allocation5 + $0x2000] ss:$16 sps:$4 sm:$0xff]  }
 0x3fb   :  { %13505 = vmatprep.subr.bf16.mxu0 %v19782_v48  ;;  %v22083_v48 = vcombine.high %v22067_v37, %v22067_v37 }
 0x3fd   :  { %14736 = vmatpush1.bf16.msra.mxu1 %v19783_v49  ;;  %v19866_v49 = vld [vmem:[#allocation5 + $0x2024] ss:$16 sps:$4 sm:$0xff]  }
 0x3fe   :  { %13506 = vmatpush1.bf16.msra.mxu0 %v19780_v19  ;;  %14737 = vmatprep.subr.bf16.mxu1 %v19791_v31  ;;  %v19861_v19 = vld [vmem:[#allocation5 + $0x1c08] ss:$16 sps:$4 sm:$0xff]   ;;  %v22086_v31 = vrot.slane %v2399_v46, %v21865_v50  ;;  %v19944_v46 = vld [vmem:[#allocation5 + $0x21c4] ss:$16 sps:$4 sm:$0xff]  }
 0x3ff   :  { %13507 = vmatprep.subr.bf16.mxu0 %v19788_v52  ;;  %v19869_v52 = vld [vmem:[#allocation5 + $0x1c2c] ss:$16 sps:$4 sm:$0xff]  }
 0x401   :  { %14738 = vmatpush1.bf16.msra.mxu1 %v19789_v16  ;;  %v19867_v16 = vld [vmem:[#allocation5 + $0x1c28] ss:$16 sps:$4 sm:$0xff]  }
 0x402   :  { %13508 = vmatpush1.bf16.msra.mxu0 %v19786_v53  ;;  %14739 = vmatprep.subr.bf16.mxu1 %v19797_v56  ;;  %v19864_v53 = vld [vmem:[#allocation5 + $0x2020] ss:$16 sps:$4 sm:$0xff]   ;;  %v19875_v56 = vld [vmem:[#allocation5 + $0x1c4c] ss:$16 sps:$4 sm:$0xff]  }
 0x403   :  { %13509 = vmatprep.subr.bf16.mxu0 %v19794_v18  ;;  %v19872_v18 = vld [vmem:[#allocation5 + $0x2044] ss:$16 sps:$4 sm:$0xff]  }
 0x405   :  { %14740 = vmatpush1.bf16.msra.mxu1 %v19795_v13  ;;  %v19873_v13 = vld [vmem:[#allocation5 + $0x1c48] ss:$16 sps:$4 sm:$0xff]  }
 0x406   :  { %13510 = vmatpush1.bf16.msra.mxu0 %v19792_v28  ;;  %14741 = vmatprep.subr.bf16.mxu1 %v19803_v59  ;;  %v19870_v28 = vld [vmem:[#allocation5 + $0x2040] ss:$16 sps:$4 sm:$0xff]  }
 0x407   :  { %13511 = vmatprep.subr.bf16.mxu0 %v19800_v25  ;;  %v19878_v25 = vld [vmem:[#allocation5 + $0x2064] ss:$16 sps:$4 sm:$0xff]   ;;  %v19876_v59 = vld [vmem:[#allocation5 + $0x2060] ss:$16 sps:$4 sm:$0xff]  }
 0x409   :  { %14742 = vmatpush1.bf16.msra.mxu1 %v19801_v60  ;;  %v19884_v60 = vld [vmem:[#allocation5 + $0x2084] ss:$16 sps:$4 sm:$0xff]  }
 0x40a   :  { %13512 = vmatpush1.bf16.msra.mxu0 %v19798_v24  ;;  %14743 = vmatprep.subr.bf16.mxu1 %v19809_v33  ;;  %v19879_v24 = vld [vmem:[#allocation5 + $0x1c68] ss:$16 sps:$4 sm:$0xff]   ;;  %v19882_v33 = vld [vmem:[#allocation5 + $0x2080] ss:$16 sps:$4 sm:$0xff]  }
 0x40b   :  { %13513 = vmatprep.subr.bf16.mxu0 %v19806_v61  ;;  %v19887_v61 = vld [vmem:[#allocation5 + $0x1c8c] ss:$16 sps:$4 sm:$0xff]  }
 0x40d   :  { %14744 = vmatpush1.bf16.msra.mxu1 %v19807_v0  ;;  %v19893_v0 = vld [vmem:[#allocation5 + $0x1cac] ss:$16 sps:$4 sm:$0xff]  }
 0x40e   :  { %13514 = vmatpush1.bf16.msra.mxu0 %v19804_v63  ;;  %14745 = vmatprep.subr.bf16.mxu1 %v19815_v4  ;;  %v19890_v63 = vld [vmem:[#allocation5 + $0x20a4] ss:$16 sps:$4 sm:$0xff]   ;;  %v19891_v4 = vld [vmem:[#allocation5 + $0x1ca8] ss:$16 sps:$4 sm:$0xff]  }
 0x40f   :  { %13515 = vmatprep.subr.bf16.mxu0 %v19812_v2  ;;  %v19888_v2 = vld [vmem:[#allocation5 + $0x20a0] ss:$16 sps:$4 sm:$0xff]  }
 0x411   :  { %14746 = vmatpush1.bf16.msra.mxu1 %v19813_v38  ;;  %v19899_v38 = vld [vmem:[#allocation5 + $0x1ccc] ss:$16 sps:$4 sm:$0xff]  }
 0x412   :  { %13516 = vmatpush1.bf16.msra.mxu0 %v19810_v36  ;;  %14747 = vmatprep.subr.bf16.mxu1 %v19821_v10  ;;  %v19896_v36 = vld [vmem:[#allocation5 + $0x20c4] ss:$16 sps:$4 sm:$0xff]   ;;  %v19897_v10 = vld [vmem:[#allocation5 + $0x1cc8] ss:$16 sps:$4 sm:$0xff]  }
 0x413   :  { %13517 = vmatprep.subr.bf16.mxu0 %v19818_v9  ;;  %v19894_v9 = vld [vmem:[#allocation5 + $0x20c0] ss:$16 sps:$4 sm:$0xff]  }
 0x415   :  { %14748 = vmatpush1.bf16.msra.mxu1 %v19819_v44  ;;  %v19905_v44 = vld [vmem:[#allocation5 + $0x1cec] ss:$16 sps:$4 sm:$0xff]  }
 0x416   :  { %13518 = vmatpush1.bf16.msra.mxu0 %v19816_v14  ;;  %14749 = vmatprep.subr.bf16.mxu1 %v19827_v41  ;;  %v19902_v14 = vld [vmem:[#allocation5 + $0x20e4] ss:$16 sps:$4 sm:$0xff]   ;;  %v19903_v41 = vld [vmem:[#allocation5 + $0x1ce8] ss:$16 sps:$4 sm:$0xff]  }
 0x417   :  { %13519 = vmatprep.subr.bf16.mxu0 %v19824_v15  ;;  %v19900_v15 = vld [vmem:[#allocation5 + $0x20e0] ss:$16 sps:$4 sm:$0xff]  }
 0x419   :  { %14750 = vmatpush1.bf16.msra.mxu1 %v19825_v17  ;;  %v19911_v17 = vld [vmem:[#allocation5 + $0x1d0c] ss:$16 sps:$4 sm:$0xff]  }
 0x41a   :  { %13520 = vmatpush1.bf16.msra.mxu0 %v19822_v55  ;;  %14751 = vmatprep.subr.bf16.mxu1 %v19833_v20  ;;  %v19908_v55 = vld [vmem:[#allocation5 + $0x2104] ss:$16 sps:$4 sm:$0xff]   ;;  %v19909_v20 = vld [vmem:[#allocation5 + $0x1d08] ss:$16 sps:$4 sm:$0xff]  }
 0x41b   :  { %13521 = vmatprep.subr.bf16.mxu0 %v19830_v12  ;;  %v19906_v12 = vld [vmem:[#allocation5 + $0x2100] ss:$16 sps:$4 sm:$0xff]  }
 0x41d   :  { %14752 = vmatpush1.bf16.msra.mxu1 %v19831_v22  ;;  %v19917_v22 = vld [vmem:[#allocation5 + $0x1d2c] ss:$16 sps:$4 sm:$0xff]  }
 0x41e   :  { %13522 = vmatpush1.bf16.msra.mxu0 %v19828_v21  ;;  %14753 = vmatprep.subr.bf16.mxu1 %v19839_v51  ;;  %v19914_v21 = vld [vmem:[#allocation5 + $0x2124] ss:$16 sps:$4 sm:$0xff]   ;;  %v19915_v51 = vld [vmem:[#allocation5 + $0x1d28] ss:$16 sps:$4 sm:$0xff]  }
 0x41f   :  { %13523 = vmatprep.subr.bf16.mxu0 %v19836_v54  ;;  %v19912_v54 = vld [vmem:[#allocation5 + $0x2120] ss:$16 sps:$4 sm:$0xff]  }
 0x421   :  { %14754 = vmatpush1.bf16.msra.mxu1 %v19837_v29  ;;  %v19923_v29 = vld [vmem:[#allocation5 + $0x1d4c] ss:$16 sps:$4 sm:$0xff]  }
 0x422   :  { %13524 = vmatpush1.bf16.msra.mxu0 %v19834_v27  ;;  %14755 = vmatprep.subr.bf16.mxu1 %v19845_v11  ;;  %v19920_v27 = vld [vmem:[#allocation5 + $0x2144] ss:$16 sps:$4 sm:$0xff]   ;;  %v19921_v11 = vld [vmem:[#allocation5 + $0x1d48] ss:$16 sps:$4 sm:$0xff]  }
 0x423   :  { %13525 = vmatprep.subr.bf16.mxu0 %v19842_v30  ;;  %v19918_v30 = vld [vmem:[#allocation5 + $0x2140] ss:$16 sps:$4 sm:$0xff]  }
 0x425   :  { %14756 = vmatpush1.bf16.msra.mxu1 %v19843_v34  ;;  %v19929_v34 = vld [vmem:[#allocation5 + $0x1d6c] ss:$16 sps:$4 sm:$0xff]  }
 0x426   :  { %13526 = vmatpush1.bf16.msra.mxu0 %v19840_v58  ;;  %14757 = vmatprep.subr.bf16.mxu1 %v19851_v8  ;;  %v19926_v58 = vld [vmem:[#allocation5 + $0x2164] ss:$16 sps:$4 sm:$0xff]   ;;  %v19927_v8 = vld [vmem:[#allocation5 + $0x1d68] ss:$16 sps:$4 sm:$0xff]  }
 0x427   :  { %13527 = vmatprep.subr.bf16.mxu0 %v19848_v35  ;;  %v19924_v35 = vld [vmem:[#allocation5 + $0x2160] ss:$16 sps:$4 sm:$0xff]  }
 0x429   :  { %14758 = vmatpush1.bf16.msra.mxu1 %v19849_v39  ;;  %v19935_v39 = vld [vmem:[#allocation5 + $0x1d8c] ss:$16 sps:$4 sm:$0xff]  }
 0x42a   :  { %13528 = vmatpush1.bf16.msra.mxu0 %v19846_v32  ;;  %14759 = vmatprep.subr.bf16.mxu1 %v19857_v47  ;;  %v19932_v32 = vld [vmem:[#allocation5 + $0x2184] ss:$16 sps:$4 sm:$0xff]   ;;  %v19933_v47 = vld [vmem:[#allocation5 + $0x1d88] ss:$16 sps:$4 sm:$0xff]  }
 0x42b   :  { %13529 = vmatprep.subr.bf16.mxu0 %v19854_v40  ;;  %v19930_v40 = vld [vmem:[#allocation5 + $0x2180] ss:$16 sps:$4 sm:$0xff]  }
 0x42d   :  { %14760 = vmatpush1.bf16.msra.mxu1 %v19855_v1  ;;  %v19941_v1 = vld [vmem:[#allocation5 + $0x1dac] ss:$16 sps:$4 sm:$0xff]  }
 0x42e   :  { %13530 = vmatpush1.bf16.msra.mxu0 %v19852_v7  ;;  %14770 = vmatprep.subr.bf16.mxu1 %v19863_v45  ;;  %v19938_v7 = vld [vmem:[#allocation5 + $0x21a4] ss:$16 sps:$4 sm:$0xff]   ;;  %v19939_v45 = vld [vmem:[#allocation5 + $0x1da8] ss:$16 sps:$4 sm:$0xff]  }
 0x42f   :  { %13540 = vmatprep.subr.bf16.mxu0 %v19860_v3  ;;  %v19936_v3 = vld [vmem:[#allocation5 + $0x21a0] ss:$16 sps:$4 sm:$0xff]  }
 0x430   :  { %14762 = vmatmul.mubr.bf16.vlgmr.msra.gmra.mrb[4].mxu1 %v22056_v26  ;;  %v19881_v26 = vld [vmem:[#allocation5 + $0x1c6c] ss:$16 sps:$4 sm:$0xff]  }
 0x431   :  { %13532 = vmatmul.mubr.bf16.vlgmr.msra.gmra.mrb[0].mxu0 %v22083_v48  ;;  %14771 = vmatpush1.bf16.msra.mxu1 %v19861_v19  ;;  %v19942_v19 = vld [vmem:[#allocation5 + $0x21c0] ss:$16 sps:$4 sm:$0xff]  }
 0x432   :  { %13541 = vmatpush1.bf16.msra.mxu0 %v19858_v23  ;;  %14772 = vmatprep.subr.bf16.mxu1 %v19869_v52  ;;  %v19947_v23 = vld [vmem:[#allocation5 + $0x1dcc] ss:$16 sps:$4 sm:$0xff]   ;;  %v19950_v52 = vld [vmem:[#allocation5 + $0x21e4] ss:$16 sps:$4 sm:$0xff]  }
 0x433   :  { %13542 = vmatprep.subr.bf16.mxu0 %v19866_v49  ;;  %13572 = vmatprep.mubr.bf16.mxu0 %v22086_v31  ;;  %v19945_v49 = vld [vmem:[#allocation5 + $0x1dc8] ss:$16 sps:$4 sm:$0xff]  }
 0x434   :  { %14802 = vmatprep.mubr.bf16.mxu1 %v22059_v57  ;;  %v19885_v57 = vld [vmem:[#allocation5 + $0x1c88] ss:$16 sps:$4 sm:$0xff]  }
 0x435   :  { %14773 = vmatpush1.bf16.msra.mxu1 %v19867_v16  ;;  %v19948_v16 = vld [vmem:[#allocation5 + $0x21e0] ss:$16 sps:$4 sm:$0xff]  }
 0x436   :  { %13543 = vmatpush1.bf16.msra.mxu0 %v19864_v53  ;;  %14774 = vmatprep.subr.bf16.mxu1 %v19875_v56  ;;  %v19953_v53 = vld [vmem:[#allocation5 + $0x1dec] ss:$16 sps:$4 sm:$0xff]   ;;  %v19956_v56 = vld [vmem:[#allocation5 + $0x2204] ss:$16 sps:$4 sm:$0xff]  }
 0x437   :  { %13544 = vmatprep.subr.bf16.mxu0 %v19872_v18  ;;  %v19951_v18 = vld [vmem:[#allocation5 + $0x1de8] ss:$16 sps:$4 sm:$0xff]  }
 0x439   :  { %14775 = vmatpush1.bf16.msra.mxu1 %v19873_v13  ;;  %v22094_v13 = vrot.slane %v22077_v62, %v21865_v50  ;;  %v19960_v62 = vld [vmem:[#allocation5 + $0x2220] ss:$16 sps:$4 sm:$0xff]  }
 0x43a   :  { %13545 = vmatpush1.bf16.msra.mxu0 %v19870_v28  ;;  %14776 = vmatprep.subr.bf16.mxu1 %v19881_v26  ;;  %v19959_v28 = vld [vmem:[#allocation5 + $0x1e0c] ss:$16 sps:$4 sm:$0xff]   ;;  %v19957_v26 = vld [vmem:[#allocation5 + $0x1e08] ss:$16 sps:$4 sm:$0xff]  }
 0x43b   :  { %13546 = vmatprep.subr.bf16.mxu0 %v19878_v25  ;;  %v19954_v25 = vld [vmem:[#allocation5 + $0x2200] ss:$16 sps:$4 sm:$0xff]  }
 0x43d   :  { %14777 = vmatpush1.bf16.msra.mxu1 %v19879_v24  ;;  %v19965_v24 = vld [vmem:[#allocation5 + $0x1e2c] ss:$16 sps:$4 sm:$0xff]  }
 0x43e   :  { %13547 = vmatpush1.bf16.msra.mxu0 %v19876_v59  ;;  %14778 = vmatprep.subr.bf16.mxu1 %v19887_v61  ;;  %v19962_v59 = vld [vmem:[#allocation5 + $0x2224] ss:$16 sps:$4 sm:$0xff]   ;;  %v19963_v61 = vld [vmem:[#allocation5 + $0x1e28] ss:$16 sps:$4 sm:$0xff]  }
 0x43f   :  { %13548 = vmatprep.subr.bf16.mxu0 %v19884_v60  ;;  %v22098_v60 = vcombine.high %v22086_v31, %v22086_v31 }
 0x441   :  { %14779 = vmatpush1.bf16.msra.mxu1 %v19885_v57  ;;  %v19971_v57 = vld [vmem:[#allocation5 + $0x1e4c] ss:$16 sps:$4 sm:$0xff]  }
 0x442   :  { %13549 = vmatpush1.bf16.msra.mxu0 %v19882_v33  ;;  %14780 = vmatprep.subr.bf16.mxu1 %v19893_v0  ;;  %v19968_v33 = vld [vmem:[#allocation5 + $0x2244] ss:$16 sps:$4 sm:$0xff]   ;;  %v19969_v0 = vld [vmem:[#allocation5 + $0x1e48] ss:$16 sps:$4 sm:$0xff]  }
 0x443   :  { %13550 = vmatprep.subr.bf16.mxu0 %v19890_v63  ;;  %v19966_v63 = vld [vmem:[#allocation5 + $0x2240] ss:$16 sps:$4 sm:$0xff]  }
 0x445   :  { %14781 = vmatpush1.bf16.msra.mxu1 %v19891_v4  ;;  %v19972_v4 = vld [vmem:[#allocation5 + $0x2260] ss:$16 sps:$4 sm:$0xff]  }
 0x446   :  { %13551 = vmatpush1.bf16.msra.mxu0 %v19888_v2  ;;  %14782 = vmatprep.subr.bf16.mxu1 %v19899_v38  ;;  %v19974_v2 = vld [vmem:[#allocation5 + $0x2264] ss:$16 sps:$4 sm:$0xff]  }
 0x447   :  { %13552 = vmatprep.subr.bf16.mxu0 %v19896_v36  ;;  %v19975_v36 = vld [vmem:[#allocation5 + $0x1e68] ss:$16 sps:$4 sm:$0xff]   ;;  %v19980_v38 = vld [vmem:[#allocation5 + $0x2284] ss:$16 sps:$4 sm:$0xff]  }
 0x449   :  { %14783 = vmatpush1.bf16.msra.mxu1 %v19897_v10  ;;  %v19978_v10 = vld [vmem:[#allocation5 + $0x2280] ss:$16 sps:$4 sm:$0xff]  }
 0x44a   :  { %13553 = vmatpush1.bf16.msra.mxu0 %v19894_v9  ;;  %14784 = vmatprep.subr.bf16.mxu1 %v19905_v44  ;;  %v19983_v9 = vld [vmem:[#allocation5 + $0x1e8c] ss:$16 sps:$4 sm:$0xff]  }
 0x44b   :  { %13554 = vmatprep.subr.bf16.mxu0 %v19902_v14  ;;  %v19986_v14 = vld [vmem:[#allocation5 + $0x22a4] ss:$16 sps:$4 sm:$0xff]   ;;  %v19989_v44 = vld [vmem:[#allocation5 + $0x1eac] ss:$16 sps:$4 sm:$0xff]  }
 0x44d   :  { %14785 = vmatpush1.bf16.msra.mxu1 %v19903_v41  ;;  %v19987_v41 = vld [vmem:[#allocation5 + $0x1ea8] ss:$16 sps:$4 sm:$0xff]  }
 0x44e   :  { %13555 = vmatpush1.bf16.msra.mxu0 %v19900_v15  ;;  %14786 = vmatprep.subr.bf16.mxu1 %v19911_v17  ;;  %v19984_v15 = vld [vmem:[#allocation5 + $0x22a0] ss:$16 sps:$4 sm:$0xff]   ;;  %v19995_v17 = vld [vmem:[#allocation5 + $0x1ecc] ss:$16 sps:$4 sm:$0xff]  }
 0x44f   :  { %13556 = vmatprep.subr.bf16.mxu0 %v19908_v55  ;;  %v19992_v55 = vld [vmem:[#allocation5 + $0x22c4] ss:$16 sps:$4 sm:$0xff]  }
 0x451   :  { %14787 = vmatpush1.bf16.msra.mxu1 %v19909_v20  ;;  %v19993_v20 = vld [vmem:[#allocation5 + $0x1ec8] ss:$16 sps:$4 sm:$0xff]  }
 0x452   :  { %13557 = vmatpush1.bf16.msra.mxu0 %v19906_v12  ;;  %14788 = vmatprep.subr.bf16.mxu1 %v19917_v22  ;;  %v19990_v12 = vld [vmem:[#allocation5 + $0x22c0] ss:$16 sps:$4 sm:$0xff]   ;;  %v20001_v22 = vld [vmem:[#allocation5 + $0x1eec] ss:$16 sps:$4 sm:$0xff]  }
 0x453   :  { %13558 = vmatprep.subr.bf16.mxu0 %v19914_v21  ;;  %v19998_v21 = vld [vmem:[#allocation5 + $0x22e4] ss:$16 sps:$4 sm:$0xff]  }
 0x455   :  { %14789 = vmatpush1.bf16.msra.mxu1 %v19915_v51  ;;  %v19999_v51 = vld [vmem:[#allocation5 + $0x1ee8] ss:$16 sps:$4 sm:$0xff]  }
 0x456   :  { %13559 = vmatpush1.bf16.msra.mxu0 %v19912_v54  ;;  %14790 = vmatprep.subr.bf16.mxu1 %v19923_v29  ;;  %v19996_v54 = vld [vmem:[#allocation5 + $0x22e0] ss:$16 sps:$4 sm:$0xff]   ;;  %v20007_v29 = vld [vmem:[#allocation5 + $0x1f0c] ss:$16 sps:$4 sm:$0xff]  }
 0x457   :  { %13560 = vmatprep.subr.bf16.mxu0 %v19920_v27  ;;  %v20004_v27 = vld [vmem:[#allocation5 + $0x2304] ss:$16 sps:$4 sm:$0xff]  }
 0x459   :  { %14791 = vmatpush1.bf16.msra.mxu1 %v19921_v11  ;;  %v20005_v11 = vld [vmem:[#allocation5 + $0x1f08] ss:$16 sps:$4 sm:$0xff]  }
 0x45a   :  { %13561 = vmatpush1.bf16.msra.mxu0 %v19918_v30  ;;  %14792 = vmatprep.subr.bf16.mxu1 %v19929_v34  ;;  %v20002_v30 = vld [vmem:[#allocation5 + $0x2300] ss:$16 sps:$4 sm:$0xff]   ;;  %v20013_v34 = vld [vmem:[#allocation5 + $0x1f2c] ss:$16 sps:$4 sm:$0xff]  }
 0x45b   :  { %13562 = vmatprep.subr.bf16.mxu0 %v19926_v58  ;;  %v20010_v58 = vld [vmem:[#allocation5 + $0x2324] ss:$16 sps:$4 sm:$0xff]  }
 0x45d   :  { %14793 = vmatpush1.bf16.msra.mxu1 %v19927_v8  ;;  %v20011_v8 = vld [vmem:[#allocation5 + $0x1f28] ss:$16 sps:$4 sm:$0xff]  }
 0x45e   :  { %13563 = vmatpush1.bf16.msra.mxu0 %v19924_v35  ;;  %14794 = vmatprep.subr.bf16.mxu1 %v19935_v39  ;;  %v20008_v35 = vld [vmem:[#allocation5 + $0x2320] ss:$16 sps:$4 sm:$0xff]   ;;  %v20019_v39 = vld [vmem:[#allocation5 + $0x1f4c] ss:$16 sps:$4 sm:$0xff]  }
 0x45f   :  { %13564 = vmatprep.subr.bf16.mxu0 %v19932_v32  ;;  %v20016_v32 = vld [vmem:[#allocation5 + $0x2344] ss:$16 sps:$4 sm:$0xff]  }
 0x461   :  { %14795 = vmatpush1.bf16.msra.mxu1 %v19933_v47  ;;  %v20017_v47 = vld [vmem:[#allocation5 + $0x1f48] ss:$16 sps:$4 sm:$0xff]  }
 0x462   :  { %13565 = vmatpush1.bf16.msra.mxu0 %v19930_v40  ;;  %14796 = vmatprep.subr.bf16.mxu1 %v19941_v1  ;;  %v20014_v40 = vld [vmem:[#allocation5 + $0x2340] ss:$16 sps:$4 sm:$0xff]   ;;  %v20025_v1 = vld [vmem:[#allocation5 + $0x1f6c] ss:$16 sps:$4 sm:$0xff]  }
 0x463   :  { %13566 = vmatprep.subr.bf16.mxu0 %v19938_v7  ;;  %v20022_v7 = vld [vmem:[#allocation5 + $0x2364] ss:$16 sps:$4 sm:$0xff]  }
 0x465   :  { %14797 = vmatpush1.bf16.msra.mxu1 %v19939_v45  ;;  %v20023_v45 = vld [vmem:[#allocation5 + $0x1f68] ss:$16 sps:$4 sm:$0xff]  }
 0x466   :  { %13567 = vmatpush1.bf16.msra.mxu0 %v19936_v3  ;;  %14798 = vmatprep.subr.bf16.mxu1 %v19947_v23  ;;  %v20020_v3 = vld [vmem:[#allocation5 + $0x2360] ss:$16 sps:$4 sm:$0xff]   ;;  %v20031_v23 = vld [vmem:[#allocation5 + $0x1f8c] ss:$16 sps:$4 sm:$0xff]  }
 0x467   :  { %13568 = vmatprep.subr.bf16.mxu0 %v19944_v46  ;;  %v20028_v46 = vld [vmem:[#allocation5 + $0x2384] ss:$16 sps:$4 sm:$0xff]  }
 0x469   :  { %14799 = vmatpush1.bf16.msra.mxu1 %v19945_v49  ;;  %v20029_v49 = vld [vmem:[#allocation5 + $0x1f88] ss:$16 sps:$4 sm:$0xff]  }
 0x46a   :  { %13569 = vmatpush1.bf16.msra.mxu0 %v19942_v19  ;;  %14800 = vmatprep.subr.bf16.mxu1 %v19953_v53  ;;  %v20026_v19 = vld [vmem:[#allocation5 + $0x2380] ss:$16 sps:$4 sm:$0xff]   ;;  %v20037_v53 = vld [vmem:[#allocation5 + $0x1fac] ss:$16 sps:$4 sm:$0xff]  }
 0x46b   :  { %13570 = vmatprep.subr.bf16.mxu0 %v19950_v52  ;;  %v20034_v52 = vld [vmem:[#allocation5 + $0x23a4] ss:$16 sps:$4 sm:$0xff]  }
 0x46d   :  { %14801 = vmatpush1.bf16.msra.mxu1 %v19951_v18  ;;  %v20035_v18 = vld [vmem:[#allocation5 + $0x1fa8] ss:$16 sps:$4 sm:$0xff]  }
 0x46e   :  { %13571 = vmatpush1.bf16.msra.mxu0 %v19948_v16  ;;  %14811 = vmatprep.subr.bf16.mxu1 %v19959_v28  ;;  %v20032_v16 = vld [vmem:[#allocation5 + $0x23a0] ss:$16 sps:$4 sm:$0xff]   ;;  %v20043_v28 = vld [vmem:[#allocation5 + $0x1fcc] ss:$16 sps:$4 sm:$0xff]  }
 0x46f   :  { %13581 = vmatprep.subr.bf16.mxu0 %v19956_v56  ;;  %v20040_v56 = vld [vmem:[#allocation5 + $0x23c4] ss:$16 sps:$4 sm:$0xff]  }
 0x470   :  { %14803 = vmatmul.mubr.bf16.vlgmr.msra.gmra.mrb[4].mxu1 %v22067_v37  ;;  %v19977_v37 = vld [vmem:[#allocation5 + $0x1e6c] ss:$16 sps:$4 sm:$0xff]  }
 0x471   :  { %13573 = vmatmul.mubr.bf16.vlgmr.msra.gmra.mrb[0].mxu0 %v22094_v13  ;;  %14812 = vmatpush1.bf16.msra.mxu1 %v19957_v26 }
 0x472   :  { %13582 = vmatpush1.bf16.msra.mxu0 %v19954_v25  ;;  %14813 = vmatprep.subr.bf16.mxu1 %v19965_v24  ;;  %v21592_v25 = vld [vmem:[#allocation3 + $0x20] sm:$0xff]  ;;  %v20041_v24 = vld [vmem:[#allocation5 + $0x1fc8] ss:$16 sps:$4 sm:$0xff]  }
 0x473   :  { %13583 = vmatprep.subr.bf16.mxu0 %v19962_v59  ;;  %13613 = vmatprep.mubr.bf16.mxu0 %v22098_v60  ;;  %v2384_v26 = vcombine.high %v21592_v25, %v21592_v25  ;;  %v20038_v59 = vld [vmem:[#allocation5 + $0x23c0] ss:$16 sps:$4 sm:$0xff]  }
 0x474   :  { %14843 = vmatprep.mubr.bf16.mxu1 %v22071_v42  ;;  %v19981_v42 = vld [vmem:[#allocation5 + $0x1e88] ss:$16 sps:$4 sm:$0xff]   ;;  %v20116_v25 = vld [vmem:[#allocation5 + $0x2560] ss:$16 sps:$4 sm:$0xff]  }
 0x475   :  { %14814 = vmatpush1.bf16.msra.mxu1 %v19963_v61  ;;  %v20049_v61 = vld [vmem:[#allocation5 + $0x1fec] ss:$16 sps:$4 sm:$0xff]  }
 0x476   :  { %13584 = vmatpush1.bf16.msra.mxu0 %v19960_v62  ;;  %14815 = vmatprep.subr.bf16.mxu1 %v19971_v57  ;;  %v20046_v62 = vld [vmem:[#allocation5 + $0x23e4] ss:$16 sps:$4 sm:$0xff]   ;;  %v20044_v57 = vld [vmem:[#allocation5 + $0x23e0] ss:$16 sps:$4 sm:$0xff]  }
 0x477   :  { %13585 = vmatprep.subr.bf16.mxu0 %v19968_v33  ;;  %v22105_v33 = vrot.slane %v2384_v26, %v21865_v50  ;;  %v20119_v26 = vld [vmem:[#allocation5 + $0x2168] ss:$16 sps:$4 sm:$0xff]  }
 0x479   :  { %14816 = vmatpush1.bf16.msra.mxu1 %v19969_v0  ;;  %v20052_v0 = vld [vmem:[#allocation5 + $0x2404] ss:$16 sps:$4 sm:$0xff]  }
 0x47a   :  { %13586 = vmatpush1.bf16.msra.mxu0 %v19966_v63  ;;  %14817 = vmatprep.subr.bf16.mxu1 %v19977_v37  ;;  %v20047_v63 = vld [vmem:[#allocation5 + $0x1fe8] ss:$16 sps:$4 sm:$0xff]   ;;  %v2400_v37 = vcombine.high %v22105_v33, %v22105_v33 }
 0x47b   :  { %13587 = vmatprep.subr.bf16.mxu0 %v19974_v2  ;;  %v20055_v2 = vld [vmem:[#allocation5 + $0x200c] ss:$16 sps:$4 sm:$0xff]  }
 0x47d   :  { %14818 = vmatpush1.bf16.msra.mxu1 %v19975_v36  ;;  %v20050_v36 = vld [vmem:[#allocation5 + $0x2400] ss:$16 sps:$4 sm:$0xff]  }
 0x47e   :  { %13588 = vmatpush1.bf16.msra.mxu0 %v19972_v4  ;;  %14819 = vmatprep.subr.bf16.mxu1 %v19983_v9  ;;  %v22111_v4 = vcombine.high %v22094_v13, %v22094_v13  ;;  %v20058_v9 = vld [vmem:[#allocation5 + $0x2424] ss:$16 sps:$4 sm:$0xff]  }
 0x47f   :  { %13589 = vmatprep.subr.bf16.mxu0 %v19980_v38  ;;  %v20053_v38 = vld [vmem:[#allocation5 + $0x2008] ss:$16 sps:$4 sm:$0xff]  }
 0x481   :  { %14820 = vmatpush1.bf16.msra.mxu1 %v19981_v42  ;;  %v22114_v42 = vrot.slane %v2400_v37, %v21865_v50  ;;  %v20136_v37 = vld [vmem:[#allocation5 + $0x25c4] ss:$16 sps:$4 sm:$0xff]  }
 0x482   :  { %13590 = vmatpush1.bf16.msra.mxu0 %v19978_v10  ;;  %14821 = vmatprep.subr.bf16.mxu1 %v19989_v44  ;;  %v20061_v10 = vld [vmem:[#allocation5 + $0x202c] ss:$16 sps:$4 sm:$0xff]   ;;  %v20059_v44 = vld [vmem:[#allocation5 + $0x2028] ss:$16 sps:$4 sm:$0xff]  }
 0x483   :  { %13591 = vmatprep.subr.bf16.mxu0 %v19986_v14  ;;  %v20056_v14 = vld [vmem:[#allocation5 + $0x2420] ss:$16 sps:$4 sm:$0xff]  }
 0x485   :  { %14822 = vmatpush1.bf16.msra.mxu1 %v19987_v41  ;;  %v20067_v41 = vld [vmem:[#allocation5 + $0x204c] ss:$16 sps:$4 sm:$0xff]  }
 0x486   :  { %13592 = vmatpush1.bf16.msra.mxu0 %v19984_v15  ;;  %14823 = vmatprep.subr.bf16.mxu1 %v19995_v17  ;;  %v20064_v15 = vld [vmem:[#allocation5 + $0x2444] ss:$16 sps:$4 sm:$0xff]   ;;  %v20065_v17 = vld [vmem:[#allocation5 + $0x2048] ss:$16 sps:$4 sm:$0xff]  }
 0x487   :  { %13593 = vmatprep.subr.bf16.mxu0 %v19992_v55  ;;  %v20062_v55 = vld [vmem:[#allocation5 + $0x2440] ss:$16 sps:$4 sm:$0xff]  }
 0x489   :  { %14824 = vmatpush1.bf16.msra.mxu1 %v19993_v20  ;;  %v20068_v20 = vld [vmem:[#allocation5 + $0x2460] ss:$16 sps:$4 sm:$0xff]  }
 0x48a   :  { %13594 = vmatpush1.bf16.msra.mxu0 %v19990_v12  ;;  %14825 = vmatprep.subr.bf16.mxu1 %v20001_v22  ;;  %v20070_v12 = vld [vmem:[#allocation5 + $0x2464] ss:$16 sps:$4 sm:$0xff]  }
 0x48b   :  { %13595 = vmatprep.subr.bf16.mxu0 %v19998_v21  ;;  %v20071_v21 = vld [vmem:[#allocation5 + $0x2068] ss:$16 sps:$4 sm:$0xff]   ;;  %v20076_v22 = vld [vmem:[#allocation5 + $0x2484] ss:$16 sps:$4 sm:$0xff]  }
 0x48d   :  { %14826 = vmatpush1.bf16.msra.mxu1 %v19999_v51  ;;  %v20074_v51 = vld [vmem:[#allocation5 + $0x2480] ss:$16 sps:$4 sm:$0xff]  }
 0x48e   :  { %13596 = vmatpush1.bf16.msra.mxu0 %v19996_v54  ;;  %14827 = vmatprep.subr.bf16.mxu1 %v20007_v29  ;;  %v20079_v54 = vld [vmem:[#allocation5 + $0x208c] ss:$16 sps:$4 sm:$0xff]  }
 0x48f   :  { %13597 = vmatprep.subr.bf16.mxu0 %v20004_v27  ;;  %v20082_v27 = vld [vmem:[#allocation5 + $0x24a4] ss:$16 sps:$4 sm:$0xff]   ;;  %v20085_v29 = vld [vmem:[#allocation5 + $0x20ac] ss:$16 sps:$4 sm:$0xff]  }
 0x491   :  { %14828 = vmatpush1.bf16.msra.mxu1 %v20005_v11  ;;  %v20083_v11 = vld [vmem:[#allocation5 + $0x20a8] ss:$16 sps:$4 sm:$0xff]  }
 0x492   :  { %13598 = vmatpush1.bf16.msra.mxu0 %v20002_v30  ;;  %14829 = vmatprep.subr.bf16.mxu1 %v20013_v34  ;;  %v20080_v30 = vld [vmem:[#allocation5 + $0x24a0] ss:$16 sps:$4 sm:$0xff]   ;;  %v20091_v34 = vld [vmem:[#allocation5 + $0x20cc] ss:$16 sps:$4 sm:$0xff]  }
 0x493   :  { %13599 = vmatprep.subr.bf16.mxu0 %v20010_v58  ;;  %v20088_v58 = vld [vmem:[#allocation5 + $0x24c4] ss:$16 sps:$4 sm:$0xff]  }
 0x495   :  { %14830 = vmatpush1.bf16.msra.mxu1 %v20011_v8  ;;  %v20089_v8 = vld [vmem:[#allocation5 + $0x20c8] ss:$16 sps:$4 sm:$0xff]  }
 0x496   :  { %13600 = vmatpush1.bf16.msra.mxu0 %v20008_v35  ;;  %14831 = vmatprep.subr.bf16.mxu1 %v20019_v39  ;;  %v20086_v35 = vld [vmem:[#allocation5 + $0x24c0] ss:$16 sps:$4 sm:$0xff]   ;;  %v20097_v39 = vld [vmem:[#allocation5 + $0x20ec] ss:$16 sps:$4 sm:$0xff]  }
 0x497   :  { %13601 = vmatprep.subr.bf16.mxu0 %v20016_v32  ;;  %v20094_v32 = vld [vmem:[#allocation5 + $0x24e4] ss:$16 sps:$4 sm:$0xff]  }
 0x499   :  { %14832 = vmatpush1.bf16.msra.mxu1 %v20017_v47  ;;  %v20095_v47 = vld [vmem:[#allocation5 + $0x20e8] ss:$16 sps:$4 sm:$0xff]  }
 0x49a   :  { %13602 = vmatpush1.bf16.msra.mxu0 %v20014_v40  ;;  %14833 = vmatprep.subr.bf16.mxu1 %v20025_v1  ;;  %v20092_v40 = vld [vmem:[#allocation5 + $0x24e0] ss:$16 sps:$4 sm:$0xff]   ;;  %v20103_v1 = vld [vmem:[#allocation5 + $0x210c] ss:$16 sps:$4 sm:$0xff]  }
 0x49b   :  { %13603 = vmatprep.subr.bf16.mxu0 %v20022_v7  ;;  %v20100_v7 = vld [vmem:[#allocation5 + $0x2504] ss:$16 sps:$4 sm:$0xff]  }
 0x49d   :  { %14834 = vmatpush1.bf16.msra.mxu1 %v20023_v45  ;;  %v20101_v45 = vld [vmem:[#allocation5 + $0x2108] ss:$16 sps:$4 sm:$0xff]  }
 0x49e   :  { %13604 = vmatpush1.bf16.msra.mxu0 %v20020_v3  ;;  %14835 = vmatprep.subr.bf16.mxu1 %v20031_v23  ;;  %v20098_v3 = vld [vmem:[#allocation5 + $0x2500] ss:$16 sps:$4 sm:$0xff]   ;;  %v20109_v23 = vld [vmem:[#allocation5 + $0x212c] ss:$16 sps:$4 sm:$0xff]  }
 0x49f   :  { %13605 = vmatprep.subr.bf16.mxu0 %v20028_v46  ;;  %v20106_v46 = vld [vmem:[#allocation5 + $0x2524] ss:$16 sps:$4 sm:$0xff]  }
 0x4a1   :  { %14836 = vmatpush1.bf16.msra.mxu1 %v20029_v49  ;;  %v20107_v49 = vld [vmem:[#allocation5 + $0x2128] ss:$16 sps:$4 sm:$0xff]  }
 0x4a2   :  { %13606 = vmatpush1.bf16.msra.mxu0 %v20026_v19  ;;  %14837 = vmatprep.subr.bf16.mxu1 %v20037_v53  ;;  %v20104_v19 = vld [vmem:[#allocation5 + $0x2520] ss:$16 sps:$4 sm:$0xff]   ;;  %v20115_v53 = vld [vmem:[#allocation5 + $0x214c] ss:$16 sps:$4 sm:$0xff]  }
 0x4a3   :  { %13607 = vmatprep.subr.bf16.mxu0 %v20034_v52  ;;  %v20112_v52 = vld [vmem:[#allocation5 + $0x2544] ss:$16 sps:$4 sm:$0xff]  }
 0x4a5   :  { %14838 = vmatpush1.bf16.msra.mxu1 %v20035_v18  ;;  %v20113_v18 = vld [vmem:[#allocation5 + $0x2148] ss:$16 sps:$4 sm:$0xff]  }
 0x4a6   :  { %13608 = vmatpush1.bf16.msra.mxu0 %v20032_v16  ;;  %14839 = vmatprep.subr.bf16.mxu1 %v20043_v28  ;;  %v20110_v16 = vld [vmem:[#allocation5 + $0x2540] ss:$16 sps:$4 sm:$0xff]   ;;  %v20121_v28 = vld [vmem:[#allocation5 + $0x216c] ss:$16 sps:$4 sm:$0xff]  }
 0x4a7   :  { %13609 = vmatprep.subr.bf16.mxu0 %v20040_v56  ;;  %v20118_v56 = vld [vmem:[#allocation5 + $0x2564] ss:$16 sps:$4 sm:$0xff]  }
 0x4a9   :  { %14840 = vmatpush1.bf16.msra.mxu1 %v20041_v24  ;;  %v20127_v24 = vld [vmem:[#allocation5 + $0x218c] ss:$16 sps:$4 sm:$0xff]  }
 0x4aa   :  { %13610 = vmatpush1.bf16.msra.mxu0 %v20038_v59  ;;  %14841 = vmatprep.subr.bf16.mxu1 %v20049_v61  ;;  %v20124_v59 = vld [vmem:[#allocation5 + $0x2584] ss:$16 sps:$4 sm:$0xff]   ;;  %v20125_v61 = vld [vmem:[#allocation5 + $0x2188] ss:$16 sps:$4 sm:$0xff]  }
 0x4ab   :  { %13611 = vmatprep.subr.bf16.mxu0 %v20046_v62  ;;  %v20122_v62 = vld [vmem:[#allocation5 + $0x2580] ss:$16 sps:$4 sm:$0xff]  }
 0x4ad   :  { %14842 = vmatpush1.bf16.msra.mxu1 %v20047_v63  ;;  %v20133_v63 = vld [vmem:[#allocation5 + $0x21ac] ss:$16 sps:$4 sm:$0xff]  }
 0x4ae   :  { %13612 = vmatpush1.bf16.msra.mxu0 %v20044_v57  ;;  %14852 = vmatprep.subr.bf16.mxu1 %v20055_v2  ;;  %v20130_v57 = vld [vmem:[#allocation5 + $0x25a4] ss:$16 sps:$4 sm:$0xff]   ;;  %v20131_v2 = vld [vmem:[#allocation5 + $0x21a8] ss:$16 sps:$4 sm:$0xff]  }
 0x4af   :  { %13622 = vmatprep.subr.bf16.mxu0 %v20052_v0  ;;  %v20128_v0 = vld [vmem:[#allocation5 + $0x25a0] ss:$16 sps:$4 sm:$0xff]  }
 0x4b0   :  { %14844 = vmatmul.mubr.bf16.vlgmr.msra.gmra.mrb[4].mxu1 %v22083_v48  ;;  %v20073_v48 = vld [vmem:[#allocation5 + $0x206c] ss:$16 sps:$4 sm:$0xff]  }
 0x4b1   :  { %13614 = vmatmul.mubr.bf16.vlgmr.msra.gmra.mrb[0].mxu0 %v22111_v4  ;;  %14853 = vmatpush1.bf16.msra.mxu1 %v20053_v38  ;;  %v20134_v38 = vld [vmem:[#allocation5 + $0x25c0] ss:$16 sps:$4 sm:$0xff]  }
 0x4b2   :  { %13623 = vmatpush1.bf16.msra.mxu0 %v20050_v36  ;;  %14854 = vmatprep.subr.bf16.mxu1 %v20061_v10  ;;  %v20139_v36 = vld [vmem:[#allocation5 + $0x21cc] ss:$16 sps:$4 sm:$0xff]   ;;  %v20142_v10 = vld [vmem:[#allocation5 + $0x25e4] ss:$16 sps:$4 sm:$0xff]  }
 0x4b3   :  { %13624 = vmatprep.subr.bf16.mxu0 %v20058_v9  ;;  %13654 = vmatprep.mubr.bf16.mxu0 %v22114_v42  ;;  %v20137_v9 = vld [vmem:[#allocation5 + $0x21c8] ss:$16 sps:$4 sm:$0xff]  }
 0x4b4   :  { %14884 = vmatprep.mubr.bf16.mxu1 %v22086_v31  ;;  %v20077_v31 = vld [vmem:[#allocation5 + $0x2088] ss:$16 sps:$4 sm:$0xff]  }
 0x4b5   :  { %14855 = vmatpush1.bf16.msra.mxu1 %v20059_v44  ;;  %v20140_v44 = vld [vmem:[#allocation5 + $0x25e0] ss:$16 sps:$4 sm:$0xff]  }
 0x4b6   :  { %13625 = vmatpush1.bf16.msra.mxu0 %v20056_v14  ;;  %14856 = vmatprep.subr.bf16.mxu1 %v20067_v41  ;;  %v20145_v14 = vld [vmem:[#allocation5 + $0x21ec] ss:$16 sps:$4 sm:$0xff]   ;;  %v20149_v41 = vld [vmem:[#allocation5 + $0x2604] ss:$16 sps:$4 sm:$0xff]  }
 0x4b7   :  { %13626 = vmatprep.subr.bf16.mxu0 %v20064_v15  ;;  %v20143_v15 = vld [vmem:[#allocation5 + $0x21e8] ss:$16 sps:$4 sm:$0xff]  }
 0x4b9   :  { %14857 = vmatpush1.bf16.msra.mxu1 %v20065_v17  ;;  %v22122_v17 = vrot.slane %v22105_v33, %v21865_v50  ;;  %v20153_v33 = vld [vmem:[#allocation5 + $0x2620] ss:$16 sps:$4 sm:$0xff]  }
 0x4ba   :  { %13627 = vmatpush1.bf16.msra.mxu0 %v20062_v55  ;;  %14858 = vmatprep.subr.bf16.mxu1 %v20073_v48  ;;  %v20152_v55 = vld [vmem:[#allocation5 + $0x220c] ss:$16 sps:$4 sm:$0xff]   ;;  %v20150_v48 = vld [vmem:[#allocation5 + $0x2208] ss:$16 sps:$4 sm:$0xff]  }
 0x4bb   :  { %13628 = vmatprep.subr.bf16.mxu0 %v20070_v12  ;;  %v20147_v12 = vld [vmem:[#allocation5 + $0x2600] ss:$16 sps:$4 sm:$0xff]  }
 0x4bd   :  { %14859 = vmatpush1.bf16.msra.mxu1 %v20071_v21  ;;  %v20158_v21 = vld [vmem:[#allocation5 + $0x222c] ss:$16 sps:$4 sm:$0xff]  }
 0x4be   :  { %13629 = vmatpush1.bf16.msra.mxu0 %v20068_v20  ;;  %14860 = vmatprep.subr.bf16.mxu1 %v20079_v54  ;;  %v20155_v20 = vld [vmem:[#allocation5 + $0x2624] ss:$16 sps:$4 sm:$0xff]   ;;  %v20156_v54 = vld [vmem:[#allocation5 + $0x2228] ss:$16 sps:$4 sm:$0xff]  }
 0x4bf   :  { %13630 = vmatprep.subr.bf16.mxu0 %v20076_v22  ;;  %v22126_v22 = vcombine.high %v22114_v42, %v22114_v42 }
 0x4c1   :  { %14861 = vmatpush1.bf16.msra.mxu1 %v20077_v31  ;;  %v20164_v31 = vld [vmem:[#allocation5 + $0x224c] ss:$16 sps:$4 sm:$0xff]  }
 0x4c2   :  { %13631 = vmatpush1.bf16.msra.mxu0 %v20074_v51  ;;  %14862 = vmatprep.subr.bf16.mxu1 %v20085_v29  ;;  %v20161_v51 = vld [vmem:[#allocation5 + $0x2644] ss:$16 sps:$4 sm:$0xff]   ;;  %v20162_v29 = vld [vmem:[#allocation5 + $0x2248] ss:$16 sps:$4 sm:$0xff]  }
 0x4c3   :  { %13632 = vmatprep.subr.bf16.mxu0 %v20082_v27  ;;  %v20159_v27 = vld [vmem:[#allocation5 + $0x2640] ss:$16 sps:$4 sm:$0xff]  }
 0x4c5   :  { %14863 = vmatpush1.bf16.msra.mxu1 %v20083_v11  ;;  %v20165_v11 = vld [vmem:[#allocation5 + $0x2660] ss:$16 sps:$4 sm:$0xff]  }
 0x4c6   :  { %13633 = vmatpush1.bf16.msra.mxu0 %v20080_v30  ;;  %14864 = vmatprep.subr.bf16.mxu1 %v20091_v34  ;;  %v20167_v30 = vld [vmem:[#allocation5 + $0x2664] ss:$16 sps:$4 sm:$0xff]  }
 0x4c7   :  { %13634 = vmatprep.subr.bf16.mxu0 %v20088_v58  ;;  %v20168_v58 = vld [vmem:[#allocation5 + $0x2268] ss:$16 sps:$4 sm:$0xff]   ;;  %v20173_v34 = vld [vmem:[#allocation5 + $0x2684] ss:$16 sps:$4 sm:$0xff]  }
 0x4c9   :  { %14865 = vmatpush1.bf16.msra.mxu1 %v20089_v8  ;;  %v20171_v8 = vld [vmem:[#allocation5 + $0x2680] ss:$16 sps:$4 sm:$0xff]  }
 0x4ca   :  { %13635 = vmatpush1.bf16.msra.mxu0 %v20086_v35  ;;  %14866 = vmatprep.subr.bf16.mxu1 %v20097_v39  ;;  %v20176_v35 = vld [vmem:[#allocation5 + $0x228c] ss:$16 sps:$4 sm:$0xff]  }
 0x4cb   :  { %13636 = vmatprep.subr.bf16.mxu0 %v20094_v32  ;;  %v20179_v32 = vld [vmem:[#allocation5 + $0x26a4] ss:$16 sps:$4 sm:$0xff]   ;;  %v20182_v39 = vld [vmem:[#allocation5 + $0x22ac] ss:$16 sps:$4 sm:$0xff]  }
 0x4cd   :  { %14867 = vmatpush1.bf16.msra.mxu1 %v20095_v47  ;;  %v20180_v47 = vld [vmem:[#allocation5 + $0x22a8] ss:$16 sps:$4 sm:$0xff]  }
 0x4ce   :  { %13637 = vmatpush1.bf16.msra.mxu0 %v20092_v40  ;;  %14868 = vmatprep.subr.bf16.mxu1 %v20103_v1  ;;  %v20177_v40 = vld [vmem:[#allocation5 + $0x26a0] ss:$16 sps:$4 sm:$0xff]   ;;  %v20188_v1 = vld [vmem:[#allocation5 + $0x22cc] ss:$16 sps:$4 sm:$0xff]  }
 0x4cf   :  { %13638 = vmatprep.subr.bf16.mxu0 %v20100_v7  ;;  %v20185_v7 = vld [vmem:[#allocation5 + $0x26c4] ss:$16 sps:$4 sm:$0xff]  }
 0x4d1   :  { %14869 = vmatpush1.bf16.msra.mxu1 %v20101_v45  ;;  %v20186_v45 = vld [vmem:[#allocation5 + $0x22c8] ss:$16 sps:$4 sm:$0xff]  }
 0x4d2   :  { %13639 = vmatpush1.bf16.msra.mxu0 %v20098_v3  ;;  %14870 = vmatprep.subr.bf16.mxu1 %v20109_v23  ;;  %v20183_v3 = vld [vmem:[#allocation5 + $0x26c0] ss:$16 sps:$4 sm:$0xff]   ;;  %v20194_v23 = vld [vmem:[#allocation5 + $0x22ec] ss:$16 sps:$4 sm:$0xff]  }
 0x4d3   :  { %13640 = vmatprep.subr.bf16.mxu0 %v20106_v46  ;;  %v20191_v46 = vld [vmem:[#allocation5 + $0x26e4] ss:$16 sps:$4 sm:$0xff]  }
 0x4d5   :  { %14871 = vmatpush1.bf16.msra.mxu1 %v20107_v49  ;;  %v20192_v49 = vld [vmem:[#allocation5 + $0x22e8] ss:$16 sps:$4 sm:$0xff]  }
 0x4d6   :  { %13641 = vmatpush1.bf16.msra.mxu0 %v20104_v19  ;;  %14872 = vmatprep.subr.bf16.mxu1 %v20115_v53  ;;  %v20189_v19 = vld [vmem:[#allocation5 + $0x26e0] ss:$16 sps:$4 sm:$0xff]   ;;  %v20200_v53 = vld [vmem:[#allocation5 + $0x230c] ss:$16 sps:$4 sm:$0xff]  }
 0x4d7   :  { %13642 = vmatprep.subr.bf16.mxu0 %v20112_v52  ;;  %v20197_v52 = vld [vmem:[#allocation5 + $0x2704] ss:$16 sps:$4 sm:$0xff]  }
 0x4d9   :  { %14873 = vmatpush1.bf16.msra.mxu1 %v20113_v18  ;;  %v20198_v18 = vld [vmem:[#allocation5 + $0x2308] ss:$16 sps:$4 sm:$0xff]  }
 0x4da   :  { %13643 = vmatpush1.bf16.msra.mxu0 %v20110_v16  ;;  %14874 = vmatprep.subr.bf16.mxu1 %v20121_v28  ;;  %v20195_v16 = vld [vmem:[#allocation5 + $0x2700] ss:$16 sps:$4 sm:$0xff]   ;;  %v20206_v28 = vld [vmem:[#allocation5 + $0x232c] ss:$16 sps:$4 sm:$0xff]  }
 0x4db   :  { %13644 = vmatprep.subr.bf16.mxu0 %v20118_v56  ;;  %v20203_v56 = vld [vmem:[#allocation5 + $0x2724] ss:$16 sps:$4 sm:$0xff]  }
 0x4dd   :  { %14875 = vmatpush1.bf16.msra.mxu1 %v20119_v26  ;;  %v20204_v26 = vld [vmem:[#allocation5 + $0x2328] ss:$16 sps:$4 sm:$0xff]  }
 0x4de   :  { %13645 = vmatpush1.bf16.msra.mxu0 %v20116_v25  ;;  %14876 = vmatprep.subr.bf16.mxu1 %v20127_v24  ;;  %v20201_v25 = vld [vmem:[#allocation5 + $0x2720] ss:$16 sps:$4 sm:$0xff]   ;;  %v20212_v24 = vld [vmem:[#allocation5 + $0x234c] ss:$16 sps:$4 sm:$0xff]  }
 0x4df   :  { %13646 = vmatprep.subr.bf16.mxu0 %v20124_v59  ;;  %v20209_v59 = vld [vmem:[#allocation5 + $0x2744] ss:$16 sps:$4 sm:$0xff]  }
 0x4e1   :  { %14877 = vmatpush1.bf16.msra.mxu1 %v20125_v61  ;;  %v20210_v61 = vld [vmem:[#allocation5 + $0x2348] ss:$16 sps:$4 sm:$0xff]  }
 0x4e2   :  { %13647 = vmatpush1.bf16.msra.mxu0 %v20122_v62  ;;  %14878 = vmatprep.subr.bf16.mxu1 %v20133_v63  ;;  %v20207_v62 = vld [vmem:[#allocation5 + $0x2740] ss:$16 sps:$4 sm:$0xff]   ;;  %v20218_v63 = vld [vmem:[#allocation5 + $0x236c] ss:$16 sps:$4 sm:$0xff]  }
 0x4e3   :  { %13648 = vmatprep.subr.bf16.mxu0 %v20130_v57  ;;  %v20215_v57 = vld [vmem:[#allocation5 + $0x2764] ss:$16 sps:$4 sm:$0xff]  }
 0x4e5   :  { %14879 = vmatpush1.bf16.msra.mxu1 %v20131_v2  ;;  %v20216_v2 = vld [vmem:[#allocation5 + $0x2368] ss:$16 sps:$4 sm:$0xff]  }
 0x4e6   :  { %13649 = vmatpush1.bf16.msra.mxu0 %v20128_v0  ;;  %14880 = vmatprep.subr.bf16.mxu1 %v20139_v36  ;;  %v20213_v0 = vld [vmem:[#allocation5 + $0x2760] ss:$16 sps:$4 sm:$0xff]   ;;  %v20224_v36 = vld [vmem:[#allocation5 + $0x238c] ss:$16 sps:$4 sm:$0xff]  }
 0x4e7   :  { %13650 = vmatprep.subr.bf16.mxu0 %v20136_v37  ;;  %v20221_v37 = vld [vmem:[#allocation5 + $0x2784] ss:$16 sps:$4 sm:$0xff]  }
 0x4e9   :  { %14881 = vmatpush1.bf16.msra.mxu1 %v20137_v9  ;;  %v20222_v9 = vld [vmem:[#allocation5 + $0x2388] ss:$16 sps:$4 sm:$0xff]  }
 0x4ea   :  { %13651 = vmatpush1.bf16.msra.mxu0 %v20134_v38  ;;  %14882 = vmatprep.subr.bf16.mxu1 %v20145_v14  ;;  %v20219_v38 = vld [vmem:[#allocation5 + $0x2780] ss:$16 sps:$4 sm:$0xff]   ;;  %v20230_v14 = vld [vmem:[#allocation5 + $0x23ac] ss:$16 sps:$4 sm:$0xff]  }
 0x4eb   :  { %13652 = vmatprep.subr.bf16.mxu0 %v20142_v10  ;;  %v20227_v10 = vld [vmem:[#allocation5 + $0x27a4] ss:$16 sps:$4 sm:$0xff]  }
 0x4ed   :  { %14883 = vmatpush1.bf16.msra.mxu1 %v20143_v15  ;;  %v20228_v15 = vld [vmem:[#allocation5 + $0x23a8] ss:$16 sps:$4 sm:$0xff]  }
 0x4ee   :  { %13653 = vmatpush1.bf16.msra.mxu0 %v20140_v44  ;;  %14893 = vmatprep.subr.bf16.mxu1 %v20152_v55  ;;  %v20225_v44 = vld [vmem:[#allocation5 + $0x27a0] ss:$16 sps:$4 sm:$0xff]   ;;  %v20236_v55 = vld [vmem:[#allocation5 + $0x23cc] ss:$16 sps:$4 sm:$0xff]  }
 0x4ef   :  { %13663 = vmatprep.subr.bf16.mxu0 %v20149_v41  ;;  %v20233_v41 = vld [vmem:[#allocation5 + $0x27c4] ss:$16 sps:$4 sm:$0xff]  }
 0x4f0   :  { %14885 = vmatmul.mubr.bf16.vlgmr.msra.gmra.mrb[4].mxu1 %v22094_v13  ;;  %v20170_v13 = vld [vmem:[#allocation5 + $0x226c] ss:$16 sps:$4 sm:$0xff]  }
 0x4f1   :  { %13655 = vmatmul.mubr.bf16.vlgmr.msra.gmra.mrb[0].mxu0 %v22122_v17  ;;  %14894 = vmatpush1.bf16.msra.mxu1 %v20150_v48  ;;  %v20231_v48 = vld [vmem:[#allocation5 + $0x27c0] ss:$16 sps:$4 sm:$0xff]  }
 0x4f2   :  { %13664 = vmatpush1.bf16.msra.mxu0 %v20147_v12  ;;  %14895 = vmatprep.subr.bf16.mxu1 %v20158_v21  ;;  %v22132_v12 = vld [vmem:[#allocation3 + $0x28] sm:$0xff]  ;;  %v20239_v21 = vld [vmem:[#allocation5 + $0x27e4] ss:$16 sps:$4 sm:$0xff]  }
 0x4f3   :  { %13665 = vmatprep.subr.bf16.mxu0 %v20155_v20  ;;  %13695 = vmatprep.mubr.bf16.mxu0 %v22126_v22  ;;  %v20234_v20 = vld [vmem:[#allocation5 + $0x23c8] ss:$16 sps:$4 sm:$0xff]  }
 0x4f4   :  { %14925 = vmatprep.mubr.bf16.mxu1 %v22098_v60  ;;  %v20174_v60 = vld [vmem:[#allocation5 + $0x2288] ss:$16 sps:$4 sm:$0xff]  }
 0x4f5   :  { %14896 = vmatpush1.bf16.msra.mxu1 %v20156_v54  ;;  %v22136_v54 = vrot.slane %v22132_v12, %v21865_v50 }
 0x4f6   :  { %13666 = vmatpush1.bf16.msra.mxu0 %v20153_v33  ;;  %14897 = vmatprep.subr.bf16.mxu1 %v20164_v31  ;;  %v20242_v33 = vld [vmem:[#allocation5 + $0x23ec] ss:$16 sps:$4 sm:$0xff]   ;;  %v20240_v31 = vld [vmem:[#allocation5 + $0x23e8] ss:$16 sps:$4 sm:$0xff]  }
 0x4f7   :  { %13667 = vmatprep.subr.bf16.mxu0 %v20161_v51  ;;  %v20237_v51 = vld [vmem:[#allocation5 + $0x27e0] ss:$16 sps:$4 sm:$0xff]  }
 0x4f9   :  { %14898 = vmatpush1.bf16.msra.mxu1 %v20162_v29  ;;  %v20248_v29 = vld [vmem:[#allocation5 + $0x240c] ss:$16 sps:$4 sm:$0xff]  }
 0x4fa   :  { %13668 = vmatpush1.bf16.msra.mxu0 %v20159_v27  ;;  %14899 = vmatprep.subr.bf16.mxu1 %v20170_v13  ;;  %v20245_v27 = vld [vmem:[#allocation5 + $0x2804] ss:$16 sps:$4 sm:$0xff]   ;;  %v22142_v13 = vcombine.high %v22122_v17, %v22122_v17 }
 0x4fb   :  { %13669 = vmatprep.subr.bf16.mxu0 %v20167_v30  ;;  %v2448_v30 = vcombine.high %v22136_v54, %v22136_v54 }
 0x4fd   :  { %14900 = vmatpush1.bf16.msra.mxu1 %v20168_v58  ;;  %v20246_v58 = vld [vmem:[#allocation5 + $0x2408] ss:$16 sps:$4 sm:$0xff]  }
 0x4fe   :  { %13670 = vmatpush1.bf16.msra.mxu0 %v20165_v11  ;;  %14901 = vmatprep.subr.bf16.mxu1 %v20176_v35  ;;  %v20243_v11 = vld [vmem:[#allocation5 + $0x2800] ss:$16 sps:$4 sm:$0xff]   ;;  %v20254_v35 = vld [vmem:[#allocation5 + $0x242c] ss:$16 sps:$4 sm:$0xff]  }
 0x4ff   :  { %13671 = vmatprep.subr.bf16.mxu0 %v20173_v34  ;;  %v20251_v34 = vld [vmem:[#allocation5 + $0x2824] ss:$16 sps:$4 sm:$0xff]  }
 0x501   :  { %14902 = vmatpush1.bf16.msra.mxu1 %v20174_v60  ;;  %v20249_v60 = vld [vmem:[#allocation5 + $0x2820] ss:$16 sps:$4 sm:$0xff]  }
 0x502   :  { %13672 = vmatpush1.bf16.msra.mxu0 %v20171_v8  ;;  %14903 = vmatprep.subr.bf16.mxu1 %v20182_v39  ;;  %v22145_v8 = vrot.slane %v2448_v30, %v21865_v50  ;;  %v20257_v39 = vld [vmem:[#allocation5 + $0x2844] ss:$16 sps:$4 sm:$0xff]   ;;  %v20324_v30 = vld [vmem:[#allocation5 + $0x25a8] ss:$16 sps:$4 sm:$0xff]  }
 0x503   :  { %13673 = vmatprep.subr.bf16.mxu0 %v20179_v32  ;;  %v20252_v32 = vld [vmem:[#allocation5 + $0x2428] ss:$16 sps:$4 sm:$0xff]  }
 0x505   :  { %14904 = vmatpush1.bf16.msra.mxu1 %v20180_v47  ;;  %v20255_v47 = vld [vmem:[#allocation5 + $0x2840] ss:$16 sps:$4 sm:$0xff]  }
 0x506   :  { %13674 = vmatpush1.bf16.msra.mxu0 %v20177_v40  ;;  %14905 = vmatprep.subr.bf16.mxu1 %v20188_v1  ;;  %v20260_v40 = vld [vmem:[#allocation5 + $0x244c] ss:$16 sps:$4 sm:$0xff]   ;;  %v20263_v1 = vld [vmem:[#allocation5 + $0x2864] ss:$16 sps:$4 sm:$0xff]  }
 0x507   :  { %13675 = vmatprep.subr.bf16.mxu0 %v20185_v7  ;;  %v20258_v7 = vld [vmem:[#allocation5 + $0x2448] ss:$16 sps:$4 sm:$0xff]  }
 0x509   :  { %14906 = vmatpush1.bf16.msra.mxu1 %v20186_v45  ;;  %v20264_v45 = vld [vmem:[#allocation5 + $0x2468] ss:$16 sps:$4 sm:$0xff]  }
 0x50a   :  { %13676 = vmatpush1.bf16.msra.mxu0 %v20183_v3  ;;  %14907 = vmatprep.subr.bf16.mxu1 %v20194_v23  ;;  %v20261_v3 = vld [vmem:[#allocation5 + $0x2860] ss:$16 sps:$4 sm:$0xff]   ;;  %v20272_v23 = vld [vmem:[#allocation5 + $0x248c] ss:$16 sps:$4 sm:$0xff]  }
 0x50b   :  { %13677 = vmatprep.subr.bf16.mxu0 %v20191_v46  ;;  %v20269_v46 = vld [vmem:[#allocation5 + $0x2884] ss:$16 sps:$4 sm:$0xff]  }
 0x50d   :  { %14908 = vmatpush1.bf16.msra.mxu1 %v20192_v49  ;;  %v20275_v49 = vld [vmem:[#allocation5 + $0x28a4] ss:$16 sps:$4 sm:$0xff]  }
 0x50e   :  { %13678 = vmatpush1.bf16.msra.mxu0 %v20189_v19  ;;  %14909 = vmatprep.subr.bf16.mxu1 %v20200_v53  ;;  %v20267_v19 = vld [vmem:[#allocation5 + $0x2880] ss:$16 sps:$4 sm:$0xff]  }
 0x50f   :  { %13679 = vmatprep.subr.bf16.mxu0 %v20197_v52  ;;  %v20278_v52 = vld [vmem:[#allocation5 + $0x24ac] ss:$16 sps:$4 sm:$0xff]   ;;  %v20273_v53 = vld [vmem:[#allocation5 + $0x28a0] ss:$16 sps:$4 sm:$0xff]  }
 0x511   :  { %14910 = vmatpush1.bf16.msra.mxu1 %v20198_v18  ;;  %v20281_v18 = vld [vmem:[#allocation5 + $0x28c4] ss:$16 sps:$4 sm:$0xff]  }
 0x512   :  { %13680 = vmatpush1.bf16.msra.mxu0 %v20195_v16  ;;  %14911 = vmatprep.subr.bf16.mxu1 %v20206_v28  ;;  %v20276_v16 = vld [vmem:[#allocation5 + $0x24a8] ss:$16 sps:$4 sm:$0xff]   ;;  %v20279_v28 = vld [vmem:[#allocation5 + $0x28c0] ss:$16 sps:$4 sm:$0xff]  }
 0x513   :  { %13681 = vmatprep.subr.bf16.mxu0 %v20203_v56  ;;  %v20284_v56 = vld [vmem:[#allocation5 + $0x24cc] ss:$16 sps:$4 sm:$0xff]  }
 0x515   :  { %14912 = vmatpush1.bf16.msra.mxu1 %v20204_v26  ;;  %v20287_v26 = vld [vmem:[#allocation5 + $0x28e4] ss:$16 sps:$4 sm:$0xff]  }
 0x516   :  { %13682 = vmatpush1.bf16.msra.mxu0 %v20201_v25  ;;  %14913 = vmatprep.subr.bf16.mxu1 %v20212_v24  ;;  %v20282_v25 = vld [vmem:[#allocation5 + $0x24c8] ss:$16 sps:$4 sm:$0xff]   ;;  %v20285_v24 = vld [vmem:[#allocation5 + $0x28e0] ss:$16 sps:$4 sm:$0xff]  }
 0x517   :  { %13683 = vmatprep.subr.bf16.mxu0 %v20209_v59  ;;  %v20290_v59 = vld [vmem:[#allocation5 + $0x24ec] ss:$16 sps:$4 sm:$0xff]  }
 0x519   :  { %14914 = vmatpush1.bf16.msra.mxu1 %v20210_v61  ;;  %v20293_v61 = vld [vmem:[#allocation5 + $0x2904] ss:$16 sps:$4 sm:$0xff]  }
 0x51a   :  { %13684 = vmatpush1.bf16.msra.mxu0 %v20207_v62  ;;  %14915 = vmatprep.subr.bf16.mxu1 %v20218_v63  ;;  %v20288_v62 = vld [vmem:[#allocation5 + $0x24e8] ss:$16 sps:$4 sm:$0xff]   ;;  %v20291_v63 = vld [vmem:[#allocation5 + $0x2900] ss:$16 sps:$4 sm:$0xff]  }
 0x51b   :  { %13685 = vmatprep.subr.bf16.mxu0 %v20215_v57  ;;  %v20296_v57 = vld [vmem:[#allocation5 + $0x250c] ss:$16 sps:$4 sm:$0xff]  }
 0x51d   :  { %14916 = vmatpush1.bf16.msra.mxu1 %v20216_v2  ;;  %v20299_v2 = vld [vmem:[#allocation5 + $0x2924] ss:$16 sps:$4 sm:$0xff]  }
 0x51e   :  { %13686 = vmatpush1.bf16.msra.mxu0 %v20213_v0  ;;  %14917 = vmatprep.subr.bf16.mxu1 %v20224_v36  ;;  %v20294_v0 = vld [vmem:[#allocation5 + $0x2508] ss:$16 sps:$4 sm:$0xff]   ;;  %v20297_v36 = vld [vmem:[#allocation5 + $0x2920] ss:$16 sps:$4 sm:$0xff]  }
 0x51f   :  { %13687 = vmatprep.subr.bf16.mxu0 %v20221_v37  ;;  %v20302_v37 = vld [vmem:[#allocation5 + $0x252c] ss:$16 sps:$4 sm:$0xff]  }
 0x521   :  { %14918 = vmatpush1.bf16.msra.mxu1 %v20222_v9  ;;  %v20305_v9 = vld [vmem:[#allocation5 + $0x2944] ss:$16 sps:$4 sm:$0xff]  }
 0x522   :  { %13688 = vmatpush1.bf16.msra.mxu0 %v20219_v38  ;;  %14919 = vmatprep.subr.bf16.mxu1 %v20230_v14  ;;  %v20300_v38 = vld [vmem:[#allocation5 + $0x2528] ss:$16 sps:$4 sm:$0xff]   ;;  %v20303_v14 = vld [vmem:[#allocation5 + $0x2940] ss:$16 sps:$4 sm:$0xff]  }
 0x523   :  { %13689 = vmatprep.subr.bf16.mxu0 %v20227_v10  ;;  %v20308_v10 = vld [vmem:[#allocation5 + $0x254c] ss:$16 sps:$4 sm:$0xff]  }
 0x525   :  { %14920 = vmatpush1.bf16.msra.mxu1 %v20228_v15  ;;  %v20311_v15 = vld [vmem:[#allocation5 + $0x2964] ss:$16 sps:$4 sm:$0xff]  }
 0x526   :  { %13690 = vmatpush1.bf16.msra.mxu0 %v20225_v44  ;;  %14921 = vmatprep.subr.bf16.mxu1 %v20236_v55  ;;  %v20306_v44 = vld [vmem:[#allocation5 + $0x2548] ss:$16 sps:$4 sm:$0xff]   ;;  %v20309_v55 = vld [vmem:[#allocation5 + $0x2960] ss:$16 sps:$4 sm:$0xff]  }
 0x527   :  { %13691 = vmatprep.subr.bf16.mxu0 %v20233_v41  ;;  %v20314_v41 = vld [vmem:[#allocation5 + $0x256c] ss:$16 sps:$4 sm:$0xff]  }
 0x529   :  { %14922 = vmatpush1.bf16.msra.mxu1 %v20234_v20  ;;  %v20317_v20 = vld [vmem:[#allocation5 + $0x2984] ss:$16 sps:$4 sm:$0xff]  }
 0x52a   :  { %13692 = vmatpush1.bf16.msra.mxu0 %v20231_v48  ;;  %14923 = vmatprep.subr.bf16.mxu1 %v20242_v33  ;;  %v20312_v48 = vld [vmem:[#allocation5 + $0x2568] ss:$16 sps:$4 sm:$0xff]   ;;  %v20315_v33 = vld [vmem:[#allocation5 + $0x2980] ss:$16 sps:$4 sm:$0xff]  }
 0x52b   :  { %13693 = vmatprep.subr.bf16.mxu0 %v20239_v21  ;;  %v20320_v21 = vld [vmem:[#allocation5 + $0x258c] ss:$16 sps:$4 sm:$0xff]  }
 0x52d   :  { %14924 = vmatpush1.bf16.msra.mxu1 %v20240_v31  ;;  %v20323_v31 = vld [vmem:[#allocation5 + $0x29a4] ss:$16 sps:$4 sm:$0xff]  }
 0x52e   :  { %13694 = vmatpush1.bf16.msra.mxu0 %v20237_v51  ;;  %14934 = vmatprep.subr.bf16.mxu1 %v20248_v29  ;;  %v20318_v51 = vld [vmem:[#allocation5 + $0x2588] ss:$16 sps:$4 sm:$0xff]   ;;  %v20321_v29 = vld [vmem:[#allocation5 + $0x29a0] ss:$16 sps:$4 sm:$0xff]  }
 0x52f   :  { %13704 = vmatprep.subr.bf16.mxu0 %v20245_v27  ;;  %v20326_v27 = vld [vmem:[#allocation5 + $0x25ac] ss:$16 sps:$4 sm:$0xff]  }
 0x530   :  { %14926 = vmatmul.mubr.bf16.vlgmr.msra.gmra.mrb[4].mxu1 %v22111_v4  ;;  %v20266_v4 = vld [vmem:[#allocation5 + $0x246c] ss:$16 sps:$4 sm:$0xff]  }
 0x531   :  { %13696 = vmatmul.mubr.bf16.vlgmr.msra.gmra.mrb[0].mxu0 %v22142_v13  ;;  %14935 = vmatpush1.bf16.msra.mxu1 %v20246_v58  ;;  %v20332_v58 = vld [vmem:[#allocation5 + $0x25cc] ss:$16 sps:$4 sm:$0xff]  }
 0x532   :  { %13705 = vmatpush1.bf16.msra.mxu0 %v20243_v11  ;;  %14936 = vmatprep.subr.bf16.mxu1 %v20254_v35  ;;  %v20329_v11 = vld [vmem:[#allocation5 + $0x29c4] ss:$16 sps:$4 sm:$0xff]   ;;  %v20330_v35 = vld [vmem:[#allocation5 + $0x25c8] ss:$16 sps:$4 sm:$0xff]  }
 0x533   :  { %13706 = vmatprep.subr.bf16.mxu0 %v20251_v34  ;;  %13736 = vmatprep.mubr.bf16.mxu0 %v22145_v8  ;;  %v20327_v34 = vld [vmem:[#allocation5 + $0x29c0] ss:$16 sps:$4 sm:$0xff]  }
 0x534   :  { %14966 = vmatprep.mubr.bf16.mxu1 %v22114_v42  ;;  %v20270_v42 = vld [vmem:[#allocation5 + $0x2488] ss:$16 sps:$4 sm:$0xff]  }
 0x535   :  { %14937 = vmatpush1.bf16.msra.mxu1 %v20252_v32  ;;  %v20338_v32 = vld [vmem:[#allocation5 + $0x25ec] ss:$16 sps:$4 sm:$0xff]  }
 0x536   :  { %13707 = vmatpush1.bf16.msra.mxu0 %v20249_v60  ;;  %14938 = vmatprep.subr.bf16.mxu1 %v20260_v40  ;;  %v20335_v60 = vld [vmem:[#allocation5 + $0x29e4] ss:$16 sps:$4 sm:$0xff]   ;;  %v20336_v40 = vld [vmem:[#allocation5 + $0x25e8] ss:$16 sps:$4 sm:$0xff]  }
 0x537   :  { %13708 = vmatprep.subr.bf16.mxu0 %v20257_v39  ;;  %v20333_v39 = vld [vmem:[#allocation5 + $0x29e0] ss:$16 sps:$4 sm:$0xff]  }
 0x539   :  { %14939 = vmatpush1.bf16.msra.mxu1 %v20258_v7  ;;  %v20344_v7 = vld [vmem:[#allocation5 + $0x260c] ss:$16 sps:$4 sm:$0xff]  }
 0x53a   :  { %13709 = vmatpush1.bf16.msra.mxu0 %v20255_v47  ;;  %14940 = vmatprep.subr.bf16.mxu1 %v20266_v4  ;;  %v20341_v47 = vld [vmem:[#allocation5 + $0x2a04] ss:$16 sps:$4 sm:$0xff]   ;;  %v20339_v4 = vld [vmem:[#allocation5 + $0x2a00] ss:$16 sps:$4 sm:$0xff]  }
 0x53b   :  { %13710 = vmatprep.subr.bf16.mxu0 %v20263_v1  ;;  %v22153_v1 = vrot.slane %v22136_v54, %v21865_v50  ;;  %v20345_v54 = vld [vmem:[#allocation5 + $0x2a20] ss:$16 sps:$4 sm:$0xff]  }
 0x53d   :  { %14941 = vmatpush1.bf16.msra.mxu1 %v20264_v45  ;;  %v20347_v45 = vld [vmem:[#allocation5 + $0x2a24] ss:$16 sps:$4 sm:$0xff]  }
 0x53e   :  { %13711 = vmatpush1.bf16.msra.mxu0 %v20261_v3  ;;  %14942 = vmatprep.subr.bf16.mxu1 %v20272_v23  ;;  %v20342_v3 = vld [vmem:[#allocation5 + $0x2608] ss:$16 sps:$4 sm:$0xff]   ;;  %v22157_v23 = vcombine.high %v22145_v8, %v22145_v8 }
 0x53f   :  { %13712 = vmatprep.subr.bf16.mxu0 %v20269_v46  ;;  %v20350_v46 = vld [vmem:[#allocation5 + $0x262c] ss:$16 sps:$4 sm:$0xff]  }
 0x541   :  { %14943 = vmatpush1.bf16.msra.mxu1 %v20270_v42  ;;  %v20353_v42 = vld [vmem:[#allocation5 + $0x2a44] ss:$16 sps:$4 sm:$0xff]  }
 0x542   :  { %13713 = vmatpush1.bf16.msra.mxu0 %v20267_v19  ;;  %14944 = vmatprep.subr.bf16.mxu1 %v20278_v52  ;;  %v20348_v19 = vld [vmem:[#allocation5 + $0x2628] ss:$16 sps:$4 sm:$0xff]   ;;  %v20351_v52 = vld [vmem:[#allocation5 + $0x2a40] ss:$16 sps:$4 sm:$0xff]  }
 0x543   :  { %13714 = vmatprep.subr.bf16.mxu0 %v20275_v49  ;;  %v20356_v49 = vld [vmem:[#allocation5 + $0x264c] ss:$16 sps:$4 sm:$0xff]  }
 0x545   :  { %14945 = vmatpush1.bf16.msra.mxu1 %v20276_v16  ;;  %v20359_v16 = vld [vmem:[#allocation5 + $0x2a64] ss:$16 sps:$4 sm:$0xff]  }
 0x546   :  { %13715 = vmatpush1.bf16.msra.mxu0 %v20273_v53  ;;  %14946 = vmatprep.subr.bf16.mxu1 %v20284_v56  ;;  %v20354_v53 = vld [vmem:[#allocation5 + $0x2648] ss:$16 sps:$4 sm:$0xff]  }
 0x547   :  { %13716 = vmatprep.subr.bf16.mxu0 %v20281_v18  ;;  %v20357_v18 = vld [vmem:[#allocation5 + $0x2a60] ss:$16 sps:$4 sm:$0xff]   ;;  %v20360_v56 = vld [vmem:[#allocation5 + $0x2668] ss:$16 sps:$4 sm:$0xff]  }
 0x549   :  { %14947 = vmatpush1.bf16.msra.mxu1 %v20282_v25  ;;  %v20368_v25 = vld [vmem:[#allocation5 + $0x268c] ss:$16 sps:$4 sm:$0xff]  }
 0x54a   :  { %13717 = vmatpush1.bf16.msra.mxu0 %v20279_v28  ;;  %14948 = vmatprep.subr.bf16.mxu1 %v20290_v59  ;;  %v20365_v28 = vld [vmem:[#allocation5 + $0x2a84] ss:$16 sps:$4 sm:$0xff]  }
 0x54b   :  { %13718 = vmatprep.subr.bf16.mxu0 %v20287_v26  ;;  %v20363_v26 = vld [vmem:[#allocation5 + $0x2a80] ss:$16 sps:$4 sm:$0xff]   ;;  %v20371_v59 = vld [vmem:[#allocation5 + $0x2aa4] ss:$16 sps:$4 sm:$0xff]  }
 0x54d   :  { %14949 = vmatpush1.bf16.msra.mxu1 %v20288_v62  ;;  %v20369_v62 = vld [vmem:[#allocation5 + $0x2aa0] ss:$16 sps:$4 sm:$0xff]  }
 0x54e   :  { %13719 = vmatpush1.bf16.msra.mxu0 %v20285_v24  ;;  %14950 = vmatprep.subr.bf16.mxu1 %v20296_v57  ;;  %v20374_v24 = vld [vmem:[#allocation5 + $0x26ac] ss:$16 sps:$4 sm:$0xff]   ;;  %v20377_v57 = vld [vmem:[#allocation5 + $0x2ac4] ss:$16 sps:$4 sm:$0xff]  }
 0x54f   :  { %13720 = vmatprep.subr.bf16.mxu0 %v20293_v61  ;;  %v20372_v61 = vld [vmem:[#allocation5 + $0x26a8] ss:$16 sps:$4 sm:$0xff]  }
 0x551   :  { %14951 = vmatpush1.bf16.msra.mxu1 %v20294_v0  ;;  %v20375_v0 = vld [vmem:[#allocation5 + $0x2ac0] ss:$16 sps:$4 sm:$0xff]  }
 0x552   :  { %13721 = vmatpush1.bf16.msra.mxu0 %v20291_v63  ;;  %14952 = vmatprep.subr.bf16.mxu1 %v20302_v37  ;;  %v20380_v63 = vld [vmem:[#allocation5 + $0x26cc] ss:$16 sps:$4 sm:$0xff]   ;;  %v20383_v37 = vld [vmem:[#allocation5 + $0x2ae4] ss:$16 sps:$4 sm:$0xff]  }
 0x553   :  { %13722 = vmatprep.subr.bf16.mxu0 %v20299_v2  ;;  %v20378_v2 = vld [vmem:[#allocation5 + $0x26c8] ss:$16 sps:$4 sm:$0xff]  }
 0x555   :  { %14953 = vmatpush1.bf16.msra.mxu1 %v20300_v38  ;;  %v20381_v38 = vld [vmem:[#allocation5 + $0x2ae0] ss:$16 sps:$4 sm:$0xff]  }
 0x556   :  { %13723 = vmatpush1.bf16.msra.mxu0 %v20297_v36  ;;  %14954 = vmatprep.subr.bf16.mxu1 %v20308_v10  ;;  %v20386_v36 = vld [vmem:[#allocation5 + $0x26ec] ss:$16 sps:$4 sm:$0xff]   ;;  %v20389_v10 = vld [vmem:[#allocation5 + $0x2b04] ss:$16 sps:$4 sm:$0xff]  }
 0x557   :  { %13724 = vmatprep.subr.bf16.mxu0 %v20305_v9  ;;  %v20384_v9 = vld [vmem:[#allocation5 + $0x26e8] ss:$16 sps:$4 sm:$0xff]  }
 0x559   :  { %14955 = vmatpush1.bf16.msra.mxu1 %v20306_v44  ;;  %v20387_v44 = vld [vmem:[#allocation5 + $0x2b00] ss:$16 sps:$4 sm:$0xff]  }
 0x55a   :  { %13725 = vmatpush1.bf16.msra.mxu0 %v20303_v14  ;;  %14956 = vmatprep.subr.bf16.mxu1 %v20314_v41  ;;  %v20392_v14 = vld [vmem:[#allocation5 + $0x270c] ss:$16 sps:$4 sm:$0xff]   ;;  %v20395_v41 = vld [vmem:[#allocation5 + $0x2b24] ss:$16 sps:$4 sm:$0xff]  }
 0x55b   :  { %13726 = vmatprep.subr.bf16.mxu0 %v20311_v15  ;;  %v20390_v15 = vld [vmem:[#allocation5 + $0x2708] ss:$16 sps:$4 sm:$0xff]  }
 0x55d   :  { %14957 = vmatpush1.bf16.msra.mxu1 %v20312_v48  ;;  %v20393_v48 = vld [vmem:[#allocation5 + $0x2b20] ss:$16 sps:$4 sm:$0xff]  }
 0x55e   :  { %13727 = vmatpush1.bf16.msra.mxu0 %v20309_v55  ;;  %14958 = vmatprep.subr.bf16.mxu1 %v20320_v21  ;;  %v20398_v55 = vld [vmem:[#allocation5 + $0x272c] ss:$16 sps:$4 sm:$0xff]   ;;  %v20401_v21 = vld [vmem:[#allocation5 + $0x2b44] ss:$16 sps:$4 sm:$0xff]  }
 0x55f   :  { %13728 = vmatprep.subr.bf16.mxu0 %v20317_v20  ;;  %v20396_v20 = vld [vmem:[#allocation5 + $0x2728] ss:$16 sps:$4 sm:$0xff]  }
 0x561   :  { %14959 = vmatpush1.bf16.msra.mxu1 %v20318_v51  ;;  %v20399_v51 = vld [vmem:[#allocation5 + $0x2b40] ss:$16 sps:$4 sm:$0xff]  }
 0x562   :  { %13729 = vmatpush1.bf16.msra.mxu0 %v20315_v33  ;;  %14960 = vmatprep.subr.bf16.mxu1 %v20326_v27  ;;  %v20404_v33 = vld [vmem:[#allocation5 + $0x274c] ss:$16 sps:$4 sm:$0xff]   ;;  %v20407_v27 = vld [vmem:[#allocation5 + $0x2b64] ss:$16 sps:$4 sm:$0xff]  }
 0x563   :  { %13730 = vmatprep.subr.bf16.mxu0 %v20323_v31  ;;  %v20402_v31 = vld [vmem:[#allocation5 + $0x2748] ss:$16 sps:$4 sm:$0xff]  }
 0x565   :  { %14961 = vmatpush1.bf16.msra.mxu1 %v20324_v30  ;;  %v20405_v30 = vld [vmem:[#allocation5 + $0x2b60] ss:$16 sps:$4 sm:$0xff]  }
 0x566   :  { %13731 = vmatpush1.bf16.msra.mxu0 %v20321_v29  ;;  %14962 = vmatprep.subr.bf16.mxu1 %v20332_v58  ;;  %v20410_v29 = vld [vmem:[#allocation5 + $0x276c] ss:$16 sps:$4 sm:$0xff]   ;;  %v20413_v58 = vld [vmem:[#allocation5 + $0x2b84] ss:$16 sps:$4 sm:$0xff]  }
 0x567   :  { %13732 = vmatprep.subr.bf16.mxu0 %v20329_v11  ;;  %v20408_v11 = vld [vmem:[#allocation5 + $0x2768] ss:$16 sps:$4 sm:$0xff]  }
 0x569   :  { %14963 = vmatpush1.bf16.msra.mxu1 %v20330_v35  ;;  %v20411_v35 = vld [vmem:[#allocation5 + $0x2b80] ss:$16 sps:$4 sm:$0xff]  }
 0x56a   :  { %13733 = vmatpush1.bf16.msra.mxu0 %v20327_v34  ;;  %14964 = vmatprep.subr.bf16.mxu1 %v20338_v32  ;;  %v20416_v34 = vld [vmem:[#allocation5 + $0x278c] ss:$16 sps:$4 sm:$0xff]   ;;  %v20419_v32 = vld [vmem:[#allocation5 + $0x2ba4] ss:$16 sps:$4 sm:$0xff]  }
 0x56b   :  { %13734 = vmatprep.subr.bf16.mxu0 %v20335_v60  ;;  %v20414_v60 = vld [vmem:[#allocation5 + $0x2788] ss:$16 sps:$4 sm:$0xff]  }
 0x56d   :  { %14965 = vmatpush1.bf16.msra.mxu1 %v20336_v40  ;;  %v20417_v40 = vld [vmem:[#allocation5 + $0x2ba0] ss:$16 sps:$4 sm:$0xff]  }
 0x56e   :  { %13735 = vmatpush1.bf16.msra.mxu0 %v20333_v39  ;;  %14975 = vmatprep.subr.bf16.mxu1 %v20344_v7  ;;  %v20422_v39 = vld [vmem:[#allocation5 + $0x27ac] ss:$16 sps:$4 sm:$0xff]   ;;  %v20425_v7 = vld [vmem:[#allocation5 + $0x2bc4] ss:$16 sps:$4 sm:$0xff]  }
 0x56f   :  { %13745 = vmatprep.subr.bf16.mxu0 %v20341_v47  ;;  %v20420_v47 = vld [vmem:[#allocation5 + $0x27a8] ss:$16 sps:$4 sm:$0xff]  }
 0x570   :  { %14967 = vmatmul.mubr.bf16.vlgmr.msra.gmra.mrb[4].mxu1 %v22122_v17  ;;  %v20362_v17 = vld [vmem:[#allocation5 + $0x266c] ss:$16 sps:$4 sm:$0xff]  }
 0x571   :  { %13737 = vmatmul.mubr.bf16.vlgmr.msra.gmra.mrb[0].mxu0 %v22153_v1  ;;  %14976 = vmatpush1.bf16.msra.mxu1 %v20342_v3  ;;  %v2433_v3 = vcombine.high %v22132_v12, %v22132_v12 }
 0x572   :  { %13746 = vmatpush1.bf16.msra.mxu0 %v20339_v4  ;;  %14977 = vmatprep.subr.bf16.mxu1 %v20350_v46  ;;  %v20428_v4 = vld [vmem:[#allocation5 + $0x27cc] ss:$16 sps:$4 sm:$0xff]   ;;  %v20426_v46 = vld [vmem:[#allocation5 + $0x27c8] ss:$16 sps:$4 sm:$0xff]  }
 0x573   :  { %13747 = vmatprep.subr.bf16.mxu0 %v20347_v45  ;;  %13777 = vmatprep.mubr.bf16.mxu0 %v22157_v23  ;;  %v20423_v45 = vld [vmem:[#allocation5 + $0x2bc0] ss:$16 sps:$4 sm:$0xff]  }
 0x574   :  { %15007 = vmatprep.mubr.bf16.mxu1 %v22126_v22  ;;  %v20366_v22 = vld [vmem:[#allocation5 + $0x2688] ss:$16 sps:$4 sm:$0xff]  }
 0x575   :  { %14978 = vmatpush1.bf16.msra.mxu1 %v20348_v19  ;;  %v20434_v19 = vld [vmem:[#allocation5 + $0x27ec] ss:$16 sps:$4 sm:$0xff]  }
 0x576   :  { %13748 = vmatpush1.bf16.msra.mxu0 %v20345_v54  ;;  %14979 = vmatprep.subr.bf16.mxu1 %v20356_v49  ;;  %v20431_v54 = vld [vmem:[#allocation5 + $0x2be4] ss:$16 sps:$4 sm:$0xff]   ;;  %v20429_v49 = vld [vmem:[#allocation5 + $0x2be0] ss:$16 sps:$4 sm:$0xff]  }
 0x577   :  { %13749 = vmatprep.subr.bf16.mxu0 %v20353_v42  ;;  %v22166_v42 = vrot.slane %v2433_v3, %v21865_v50  ;;  %v20504_v3 = vld [vmem:[#allocation5 + $0x2968] ss:$16 sps:$4 sm:$0xff]  }
 0x579   :  { %14980 = vmatpush1.bf16.msra.mxu1 %v20354_v53  ;;  %v20437_v53 = vld [vmem:[#allocation5 + $0x2c04] ss:$16 sps:$4 sm:$0xff]   ;;  %v2449_v12 = vcombine.high %v22166_v42, %v22166_v42 }
 0x57a   :  { %13750 = vmatpush1.bf16.msra.mxu0 %v20351_v52  ;;  %14981 = vmatprep.subr.bf16.mxu1 %v20362_v17  ;;  %v20432_v52 = vld [vmem:[#allocation5 + $0x27e8] ss:$16 sps:$4 sm:$0xff]   ;;  %v22172_v17 = vcombine.high %v22153_v1, %v22153_v1 }
 0x57b   :  { %13751 = vmatprep.subr.bf16.mxu0 %v20359_v16  ;;  %v20440_v16 = vld [vmem:[#allocation5 + $0x280c] ss:$16 sps:$4 sm:$0xff]  }
 0x57d   :  { %14982 = vmatpush1.bf16.msra.mxu1 %v20360_v56  ;;  %v20438_v56 = vld [vmem:[#allocation5 + $0x2808] ss:$16 sps:$4 sm:$0xff]  }
 0x57e   :  { %13752 = vmatpush1.bf16.msra.mxu0 %v20357_v18  ;;  %14983 = vmatprep.subr.bf16.mxu1 %v20368_v25  ;;  %v20435_v18 = vld [vmem:[#allocation5 + $0x2c00] ss:$16 sps:$4 sm:$0xff]   ;;  %v20446_v25 = vld [vmem:[#allocation5 + $0x282c] ss:$16 sps:$4 sm:$0xff]  }
 0x57f   :  { %13753 = vmatprep.subr.bf16.mxu0 %v20365_v28  ;;  %v20443_v28 = vld [vmem:[#allocation5 + $0x2c24] ss:$16 sps:$4 sm:$0xff]  }
 0x581   :  { %14984 = vmatpush1.bf16.msra.mxu1 %v20366_v22  ;;  %v20441_v22 = vld [vmem:[#allocation5 + $0x2c20] ss:$16 sps:$4 sm:$0xff]  }
 0x582   :  { %13754 = vmatpush1.bf16.msra.mxu0 %v20363_v26  ;;  %14985 = vmatprep.subr.bf16.mxu1 %v20374_v24  ;;  %v22175_v26 = vrot.slane %v2449_v12, %v21865_v50  ;;  %v20449_v24 = vld [vmem:[#allocation5 + $0x2c44] ss:$16 sps:$4 sm:$0xff]  }
 0x583   :  { %13755 = vmatprep.subr.bf16.mxu0 %v20371_v59  ;;  %v20444_v59 = vld [vmem:[#allocation5 + $0x2828] ss:$16 sps:$4 sm:$0xff]   ;;  %v20521_v12 = vld [vmem:[#allocation5 + $0x2dc4] ss:$16 sps:$4 sm:$0xff]  }
 0x585   :  { %14986 = vmatpush1.bf16.msra.mxu1 %v20372_v61  ;;  %v20447_v61 = vld [vmem:[#allocation5 + $0x2c40] ss:$16 sps:$4 sm:$0xff]  }
 0x586   :  { %13756 = vmatpush1.bf16.msra.mxu0 %v20369_v62  ;;  %14987 = vmatprep.subr.bf16.mxu1 %v20380_v63  ;;  %v20452_v62 = vld [vmem:[#allocation5 + $0x284c] ss:$16 sps:$4 sm:$0xff]   ;;  %v20455_v63 = vld [vmem:[#allocation5 + $0x2c64] ss:$16 sps:$4 sm:$0xff]  }
 0x587   :  { %13757 = vmatprep.subr.bf16.mxu0 %v20377_v57  ;;  %v20450_v57 = vld [vmem:[#allocation5 + $0x2848] ss:$16 sps:$4 sm:$0xff]  }
 0x589   :  { %14988 = vmatpush1.bf16.msra.mxu1 %v20378_v2  ;;  %v20456_v2 = vld [vmem:[#allocation5 + $0x2868] ss:$16 sps:$4 sm:$0xff]  }
 0x58a   :  { %13758 = vmatpush1.bf16.msra.mxu0 %v20375_v0  ;;  %14989 = vmatprep.subr.bf16.mxu1 %v20386_v36  ;;  %v20453_v0 = vld [vmem:[#allocation5 + $0x2c60] ss:$16 sps:$4 sm:$0xff]   ;;  %v20464_v36 = vld [vmem:[#allocation5 + $0x288c] ss:$16 sps:$4 sm:$0xff]  }
 0x58b   :  { %13759 = vmatprep.subr.bf16.mxu0 %v20383_v37  ;;  %v20461_v37 = vld [vmem:[#allocation5 + $0x2c84] ss:$16 sps:$4 sm:$0xff]  }
 0x58d   :  { %14990 = vmatpush1.bf16.msra.mxu1 %v20384_v9  ;;  %v20467_v9 = vld [vmem:[#allocation5 + $0x2ca4] ss:$16 sps:$4 sm:$0xff]  }
 0x58e   :  { %13760 = vmatpush1.bf16.msra.mxu0 %v20381_v38  ;;  %14991 = vmatprep.subr.bf16.mxu1 %v20392_v14  ;;  %v20459_v38 = vld [vmem:[#allocation5 + $0x2c80] ss:$16 sps:$4 sm:$0xff]  }
 0x58f   :  { %13761 = vmatprep.subr.bf16.mxu0 %v20389_v10  ;;  %v20470_v10 = vld [vmem:[#allocation5 + $0x28ac] ss:$16 sps:$4 sm:$0xff]   ;;  %v20465_v14 = vld [vmem:[#allocation5 + $0x2ca0] ss:$16 sps:$4 sm:$0xff]  }
 0x591   :  { %14992 = vmatpush1.bf16.msra.mxu1 %v20390_v15  ;;  %v20473_v15 = vld [vmem:[#allocation5 + $0x2cc4] ss:$16 sps:$4 sm:$0xff]  }
 0x592   :  { %13762 = vmatpush1.bf16.msra.mxu0 %v20387_v44  ;;  %14993 = vmatprep.subr.bf16.mxu1 %v20398_v55  ;;  %v20468_v44 = vld [vmem:[#allocation5 + $0x28a8] ss:$16 sps:$4 sm:$0xff]   ;;  %v20471_v55 = vld [vmem:[#allocation5 + $0x2cc0] ss:$16 sps:$4 sm:$0xff]  }
 0x593   :  { %13763 = vmatprep.subr.bf16.mxu0 %v20395_v41  ;;  %v20476_v41 = vld [vmem:[#allocation5 + $0x28cc] ss:$16 sps:$4 sm:$0xff]  }
 0x595   :  { %14994 = vmatpush1.bf16.msra.mxu1 %v20396_v20  ;;  %v20479_v20 = vld [vmem:[#allocation5 + $0x2ce4] ss:$16 sps:$4 sm:$0xff]  }
 0x596   :  { %13764 = vmatpush1.bf16.msra.mxu0 %v20393_v48  ;;  %14995 = vmatprep.subr.bf16.mxu1 %v20404_v33  ;;  %v20474_v48 = vld [vmem:[#allocation5 + $0x28c8] ss:$16 sps:$4 sm:$0xff]   ;;  %v20477_v33 = vld [vmem:[#allocation5 + $0x2ce0] ss:$16 sps:$4 sm:$0xff]  }
 0x597   :  { %13765 = vmatprep.subr.bf16.mxu0 %v20401_v21  ;;  %v20482_v21 = vld [vmem:[#allocation5 + $0x28ec] ss:$16 sps:$4 sm:$0xff]  }
 0x599   :  { %14996 = vmatpush1.bf16.msra.mxu1 %v20402_v31  ;;  %v20485_v31 = vld [vmem:[#allocation5 + $0x2d04] ss:$16 sps:$4 sm:$0xff]  }
 0x59a   :  { %13766 = vmatpush1.bf16.msra.mxu0 %v20399_v51  ;;  %14997 = vmatprep.subr.bf16.mxu1 %v20410_v29  ;;  %v20480_v51 = vld [vmem:[#allocation5 + $0x28e8] ss:$16 sps:$4 sm:$0xff]   ;;  %v20483_v29 = vld [vmem:[#allocation5 + $0x2d00] ss:$16 sps:$4 sm:$0xff]  }
 0x59b   :  { %13767 = vmatprep.subr.bf16.mxu0 %v20407_v27  ;;  %v20488_v27 = vld [vmem:[#allocation5 + $0x290c] ss:$16 sps:$4 sm:$0xff]  }
 0x59d   :  { %14998 = vmatpush1.bf16.msra.mxu1 %v20408_v11  ;;  %v20491_v11 = vld [vmem:[#allocation5 + $0x2d24] ss:$16 sps:$4 sm:$0xff]  }
 0x59e   :  { %13768 = vmatpush1.bf16.msra.mxu0 %v20405_v30  ;;  %14999 = vmatprep.subr.bf16.mxu1 %v20416_v34  ;;  %v20486_v30 = vld [vmem:[#allocation5 + $0x2908] ss:$16 sps:$4 sm:$0xff]   ;;  %v20489_v34 = vld [vmem:[#allocation5 + $0x2d20] ss:$16 sps:$4 sm:$0xff]  }
 0x59f   :  { %13769 = vmatprep.subr.bf16.mxu0 %v20413_v58  ;;  %v20494_v58 = vld [vmem:[#allocation5 + $0x292c] ss:$16 sps:$4 sm:$0xff]  }
 0x5a1   :  { %15000 = vmatpush1.bf16.msra.mxu1 %v20414_v60  ;;  %v20497_v60 = vld [vmem:[#allocation5 + $0x2d44] ss:$16 sps:$4 sm:$0xff]  }
 0x5a2   :  { %13770 = vmatpush1.bf16.msra.mxu0 %v20411_v35  ;;  %15001 = vmatprep.subr.bf16.mxu1 %v20422_v39  ;;  %v20492_v35 = vld [vmem:[#allocation5 + $0x2928] ss:$16 sps:$4 sm:$0xff]   ;;  %v20495_v39 = vld [vmem:[#allocation5 + $0x2d40] ss:$16 sps:$4 sm:$0xff]  }
 0x5a3   :  { %13771 = vmatprep.subr.bf16.mxu0 %v20419_v32  ;;  %v20500_v32 = vld [vmem:[#allocation5 + $0x294c] ss:$16 sps:$4 sm:$0xff]  }
 0x5a5   :  { %15002 = vmatpush1.bf16.msra.mxu1 %v20420_v47  ;;  %v20503_v47 = vld [vmem:[#allocation5 + $0x2d64] ss:$16 sps:$4 sm:$0xff]  }
 0x5a6   :  { %13772 = vmatpush1.bf16.msra.mxu0 %v20417_v40  ;;  %15003 = vmatprep.subr.bf16.mxu1 %v20428_v4  ;;  %v20498_v40 = vld [vmem:[#allocation5 + $0x2948] ss:$16 sps:$4 sm:$0xff]   ;;  %v20501_v4 = vld [vmem:[#allocation5 + $0x2d60] ss:$16 sps:$4 sm:$0xff]  }
 0x5a7   :  { %13773 = vmatprep.subr.bf16.mxu0 %v20425_v7  ;;  %v20506_v7 = vld [vmem:[#allocation5 + $0x296c] ss:$16 sps:$4 sm:$0xff]  }
 0x5a9   :  { %15004 = vmatpush1.bf16.msra.mxu1 %v20426_v46  ;;  %v20512_v46 = vld [vmem:[#allocation5 + $0x298c] ss:$16 sps:$4 sm:$0xff]  }
 0x5aa   :  { %13774 = vmatpush1.bf16.msra.mxu0 %v20423_v45  ;;  %15005 = vmatprep.subr.bf16.mxu1 %v20434_v19  ;;  %v20509_v45 = vld [vmem:[#allocation5 + $0x2d84] ss:$16 sps:$4 sm:$0xff]   ;;  %v20510_v19 = vld [vmem:[#allocation5 + $0x2988] ss:$16 sps:$4 sm:$0xff]  }
 0x5ab   :  { %13775 = vmatprep.subr.bf16.mxu0 %v20431_v54  ;;  %v20507_v54 = vld [vmem:[#allocation5 + $0x2d80] ss:$16 sps:$4 sm:$0xff]  }
 0x5ad   :  { %15006 = vmatpush1.bf16.msra.mxu1 %v20432_v52  ;;  %v20518_v52 = vld [vmem:[#allocation5 + $0x29ac] ss:$16 sps:$4 sm:$0xff]  }
 0x5ae   :  { %13776 = vmatpush1.bf16.msra.mxu0 %v20429_v49  ;;  %15016 = vmatprep.subr.bf16.mxu1 %v20440_v16  ;;  %v20515_v49 = vld [vmem:[#allocation5 + $0x2da4] ss:$16 sps:$4 sm:$0xff]   ;;  %v20516_v16 = vld [vmem:[#allocation5 + $0x29a8] ss:$16 sps:$4 sm:$0xff]  }
 0x5af   :  { %13786 = vmatprep.subr.bf16.mxu0 %v20437_v53  ;;  %v20513_v53 = vld [vmem:[#allocation5 + $0x2da0] ss:$16 sps:$4 sm:$0xff]  }
 0x5b0   :  { %15008 = vmatmul.mubr.bf16.vlgmr.msra.gmra.mrb[4].mxu1 %v22142_v13  ;;  %v20458_v13 = vld [vmem:[#allocation5 + $0x286c] ss:$16 sps:$4 sm:$0xff]  }
 0x5b1   :  { %13778 = vmatmul.mubr.bf16.vlgmr.msra.gmra.mrb[0].mxu0 %v22172_v17  ;;  %15017 = vmatpush1.bf16.msra.mxu1 %v20438_v56  ;;  %v20519_v56 = vld [vmem:[#allocation5 + $0x2dc0] ss:$16 sps:$4 sm:$0xff]  }
 0x5b2   :  { %13787 = vmatpush1.bf16.msra.mxu0 %v20435_v18  ;;  %15018 = vmatprep.subr.bf16.mxu1 %v20446_v25  ;;  %v20524_v18 = vld [vmem:[#allocation5 + $0x29cc] ss:$16 sps:$4 sm:$0xff]   ;;  %v20527_v25 = vld [vmem:[#allocation5 + $0x2de4] ss:$16 sps:$4 sm:$0xff]  }
 0x5b3   :  { %13788 = vmatprep.subr.bf16.mxu0 %v20443_v28  ;;  %13818 = vmatprep.mubr.bf16.mxu0 %v22175_v26  ;;  %v20522_v28 = vld [vmem:[#allocation5 + $0x29c8] ss:$16 sps:$4 sm:$0xff]  }
 0x5b4   :  { %15048 = vmatprep.mubr.bf16.mxu1 %v22145_v8  ;;  %v20462_v8 = vld [vmem:[#allocation5 + $0x2888] ss:$16 sps:$4 sm:$0xff]  }
 0x5b5   :  { %15019 = vmatpush1.bf16.msra.mxu1 %v20444_v59  ;;  %v20525_v59 = vld [vmem:[#allocation5 + $0x2de0] ss:$16 sps:$4 sm:$0xff]  }
 0x5b6   :  { %13789 = vmatpush1.bf16.msra.mxu0 %v20441_v22  ;;  %15020 = vmatprep.subr.bf16.mxu1 %v20452_v62  ;;  %v20530_v22 = vld [vmem:[#allocation5 + $0x29ec] ss:$16 sps:$4 sm:$0xff]   ;;  %v20534_v62 = vld [vmem:[#allocation5 + $0x2e04] ss:$16 sps:$4 sm:$0xff]  }
 0x5b7   :  { %13790 = vmatprep.subr.bf16.mxu0 %v20449_v24  ;;  %v20528_v24 = vld [vmem:[#allocation5 + $0x29e8] ss:$16 sps:$4 sm:$0xff]  }
 0x5b9   :  { %15021 = vmatpush1.bf16.msra.mxu1 %v20450_v57  ;;  %v22183_v57 = vrot.slane %v22166_v42, %v21865_v50  ;;  %v20538_v42 = vld [vmem:[#allocation5 + $0x2e20] ss:$16 sps:$4 sm:$0xff]  }
 0x5ba   :  { %13791 = vmatpush1.bf16.msra.mxu0 %v20447_v61  ;;  %15022 = vmatprep.subr.bf16.mxu1 %v20458_v13  ;;  %v20537_v61 = vld [vmem:[#allocation5 + $0x2a0c] ss:$16 sps:$4 sm:$0xff]   ;;  %v20535_v13 = vld [vmem:[#allocation5 + $0x2a08] ss:$16 sps:$4 sm:$0xff]  }
 0x5bb   :  { %13792 = vmatprep.subr.bf16.mxu0 %v20455_v63  ;;  %v20532_v63 = vld [vmem:[#allocation5 + $0x2e00] ss:$16 sps:$4 sm:$0xff]  }
 0x5bd   :  { %15023 = vmatpush1.bf16.msra.mxu1 %v20456_v2  ;;  %v20543_v2 = vld [vmem:[#allocation5 + $0x2a2c] ss:$16 sps:$4 sm:$0xff]  }
 0x5be   :  { %13793 = vmatpush1.bf16.msra.mxu0 %v20453_v0  ;;  %15024 = vmatprep.subr.bf16.mxu1 %v20464_v36  ;;  %v20540_v0 = vld [vmem:[#allocation5 + $0x2e24] ss:$16 sps:$4 sm:$0xff]   ;;  %v20541_v36 = vld [vmem:[#allocation5 + $0x2a28] ss:$16 sps:$4 sm:$0xff]  }
 0x5bf   :  { %13794 = vmatprep.subr.bf16.mxu0 %v20461_v37  ;;  %v22187_v37 = vcombine.high %v22175_v26, %v22175_v26 }
 0x5c1   :  { %15025 = vmatpush1.bf16.msra.mxu1 %v20462_v8  ;;  %v20549_v8 = vld [vmem:[#allocation5 + $0x2a4c] ss:$16 sps:$4 sm:$0xff]  }
 0x5c2   :  { %13795 = vmatpush1.bf16.msra.mxu0 %v20459_v38  ;;  %15026 = vmatprep.subr.bf16.mxu1 %v20470_v10  ;;  %v20546_v38 = vld [vmem:[#allocation5 + $0x2e44] ss:$16 sps:$4 sm:$0xff]   ;;  %v20547_v10 = vld [vmem:[#allocation5 + $0x2a48] ss:$16 sps:$4 sm:$0xff]  }
 0x5c3   :  { %13796 = vmatprep.subr.bf16.mxu0 %v20467_v9  ;;  %v20544_v9 = vld [vmem:[#allocation5 + $0x2e40] ss:$16 sps:$4 sm:$0xff]  }
 0x5c5   :  { %15027 = vmatpush1.bf16.msra.mxu1 %v20468_v44  ;;  %v20550_v44 = vld [vmem:[#allocation5 + $0x2e60] ss:$16 sps:$4 sm:$0xff]  }
 0x5c6   :  { %13797 = vmatpush1.bf16.msra.mxu0 %v20465_v14  ;;  %15028 = vmatprep.subr.bf16.mxu1 %v20476_v41  ;;  %v20552_v14 = vld [vmem:[#allocation5 + $0x2e64] ss:$16 sps:$4 sm:$0xff]  }
 0x5c7   :  { %13798 = vmatprep.subr.bf16.mxu0 %v20473_v15  ;;  %v20553_v15 = vld [vmem:[#allocation5 + $0x2a68] ss:$16 sps:$4 sm:$0xff]   ;;  %v20558_v41 = vld [vmem:[#allocation5 + $0x2e84] ss:$16 sps:$4 sm:$0xff]  }
 0x5c9   :  { %15029 = vmatpush1.bf16.msra.mxu1 %v20474_v48  ;;  %v20556_v48 = vld [vmem:[#allocation5 + $0x2e80] ss:$16 sps:$4 sm:$0xff]  }
 0x5ca   :  { %13799 = vmatpush1.bf16.msra.mxu0 %v20471_v55  ;;  %15030 = vmatprep.subr.bf16.mxu1 %v20482_v21  ;;  %v20561_v55 = vld [vmem:[#allocation5 + $0x2a8c] ss:$16 sps:$4 sm:$0xff]  }
 0x5cb   :  { %13800 = vmatprep.subr.bf16.mxu0 %v20479_v20  ;;  %v20564_v20 = vld [vmem:[#allocation5 + $0x2ea4] ss:$16 sps:$4 sm:$0xff]   ;;  %v20567_v21 = vld [vmem:[#allocation5 + $0x2aac] ss:$16 sps:$4 sm:$0xff]  }
 0x5cd   :  { %15031 = vmatpush1.bf16.msra.mxu1 %v20480_v51  ;;  %v20565_v51 = vld [vmem:[#allocation5 + $0x2aa8] ss:$16 sps:$4 sm:$0xff]  }
 0x5ce   :  { %13801 = vmatpush1.bf16.msra.mxu0 %v20477_v33  ;;  %15032 = vmatprep.subr.bf16.mxu1 %v20488_v27  ;;  %v20562_v33 = vld [vmem:[#allocation5 + $0x2ea0] ss:$16 sps:$4 sm:$0xff]   ;;  %v20573_v27 = vld [vmem:[#allocation5 + $0x2acc] ss:$16 sps:$4 sm:$0xff]  }
 0x5cf   :  { %13802 = vmatprep.subr.bf16.mxu0 %v20485_v31  ;;  %v20570_v31 = vld [vmem:[#allocation5 + $0x2ec4] ss:$16 sps:$4 sm:$0xff]  }
 0x5d1   :  { %15033 = vmatpush1.bf16.msra.mxu1 %v20486_v30  ;;  %v20571_v30 = vld [vmem:[#allocation5 + $0x2ac8] ss:$16 sps:$4 sm:$0xff]  }
 0x5d2   :  { %13803 = vmatpush1.bf16.msra.mxu0 %v20483_v29  ;;  %15034 = vmatprep.subr.bf16.mxu1 %v20494_v58  ;;  %v20568_v29 = vld [vmem:[#allocation5 + $0x2ec0] ss:$16 sps:$4 sm:$0xff]   ;;  %v20579_v58 = vld [vmem:[#allocation5 + $0x2aec] ss:$16 sps:$4 sm:$0xff]  }
 0x5d3   :  { %13804 = vmatprep.subr.bf16.mxu0 %v20491_v11  ;;  %v20576_v11 = vld [vmem:[#allocation5 + $0x2ee4] ss:$16 sps:$4 sm:$0xff]  }
 0x5d5   :  { %15035 = vmatpush1.bf16.msra.mxu1 %v20492_v35  ;;  %v20577_v35 = vld [vmem:[#allocation5 + $0x2ae8] ss:$16 sps:$4 sm:$0xff]  }
 0x5d6   :  { %13805 = vmatpush1.bf16.msra.mxu0 %v20489_v34  ;;  %15036 = vmatprep.subr.bf16.mxu1 %v20500_v32  ;;  %v20574_v34 = vld [vmem:[#allocation5 + $0x2ee0] ss:$16 sps:$4 sm:$0xff]   ;;  %v20585_v32 = vld [vmem:[#allocation5 + $0x2b0c] ss:$16 sps:$4 sm:$0xff]  }
 0x5d7   :  { %13806 = vmatprep.subr.bf16.mxu0 %v20497_v60  ;;  %v20582_v60 = vld [vmem:[#allocation5 + $0x2f04] ss:$16 sps:$4 sm:$0xff]  }
 0x5d9   :  { %15037 = vmatpush1.bf16.msra.mxu1 %v20498_v40  ;;  %v20583_v40 = vld [vmem:[#allocation5 + $0x2b08] ss:$16 sps:$4 sm:$0xff]  }
 0x5da   :  { %13807 = vmatpush1.bf16.msra.mxu0 %v20495_v39  ;;  %15038 = vmatprep.subr.bf16.mxu1 %v20506_v7  ;;  %v20580_v39 = vld [vmem:[#allocation5 + $0x2f00] ss:$16 sps:$4 sm:$0xff]   ;;  %v20591_v7 = vld [vmem:[#allocation5 + $0x2b2c] ss:$16 sps:$4 sm:$0xff]  }
 0x5db   :  { %13808 = vmatprep.subr.bf16.mxu0 %v20503_v47  ;;  %v20588_v47 = vld [vmem:[#allocation5 + $0x2f24] ss:$16 sps:$4 sm:$0xff]  }
 0x5dd   :  { %15039 = vmatpush1.bf16.msra.mxu1 %v20504_v3  ;;  %v20589_v3 = vld [vmem:[#allocation5 + $0x2b28] ss:$16 sps:$4 sm:$0xff]  }
 0x5de   :  { %13809 = vmatpush1.bf16.msra.mxu0 %v20501_v4  ;;  %15040 = vmatprep.subr.bf16.mxu1 %v20512_v46  ;;  %v20586_v4 = vld [vmem:[#allocation5 + $0x2f20] ss:$16 sps:$4 sm:$0xff]   ;;  %v20597_v46 = vld [vmem:[#allocation5 + $0x2b4c] ss:$16 sps:$4 sm:$0xff]  }
 0x5df   :  { %13810 = vmatprep.subr.bf16.mxu0 %v20509_v45  ;;  %v20594_v45 = vld [vmem:[#allocation5 + $0x2f44] ss:$16 sps:$4 sm:$0xff]  }
 0x5e1   :  { %15041 = vmatpush1.bf16.msra.mxu1 %v20510_v19  ;;  %v20595_v19 = vld [vmem:[#allocation5 + $0x2b48] ss:$16 sps:$4 sm:$0xff]  }
 0x5e2   :  { %13811 = vmatpush1.bf16.msra.mxu0 %v20507_v54  ;;  %15042 = vmatprep.subr.bf16.mxu1 %v20518_v52  ;;  %v20592_v54 = vld [vmem:[#allocation5 + $0x2f40] ss:$16 sps:$4 sm:$0xff]   ;;  %v20603_v52 = vld [vmem:[#allocation5 + $0x2b6c] ss:$16 sps:$4 sm:$0xff]  }
 0x5e3   :  { %13812 = vmatprep.subr.bf16.mxu0 %v20515_v49  ;;  %v20600_v49 = vld [vmem:[#allocation5 + $0x2f64] ss:$16 sps:$4 sm:$0xff]  }
 0x5e5   :  { %15043 = vmatpush1.bf16.msra.mxu1 %v20516_v16  ;;  %v20601_v16 = vld [vmem:[#allocation5 + $0x2b68] ss:$16 sps:$4 sm:$0xff]  }
 0x5e6   :  { %13813 = vmatpush1.bf16.msra.mxu0 %v20513_v53  ;;  %15044 = vmatprep.subr.bf16.mxu1 %v20524_v18  ;;  %v20598_v53 = vld [vmem:[#allocation5 + $0x2f60] ss:$16 sps:$4 sm:$0xff]   ;;  %v20609_v18 = vld [vmem:[#allocation5 + $0x2b8c] ss:$16 sps:$4 sm:$0xff]  }
 0x5e7   :  { %13814 = vmatprep.subr.bf16.mxu0 %v20521_v12  ;;  %v20606_v12 = vld [vmem:[#allocation5 + $0x2f84] ss:$16 sps:$4 sm:$0xff]  }
 0x5e9   :  { %15045 = vmatpush1.bf16.msra.mxu1 %v20522_v28  ;;  %v20607_v28 = vld [vmem:[#allocation5 + $0x2b88] ss:$16 sps:$4 sm:$0xff]  }
 0x5ea   :  { %13815 = vmatpush1.bf16.msra.mxu0 %v20519_v56  ;;  %15046 = vmatprep.subr.bf16.mxu1 %v20530_v22  ;;  %v20604_v56 = vld [vmem:[#allocation5 + $0x2f80] ss:$16 sps:$4 sm:$0xff]   ;;  %v20615_v22 = vld [vmem:[#allocation5 + $0x2bac] ss:$16 sps:$4 sm:$0xff]  }
 0x5eb   :  { %13816 = vmatprep.subr.bf16.mxu0 %v20527_v25  ;;  %v20612_v25 = vld [vmem:[#allocation5 + $0x2fa4] ss:$16 sps:$4 sm:$0xff]  }
 0x5ed   :  { %15047 = vmatpush1.bf16.msra.mxu1 %v20528_v24  ;;  %v20613_v24 = vld [vmem:[#allocation5 + $0x2ba8] ss:$16 sps:$4 sm:$0xff]  }
 0x5ee   :  { %13817 = vmatpush1.bf16.msra.mxu0 %v20525_v59  ;;  %15057 = vmatprep.subr.bf16.mxu1 %v20537_v61  ;;  %v20610_v59 = vld [vmem:[#allocation5 + $0x2fa0] ss:$16 sps:$4 sm:$0xff]   ;;  %v20621_v61 = vld [vmem:[#allocation5 + $0x2bcc] ss:$16 sps:$4 sm:$0xff]  }
 0x5ef   :  { %13827 = vmatprep.subr.bf16.mxu0 %v20534_v62  ;;  %v20618_v62 = vld [vmem:[#allocation5 + $0x2fc4] ss:$16 sps:$4 sm:$0xff]  }
 0x5f0   :  { %15049 = vmatmul.mubr.bf16.vlgmr.msra.gmra.mrb[4].mxu1 %v22153_v1  ;;  %v20555_v1 = vld [vmem:[#allocation5 + $0x2a6c] ss:$16 sps:$4 sm:$0xff]  }
 0x5f1   :  { %13819 = vmatmul.mubr.bf16.vlgmr.msra.gmra.mrb[0].mxu0 %v22183_v57  ;;  %15058 = vmatpush1.bf16.msra.mxu1 %v20535_v13  ;;  %v20616_v13 = vld [vmem:[#allocation5 + $0x2fc0] ss:$16 sps:$4 sm:$0xff]  }
 0x5f2   :  { %13828 = vmatpush1.bf16.msra.mxu0 %v20532_v63  ;;  %15059 = vmatprep.subr.bf16.mxu1 %v20543_v2  ;;  %v22193_v63 = vld [vmem:[#allocation3 + $0x30] sm:$0xff] }
 0x5f3   :  { %13829 = vmatprep.subr.bf16.mxu0 %v20540_v0  ;;  %13859 = vmatprep.mubr.bf16.mxu0 %v22187_v37  ;;  %v20619_v0 = vld [vmem:[#allocation5 + $0x2bc8] ss:$16 sps:$4 sm:$0xff]   ;;  %v20624_v2 = vld [vmem:[#allocation5 + $0x2fe4] ss:$16 sps:$4 sm:$0xff]  }
 0x5f4   :  { %15089 = vmatprep.mubr.bf16.mxu1 %v22157_v23  ;;  %v20559_v23 = vld [vmem:[#allocation5 + $0x2a88] ss:$16 sps:$4 sm:$0xff]  }
 0x5f5   :  { %15060 = vmatpush1.bf16.msra.mxu1 %v20541_v36  ;;  %v22197_v36 = vrot.slane %v22193_v63, %v21865_v50 }
 0x5f6   :  { %13830 = vmatpush1.bf16.msra.mxu0 %v20538_v42  ;;  %15061 = vmatprep.subr.bf16.mxu1 %v20549_v8  ;;  %v20627_v42 = vld [vmem:[#allocation5 + $0x2bec] ss:$16 sps:$4 sm:$0xff]   ;;  %v20625_v8 = vld [vmem:[#allocation5 + $0x2be8] ss:$16 sps:$4 sm:$0xff]  }
 0x5f7   :  { %13831 = vmatprep.subr.bf16.mxu0 %v20546_v38  ;;  %v20622_v38 = vld [vmem:[#allocation5 + $0x2fe0] ss:$16 sps:$4 sm:$0xff]  }
 0x5f9   :  { %15062 = vmatpush1.bf16.msra.mxu1 %v20547_v10  ;;  %v20633_v10 = vld [vmem:[#allocation5 + $0x2c0c] ss:$16 sps:$4 sm:$0xff]  }
 0x5fa   :  { %13832 = vmatpush1.bf16.msra.mxu0 %v20544_v9  ;;  %15063 = vmatprep.subr.bf16.mxu1 %v20555_v1  ;;  %v20630_v9 = vld [vmem:[#allocation5 + $0x3004] ss:$16 sps:$4 sm:$0xff]   ;;  %v22203_v1 = vcombine.high %v22183_v57, %v22183_v57 }
 0x5fb   :  { %13833 = vmatprep.subr.bf16.mxu0 %v20552_v14  ;;  %v2497_v14 = vcombine.high %v22197_v36, %v22197_v36 }
 0x5fd   :  { %15064 = vmatpush1.bf16.msra.mxu1 %v20553_v15  ;;  %v20631_v15 = vld [vmem:[#allocation5 + $0x2c08] ss:$16 sps:$4 sm:$0xff]  }
 0x5fe   :  { %13834 = vmatpush1.bf16.msra.mxu0 %v20550_v44  ;;  %15065 = vmatprep.subr.bf16.mxu1 %v20561_v55  ;;  %v20628_v44 = vld [vmem:[#allocation5 + $0x3000] ss:$16 sps:$4 sm:$0xff]   ;;  %v20639_v55 = vld [vmem:[#allocation5 + $0x2c2c] ss:$16 sps:$4 sm:$0xff]  }
 0x5ff   :  { %13835 = vmatprep.subr.bf16.mxu0 %v20558_v41  ;;  %v20636_v41 = vld [vmem:[#allocation5 + $0x3024] ss:$16 sps:$4 sm:$0xff]  }
 0x601   :  { %15066 = vmatpush1.bf16.msra.mxu1 %v20559_v23  ;;  %v20634_v23 = vld [vmem:[#allocation5 + $0x3020] ss:$16 sps:$4 sm:$0xff]  }
 0x602   :  { %13836 = vmatpush1.bf16.msra.mxu0 %v20556_v48  ;;  %15067 = vmatprep.subr.bf16.mxu1 %v20567_v21  ;;  %v22206_v48 = vrot.slane %v2497_v14, %v21865_v50  ;;  %v20642_v21 = vld [vmem:[#allocation5 + $0x3044] ss:$16 sps:$4 sm:$0xff]   ;;  %v20709_v14 = vld [vmem:[#allocation5 + $0x2da8] ss:$16 sps:$4 sm:$0xff]  }
 0x603   :  { %13837 = vmatprep.subr.bf16.mxu0 %v20564_v20  ;;  %v20637_v20 = vld [vmem:[#allocation5 + $0x2c28] ss:$16 sps:$4 sm:$0xff]  }
 0x605   :  { %15068 = vmatpush1.bf16.msra.mxu1 %v20565_v51  ;;  %v20640_v51 = vld [vmem:[#allocation5 + $0x3040] ss:$16 sps:$4 sm:$0xff]  }
 0x606   :  { %13838 = vmatpush1.bf16.msra.mxu0 %v20562_v33  ;;  %15069 = vmatprep.subr.bf16.mxu1 %v20573_v27  ;;  %v20645_v33 = vld [vmem:[#allocation5 + $0x2c4c] ss:$16 sps:$4 sm:$0xff]   ;;  %v20648_v27 = vld [vmem:[#allocation5 + $0x3064] ss:$16 sps:$4 sm:$0xff]  }
 0x607   :  { %13839 = vmatprep.subr.bf16.mxu0 %v20570_v31  ;;  %v20643_v31 = vld [vmem:[#allocation5 + $0x2c48] ss:$16 sps:$4 sm:$0xff]  }
 0x609   :  { %15070 = vmatpush1.bf16.msra.mxu1 %v20571_v30  ;;  %v20649_v30 = vld [vmem:[#allocation5 + $0x2c68] ss:$16 sps:$4 sm:$0xff]  }
 0x60a   :  { %13840 = vmatpush1.bf16.msra.mxu0 %v20568_v29  ;;  %15071 = vmatprep.subr.bf16.mxu1 %v20579_v58  ;;  %v20646_v29 = vld [vmem:[#allocation5 + $0x3060] ss:$16 sps:$4 sm:$0xff]   ;;  %v20657_v58 = vld [vmem:[#allocation5 + $0x2c8c] ss:$16 sps:$4 sm:$0xff]  }
 0x60b   :  { %13841 = vmatprep.subr.bf16.mxu0 %v20576_v11  ;;  %v20654_v11 = vld [vmem:[#allocation5 + $0x3084] ss:$16 sps:$4 sm:$0xff]  }
 0x60d   :  { %15072 = vmatpush1.bf16.msra.mxu1 %v20577_v35  ;;  %v20660_v35 = vld [vmem:[#allocation5 + $0x30a4] ss:$16 sps:$4 sm:$0xff]  }
 0x60e   :  { %13842 = vmatpush1.bf16.msra.mxu0 %v20574_v34  ;;  %15073 = vmatprep.subr.bf16.mxu1 %v20585_v32  ;;  %v20652_v34 = vld [vmem:[#allocation5 + $0x3080] ss:$16 sps:$4 sm:$0xff]  }
 0x60f   :  { %13843 = vmatprep.subr.bf16.mxu0 %v20582_v60  ;;  %v20663_v60 = vld [vmem:[#allocation5 + $0x2cac] ss:$16 sps:$4 sm:$0xff]   ;;  %v20658_v32 = vld [vmem:[#allocation5 + $0x30a0] ss:$16 sps:$4 sm:$0xff]  }
 0x611   :  { %15074 = vmatpush1.bf16.msra.mxu1 %v20583_v40  ;;  %v20666_v40 = vld [vmem:[#allocation5 + $0x30c4] ss:$16 sps:$4 sm:$0xff]  }
 0x612   :  { %13844 = vmatpush1.bf16.msra.mxu0 %v20580_v39  ;;  %15075 = vmatprep.subr.bf16.mxu1 %v20591_v7  ;;  %v20661_v39 = vld [vmem:[#allocation5 + $0x2ca8] ss:$16 sps:$4 sm:$0xff]   ;;  %v20664_v7 = vld [vmem:[#allocation5 + $0x30c0] ss:$16 sps:$4 sm:$0xff]  }
 0x613   :  { %13845 = vmatprep.subr.bf16.mxu0 %v20588_v47  ;;  %v20669_v47 = vld [vmem:[#allocation5 + $0x2ccc] ss:$16 sps:$4 sm:$0xff]  }
 0x615   :  { %15076 = vmatpush1.bf16.msra.mxu1 %v20589_v3  ;;  %v20672_v3 = vld [vmem:[#allocation5 + $0x30e4] ss:$16 sps:$4 sm:$0xff]  }
 0x616   :  { %13846 = vmatpush1.bf16.msra.mxu0 %v20586_v4  ;;  %15077 = vmatprep.subr.bf16.mxu1 %v20597_v46  ;;  %v20667_v4 = vld [vmem:[#allocation5 + $0x2cc8] ss:$16 sps:$4 sm:$0xff]   ;;  %v20670_v46 = vld [vmem:[#allocation5 + $0x30e0] ss:$16 sps:$4 sm:$0xff]  }
 0x617   :  { %13847 = vmatprep.subr.bf16.mxu0 %v20594_v45  ;;  %v20675_v45 = vld [vmem:[#allocation5 + $0x2cec] ss:$16 sps:$4 sm:$0xff]  }
 0x619   :  { %15078 = vmatpush1.bf16.msra.mxu1 %v20595_v19  ;;  %v20678_v19 = vld [vmem:[#allocation5 + $0x3104] ss:$16 sps:$4 sm:$0xff]  }
 0x61a   :  { %13848 = vmatpush1.bf16.msra.mxu0 %v20592_v54  ;;  %15079 = vmatprep.subr.bf16.mxu1 %v20603_v52  ;;  %v20673_v54 = vld [vmem:[#allocation5 + $0x2ce8] ss:$16 sps:$4 sm:$0xff]   ;;  %v20676_v52 = vld [vmem:[#allocation5 + $0x3100] ss:$16 sps:$4 sm:$0xff]  }
 0x61b   :  { %13849 = vmatprep.subr.bf16.mxu0 %v20600_v49  ;;  %v20681_v49 = vld [vmem:[#allocation5 + $0x2d0c] ss:$16 sps:$4 sm:$0xff]  }
 0x61d   :  { %15080 = vmatpush1.bf16.msra.mxu1 %v20601_v16  ;;  %v20684_v16 = vld [vmem:[#allocation5 + $0x3124] ss:$16 sps:$4 sm:$0xff]  }
 0x61e   :  { %13850 = vmatpush1.bf16.msra.mxu0 %v20598_v53  ;;  %15081 = vmatprep.subr.bf16.mxu1 %v20609_v18  ;;  %v20679_v53 = vld [vmem:[#allocation5 + $0x2d08] ss:$16 sps:$4 sm:$0xff]   ;;  %v20682_v18 = vld [vmem:[#allocation5 + $0x3120] ss:$16 sps:$4 sm:$0xff]  }
 0x61f   :  { %13851 = vmatprep.subr.bf16.mxu0 %v20606_v12  ;;  %v20687_v12 = vld [vmem:[#allocation5 + $0x2d2c] ss:$16 sps:$4 sm:$0xff]  }
 0x621   :  { %15082 = vmatpush1.bf16.msra.mxu1 %v20607_v28  ;;  %v20690_v28 = vld [vmem:[#allocation5 + $0x3144] ss:$16 sps:$4 sm:$0xff]  }
 0x622   :  { %13852 = vmatpush1.bf16.msra.mxu0 %v20604_v56  ;;  %15083 = vmatprep.subr.bf16.mxu1 %v20615_v22  ;;  %v20685_v56 = vld [vmem:[#allocation5 + $0x2d28] ss:$16 sps:$4 sm:$0xff]   ;;  %v20688_v22 = vld [vmem:[#allocation5 + $0x3140] ss:$16 sps:$4 sm:$0xff]  }
 0x623   :  { %13853 = vmatprep.subr.bf16.mxu0 %v20612_v25  ;;  %v20693_v25 = vld [vmem:[#allocation5 + $0x2d4c] ss:$16 sps:$4 sm:$0xff]  }
 0x625   :  { %15084 = vmatpush1.bf16.msra.mxu1 %v20613_v24  ;;  %v20696_v24 = vld [vmem:[#allocation5 + $0x3164] ss:$16 sps:$4 sm:$0xff]  }
 0x626   :  { %13854 = vmatpush1.bf16.msra.mxu0 %v20610_v59  ;;  %15085 = vmatprep.subr.bf16.mxu1 %v20621_v61  ;;  %v20691_v59 = vld [vmem:[#allocation5 + $0x2d48] ss:$16 sps:$4 sm:$0xff]   ;;  %v20694_v61 = vld [vmem:[#allocation5 + $0x3160] ss:$16 sps:$4 sm:$0xff]  }
 0x627   :  { %13855 = vmatprep.subr.bf16.mxu0 %v20618_v62  ;;  %v20699_v62 = vld [vmem:[#allocation5 + $0x2d6c] ss:$16 sps:$4 sm:$0xff]  }
 0x629   :  { %15086 = vmatpush1.bf16.msra.mxu1 %v20619_v0  ;;  %v20702_v0 = vld [vmem:[#allocation5 + $0x3184] ss:$16 sps:$4 sm:$0xff]  }
 0x62a   :  { %13856 = vmatpush1.bf16.msra.mxu0 %v20616_v13  ;;  %15087 = vmatprep.subr.bf16.mxu1 %v20627_v42  ;;  %v20697_v13 = vld [vmem:[#allocation5 + $0x2d68] ss:$16 sps:$4 sm:$0xff]   ;;  %v20700_v42 = vld [vmem:[#allocation5 + $0x3180] ss:$16 sps:$4 sm:$0xff]  }
 0x62b   :  { %13857 = vmatprep.subr.bf16.mxu0 %v20624_v2  ;;  %v20705_v2 = vld [vmem:[#allocation5 + $0x2d8c] ss:$16 sps:$4 sm:$0xff]  }
 0x62d   :  { %15088 = vmatpush1.bf16.msra.mxu1 %v20625_v8  ;;  %v20708_v8 = vld [vmem:[#allocation5 + $0x31a4] ss:$16 sps:$4 sm:$0xff]  }
 0x62e   :  { %13858 = vmatpush1.bf16.msra.mxu0 %v20622_v38  ;;  %15098 = vmatprep.subr.bf16.mxu1 %v20633_v10  ;;  %v20703_v38 = vld [vmem:[#allocation5 + $0x2d88] ss:$16 sps:$4 sm:$0xff]   ;;  %v20706_v10 = vld [vmem:[#allocation5 + $0x31a0] ss:$16 sps:$4 sm:$0xff]  }
 0x62f   :  { %13868 = vmatprep.subr.bf16.mxu0 %v20630_v9  ;;  %v20711_v9 = vld [vmem:[#allocation5 + $0x2dac] ss:$16 sps:$4 sm:$0xff]  }
 0x630   :  { %15090 = vmatmul.mubr.bf16.vlgmr.msra.gmra.mrb[4].mxu1 %v22172_v17  ;;  %v20651_v17 = vld [vmem:[#allocation5 + $0x2c6c] ss:$16 sps:$4 sm:$0xff]  }
 0x631   :  { %13860 = vmatmul.mubr.bf16.vlgmr.msra.gmra.mrb[0].mxu0 %v22203_v1  ;;  %15099 = vmatpush1.bf16.msra.mxu1 %v20631_v15  ;;  %v20717_v15 = vld [vmem:[#allocation5 + $0x2dcc] ss:$16 sps:$4 sm:$0xff]  }
 0x632   :  { %13869 = vmatpush1.bf16.msra.mxu0 %v20628_v44  ;;  %15100 = vmatprep.subr.bf16.mxu1 %v20639_v55  ;;  %v20714_v44 = vld [vmem:[#allocation5 + $0x31c4] ss:$16 sps:$4 sm:$0xff]   ;;  %v20715_v55 = vld [vmem:[#allocation5 + $0x2dc8] ss:$16 sps:$4 sm:$0xff]  }
 0x633   :  { %13870 = vmatprep.subr.bf16.mxu0 %v20636_v41  ;;  %13900 = vmatprep.mubr.bf16.mxu0 %v22206_v48  ;;  %v20712_v41 = vld [vmem:[#allocation5 + $0x31c0] ss:$16 sps:$4 sm:$0xff]  }
 0x634   :  { %15130 = vmatprep.mubr.bf16.mxu1 %v22175_v26  ;;  %v20655_v26 = vld [vmem:[#allocation5 + $0x2c88] ss:$16 sps:$4 sm:$0xff]  }
 0x635   :  { %15101 = vmatpush1.bf16.msra.mxu1 %v20637_v20  ;;  %v20723_v20 = vld [vmem:[#allocation5 + $0x2dec] ss:$16 sps:$4 sm:$0xff]  }
 0x636   :  { %13871 = vmatpush1.bf16.msra.mxu0 %v20634_v23  ;;  %15102 = vmatprep.subr.bf16.mxu1 %v20645_v33  ;;  %v20720_v23 = vld [vmem:[#allocation5 + $0x31e4] ss:$16 sps:$4 sm:$0xff]   ;;  %v20721_v33 = vld [vmem:[#allocation5 + $0x2de8] ss:$16 sps:$4 sm:$0xff]  }
 0x637   :  { %13872 = vmatprep.subr.bf16.mxu0 %v20642_v21  ;;  %v20718_v21 = vld [vmem:[#allocation5 + $0x31e0] ss:$16 sps:$4 sm:$0xff]  }
 0x639   :  { %15103 = vmatpush1.bf16.msra.mxu1 %v20643_v31  ;;  %v20729_v31 = vld [vmem:[#allocation5 + $0x2e0c] ss:$16 sps:$4 sm:$0xff]  }
 0x63a   :  { %13873 = vmatpush1.bf16.msra.mxu0 %v20640_v51  ;;  %15104 = vmatprep.subr.bf16.mxu1 %v20651_v17  ;;  %v20726_v51 = vld [vmem:[#allocation5 + $0x3204] ss:$16 sps:$4 sm:$0xff]   ;;  %v20724_v17 = vld [vmem:[#allocation5 + $0x3200] ss:$16 sps:$4 sm:$0xff]  }
 0x63b   :  { %13874 = vmatprep.subr.bf16.mxu0 %v20648_v27  ;;  %v22214_v27 = vrot.slane %v22197_v36, %v21865_v50  ;;  %v20730_v36 = vld [vmem:[#allocation5 + $0x3220] ss:$16 sps:$4 sm:$0xff]  }
 0x63d   :  { %15105 = vmatpush1.bf16.msra.mxu1 %v20649_v30  ;;  %v20732_v30 = vld [vmem:[#allocation5 + $0x3224] ss:$16 sps:$4 sm:$0xff]  }
 0x63e   :  { %13875 = vmatpush1.bf16.msra.mxu0 %v20646_v29  ;;  %15106 = vmatprep.subr.bf16.mxu1 %v20657_v58  ;;  %v20727_v29 = vld [vmem:[#allocation5 + $0x2e08] ss:$16 sps:$4 sm:$0xff]   ;;  %v22218_v58 = vcombine.high %v22206_v48, %v22206_v48 }
 0x63f   :  { %13876 = vmatprep.subr.bf16.mxu0 %v20654_v11  ;;  %v20735_v11 = vld [vmem:[#allocation5 + $0x2e2c] ss:$16 sps:$4 sm:$0xff]  }
 0x641   :  { %15107 = vmatpush1.bf16.msra.mxu1 %v20655_v26  ;;  %v20738_v26 = vld [vmem:[#allocation5 + $0x3244] ss:$16 sps:$4 sm:$0xff]  }
 0x642   :  { %13877 = vmatpush1.bf16.msra.mxu0 %v20652_v34  ;;  %15108 = vmatprep.subr.bf16.mxu1 %v20663_v60  ;;  %v20733_v34 = vld [vmem:[#allocation5 + $0x2e28] ss:$16 sps:$4 sm:$0xff]   ;;  %v20736_v60 = vld [vmem:[#allocation5 + $0x3240] ss:$16 sps:$4 sm:$0xff]  }
 0x643   :  { %13878 = vmatprep.subr.bf16.mxu0 %v20660_v35  ;;  %v20741_v35 = vld [vmem:[#allocation5 + $0x2e4c] ss:$16 sps:$4 sm:$0xff]  }
 0x645   :  { %15109 = vmatpush1.bf16.msra.mxu1 %v20661_v39  ;;  %v20744_v39 = vld [vmem:[#allocation5 + $0x3264] ss:$16 sps:$4 sm:$0xff]  }
 0x646   :  { %13879 = vmatpush1.bf16.msra.mxu0 %v20658_v32  ;;  %15110 = vmatprep.subr.bf16.mxu1 %v20669_v47  ;;  %v20739_v32 = vld [vmem:[#allocation5 + $0x2e48] ss:$16 sps:$4 sm:$0xff]  }
 0x647   :  { %13880 = vmatprep.subr.bf16.mxu0 %v20666_v40  ;;  %v20742_v40 = vld [vmem:[#allocation5 + $0x3260] ss:$16 sps:$4 sm:$0xff]   ;;  %v20745_v47 = vld [vmem:[#allocation5 + $0x2e68] ss:$16 sps:$4 sm:$0xff]  }
 0x649   :  { %15111 = vmatpush1.bf16.msra.mxu1 %v20667_v4  ;;  %v20753_v4 = vld [vmem:[#allocation5 + $0x2e8c] ss:$16 sps:$4 sm:$0xff]  }
 0x64a   :  { %13881 = vmatpush1.bf16.msra.mxu0 %v20664_v7  ;;  %15112 = vmatprep.subr.bf16.mxu1 %v20675_v45  ;;  %v20750_v7 = vld [vmem:[#allocation5 + $0x3284] ss:$16 sps:$4 sm:$0xff]  }
 0x64b   :  { %13882 = vmatprep.subr.bf16.mxu0 %v20672_v3  ;;  %v20748_v3 = vld [vmem:[#allocation5 + $0x3280] ss:$16 sps:$4 sm:$0xff]   ;;  %v20756_v45 = vld [vmem:[#allocation5 + $0x32a4] ss:$16 sps:$4 sm:$0xff]  }
 0x64d   :  { %15113 = vmatpush1.bf16.msra.mxu1 %v20673_v54  ;;  %v20754_v54 = vld [vmem:[#allocation5 + $0x32a0] ss:$16 sps:$4 sm:$0xff]  }
 0x64e   :  { %13883 = vmatpush1.bf16.msra.mxu0 %v20670_v46  ;;  %15114 = vmatprep.subr.bf16.mxu1 %v20681_v49  ;;  %v20759_v46 = vld [vmem:[#allocation5 + $0x2eac] ss:$16 sps:$4 sm:$0xff]   ;;  %v20762_v49 = vld [vmem:[#allocation5 + $0x32c4] ss:$16 sps:$4 sm:$0xff]  }
 0x64f   :  { %13884 = vmatprep.subr.bf16.mxu0 %v20678_v19  ;;  %v20757_v19 = vld [vmem:[#allocation5 + $0x2ea8] ss:$16 sps:$4 sm:$0xff]  }
 0x651   :  { %15115 = vmatpush1.bf16.msra.mxu1 %v20679_v53  ;;  %v20760_v53 = vld [vmem:[#allocation5 + $0x32c0] ss:$16 sps:$4 sm:$0xff]  }
 0x652   :  { %13885 = vmatpush1.bf16.msra.mxu0 %v20676_v52  ;;  %15116 = vmatprep.subr.bf16.mxu1 %v20687_v12  ;;  %v20765_v52 = vld [vmem:[#allocation5 + $0x2ecc] ss:$16 sps:$4 sm:$0xff]   ;;  %v20768_v12 = vld [vmem:[#allocation5 + $0x32e4] ss:$16 sps:$4 sm:$0xff]  }
 0x653   :  { %13886 = vmatprep.subr.bf16.mxu0 %v20684_v16  ;;  %v20763_v16 = vld [vmem:[#allocation5 + $0x2ec8] ss:$16 sps:$4 sm:$0xff]  }
 0x655   :  { %15117 = vmatpush1.bf16.msra.mxu1 %v20685_v56  ;;  %v20766_v56 = vld [vmem:[#allocation5 + $0x32e0] ss:$16 sps:$4 sm:$0xff]  }
 0x656   :  { %13887 = vmatpush1.bf16.msra.mxu0 %v20682_v18  ;;  %15118 = vmatprep.subr.bf16.mxu1 %v20693_v25  ;;  %v20771_v18 = vld [vmem:[#allocation5 + $0x2eec] ss:$16 sps:$4 sm:$0xff]   ;;  %v20774_v25 = vld [vmem:[#allocation5 + $0x3304] ss:$16 sps:$4 sm:$0xff]  }
 0x657   :  { %13888 = vmatprep.subr.bf16.mxu0 %v20690_v28  ;;  %v20769_v28 = vld [vmem:[#allocation5 + $0x2ee8] ss:$16 sps:$4 sm:$0xff]  }
 0x659   :  { %15119 = vmatpush1.bf16.msra.mxu1 %v20691_v59  ;;  %v20772_v59 = vld [vmem:[#allocation5 + $0x3300] ss:$16 sps:$4 sm:$0xff]  }
 0x65a   :  { %13889 = vmatpush1.bf16.msra.mxu0 %v20688_v22  ;;  %15120 = vmatprep.subr.bf16.mxu1 %v20699_v62  ;;  %v20777_v22 = vld [vmem:[#allocation5 + $0x2f0c] ss:$16 sps:$4 sm:$0xff]   ;;  %v20780_v62 = vld [vmem:[#allocation5 + $0x3324] ss:$16 sps:$4 sm:$0xff]  }
 0x65b   :  { %13890 = vmatprep.subr.bf16.mxu0 %v20696_v24  ;;  %v20775_v24 = vld [vmem:[#allocation5 + $0x2f08] ss:$16 sps:$4 sm:$0xff]  }
 0x65d   :  { %15121 = vmatpush1.bf16.msra.mxu1 %v20697_v13  ;;  %v20778_v13 = vld [vmem:[#allocation5 + $0x3320] ss:$16 sps:$4 sm:$0xff]  }
 0x65e   :  { %13891 = vmatpush1.bf16.msra.mxu0 %v20694_v61  ;;  %15122 = vmatprep.subr.bf16.mxu1 %v20705_v2  ;;  %v20783_v61 = vld [vmem:[#allocation5 + $0x2f2c] ss:$16 sps:$4 sm:$0xff]   ;;  %v20786_v2 = vld [vmem:[#allocation5 + $0x3344] ss:$16 sps:$4 sm:$0xff]  }
 0x65f   :  { %13892 = vmatprep.subr.bf16.mxu0 %v20702_v0  ;;  %v20781_v0 = vld [vmem:[#allocation5 + $0x2f28] ss:$16 sps:$4 sm:$0xff]  }
 0x661   :  { %15123 = vmatpush1.bf16.msra.mxu1 %v20703_v38  ;;  %v20784_v38 = vld [vmem:[#allocation5 + $0x3340] ss:$16 sps:$4 sm:$0xff]  }
 0x662   :  { %13893 = vmatpush1.bf16.msra.mxu0 %v20700_v42  ;;  %15124 = vmatprep.subr.bf16.mxu1 %v20711_v9  ;;  %v20789_v42 = vld [vmem:[#allocation5 + $0x2f4c] ss:$16 sps:$4 sm:$0xff]   ;;  %v20792_v9 = vld [vmem:[#allocation5 + $0x3364] ss:$16 sps:$4 sm:$0xff]  }
 0x663   :  { %13894 = vmatprep.subr.bf16.mxu0 %v20708_v8  ;;  %v20787_v8 = vld [vmem:[#allocation5 + $0x2f48] ss:$16 sps:$4 sm:$0xff]  }
 0x665   :  { %15125 = vmatpush1.bf16.msra.mxu1 %v20709_v14  ;;  %v20790_v14 = vld [vmem:[#allocation5 + $0x3360] ss:$16 sps:$4 sm:$0xff]  }
 0x666   :  { %13895 = vmatpush1.bf16.msra.mxu0 %v20706_v10  ;;  %15126 = vmatprep.subr.bf16.mxu1 %v20717_v15  ;;  %v20795_v10 = vld [vmem:[#allocation5 + $0x2f6c] ss:$16 sps:$4 sm:$0xff]   ;;  %v20798_v15 = vld [vmem:[#allocation5 + $0x3384] ss:$16 sps:$4 sm:$0xff]  }
 0x667   :  { %13896 = vmatprep.subr.bf16.mxu0 %v20714_v44  ;;  %v20793_v44 = vld [vmem:[#allocation5 + $0x2f68] ss:$16 sps:$4 sm:$0xff]  }
 0x669   :  { %15127 = vmatpush1.bf16.msra.mxu1 %v20715_v55  ;;  %v20796_v55 = vld [vmem:[#allocation5 + $0x3380] ss:$16 sps:$4 sm:$0xff]  }
 0x66a   :  { %13897 = vmatpush1.bf16.msra.mxu0 %v20712_v41  ;;  %15128 = vmatprep.subr.bf16.mxu1 %v20723_v20  ;;  %v20801_v41 = vld [vmem:[#allocation5 + $0x2f8c] ss:$16 sps:$4 sm:$0xff]   ;;  %v20804_v20 = vld [vmem:[#allocation5 + $0x33a4] ss:$16 sps:$4 sm:$0xff]  }
 0x66b   :  { %13898 = vmatprep.subr.bf16.mxu0 %v20720_v23  ;;  %v20799_v23 = vld [vmem:[#allocation5 + $0x2f88] ss:$16 sps:$4 sm:$0xff]  }
 0x66d   :  { %15129 = vmatpush1.bf16.msra.mxu1 %v20721_v33  ;;  %v20802_v33 = vld [vmem:[#allocation5 + $0x33a0] ss:$16 sps:$4 sm:$0xff]  }
 0x66e   :  { %13899 = vmatpush1.bf16.msra.mxu0 %v20718_v21  ;;  %15139 = vmatprep.subr.bf16.mxu1 %v20729_v31  ;;  %v20807_v21 = vld [vmem:[#allocation5 + $0x2fac] ss:$16 sps:$4 sm:$0xff]   ;;  %v20810_v31 = vld [vmem:[#allocation5 + $0x33c4] ss:$16 sps:$4 sm:$0xff]  }
 0x66f   :  { %13909 = vmatprep.subr.bf16.mxu0 %v20726_v51  ;;  %v20805_v51 = vld [vmem:[#allocation5 + $0x2fa8] ss:$16 sps:$4 sm:$0xff]  }
 0x670   :  { %15131 = vmatmul.mubr.bf16.vlgmr.msra.gmra.mrb[4].mxu1 %v22183_v57  ;;  %v20747_v57 = vld [vmem:[#allocation5 + $0x2e6c] ss:$16 sps:$4 sm:$0xff]  }
 0x671   :  { %13901 = vmatmul.mubr.bf16.vlgmr.msra.gmra.mrb[0].mxu0 %v22214_v27  ;;  %15140 = vmatpush1.bf16.msra.mxu1 %v20727_v29  ;;  %v2482_v29 = vcombine.high %v22193_v63, %v22193_v63 }
 0x672   :  { %13910 = vmatpush1.bf16.msra.mxu0 %v20724_v17  ;;  %15141 = vmatprep.subr.bf16.mxu1 %v20735_v11  ;;  %v20813_v17 = vld [vmem:[#allocation5 + $0x2fcc] ss:$16 sps:$4 sm:$0xff]   ;;  %v20811_v11 = vld [vmem:[#allocation5 + $0x2fc8] ss:$16 sps:$4 sm:$0xff]  }
 0x673   :  { %13911 = vmatprep.subr.bf16.mxu0 %v20732_v30  ;;  %13941 = vmatprep.mubr.bf16.mxu0 %v22218_v58  ;;  %v20808_v30 = vld [vmem:[#allocation5 + $0x33c0] ss:$16 sps:$4 sm:$0xff]  }
 0x674   :  { %15171 = vmatprep.mubr.bf16.mxu1 %v22187_v37  ;;  %v20751_v37 = vld [vmem:[#allocation5 + $0x2e88] ss:$16 sps:$4 sm:$0xff]  }
 0x675   :  { %15142 = vmatpush1.bf16.msra.mxu1 %v20733_v34  ;;  %v20819_v34 = vld [vmem:[#allocation5 + $0x2fec] ss:$16 sps:$4 sm:$0xff]  }
 0x676   :  { %13912 = vmatpush1.bf16.msra.mxu0 %v20730_v36  ;;  %15143 = vmatprep.subr.bf16.mxu1 %v20741_v35  ;;  %v20816_v36 = vld [vmem:[#allocation5 + $0x33e4] ss:$16 sps:$4 sm:$0xff]   ;;  %v20814_v35 = vld [vmem:[#allocation5 + $0x33e0] ss:$16 sps:$4 sm:$0xff]  }
 0x677   :  { %13913 = vmatprep.subr.bf16.mxu0 %v20738_v26  ;;  %v22227_v26 = vrot.slane %v2482_v29, %v21865_v50  ;;  %v20889_v29 = vld [vmem:[#allocation5 + $0x3168] ss:$16 sps:$4 sm:$0xff]  }
 0x679   :  { %15144 = vmatpush1.bf16.msra.mxu1 %v20739_v32  ;;  %v20822_v32 = vld [vmem:[#allocation5 + $0x3404] ss:$16 sps:$4 sm:$0xff]   ;;  %v2498_v63 = vcombine.high %v22227_v26, %v22227_v26 }
 0x67a   :  { %13914 = vmatpush1.bf16.msra.mxu0 %v20736_v60  ;;  %15145 = vmatprep.subr.bf16.mxu1 %v20747_v57  ;;  %v20817_v60 = vld [vmem:[#allocation5 + $0x2fe8] ss:$16 sps:$4 sm:$0xff]   ;;  %v22233_v57 = vcombine.high %v22214_v27, %v22214_v27 }
 0x67b   :  { %13915 = vmatprep.subr.bf16.mxu0 %v20744_v39  ;;  %v20825_v39 = vld [vmem:[#allocation5 + $0x300c] ss:$16 sps:$4 sm:$0xff]  }
 0x67d   :  { %15146 = vmatpush1.bf16.msra.mxu1 %v20745_v47  ;;  %v20823_v47 = vld [vmem:[#allocation5 + $0x3008] ss:$16 sps:$4 sm:$0xff]  }
 0x67e   :  { %13916 = vmatpush1.bf16.msra.mxu0 %v20742_v40  ;;  %15147 = vmatprep.subr.bf16.mxu1 %v20753_v4  ;;  %v20820_v40 = vld [vmem:[#allocation5 + $0x3400] ss:$16 sps:$4 sm:$0xff]   ;;  %v20831_v4 = vld [vmem:[#allocation5 + $0x302c] ss:$16 sps:$4 sm:$0xff]  }
 0x67f   :  { %13917 = vmatprep.subr.bf16.mxu0 %v20750_v7  ;;  %v20828_v7 = vld [vmem:[#allocation5 + $0x3424] ss:$16 sps:$4 sm:$0xff]  }
 0x681   :  { %15148 = vmatpush1.bf16.msra.mxu1 %v20751_v37  ;;  %v20826_v37 = vld [vmem:[#allocation5 + $0x3420] ss:$16 sps:$4 sm:$0xff]  }
 0x682   :  { %13918 = vmatpush1.bf16.msra.mxu0 %v20748_v3  ;;  %15149 = vmatprep.subr.bf16.mxu1 %v20759_v46  ;;  %v22236_v3 = vrot.slane %v2498_v63, %v21865_v50  ;;  %v20834_v46 = vld [vmem:[#allocation5 + $0x3444] ss:$16 sps:$4 sm:$0xff]  }
 0x683   :  { %13919 = vmatprep.subr.bf16.mxu0 %v20756_v45  ;;  %v20829_v45 = vld [vmem:[#allocation5 + $0x3028] ss:$16 sps:$4 sm:$0xff]   ;;  %v20906_v63 = vld [vmem:[#allocation5 + $0x35c4] ss:$16 sps:$4 sm:$0xff]  }
 0x685   :  { %15150 = vmatpush1.bf16.msra.mxu1 %v20757_v19  ;;  %v20832_v19 = vld [vmem:[#allocation5 + $0x3440] ss:$16 sps:$4 sm:$0xff]  }
 0x686   :  { %13920 = vmatpush1.bf16.msra.mxu0 %v20754_v54  ;;  %15151 = vmatprep.subr.bf16.mxu1 %v20765_v52  ;;  %v20837_v54 = vld [vmem:[#allocation5 + $0x304c] ss:$16 sps:$4 sm:$0xff]   ;;  %v20840_v52 = vld [vmem:[#allocation5 + $0x3464] ss:$16 sps:$4 sm:$0xff]  }
 0x687   :  { %13921 = vmatprep.subr.bf16.mxu0 %v20762_v49  ;;  %v20835_v49 = vld [vmem:[#allocation5 + $0x3048] ss:$16 sps:$4 sm:$0xff]  }
 0x689   :  { %15152 = vmatpush1.bf16.msra.mxu1 %v20763_v16  ;;  %v20841_v16 = vld [vmem:[#allocation5 + $0x3068] ss:$16 sps:$4 sm:$0xff]  }
 0x68a   :  { %13922 = vmatpush1.bf16.msra.mxu0 %v20760_v53  ;;  %15153 = vmatprep.subr.bf16.mxu1 %v20771_v18  ;;  %v20838_v53 = vld [vmem:[#allocation5 + $0x3460] ss:$16 sps:$4 sm:$0xff]   ;;  %v20849_v18 = vld [vmem:[#allocation5 + $0x308c] ss:$16 sps:$4 sm:$0xff]  }
 0x68b   :  { %13923 = vmatprep.subr.bf16.mxu0 %v20768_v12  ;;  %v20846_v12 = vld [vmem:[#allocation5 + $0x3484] ss:$16 sps:$4 sm:$0xff]  }
 0x68d   :  { %15154 = vmatpush1.bf16.msra.mxu1 %v20769_v28  ;;  %v20852_v28 = vld [vmem:[#allocation5 + $0x34a4] ss:$16 sps:$4 sm:$0xff]  }
 0x68e   :  { %13924 = vmatpush1.bf16.msra.mxu0 %v20766_v56  ;;  %15155 = vmatprep.subr.bf16.mxu1 %v20777_v22  ;;  %v20844_v56 = vld [vmem:[#allocation5 + $0x3480] ss:$16 sps:$4 sm:$0xff]  }
 0x68f   :  { %13925 = vmatprep.subr.bf16.mxu0 %v20774_v25  ;;  %v20855_v25 = vld [vmem:[#allocation5 + $0x30ac] ss:$16 sps:$4 sm:$0xff]   ;;  %v20850_v22 = vld [vmem:[#allocation5 + $0x34a0] ss:$16 sps:$4 sm:$0xff]  }
 0x691   :  { %15156 = vmatpush1.bf16.msra.mxu1 %v20775_v24  ;;  %v20858_v24 = vld [vmem:[#allocation5 + $0x34c4] ss:$16 sps:$4 sm:$0xff]  }
 0x692   :  { %13926 = vmatpush1.bf16.msra.mxu0 %v20772_v59  ;;  %15157 = vmatprep.subr.bf16.mxu1 %v20783_v61  ;;  %v20853_v59 = vld [vmem:[#allocation5 + $0x30a8] ss:$16 sps:$4 sm:$0xff]   ;;  %v20856_v61 = vld [vmem:[#allocation5 + $0x34c0] ss:$16 sps:$4 sm:$0xff]  }
 0x693   :  { %13927 = vmatprep.subr.bf16.mxu0 %v20780_v62  ;;  %v20861_v62 = vld [vmem:[#allocation5 + $0x30cc] ss:$16 sps:$4 sm:$0xff]  }
 0x695   :  { %15158 = vmatpush1.bf16.msra.mxu1 %v20781_v0  ;;  %v20864_v0 = vld [vmem:[#allocation5 + $0x34e4] ss:$16 sps:$4 sm:$0xff]  }
 0x696   :  { %13928 = vmatpush1.bf16.msra.mxu0 %v20778_v13  ;;  %15159 = vmatprep.subr.bf16.mxu1 %v20789_v42  ;;  %v20859_v13 = vld [vmem:[#allocation5 + $0x30c8] ss:$16 sps:$4 sm:$0xff]   ;;  %v20862_v42 = vld [vmem:[#allocation5 + $0x34e0] ss:$16 sps:$4 sm:$0xff]  }
 0x697   :  { %13929 = vmatprep.subr.bf16.mxu0 %v20786_v2  ;;  %v20867_v2 = vld [vmem:[#allocation5 + $0x30ec] ss:$16 sps:$4 sm:$0xff]  }
 0x699   :  { %15160 = vmatpush1.bf16.msra.mxu1 %v20787_v8  ;;  %v20870_v8 = vld [vmem:[#allocation5 + $0x3504] ss:$16 sps:$4 sm:$0xff]  }
 0x69a   :  { %13930 = vmatpush1.bf16.msra.mxu0 %v20784_v38  ;;  %15161 = vmatprep.subr.bf16.mxu1 %v20795_v10  ;;  %v20865_v38 = vld [vmem:[#allocation5 + $0x30e8] ss:$16 sps:$4 sm:$0xff]   ;;  %v20868_v10 = vld [vmem:[#allocation5 + $0x3500] ss:$16 sps:$4 sm:$0xff]  }
 0x69b   :  { %13931 = vmatprep.subr.bf16.mxu0 %v20792_v9  ;;  %v20873_v9 = vld [vmem:[#allocation5 + $0x310c] ss:$16 sps:$4 sm:$0xff]  }
 0x69d   :  { %15162 = vmatpush1.bf16.msra.mxu1 %v20793_v44  ;;  %v20876_v44 = vld [vmem:[#allocation5 + $0x3524] ss:$16 sps:$4 sm:$0xff]  }
 0x69e   :  { %13932 = vmatpush1.bf16.msra.mxu0 %v20790_v14  ;;  %15163 = vmatprep.subr.bf16.mxu1 %v20801_v41  ;;  %v20871_v14 = vld [vmem:[#allocation5 + $0x3108] ss:$16 sps:$4 sm:$0xff]   ;;  %v20874_v41 = vld [vmem:[#allocation5 + $0x3520] ss:$16 sps:$4 sm:$0xff]  }
 0x69f   :  { %13933 = vmatprep.subr.bf16.mxu0 %v20798_v15  ;;  %v20879_v15 = vld [vmem:[#allocation5 + $0x312c] ss:$16 sps:$4 sm:$0xff]  }
 0x6a1   :  { %15164 = vmatpush1.bf16.msra.mxu1 %v20799_v23  ;;  %v20882_v23 = vld [vmem:[#allocation5 + $0x3544] ss:$16 sps:$4 sm:$0xff]  }
 0x6a2   :  { %13934 = vmatpush1.bf16.msra.mxu0 %v20796_v55  ;;  %15165 = vmatprep.subr.bf16.mxu1 %v20807_v21  ;;  %v20877_v55 = vld [vmem:[#allocation5 + $0x3128] ss:$16 sps:$4 sm:$0xff]   ;;  %v20880_v21 = vld [vmem:[#allocation5 + $0x3540] ss:$16 sps:$4 sm:$0xff]  }
 0x6a3   :  { %13935 = vmatprep.subr.bf16.mxu0 %v20804_v20  ;;  %v20885_v20 = vld [vmem:[#allocation5 + $0x314c] ss:$16 sps:$4 sm:$0xff]  }
 0x6a5   :  { %15166 = vmatpush1.bf16.msra.mxu1 %v20805_v51  ;;  %v20888_v51 = vld [vmem:[#allocation5 + $0x3564] ss:$16 sps:$4 sm:$0xff]  }
 0x6a6   :  { %13936 = vmatpush1.bf16.msra.mxu0 %v20802_v33  ;;  %15167 = vmatprep.subr.bf16.mxu1 %v20813_v17  ;;  %v20883_v33 = vld [vmem:[#allocation5 + $0x3148] ss:$16 sps:$4 sm:$0xff]   ;;  %v20886_v17 = vld [vmem:[#allocation5 + $0x3560] ss:$16 sps:$4 sm:$0xff]  }
 0x6a7   :  { %13937 = vmatprep.subr.bf16.mxu0 %v20810_v31  ;;  %v20891_v31 = vld [vmem:[#allocation5 + $0x316c] ss:$16 sps:$4 sm:$0xff]  }
 0x6a9   :  { %15168 = vmatpush1.bf16.msra.mxu1 %v20811_v11  ;;  %v20897_v11 = vld [vmem:[#allocation5 + $0x318c] ss:$16 sps:$4 sm:$0xff]  }
 0x6aa   :  { %13938 = vmatpush1.bf16.msra.mxu0 %v20808_v30  ;;  %15169 = vmatprep.subr.bf16.mxu1 %v20819_v34  ;;  %v20894_v30 = vld [vmem:[#allocation5 + $0x3584] ss:$16 sps:$4 sm:$0xff]   ;;  %v20895_v34 = vld [vmem:[#allocation5 + $0x3188] ss:$16 sps:$4 sm:$0xff]  }
 0x6ab   :  { %13939 = vmatprep.subr.bf16.mxu0 %v20816_v36  ;;  %v20892_v36 = vld [vmem:[#allocation5 + $0x3580] ss:$16 sps:$4 sm:$0xff]  }
 0x6ad   :  { %15170 = vmatpush1.bf16.msra.mxu1 %v20817_v60  ;;  %v20903_v60 = vld [vmem:[#allocation5 + $0x31ac] ss:$16 sps:$4 sm:$0xff]  }
 0x6ae   :  { %13940 = vmatpush1.bf16.msra.mxu0 %v20814_v35  ;;  %15180 = vmatprep.subr.bf16.mxu1 %v20825_v39  ;;  %v20900_v35 = vld [vmem:[#allocation5 + $0x35a4] ss:$16 sps:$4 sm:$0xff]   ;;  %v20901_v39 = vld [vmem:[#allocation5 + $0x31a8] ss:$16 sps:$4 sm:$0xff]  }
 0x6af   :  { %13950 = vmatprep.subr.bf16.mxu0 %v20822_v32  ;;  %v20898_v32 = vld [vmem:[#allocation5 + $0x35a0] ss:$16 sps:$4 sm:$0xff]  }
 0x6b0   :  { %15172 = vmatmul.mubr.bf16.vlgmr.msra.gmra.mrb[4].mxu1 %v22203_v1  ;;  %v20843_v1 = vld [vmem:[#allocation5 + $0x306c] ss:$16 sps:$4 sm:$0xff]  }
 0x6b1   :  { %13942 = vmatmul.mubr.bf16.vlgmr.msra.gmra.mrb[0].mxu0 %v22233_v57  ;;  %15181 = vmatpush1.bf16.msra.mxu1 %v20823_v47  ;;  %v20904_v47 = vld [vmem:[#allocation5 + $0x35c0] ss:$16 sps:$4 sm:$0xff]  }
 0x6b2   :  { %13951 = vmatpush1.bf16.msra.mxu0 %v20820_v40  ;;  %15182 = vmatprep.subr.bf16.mxu1 %v20831_v4  ;;  %v20909_v40 = vld [vmem:[#allocation5 + $0x31cc] ss:$16 sps:$4 sm:$0xff]   ;;  %v20912_v4 = vld [vmem:[#allocation5 + $0x35e4] ss:$16 sps:$4 sm:$0xff]  }
 0x6b3   :  { %13952 = vmatprep.subr.bf16.mxu0 %v20828_v7  ;;  %13982 = vmatprep.mubr.bf16.mxu0 %v22236_v3  ;;  %v20907_v7 = vld [vmem:[#allocation5 + $0x31c8] ss:$16 sps:$4 sm:$0xff]  }
 0x6b4   :  { %15212 = vmatprep.mubr.bf16.mxu1 %v22206_v48  ;;  %v20847_v48 = vld [vmem:[#allocation5 + $0x3088] ss:$16 sps:$4 sm:$0xff]  }
 0x6b5   :  { %15183 = vmatpush1.bf16.msra.mxu1 %v20829_v45  ;;  %v20910_v45 = vld [vmem:[#allocation5 + $0x35e0] ss:$16 sps:$4 sm:$0xff]  }
 0x6b6   :  { %13953 = vmatpush1.bf16.msra.mxu0 %v20826_v37  ;;  %15184 = vmatprep.subr.bf16.mxu1 %v20837_v54  ;;  %v20915_v37 = vld [vmem:[#allocation5 + $0x31ec] ss:$16 sps:$4 sm:$0xff]   ;;  %v20919_v54 = vld [vmem:[#allocation5 + $0x3604] ss:$16 sps:$4 sm:$0xff]  }
 0x6b7   :  { %13954 = vmatprep.subr.bf16.mxu0 %v20834_v46  ;;  %v20913_v46 = vld [vmem:[#allocation5 + $0x31e8] ss:$16 sps:$4 sm:$0xff]  }
 0x6b9   :  { %15185 = vmatpush1.bf16.msra.mxu1 %v20835_v49  ;;  %v22244_v49 = vrot.slane %v22227_v26, %v21865_v50  ;;  %v20923_v26 = vld [vmem:[#allocation5 + $0x3620] ss:$16 sps:$4 sm:$0xff]  }
 0x6ba   :  { %13955 = vmatpush1.bf16.msra.mxu0 %v20832_v19  ;;  %15186 = vmatprep.subr.bf16.mxu1 %v20843_v1  ;;  %v20922_v19 = vld [vmem:[#allocation5 + $0x320c] ss:$16 sps:$4 sm:$0xff]   ;;  %v20920_v1 = vld [vmem:[#allocation5 + $0x3208] ss:$16 sps:$4 sm:$0xff]  }
 0x6bb   :  { %13956 = vmatprep.subr.bf16.mxu0 %v20840_v52  ;;  %v20917_v52 = vld [vmem:[#allocation5 + $0x3600] ss:$16 sps:$4 sm:$0xff]  }
 0x6bd   :  { %15187 = vmatpush1.bf16.msra.mxu1 %v20841_v16  ;;  %v20928_v16 = vld [vmem:[#allocation5 + $0x322c] ss:$16 sps:$4 sm:$0xff]  }
 0x6be   :  { %13957 = vmatpush1.bf16.msra.mxu0 %v20838_v53  ;;  %15188 = vmatprep.subr.bf16.mxu1 %v20849_v18  ;;  %v20925_v53 = vld [vmem:[#allocation5 + $0x3624] ss:$16 sps:$4 sm:$0xff]   ;;  %v20926_v18 = vld [vmem:[#allocation5 + $0x3228] ss:$16 sps:$4 sm:$0xff]  }
 0x6bf   :  { %13958 = vmatprep.subr.bf16.mxu0 %v20846_v12  ;;  %v22248_v12 = vcombine.high %v22236_v3, %v22236_v3 }
 0x6c1   :  { %15189 = vmatpush1.bf16.msra.mxu1 %v20847_v48  ;;  %v20934_v48 = vld [vmem:[#allocation5 + $0x324c] ss:$16 sps:$4 sm:$0xff]  }
 0x6c2   :  { %13959 = vmatpush1.bf16.msra.mxu0 %v20844_v56  ;;  %15190 = vmatprep.subr.bf16.mxu1 %v20855_v25  ;;  %v20931_v56 = vld [vmem:[#allocation5 + $0x3644] ss:$16 sps:$4 sm:$0xff]   ;;  %v20932_v25 = vld [vmem:[#allocation5 + $0x3248] ss:$16 sps:$4 sm:$0xff]  }
 0x6c3   :  { %13960 = vmatprep.subr.bf16.mxu0 %v20852_v28  ;;  %v20929_v28 = vld [vmem:[#allocation5 + $0x3640] ss:$16 sps:$4 sm:$0xff]  }
 0x6c5   :  { %15191 = vmatpush1.bf16.msra.mxu1 %v20853_v59  ;;  %v20935_v59 = vld [vmem:[#allocation5 + $0x3660] ss:$16 sps:$4 sm:$0xff]  }
 0x6c6   :  { %13961 = vmatpush1.bf16.msra.mxu0 %v20850_v22  ;;  %15192 = vmatprep.subr.bf16.mxu1 %v20861_v62  ;;  %v20937_v22 = vld [vmem:[#allocation5 + $0x3664] ss:$16 sps:$4 sm:$0xff]  }
 0x6c7   :  { %13962 = vmatprep.subr.bf16.mxu0 %v20858_v24  ;;  %v20938_v24 = vld [vmem:[#allocation5 + $0x3268] ss:$16 sps:$4 sm:$0xff]   ;;  %v20943_v62 = vld [vmem:[#allocation5 + $0x3684] ss:$16 sps:$4 sm:$0xff]  }
 0x6c9   :  { %15193 = vmatpush1.bf16.msra.mxu1 %v20859_v13  ;;  %v20941_v13 = vld [vmem:[#allocation5 + $0x3680] ss:$16 sps:$4 sm:$0xff]  }
 0x6ca   :  { %13963 = vmatpush1.bf16.msra.mxu0 %v20856_v61  ;;  %15194 = vmatprep.subr.bf16.mxu1 %v20867_v2  ;;  %v20946_v61 = vld [vmem:[#allocation5 + $0x328c] ss:$16 sps:$4 sm:$0xff]  }
 0x6cb   :  { %13964 = vmatprep.subr.bf16.mxu0 %v20864_v0  ;;  %v20949_v0 = vld [vmem:[#allocation5 + $0x36a4] ss:$16 sps:$4 sm:$0xff]   ;;  %v20952_v2 = vld [vmem:[#allocation5 + $0x32ac] ss:$16 sps:$4 sm:$0xff]  }
 0x6cd   :  { %15195 = vmatpush1.bf16.msra.mxu1 %v20865_v38  ;;  %v20950_v38 = vld [vmem:[#allocation5 + $0x32a8] ss:$16 sps:$4 sm:$0xff]  }
 0x6ce   :  { %13965 = vmatpush1.bf16.msra.mxu0 %v20862_v42  ;;  %15196 = vmatprep.subr.bf16.mxu1 %v20873_v9  ;;  %v20947_v42 = vld [vmem:[#allocation5 + $0x36a0] ss:$16 sps:$4 sm:$0xff]   ;;  %v20958_v9 = vld [vmem:[#allocation5 + $0x32cc] ss:$16 sps:$4 sm:$0xff]  }
 0x6cf   :  { %13966 = vmatprep.subr.bf16.mxu0 %v20870_v8  ;;  %v20955_v8 = vld [vmem:[#allocation5 + $0x36c4] ss:$16 sps:$4 sm:$0xff]  }
 0x6d1   :  { %15197 = vmatpush1.bf16.msra.mxu1 %v20871_v14  ;;  %v20956_v14 = vld [vmem:[#allocation5 + $0x32c8] ss:$16 sps:$4 sm:$0xff]  }
 0x6d2   :  { %13967 = vmatpush1.bf16.msra.mxu0 %v20868_v10  ;;  %15198 = vmatprep.subr.bf16.mxu1 %v20879_v15  ;;  %v20953_v10 = vld [vmem:[#allocation5 + $0x36c0] ss:$16 sps:$4 sm:$0xff]   ;;  %v20964_v15 = vld [vmem:[#allocation5 + $0x32ec] ss:$16 sps:$4 sm:$0xff]  }
 0x6d3   :  { %13968 = vmatprep.subr.bf16.mxu0 %v20876_v44  ;;  %v20961_v44 = vld [vmem:[#allocation5 + $0x36e4] ss:$16 sps:$4 sm:$0xff]  }
 0x6d5   :  { %15199 = vmatpush1.bf16.msra.mxu1 %v20877_v55  ;;  %v20962_v55 = vld [vmem:[#allocation5 + $0x32e8] ss:$16 sps:$4 sm:$0xff]  }
 0x6d6   :  { %13969 = vmatpush1.bf16.msra.mxu0 %v20874_v41  ;;  %15200 = vmatprep.subr.bf16.mxu1 %v20885_v20  ;;  %v20959_v41 = vld [vmem:[#allocation5 + $0x36e0] ss:$16 sps:$4 sm:$0xff]   ;;  %v20970_v20 = vld [vmem:[#allocation5 + $0x330c] ss:$16 sps:$4 sm:$0xff]  }
 0x6d7   :  { %13970 = vmatprep.subr.bf16.mxu0 %v20882_v23  ;;  %v20967_v23 = vld [vmem:[#allocation5 + $0x3704] ss:$16 sps:$4 sm:$0xff]  }
 0x6d9   :  { %15201 = vmatpush1.bf16.msra.mxu1 %v20883_v33  ;;  %v20968_v33 = vld [vmem:[#allocation5 + $0x3308] ss:$16 sps:$4 sm:$0xff]  }
 0x6da   :  { %13971 = vmatpush1.bf16.msra.mxu0 %v20880_v21  ;;  %15202 = vmatprep.subr.bf16.mxu1 %v20891_v31  ;;  %v20965_v21 = vld [vmem:[#allocation5 + $0x3700] ss:$16 sps:$4 sm:$0xff]   ;;  %v20976_v31 = vld [vmem:[#allocation5 + $0x332c] ss:$16 sps:$4 sm:$0xff]  }
 0x6db   :  { %13972 = vmatprep.subr.bf16.mxu0 %v20888_v51  ;;  %v20973_v51 = vld [vmem:[#allocation5 + $0x3724] ss:$16 sps:$4 sm:$0xff]  }
 0x6dd   :  { %15203 = vmatpush1.bf16.msra.mxu1 %v20889_v29  ;;  %v20974_v29 = vld [vmem:[#allocation5 + $0x3328] ss:$16 sps:$4 sm:$0xff]  }
 0x6de   :  { %13973 = vmatpush1.bf16.msra.mxu0 %v20886_v17  ;;  %15204 = vmatprep.subr.bf16.mxu1 %v20897_v11  ;;  %v20971_v17 = vld [vmem:[#allocation5 + $0x3720] ss:$16 sps:$4 sm:$0xff]   ;;  %v20982_v11 = vld [vmem:[#allocation5 + $0x334c] ss:$16 sps:$4 sm:$0xff]  }
 0x6df   :  { %13974 = vmatprep.subr.bf16.mxu0 %v20894_v30  ;;  %v20979_v30 = vld [vmem:[#allocation5 + $0x3744] ss:$16 sps:$4 sm:$0xff]  }
 0x6e1   :  { %15205 = vmatpush1.bf16.msra.mxu1 %v20895_v34  ;;  %v20980_v34 = vld [vmem:[#allocation5 + $0x3348] ss:$16 sps:$4 sm:$0xff]  }
 0x6e2   :  { %13975 = vmatpush1.bf16.msra.mxu0 %v20892_v36  ;;  %15206 = vmatprep.subr.bf16.mxu1 %v20903_v60  ;;  %v20977_v36 = vld [vmem:[#allocation5 + $0x3740] ss:$16 sps:$4 sm:$0xff]   ;;  %v20988_v60 = vld [vmem:[#allocation5 + $0x336c] ss:$16 sps:$4 sm:$0xff]  }
 0x6e3   :  { %13976 = vmatprep.subr.bf16.mxu0 %v20900_v35  ;;  %v20985_v35 = vld [vmem:[#allocation5 + $0x3764] ss:$16 sps:$4 sm:$0xff]  }
 0x6e5   :  { %15207 = vmatpush1.bf16.msra.mxu1 %v20901_v39  ;;  %v20986_v39 = vld [vmem:[#allocation5 + $0x3368] ss:$16 sps:$4 sm:$0xff]  }
 0x6e6   :  { %13977 = vmatpush1.bf16.msra.mxu0 %v20898_v32  ;;  %15208 = vmatprep.subr.bf16.mxu1 %v20909_v40  ;;  %v20983_v32 = vld [vmem:[#allocation5 + $0x3760] ss:$16 sps:$4 sm:$0xff]   ;;  %v20994_v40 = vld [vmem:[#allocation5 + $0x338c] ss:$16 sps:$4 sm:$0xff]  }
 0x6e7   :  { %13978 = vmatprep.subr.bf16.mxu0 %v20906_v63  ;;  %v20991_v63 = vld [vmem:[#allocation5 + $0x3784] ss:$16 sps:$4 sm:$0xff]  }
 0x6e9   :  { %15209 = vmatpush1.bf16.msra.mxu1 %v20907_v7  ;;  %v20992_v7 = vld [vmem:[#allocation5 + $0x3388] ss:$16 sps:$4 sm:$0xff]  }
 0x6ea   :  { %13979 = vmatpush1.bf16.msra.mxu0 %v20904_v47  ;;  %15210 = vmatprep.subr.bf16.mxu1 %v20915_v37  ;;  %v20989_v47 = vld [vmem:[#allocation5 + $0x3780] ss:$16 sps:$4 sm:$0xff]   ;;  %v21000_v37 = vld [vmem:[#allocation5 + $0x33ac] ss:$16 sps:$4 sm:$0xff]  }
 0x6eb   :  { %13980 = vmatprep.subr.bf16.mxu0 %v20912_v4  ;;  %v20997_v4 = vld [vmem:[#allocation5 + $0x37a4] ss:$16 sps:$4 sm:$0xff]  }
 0x6ed   :  { %15211 = vmatpush1.bf16.msra.mxu1 %v20913_v46  ;;  %v20998_v46 = vld [vmem:[#allocation5 + $0x33a8] ss:$16 sps:$4 sm:$0xff]  }
 0x6ee   :  { %13981 = vmatpush1.bf16.msra.mxu0 %v20910_v45  ;;  %15221 = vmatprep.subr.bf16.mxu1 %v20922_v19  ;;  %v20995_v45 = vld [vmem:[#allocation5 + $0x37a0] ss:$16 sps:$4 sm:$0xff]   ;;  %v21006_v19 = vld [vmem:[#allocation5 + $0x33cc] ss:$16 sps:$4 sm:$0xff]  }
 0x6ef   :  { %13991 = vmatprep.subr.bf16.mxu0 %v20919_v54  ;;  %v21003_v54 = vld [vmem:[#allocation5 + $0x37c4] ss:$16 sps:$4 sm:$0xff]  }
 0x6f0   :  { %15213 = vmatmul.mubr.bf16.vlgmr.msra.gmra.mrb[4].mxu1 %v22214_v27  ;;  %v20940_v27 = vld [vmem:[#allocation5 + $0x326c] ss:$16 sps:$4 sm:$0xff]  }
 0x6f1   :  { %13983 = vmatmul.mubr.bf16.vlgmr.msra.gmra.mrb[0].mxu0 %v22244_v49  ;;  %15222 = vmatpush1.bf16.msra.mxu1 %v20920_v1  ;;  %v21001_v1 = vld [vmem:[#allocation5 + $0x37c0] ss:$16 sps:$4 sm:$0xff]  }
 0x6f2   :  { %13992 = vmatpush1.bf16.msra.mxu0 %v20917_v52  ;;  %15223 = vmatprep.subr.bf16.mxu1 %v20928_v16  ;;  %v22254_v52 = vld [vmem:[#allocation3 + $0x38] sm:$0xff]  ;;  %v21009_v16 = vld [vmem:[#allocation5 + $0x37e4] ss:$16 sps:$4 sm:$0xff]  }
 0x6f3   :  { %13993 = vmatprep.subr.bf16.mxu0 %v20925_v53  ;;  %14023 = vmatprep.mubr.bf16.mxu0 %v22248_v12  ;;  %v21004_v53 = vld [vmem:[#allocation5 + $0x33c8] ss:$16 sps:$4 sm:$0xff]  }
 0x6f4   :  { %15253 = vmatprep.mubr.bf16.mxu1 %v22218_v58  ;;  %v20944_v58 = vld [vmem:[#allocation5 + $0x3288] ss:$16 sps:$4 sm:$0xff]  }
 0x6f5   :  { %15224 = vmatpush1.bf16.msra.mxu1 %v20926_v18  ;;  %v22258_v18 = vrot.slane %v22254_v52, %v21865_v50 }
 0x6f6   :  { %13994 = vmatpush1.bf16.msra.mxu0 %v20923_v26  ;;  %15225 = vmatprep.subr.bf16.mxu1 %v20934_v48  ;;  %v21012_v26 = vld [vmem:[#allocation5 + $0x33ec] ss:$16 sps:$4 sm:$0xff]   ;;  %v21010_v48 = vld [vmem:[#allocation5 + $0x33e8] ss:$16 sps:$4 sm:$0xff]  }
 0x6f7   :  { %13995 = vmatprep.subr.bf16.mxu0 %v20931_v56  ;;  %v21007_v56 = vld [vmem:[#allocation5 + $0x37e0] ss:$16 sps:$4 sm:$0xff]  }
 0x6f9   :  { %15226 = vmatpush1.bf16.msra.mxu1 %v20932_v25  ;;  %v21018_v25 = vld [vmem:[#allocation5 + $0x340c] ss:$16 sps:$4 sm:$0xff]  }
 0x6fa   :  { %13996 = vmatpush1.bf16.msra.mxu0 %v20929_v28  ;;  %15227 = vmatprep.subr.bf16.mxu1 %v20940_v27  ;;  %v21015_v28 = vld [vmem:[#allocation5 + $0x3804] ss:$16 sps:$4 sm:$0xff]   ;;  %v22264_v27 = vcombine.high %v22244_v49, %v22244_v49 }
 0x6fb   :  { %13997 = vmatprep.subr.bf16.mxu0 %v20937_v22  ;;  %v2546_v22 = vcombine.high %v22258_v18, %v22258_v18 }
 0x6fd   :  { %15228 = vmatpush1.bf16.msra.mxu1 %v20938_v24  ;;  %v21016_v24 = vld [vmem:[#allocation5 + $0x3408] ss:$16 sps:$4 sm:$0xff]  }
 0x6fe   :  { %13998 = vmatpush1.bf16.msra.mxu0 %v20935_v59  ;;  %15229 = vmatprep.subr.bf16.mxu1 %v20946_v61  ;;  %v21013_v59 = vld [vmem:[#allocation5 + $0x3800] ss:$16 sps:$4 sm:$0xff]   ;;  %v21024_v61 = vld [vmem:[#allocation5 + $0x342c] ss:$16 sps:$4 sm:$0xff]  }
 0x6ff   :  { %13999 = vmatprep.subr.bf16.mxu0 %v20943_v62  ;;  %v21021_v62 = vld [vmem:[#allocation5 + $0x3824] ss:$16 sps:$4 sm:$0xff]  }
 0x701   :  { %15230 = vmatpush1.bf16.msra.mxu1 %v20944_v58  ;;  %v21019_v58 = vld [vmem:[#allocation5 + $0x3820] ss:$16 sps:$4 sm:$0xff]  }
 0x702   :  { %14000 = vmatpush1.bf16.msra.mxu0 %v20941_v13  ;;  %15231 = vmatprep.subr.bf16.mxu1 %v20952_v2  ;;  %v22267_v13 = vrot.slane %v2546_v22, %v21865_v50  ;;  %v21027_v2 = vld [vmem:[#allocation5 + $0x3844] ss:$16 sps:$4 sm:$0xff]   ;;  %v21094_v22 = vld [vmem:[#allocation5 + $0x35a8] ss:$16 sps:$4 sm:$0xff]  }
 0x703   :  { %14001 = vmatprep.subr.bf16.mxu0 %v20949_v0  ;;  %v21022_v0 = vld [vmem:[#allocation5 + $0x3428] ss:$16 sps:$4 sm:$0xff]  }
 0x705   :  { %15232 = vmatpush1.bf16.msra.mxu1 %v20950_v38  ;;  %v21025_v38 = vld [vmem:[#allocation5 + $0x3840] ss:$16 sps:$4 sm:$0xff]  }
 0x706   :  { %14002 = vmatpush1.bf16.msra.mxu0 %v20947_v42  ;;  %15233 = vmatprep.subr.bf16.mxu1 %v20958_v9  ;;  %v21030_v42 = vld [vmem:[#allocation5 + $0x344c] ss:$16 sps:$4 sm:$0xff]   ;;  %v21033_v9 = vld [vmem:[#allocation5 + $0x3864] ss:$16 sps:$4 sm:$0xff]  }
 0x707   :  { %14003 = vmatprep.subr.bf16.mxu0 %v20955_v8  ;;  %v21028_v8 = vld [vmem:[#allocation5 + $0x3448] ss:$16 sps:$4 sm:$0xff]  }
 0x709   :  { %15234 = vmatpush1.bf16.msra.mxu1 %v20956_v14  ;;  %v21034_v14 = vld [vmem:[#allocation5 + $0x3468] ss:$16 sps:$4 sm:$0xff]  }
 0x70a   :  { %14004 = vmatpush1.bf16.msra.mxu0 %v20953_v10  ;;  %15235 = vmatprep.subr.bf16.mxu1 %v20964_v15  ;;  %v21031_v10 = vld [vmem:[#allocation5 + $0x3860] ss:$16 sps:$4 sm:$0xff]   ;;  %v21042_v15 = vld [vmem:[#allocation5 + $0x348c] ss:$16 sps:$4 sm:$0xff]  }
 0x70b   :  { %14005 = vmatprep.subr.bf16.mxu0 %v20961_v44  ;;  %v21039_v44 = vld [vmem:[#allocation5 + $0x3884] ss:$16 sps:$4 sm:$0xff]  }
 0x70d   :  { %15236 = vmatpush1.bf16.msra.mxu1 %v20962_v55  ;;  %v21045_v55 = vld [vmem:[#allocation5 + $0x38a4] ss:$16 sps:$4 sm:$0xff]  }
 0x70e   :  { %14006 = vmatpush1.bf16.msra.mxu0 %v20959_v41  ;;  %15237 = vmatprep.subr.bf16.mxu1 %v20970_v20  ;;  %v21037_v41 = vld [vmem:[#allocation5 + $0x3880] ss:$16 sps:$4 sm:$0xff]  }
 0x70f   :  { %14007 = vmatprep.subr.bf16.mxu0 %v20967_v23  ;;  %v21048_v23 = vld [vmem:[#allocation5 + $0x34ac] ss:$16 sps:$4 sm:$0xff]   ;;  %v21043_v20 = vld [vmem:[#allocation5 + $0x38a0] ss:$16 sps:$4 sm:$0xff]  }
 0x711   :  { %15238 = vmatpush1.bf16.msra.mxu1 %v20968_v33  ;;  %v21051_v33 = vld [vmem:[#allocation5 + $0x38c4] ss:$16 sps:$4 sm:$0xff]  }
 0x712   :  { %14008 = vmatpush1.bf16.msra.mxu0 %v20965_v21  ;;  %15239 = vmatprep.subr.bf16.mxu1 %v20976_v31  ;;  %v21046_v21 = vld [vmem:[#allocation5 + $0x34a8] ss:$16 sps:$4 sm:$0xff]   ;;  %v21049_v31 = vld [vmem:[#allocation5 + $0x38c0] ss:$16 sps:$4 sm:$0xff]  }
 0x713   :  { %14009 = vmatprep.subr.bf16.mxu0 %v20973_v51  ;;  %v21054_v51 = vld [vmem:[#allocation5 + $0x34cc] ss:$16 sps:$4 sm:$0xff]  }
 0x715   :  { %15240 = vmatpush1.bf16.msra.mxu1 %v20974_v29  ;;  %v21057_v29 = vld [vmem:[#allocation5 + $0x38e4] ss:$16 sps:$4 sm:$0xff]  }
 0x716   :  { %14010 = vmatpush1.bf16.msra.mxu0 %v20971_v17  ;;  %15241 = vmatprep.subr.bf16.mxu1 %v20982_v11  ;;  %v21052_v17 = vld [vmem:[#allocation5 + $0x34c8] ss:$16 sps:$4 sm:$0xff]   ;;  %v21055_v11 = vld [vmem:[#allocation5 + $0x38e0] ss:$16 sps:$4 sm:$0xff]  }
 0x717   :  { %14011 = vmatprep.subr.bf16.mxu0 %v20979_v30  ;;  %v21060_v30 = vld [vmem:[#allocation5 + $0x34ec] ss:$16 sps:$4 sm:$0xff]  }
 0x719   :  { %15242 = vmatpush1.bf16.msra.mxu1 %v20980_v34  ;;  %v21063_v34 = vld [vmem:[#allocation5 + $0x3904] ss:$16 sps:$4 sm:$0xff]  }
 0x71a   :  { %14012 = vmatpush1.bf16.msra.mxu0 %v20977_v36  ;;  %15243 = vmatprep.subr.bf16.mxu1 %v20988_v60  ;;  %v21058_v36 = vld [vmem:[#allocation5 + $0x34e8] ss:$16 sps:$4 sm:$0xff]   ;;  %v21061_v60 = vld [vmem:[#allocation5 + $0x3900] ss:$16 sps:$4 sm:$0xff]  }
 0x71b   :  { %14013 = vmatprep.subr.bf16.mxu0 %v20985_v35  ;;  %v21066_v35 = vld [vmem:[#allocation5 + $0x350c] ss:$16 sps:$4 sm:$0xff]  }
 0x71d   :  { %15244 = vmatpush1.bf16.msra.mxu1 %v20986_v39  ;;  %v21069_v39 = vld [vmem:[#allocation5 + $0x3924] ss:$16 sps:$4 sm:$0xff]  }
 0x71e   :  { %14014 = vmatpush1.bf16.msra.mxu0 %v20983_v32  ;;  %15245 = vmatprep.subr.bf16.mxu1 %v20994_v40  ;;  %v21064_v32 = vld [vmem:[#allocation5 + $0x3508] ss:$16 sps:$4 sm:$0xff]   ;;  %v21067_v40 = vld [vmem:[#allocation5 + $0x3920] ss:$16 sps:$4 sm:$0xff]  }
 0x71f   :  { %14015 = vmatprep.subr.bf16.mxu0 %v20991_v63  ;;  %v21072_v63 = vld [vmem:[#allocation5 + $0x352c] ss:$16 sps:$4 sm:$0xff]  }
 0x721   :  { %15246 = vmatpush1.bf16.msra.mxu1 %v20992_v7  ;;  %v21075_v7 = vld [vmem:[#allocation5 + $0x3944] ss:$16 sps:$4 sm:$0xff]  }
 0x722   :  { %14016 = vmatpush1.bf16.msra.mxu0 %v20989_v47  ;;  %15247 = vmatprep.subr.bf16.mxu1 %v21000_v37  ;;  %v21070_v47 = vld [vmem:[#allocation5 + $0x3528] ss:$16 sps:$4 sm:$0xff]   ;;  %v21073_v37 = vld [vmem:[#allocation5 + $0x3940] ss:$16 sps:$4 sm:$0xff]  }
 0x723   :  { %14017 = vmatprep.subr.bf16.mxu0 %v20997_v4  ;;  %v21078_v4 = vld [vmem:[#allocation5 + $0x354c] ss:$16 sps:$4 sm:$0xff]  }
 0x725   :  { %15248 = vmatpush1.bf16.msra.mxu1 %v20998_v46  ;;  %v21081_v46 = vld [vmem:[#allocation5 + $0x3964] ss:$16 sps:$4 sm:$0xff]  }
 0x726   :  { %14018 = vmatpush1.bf16.msra.mxu0 %v20995_v45  ;;  %15249 = vmatprep.subr.bf16.mxu1 %v21006_v19  ;;  %v21076_v45 = vld [vmem:[#allocation5 + $0x3548] ss:$16 sps:$4 sm:$0xff]   ;;  %v21079_v19 = vld [vmem:[#allocation5 + $0x3960] ss:$16 sps:$4 sm:$0xff]  }
 0x727   :  { %14019 = vmatprep.subr.bf16.mxu0 %v21003_v54  ;;  %v21084_v54 = vld [vmem:[#allocation5 + $0x356c] ss:$16 sps:$4 sm:$0xff]  }
 0x729   :  { %15250 = vmatpush1.bf16.msra.mxu1 %v21004_v53  ;;  %v21087_v53 = vld [vmem:[#allocation5 + $0x3984] ss:$16 sps:$4 sm:$0xff]  }
 0x72a   :  { %14020 = vmatpush1.bf16.msra.mxu0 %v21001_v1  ;;  %15251 = vmatprep.subr.bf16.mxu1 %v21012_v26  ;;  %v21082_v1 = vld [vmem:[#allocation5 + $0x3568] ss:$16 sps:$4 sm:$0xff]   ;;  %v21085_v26 = vld [vmem:[#allocation5 + $0x3980] ss:$16 sps:$4 sm:$0xff]  }
 0x72b   :  { %14021 = vmatprep.subr.bf16.mxu0 %v21009_v16  ;;  %v21090_v16 = vld [vmem:[#allocation5 + $0x358c] ss:$16 sps:$4 sm:$0xff]  }
 0x72d   :  { %15252 = vmatpush1.bf16.msra.mxu1 %v21010_v48  ;;  %v21093_v48 = vld [vmem:[#allocation5 + $0x39a4] ss:$16 sps:$4 sm:$0xff]  }
 0x72e   :  { %14022 = vmatpush1.bf16.msra.mxu0 %v21007_v56  ;;  %15262 = vmatprep.subr.bf16.mxu1 %v21018_v25  ;;  %v21088_v56 = vld [vmem:[#allocation5 + $0x3588] ss:$16 sps:$4 sm:$0xff]   ;;  %v21091_v25 = vld [vmem:[#allocation5 + $0x39a0] ss:$16 sps:$4 sm:$0xff]  }
 0x72f   :  { %14032 = vmatprep.subr.bf16.mxu0 %v21015_v28  ;;  %v21096_v28 = vld [vmem:[#allocation5 + $0x35ac] ss:$16 sps:$4 sm:$0xff]  }
 0x730   :  { %15254 = vmatmul.mubr.bf16.vlgmr.msra.gmra.mrb[4].mxu1 %v22233_v57  ;;  %v21036_v57 = vld [vmem:[#allocation5 + $0x346c] ss:$16 sps:$4 sm:$0xff]  }
 0x731   :  { %14024 = vmatmul.mubr.bf16.vlgmr.msra.gmra.mrb[0].mxu0 %v22264_v27  ;;  %15263 = vmatpush1.bf16.msra.mxu1 %v21016_v24  ;;  %v21102_v24 = vld [vmem:[#allocation5 + $0x35cc] ss:$16 sps:$4 sm:$0xff]  }
 0x732   :  { %14033 = vmatpush1.bf16.msra.mxu0 %v21013_v59  ;;  %15264 = vmatprep.subr.bf16.mxu1 %v21024_v61  ;;  %v21099_v59 = vld [vmem:[#allocation5 + $0x39c4] ss:$16 sps:$4 sm:$0xff]   ;;  %v21100_v61 = vld [vmem:[#allocation5 + $0x35c8] ss:$16 sps:$4 sm:$0xff]  }
 0x733   :  { %14034 = vmatprep.subr.bf16.mxu0 %v21021_v62  ;;  %14064 = vmatprep.mubr.bf16.mxu0 %v22267_v13  ;;  %v21097_v62 = vld [vmem:[#allocation5 + $0x39c0] ss:$16 sps:$4 sm:$0xff]  }
 0x734   :  { %15294 = vmatprep.mubr.bf16.mxu1 %v22236_v3  ;;  %v21040_v3 = vld [vmem:[#allocation5 + $0x3488] ss:$16 sps:$4 sm:$0xff]  }
 0x735   :  { %15265 = vmatpush1.bf16.msra.mxu1 %v21022_v0  ;;  %v21108_v0 = vld [vmem:[#allocation5 + $0x35ec] ss:$16 sps:$4 sm:$0xff]  }
 0x736   :  { %14035 = vmatpush1.bf16.msra.mxu0 %v21019_v58  ;;  %15266 = vmatprep.subr.bf16.mxu1 %v21030_v42  ;;  %v21105_v58 = vld [vmem:[#allocation5 + $0x39e4] ss:$16 sps:$4 sm:$0xff]   ;;  %v21106_v42 = vld [vmem:[#allocation5 + $0x35e8] ss:$16 sps:$4 sm:$0xff]  }
 0x737   :  { %14036 = vmatprep.subr.bf16.mxu0 %v21027_v2  ;;  %v21103_v2 = vld [vmem:[#allocation5 + $0x39e0] ss:$16 sps:$4 sm:$0xff]  }
 0x739   :  { %15267 = vmatpush1.bf16.msra.mxu1 %v21028_v8  ;;  %v21114_v8 = vld [vmem:[#allocation5 + $0x360c] ss:$16 sps:$4 sm:$0xff]  }
 0x73a   :  { %14037 = vmatpush1.bf16.msra.mxu0 %v21025_v38  ;;  %15268 = vmatprep.subr.bf16.mxu1 %v21036_v57  ;;  %v21111_v38 = vld [vmem:[#allocation5 + $0x3a04] ss:$16 sps:$4 sm:$0xff]   ;;  %v21109_v57 = vld [vmem:[#allocation5 + $0x3a00] ss:$16 sps:$4 sm:$0xff]  }
 0x73b   :  { %14038 = vmatprep.subr.bf16.mxu0 %v21033_v9  ;;  %v22275_v9 = vrot.slane %v22258_v18, %v21865_v50  ;;  %v21115_v18 = vld [vmem:[#allocation5 + $0x3a20] ss:$16 sps:$4 sm:$0xff]  }
 0x73d   :  { %15269 = vmatpush1.bf16.msra.mxu1 %v21034_v14  ;;  %v21117_v14 = vld [vmem:[#allocation5 + $0x3a24] ss:$16 sps:$4 sm:$0xff]  }
 0x73e   :  { %14039 = vmatpush1.bf16.msra.mxu0 %v21031_v10  ;;  %15270 = vmatprep.subr.bf16.mxu1 %v21042_v15  ;;  %v21112_v10 = vld [vmem:[#allocation5 + $0x3608] ss:$16 sps:$4 sm:$0xff]   ;;  %v22279_v15 = vcombine.high %v22267_v13, %v22267_v13 }
 0x73f   :  { %14040 = vmatprep.subr.bf16.mxu0 %v21039_v44  ;;  %v21120_v44 = vld [vmem:[#allocation5 + $0x362c] ss:$16 sps:$4 sm:$0xff]  }
 0x741   :  { %15271 = vmatpush1.bf16.msra.mxu1 %v21040_v3  ;;  %v21123_v3 = vld [vmem:[#allocation5 + $0x3a44] ss:$16 sps:$4 sm:$0xff]  }
 0x742   :  { %14041 = vmatpush1.bf16.msra.mxu0 %v21037_v41  ;;  %15272 = vmatprep.subr.bf16.mxu1 %v21048_v23  ;;  %v21118_v41 = vld [vmem:[#allocation5 + $0x3628] ss:$16 sps:$4 sm:$0xff]   ;;  %v21121_v23 = vld [vmem:[#allocation5 + $0x3a40] ss:$16 sps:$4 sm:$0xff]  }
 0x743   :  { %14042 = vmatprep.subr.bf16.mxu0 %v21045_v55  ;;  %v21126_v55 = vld [vmem:[#allocation5 + $0x364c] ss:$16 sps:$4 sm:$0xff]  }
 0x745   :  { %15273 = vmatpush1.bf16.msra.mxu1 %v21046_v21  ;;  %v21129_v21 = vld [vmem:[#allocation5 + $0x3a64] ss:$16 sps:$4 sm:$0xff]  }
 0x746   :  { %14043 = vmatpush1.bf16.msra.mxu0 %v21043_v20  ;;  %15274 = vmatprep.subr.bf16.mxu1 %v21054_v51  ;;  %v21124_v20 = vld [vmem:[#allocation5 + $0x3648] ss:$16 sps:$4 sm:$0xff]  }
 0x747   :  { %14044 = vmatprep.subr.bf16.mxu0 %v21051_v33  ;;  %v21127_v33 = vld [vmem:[#allocation5 + $0x3a60] ss:$16 sps:$4 sm:$0xff]   ;;  %v21130_v51 = vld [vmem:[#allocation5 + $0x3668] ss:$16 sps:$4 sm:$0xff]  }
 0x749   :  { %15275 = vmatpush1.bf16.msra.mxu1 %v21052_v17  ;;  %v21138_v17 = vld [vmem:[#allocation5 + $0x368c] ss:$16 sps:$4 sm:$0xff]  }
 0x74a   :  { %14045 = vmatpush1.bf16.msra.mxu0 %v21049_v31  ;;  %15276 = vmatprep.subr.bf16.mxu1 %v21060_v30  ;;  %v21135_v31 = vld [vmem:[#allocation5 + $0x3a84] ss:$16 sps:$4 sm:$0xff]  }
 0x74b   :  { %14046 = vmatprep.subr.bf16.mxu0 %v21057_v29  ;;  %v21133_v29 = vld [vmem:[#allocation5 + $0x3a80] ss:$16 sps:$4 sm:$0xff]   ;;  %v21141_v30 = vld [vmem:[#allocation5 + $0x3aa4] ss:$16 sps:$4 sm:$0xff]  }
 0x74d   :  { %15277 = vmatpush1.bf16.msra.mxu1 %v21058_v36  ;;  %v21139_v36 = vld [vmem:[#allocation5 + $0x3aa0] ss:$16 sps:$4 sm:$0xff]  }
 0x74e   :  { %14047 = vmatpush1.bf16.msra.mxu0 %v21055_v11  ;;  %15278 = vmatprep.subr.bf16.mxu1 %v21066_v35  ;;  %v21144_v11 = vld [vmem:[#allocation5 + $0x36ac] ss:$16 sps:$4 sm:$0xff]   ;;  %v21147_v35 = vld [vmem:[#allocation5 + $0x3ac4] ss:$16 sps:$4 sm:$0xff]  }
 0x74f   :  { %14048 = vmatprep.subr.bf16.mxu0 %v21063_v34  ;;  %v21142_v34 = vld [vmem:[#allocation5 + $0x36a8] ss:$16 sps:$4 sm:$0xff]  }
 0x751   :  { %15279 = vmatpush1.bf16.msra.mxu1 %v21064_v32  ;;  %v21145_v32 = vld [vmem:[#allocation5 + $0x3ac0] ss:$16 sps:$4 sm:$0xff]  }
 0x752   :  { %14049 = vmatpush1.bf16.msra.mxu0 %v21061_v60  ;;  %15280 = vmatprep.subr.bf16.mxu1 %v21072_v63  ;;  %v21150_v60 = vld [vmem:[#allocation5 + $0x36cc] ss:$16 sps:$4 sm:$0xff]   ;;  %v21153_v63 = vld [vmem:[#allocation5 + $0x3ae4] ss:$16 sps:$4 sm:$0xff]  }
 0x753   :  { %14050 = vmatprep.subr.bf16.mxu0 %v21069_v39  ;;  %v21148_v39 = vld [vmem:[#allocation5 + $0x36c8] ss:$16 sps:$4 sm:$0xff]  }
 0x755   :  { %15281 = vmatpush1.bf16.msra.mxu1 %v21070_v47  ;;  %v21151_v47 = vld [vmem:[#allocation5 + $0x3ae0] ss:$16 sps:$4 sm:$0xff]  }
 0x756   :  { %14051 = vmatpush1.bf16.msra.mxu0 %v21067_v40  ;;  %15282 = vmatprep.subr.bf16.mxu1 %v21078_v4  ;;  %v21156_v40 = vld [vmem:[#allocation5 + $0x36ec] ss:$16 sps:$4 sm:$0xff]   ;;  %v21159_v4 = vld [vmem:[#allocation5 + $0x3b04] ss:$16 sps:$4 sm:$0xff]  }
 0x757   :  { %14052 = vmatprep.subr.bf16.mxu0 %v21075_v7  ;;  %v21154_v7 = vld [vmem:[#allocation5 + $0x36e8] ss:$16 sps:$4 sm:$0xff]  }
 0x759   :  { %15283 = vmatpush1.bf16.msra.mxu1 %v21076_v45  ;;  %v21157_v45 = vld [vmem:[#allocation5 + $0x3b00] ss:$16 sps:$4 sm:$0xff]  }
 0x75a   :  { %14053 = vmatpush1.bf16.msra.mxu0 %v21073_v37  ;;  %15284 = vmatprep.subr.bf16.mxu1 %v21084_v54  ;;  %v21162_v37 = vld [vmem:[#allocation5 + $0x370c] ss:$16 sps:$4 sm:$0xff]   ;;  %v21165_v54 = vld [vmem:[#allocation5 + $0x3b24] ss:$16 sps:$4 sm:$0xff]  }
 0x75b   :  { %14054 = vmatprep.subr.bf16.mxu0 %v21081_v46  ;;  %v21160_v46 = vld [vmem:[#allocation5 + $0x3708] ss:$16 sps:$4 sm:$0xff]  }
 0x75d   :  { %15285 = vmatpush1.bf16.msra.mxu1 %v21082_v1  ;;  %v21163_v1 = vld [vmem:[#allocation5 + $0x3b20] ss:$16 sps:$4 sm:$0xff]  }
 0x75e   :  { %14055 = vmatpush1.bf16.msra.mxu0 %v21079_v19  ;;  %15286 = vmatprep.subr.bf16.mxu1 %v21090_v16  ;;  %v21168_v19 = vld [vmem:[#allocation5 + $0x372c] ss:$16 sps:$4 sm:$0xff]   ;;  %v21171_v16 = vld [vmem:[#allocation5 + $0x3b44] ss:$16 sps:$4 sm:$0xff]  }
 0x75f   :  { %14056 = vmatprep.subr.bf16.mxu0 %v21087_v53  ;;  %v21166_v53 = vld [vmem:[#allocation5 + $0x3728] ss:$16 sps:$4 sm:$0xff]  }
 0x761   :  { %15287 = vmatpush1.bf16.msra.mxu1 %v21088_v56  ;;  %v21169_v56 = vld [vmem:[#allocation5 + $0x3b40] ss:$16 sps:$4 sm:$0xff]  }
 0x762   :  { %14057 = vmatpush1.bf16.msra.mxu0 %v21085_v26  ;;  %15288 = vmatprep.subr.bf16.mxu1 %v21096_v28  ;;  %v21174_v26 = vld [vmem:[#allocation5 + $0x374c] ss:$16 sps:$4 sm:$0xff]   ;;  %v21177_v28 = vld [vmem:[#allocation5 + $0x3b64] ss:$16 sps:$4 sm:$0xff]  }
 0x763   :  { %14058 = vmatprep.subr.bf16.mxu0 %v21093_v48  ;;  %v21172_v48 = vld [vmem:[#allocation5 + $0x3748] ss:$16 sps:$4 sm:$0xff]  }
 0x765   :  { %15289 = vmatpush1.bf16.msra.mxu1 %v21094_v22  ;;  %v21175_v22 = vld [vmem:[#allocation5 + $0x3b60] ss:$16 sps:$4 sm:$0xff]  }
 0x766   :  { %14059 = vmatpush1.bf16.msra.mxu0 %v21091_v25  ;;  %15290 = vmatprep.subr.bf16.mxu1 %v21102_v24  ;;  %v21180_v25 = vld [vmem:[#allocation5 + $0x376c] ss:$16 sps:$4 sm:$0xff]   ;;  %v21183_v24 = vld [vmem:[#allocation5 + $0x3b84] ss:$16 sps:$4 sm:$0xff]  }
 0x767   :  { %14060 = vmatprep.subr.bf16.mxu0 %v21099_v59  ;;  %v21178_v59 = vld [vmem:[#allocation5 + $0x3768] ss:$16 sps:$4 sm:$0xff]  }
 0x769   :  { %15291 = vmatpush1.bf16.msra.mxu1 %v21100_v61  ;;  %v21181_v61 = vld [vmem:[#allocation5 + $0x3b80] ss:$16 sps:$4 sm:$0xff]  }
 0x76a   :  { %14061 = vmatpush1.bf16.msra.mxu0 %v21097_v62  ;;  %15292 = vmatprep.subr.bf16.mxu1 %v21108_v0  ;;  %v21186_v62 = vld [vmem:[#allocation5 + $0x378c] ss:$16 sps:$4 sm:$0xff]   ;;  %v21189_v0 = vld [vmem:[#allocation5 + $0x3ba4] ss:$16 sps:$4 sm:$0xff]  }
 0x76b   :  { %14062 = vmatprep.subr.bf16.mxu0 %v21105_v58  ;;  %v21184_v58 = vld [vmem:[#allocation5 + $0x3788] ss:$16 sps:$4 sm:$0xff]  }
 0x76d   :  { %15293 = vmatpush1.bf16.msra.mxu1 %v21106_v42  ;;  %v21187_v42 = vld [vmem:[#allocation5 + $0x3ba0] ss:$16 sps:$4 sm:$0xff]  }
 0x76e   :  { %14063 = vmatpush1.bf16.msra.mxu0 %v21103_v2  ;;  %15303 = vmatprep.subr.bf16.mxu1 %v21114_v8  ;;  %v21192_v2 = vld [vmem:[#allocation5 + $0x37ac] ss:$16 sps:$4 sm:$0xff]   ;;  %v21195_v8 = vld [vmem:[#allocation5 + $0x3bc4] ss:$16 sps:$4 sm:$0xff]  }
 0x76f   :  { %14073 = vmatprep.subr.bf16.mxu0 %v21111_v38  ;;  %v21190_v38 = vld [vmem:[#allocation5 + $0x37a8] ss:$16 sps:$4 sm:$0xff]  }
 0x770   :  { %15295 = vmatmul.mubr.bf16.vlgmr.msra.gmra.mrb[4].mxu1 %v22244_v49  ;;  %v21132_v49 = vld [vmem:[#allocation5 + $0x366c] ss:$16 sps:$4 sm:$0xff]  }
 0x771   :  { %14065 = vmatmul.mubr.bf16.vlgmr.msra.gmra.mrb[0].mxu0 %v22275_v9  ;;  %15304 = vmatpush1.bf16.msra.mxu1 %v21112_v10  ;;  %v2531_v10 = vcombine.high %v22254_v52, %v22254_v52 }
 0x772   :  { %14074 = vmatpush1.bf16.msra.mxu0 %v21109_v57  ;;  %15305 = vmatprep.subr.bf16.mxu1 %v21120_v44  ;;  %v21198_v57 = vld [vmem:[#allocation5 + $0x37cc] ss:$16 sps:$4 sm:$0xff]   ;;  %v21196_v44 = vld [vmem:[#allocation5 + $0x37c8] ss:$16 sps:$4 sm:$0xff]  }
 0x773   :  { %14075 = vmatprep.subr.bf16.mxu0 %v21117_v14  ;;  %14105 = vmatprep.mubr.bf16.mxu0 %v22279_v15  ;;  %v21193_v14 = vld [vmem:[#allocation5 + $0x3bc0] ss:$16 sps:$4 sm:$0xff]  }
 0x774   :  { %15335 = vmatprep.mubr.bf16.mxu1 %v22248_v12  ;;  %v21136_v12 = vld [vmem:[#allocation5 + $0x3688] ss:$16 sps:$4 sm:$0xff]  }
 0x775   :  { %15306 = vmatpush1.bf16.msra.mxu1 %v21118_v41  ;;  %v21204_v41 = vld [vmem:[#allocation5 + $0x37ec] ss:$16 sps:$4 sm:$0xff]  }
 0x776   :  { %14076 = vmatpush1.bf16.msra.mxu0 %v21115_v18  ;;  %15307 = vmatprep.subr.bf16.mxu1 %v21126_v55  ;;  %v21201_v18 = vld [vmem:[#allocation5 + $0x3be4] ss:$16 sps:$4 sm:$0xff]   ;;  %v21199_v55 = vld [vmem:[#allocation5 + $0x3be0] ss:$16 sps:$4 sm:$0xff]  }
 0x777   :  { %14077 = vmatprep.subr.bf16.mxu0 %v21123_v3  ;;  %v22288_v3 = vrot.slane %v2531_v10, %v21865_v50  ;;  %v21274_v10 = vld [vmem:[#allocation5 + $0x3968] ss:$16 sps:$4 sm:$0xff]  }
 0x779   :  { %15308 = vmatpush1.bf16.msra.mxu1 %v21124_v20  ;;  %v21207_v20 = vld [vmem:[#allocation5 + $0x3c04] ss:$16 sps:$4 sm:$0xff]   ;;  %v2547_v52 = vcombine.high %v22288_v3, %v22288_v3 }
 0x77a   :  { %14078 = vmatpush1.bf16.msra.mxu0 %v21121_v23  ;;  %15309 = vmatprep.subr.bf16.mxu1 %v21132_v49  ;;  %v21202_v23 = vld [vmem:[#allocation5 + $0x37e8] ss:$16 sps:$4 sm:$0xff]   ;;  %v22294_v49 = vcombine.high %v22275_v9, %v22275_v9 }
 0x77b   :  { %14079 = vmatprep.subr.bf16.mxu0 %v21129_v21  ;;  %v21210_v21 = vld [vmem:[#allocation5 + $0x380c] ss:$16 sps:$4 sm:$0xff]  }
 0x77d   :  { %15310 = vmatpush1.bf16.msra.mxu1 %v21130_v51  ;;  %v21208_v51 = vld [vmem:[#allocation5 + $0x3808] ss:$16 sps:$4 sm:$0xff]  }
 0x77e   :  { %14080 = vmatpush1.bf16.msra.mxu0 %v21127_v33  ;;  %15311 = vmatprep.subr.bf16.mxu1 %v21138_v17  ;;  %v21205_v33 = vld [vmem:[#allocation5 + $0x3c00] ss:$16 sps:$4 sm:$0xff]   ;;  %v21216_v17 = vld [vmem:[#allocation5 + $0x382c] ss:$16 sps:$4 sm:$0xff]  }
 0x77f   :  { %14081 = vmatprep.subr.bf16.mxu0 %v21135_v31  ;;  %v21213_v31 = vld [vmem:[#allocation5 + $0x3c24] ss:$16 sps:$4 sm:$0xff]  }
 0x781   :  { %15312 = vmatpush1.bf16.msra.mxu1 %v21136_v12  ;;  %v21211_v12 = vld [vmem:[#allocation5 + $0x3c20] ss:$16 sps:$4 sm:$0xff]  }
 0x782   :  { %14082 = vmatpush1.bf16.msra.mxu0 %v21133_v29  ;;  %15313 = vmatprep.subr.bf16.mxu1 %v21144_v11  ;;  %v22297_v29 = vrot.slane %v2547_v52, %v21865_v50  ;;  %v21219_v11 = vld [vmem:[#allocation5 + $0x3c44] ss:$16 sps:$4 sm:$0xff]  }
 0x783   :  { %14083 = vmatprep.subr.bf16.mxu0 %v21141_v30  ;;  %v21214_v30 = vld [vmem:[#allocation5 + $0x3828] ss:$16 sps:$4 sm:$0xff]   ;;  %v21291_v52 = vld [vmem:[#allocation5 + $0x3dc4] ss:$16 sps:$4 sm:$0xff]  }
 0x785   :  { %15314 = vmatpush1.bf16.msra.mxu1 %v21142_v34  ;;  %v21217_v34 = vld [vmem:[#allocation5 + $0x3c40] ss:$16 sps:$4 sm:$0xff]  }
 0x786   :  { %14084 = vmatpush1.bf16.msra.mxu0 %v21139_v36  ;;  %15315 = vmatprep.subr.bf16.mxu1 %v21150_v60  ;;  %v21222_v36 = vld [vmem:[#allocation5 + $0x384c] ss:$16 sps:$4 sm:$0xff]   ;;  %v21225_v60 = vld [vmem:[#allocation5 + $0x3c64] ss:$16 sps:$4 sm:$0xff]  }
 0x787   :  { %14085 = vmatprep.subr.bf16.mxu0 %v21147_v35  ;;  %v21220_v35 = vld [vmem:[#allocation5 + $0x3848] ss:$16 sps:$4 sm:$0xff]  }
 0x789   :  { %15316 = vmatpush1.bf16.msra.mxu1 %v21148_v39  ;;  %v21226_v39 = vld [vmem:[#allocation5 + $0x3868] ss:$16 sps:$4 sm:$0xff]  }
 0x78a   :  { %14086 = vmatpush1.bf16.msra.mxu0 %v21145_v32  ;;  %15317 = vmatprep.subr.bf16.mxu1 %v21156_v40  ;;  %v21223_v32 = vld [vmem:[#allocation5 + $0x3c60] ss:$16 sps:$4 sm:$0xff]   ;;  %v21234_v40 = vld [vmem:[#allocation5 + $0x388c] ss:$16 sps:$4 sm:$0xff]  }
 0x78b   :  { %14087 = vmatprep.subr.bf16.mxu0 %v21153_v63  ;;  %v21231_v63 = vld [vmem:[#allocation5 + $0x3c84] ss:$16 sps:$4 sm:$0xff]  }
 0x78d   :  { %15318 = vmatpush1.bf16.msra.mxu1 %v21154_v7  ;;  %v21237_v7 = vld [vmem:[#allocation5 + $0x3ca4] ss:$16 sps:$4 sm:$0xff]  }
 0x78e   :  { %14088 = vmatpush1.bf16.msra.mxu0 %v21151_v47  ;;  %15319 = vmatprep.subr.bf16.mxu1 %v21162_v37  ;;  %v21229_v47 = vld [vmem:[#allocation5 + $0x3c80] ss:$16 sps:$4 sm:$0xff]  }
 0x78f   :  { %14089 = vmatprep.subr.bf16.mxu0 %v21159_v4  ;;  %v21240_v4 = vld [vmem:[#allocation5 + $0x38ac] ss:$16 sps:$4 sm:$0xff]   ;;  %v21235_v37 = vld [vmem:[#allocation5 + $0x3ca0] ss:$16 sps:$4 sm:$0xff]  }
 0x791   :  { %15320 = vmatpush1.bf16.msra.mxu1 %v21160_v46  ;;  %v21243_v46 = vld [vmem:[#allocation5 + $0x3cc4] ss:$16 sps:$4 sm:$0xff]  }
 0x792   :  { %14090 = vmatpush1.bf16.msra.mxu0 %v21157_v45  ;;  %15321 = vmatprep.subr.bf16.mxu1 %v21168_v19  ;;  %v21238_v45 = vld [vmem:[#allocation5 + $0x38a8] ss:$16 sps:$4 sm:$0xff]   ;;  %v21241_v19 = vld [vmem:[#allocation5 + $0x3cc0] ss:$16 sps:$4 sm:$0xff]  }
 0x793   :  { %14091 = vmatprep.subr.bf16.mxu0 %v21165_v54  ;;  %v21246_v54 = vld [vmem:[#allocation5 + $0x38cc] ss:$16 sps:$4 sm:$0xff]  }
 0x795   :  { %15322 = vmatpush1.bf16.msra.mxu1 %v21166_v53  ;;  %v21249_v53 = vld [vmem:[#allocation5 + $0x3ce4] ss:$16 sps:$4 sm:$0xff]  }
 0x796   :  { %14092 = vmatpush1.bf16.msra.mxu0 %v21163_v1  ;;  %15323 = vmatprep.subr.bf16.mxu1 %v21174_v26  ;;  %v21244_v1 = vld [vmem:[#allocation5 + $0x38c8] ss:$16 sps:$4 sm:$0xff]   ;;  %v21247_v26 = vld [vmem:[#allocation5 + $0x3ce0] ss:$16 sps:$4 sm:$0xff]  }
 0x797   :  { %14093 = vmatprep.subr.bf16.mxu0 %v21171_v16  ;;  %v21252_v16 = vld [vmem:[#allocation5 + $0x38ec] ss:$16 sps:$4 sm:$0xff]  }
 0x799   :  { %15324 = vmatpush1.bf16.msra.mxu1 %v21172_v48  ;;  %v21255_v48 = vld [vmem:[#allocation5 + $0x3d04] ss:$16 sps:$4 sm:$0xff]  }
 0x79a   :  { %14094 = vmatpush1.bf16.msra.mxu0 %v21169_v56  ;;  %15325 = vmatprep.subr.bf16.mxu1 %v21180_v25  ;;  %v21250_v56 = vld [vmem:[#allocation5 + $0x38e8] ss:$16 sps:$4 sm:$0xff]   ;;  %v21253_v25 = vld [vmem:[#allocation5 + $0x3d00] ss:$16 sps:$4 sm:$0xff]  }
 0x79b   :  { %14095 = vmatprep.subr.bf16.mxu0 %v21177_v28  ;;  %v21258_v28 = vld [vmem:[#allocation5 + $0x390c] ss:$16 sps:$4 sm:$0xff]  }
 0x79d   :  { %15326 = vmatpush1.bf16.msra.mxu1 %v21178_v59  ;;  %v21261_v59 = vld [vmem:[#allocation5 + $0x3d24] ss:$16 sps:$4 sm:$0xff]  }
 0x79e   :  { %14096 = vmatpush1.bf16.msra.mxu0 %v21175_v22  ;;  %15327 = vmatprep.subr.bf16.mxu1 %v21186_v62  ;;  %v21256_v22 = vld [vmem:[#allocation5 + $0x3908] ss:$16 sps:$4 sm:$0xff]   ;;  %v21259_v62 = vld [vmem:[#allocation5 + $0x3d20] ss:$16 sps:$4 sm:$0xff]  }
 0x79f   :  { %14097 = vmatprep.subr.bf16.mxu0 %v21183_v24  ;;  %v21264_v24 = vld [vmem:[#allocation5 + $0x392c] ss:$16 sps:$4 sm:$0xff]  }
 0x7a1   :  { %15328 = vmatpush1.bf16.msra.mxu1 %v21184_v58  ;;  %v21267_v58 = vld [vmem:[#allocation5 + $0x3d44] ss:$16 sps:$4 sm:$0xff]  }
 0x7a2   :  { %14098 = vmatpush1.bf16.msra.mxu0 %v21181_v61  ;;  %15329 = vmatprep.subr.bf16.mxu1 %v21192_v2  ;;  %v21262_v61 = vld [vmem:[#allocation5 + $0x3928] ss:$16 sps:$4 sm:$0xff]   ;;  %v21265_v2 = vld [vmem:[#allocation5 + $0x3d40] ss:$16 sps:$4 sm:$0xff]  }
 0x7a3   :  { %14099 = vmatprep.subr.bf16.mxu0 %v21189_v0  ;;  %v21270_v0 = vld [vmem:[#allocation5 + $0x394c] ss:$16 sps:$4 sm:$0xff]  }
 0x7a5   :  { %15330 = vmatpush1.bf16.msra.mxu1 %v21190_v38  ;;  %v21273_v38 = vld [vmem:[#allocation5 + $0x3d64] ss:$16 sps:$4 sm:$0xff]  }
 0x7a6   :  { %14100 = vmatpush1.bf16.msra.mxu0 %v21187_v42  ;;  %15331 = vmatprep.subr.bf16.mxu1 %v21198_v57  ;;  %v21268_v42 = vld [vmem:[#allocation5 + $0x3948] ss:$16 sps:$4 sm:$0xff]   ;;  %v21271_v57 = vld [vmem:[#allocation5 + $0x3d60] ss:$16 sps:$4 sm:$0xff]  }
 0x7a7   :  { %14101 = vmatprep.subr.bf16.mxu0 %v21195_v8  ;;  %v21276_v8 = vld [vmem:[#allocation5 + $0x396c] ss:$16 sps:$4 sm:$0xff]  }
 0x7a9   :  { %15332 = vmatpush1.bf16.msra.mxu1 %v21196_v44  ;;  %v21282_v44 = vld [vmem:[#allocation5 + $0x398c] ss:$16 sps:$4 sm:$0xff]  }
 0x7aa   :  { %14102 = vmatpush1.bf16.msra.mxu0 %v21193_v14  ;;  %15333 = vmatprep.subr.bf16.mxu1 %v21204_v41  ;;  %v21279_v14 = vld [vmem:[#allocation5 + $0x3d84] ss:$16 sps:$4 sm:$0xff]   ;;  %v21280_v41 = vld [vmem:[#allocation5 + $0x3988] ss:$16 sps:$4 sm:$0xff]  }
 0x7ab   :  { %14103 = vmatprep.subr.bf16.mxu0 %v21201_v18  ;;  %v21277_v18 = vld [vmem:[#allocation5 + $0x3d80] ss:$16 sps:$4 sm:$0xff]  }
 0x7ad   :  { %15334 = vmatpush1.bf16.msra.mxu1 %v21202_v23  ;;  %v21288_v23 = vld [vmem:[#allocation5 + $0x39ac] ss:$16 sps:$4 sm:$0xff]  }
 0x7ae   :  { %14104 = vmatpush1.bf16.msra.mxu0 %v21199_v55  ;;  %15344 = vmatprep.subr.bf16.mxu1 %v21210_v21  ;;  %v21285_v55 = vld [vmem:[#allocation5 + $0x3da4] ss:$16 sps:$4 sm:$0xff]   ;;  %v21286_v21 = vld [vmem:[#allocation5 + $0x39a8] ss:$16 sps:$4 sm:$0xff]  }
 0x7af   :  { %14114 = vmatprep.subr.bf16.mxu0 %v21207_v20  ;;  %v21283_v20 = vld [vmem:[#allocation5 + $0x3da0] ss:$16 sps:$4 sm:$0xff]  }
 0x7b0   :  { %15336 = vmatmul.mubr.bf16.vlgmr.msra.gmra.mrb[4].mxu1 %v22264_v27  ;;  %v21228_v27 = vld [vmem:[#allocation5 + $0x386c] ss:$16 sps:$4 sm:$0xff]  }
 0x7b1   :  { %14106 = vmatmul.mubr.bf16.vlgmr.msra.gmra.mrb[0].mxu0 %v22294_v49  ;;  %15345 = vmatpush1.bf16.msra.mxu1 %v21208_v51  ;;  %v21289_v51 = vld [vmem:[#allocation5 + $0x3dc0] ss:$16 sps:$4 sm:$0xff]  }
 0x7b2   :  { %14115 = vmatpush1.bf16.msra.mxu0 %v21205_v33  ;;  %15346 = vmatprep.subr.bf16.mxu1 %v21216_v17  ;;  %v21294_v33 = vld [vmem:[#allocation5 + $0x39cc] ss:$16 sps:$4 sm:$0xff]   ;;  %v21297_v17 = vld [vmem:[#allocation5 + $0x3de4] ss:$16 sps:$4 sm:$0xff]  }
 0x7b3   :  { %14116 = vmatprep.subr.bf16.mxu0 %v21213_v31  ;;  %14146 = vmatprep.mubr.bf16.mxu0 %v22297_v29  ;;  %v21292_v31 = vld [vmem:[#allocation5 + $0x39c8] ss:$16 sps:$4 sm:$0xff]  }
 0x7b4   :  { %15376 = vmatprep.mubr.bf16.mxu1 %v22267_v13  ;;  %v21232_v13 = vld [vmem:[#allocation5 + $0x3888] ss:$16 sps:$4 sm:$0xff]  }
 0x7b5   :  { %15347 = vmatpush1.bf16.msra.mxu1 %v21214_v30  ;;  %v21295_v30 = vld [vmem:[#allocation5 + $0x3de0] ss:$16 sps:$4 sm:$0xff]  }
 0x7b6   :  { %14117 = vmatpush1.bf16.msra.mxu0 %v21211_v12  ;;  %15348 = vmatprep.subr.bf16.mxu1 %v21222_v36  ;;  %v21300_v12 = vld [vmem:[#allocation5 + $0x39ec] ss:$16 sps:$4 sm:$0xff]   ;;  %v21304_v36 = vld [vmem:[#allocation5 + $0x3e04] ss:$16 sps:$4 sm:$0xff]  }
 0x7b7   :  { %14118 = vmatprep.subr.bf16.mxu0 %v21219_v11  ;;  %v21298_v11 = vld [vmem:[#allocation5 + $0x39e8] ss:$16 sps:$4 sm:$0xff]  }
 0x7b9   :  { %15349 = vmatpush1.bf16.msra.mxu1 %v21220_v35  ;;  %v22305_v35 = vrot.slane %v22288_v3, %v21865_v50  ;;  %v21308_v50 = vld [vmem:[#allocation5 + $0x3e20] ss:$16 sps:$4 sm:$0xff]   ;;  %v21311_v3 = vld [vmem:[#allocation5 + $0x3a28] ss:$16 sps:$4 sm:$0xff]  }
 0x7ba   :  { %14119 = vmatpush1.bf16.msra.mxu0 %v21217_v34  ;;  %15350 = vmatprep.subr.bf16.mxu1 %v21228_v27  ;;  %v21307_v34 = vld [vmem:[#allocation5 + $0x3a0c] ss:$16 sps:$4 sm:$0xff]   ;;  %v21305_v27 = vld [vmem:[#allocation5 + $0x3a08] ss:$16 sps:$4 sm:$0xff]  }
 0x7bb   :  { %14120 = vmatprep.subr.bf16.mxu0 %v21225_v60  ;;  %v21302_v60 = vld [vmem:[#allocation5 + $0x3e00] ss:$16 sps:$4 sm:$0xff]  }
 0x7bd   :  { %15351 = vmatpush1.bf16.msra.mxu1 %v21226_v39  ;;  %v21313_v39 = vld [vmem:[#allocation5 + $0x3a2c] ss:$16 sps:$4 sm:$0xff]  }
 0x7be   :  { %14121 = vmatpush1.bf16.msra.mxu0 %v21223_v32  ;;  %15352 = vmatprep.subr.bf16.mxu1 %v21234_v40  ;;  %v21310_v32 = vld [vmem:[#allocation5 + $0x3e24] ss:$16 sps:$4 sm:$0xff]  }
 0x7bf   :  { %14122 = vmatprep.subr.bf16.mxu0 %v21231_v63  ;;  %v22309_v63 = vcombine.high %v22297_v29, %v22297_v29  ;;  %v21316_v40 = vld [vmem:[#allocation5 + $0x3e44] ss:$16 sps:$4 sm:$0xff]  }
 0x7c1   :  { %15353 = vmatpush1.bf16.msra.mxu1 %v21232_v13  ;;  %v21314_v13 = vld [vmem:[#allocation5 + $0x3e40] ss:$16 sps:$4 sm:$0xff]  }
 0x7c2   :  { %14123 = vmatpush1.bf16.msra.mxu0 %v21229_v47  ;;  %15354 = vmatprep.subr.bf16.mxu1 %v21240_v4  ;;  %v21319_v47 = vld [vmem:[#allocation5 + $0x3a4c] ss:$16 sps:$4 sm:$0xff]   ;;  %v21322_v4 = vld [vmem:[#allocation5 + $0x3e64] ss:$16 sps:$4 sm:$0xff]  }
 0x7c3   :  { %14124 = vmatprep.subr.bf16.mxu0 %v21237_v7  ;;  %v21317_v7 = vld [vmem:[#allocation5 + $0x3a48] ss:$16 sps:$4 sm:$0xff]  }
 0x7c5   :  { %15355 = vmatpush1.bf16.msra.mxu1 %v21238_v45  ;;  %v21323_v45 = vld [vmem:[#allocation5 + $0x3a68] ss:$16 sps:$4 sm:$0xff]  }
 0x7c6   :  { %14125 = vmatpush1.bf16.msra.mxu0 %v21235_v37  ;;  %15356 = vmatprep.subr.bf16.mxu1 %v21246_v54  ;;  %v21320_v37 = vld [vmem:[#allocation5 + $0x3e60] ss:$16 sps:$4 sm:$0xff]   ;;  %v21331_v54 = vld [vmem:[#allocation5 + $0x3a8c] ss:$16 sps:$4 sm:$0xff]  }
 0x7c7   :  { %14126 = vmatprep.subr.bf16.mxu0 %v21243_v46  ;;  %v21328_v46 = vld [vmem:[#allocation5 + $0x3e84] ss:$16 sps:$4 sm:$0xff]  }
 0x7c9   :  { %15357 = vmatpush1.bf16.msra.mxu1 %v21244_v1  ;;  %v21334_v1 = vld [vmem:[#allocation5 + $0x3ea4] ss:$16 sps:$4 sm:$0xff]  }
 0x7ca   :  { %14127 = vmatpush1.bf16.msra.mxu0 %v21241_v19  ;;  %15358 = vmatprep.subr.bf16.mxu1 %v21252_v16  ;;  %v21326_v19 = vld [vmem:[#allocation5 + $0x3e80] ss:$16 sps:$4 sm:$0xff]  }
 0x7cb   :  { %14128 = vmatprep.subr.bf16.mxu0 %v21249_v53  ;;  %v21337_v53 = vld [vmem:[#allocation5 + $0x3aac] ss:$16 sps:$4 sm:$0xff]   ;;  %v21332_v16 = vld [vmem:[#allocation5 + $0x3ea0] ss:$16 sps:$4 sm:$0xff]  }
 0x7cd   :  { %15359 = vmatpush1.bf16.msra.mxu1 %v21250_v56  ;;  %v21340_v56 = vld [vmem:[#allocation5 + $0x3ec4] ss:$16 sps:$4 sm:$0xff]  }
 0x7ce   :  { %14129 = vmatpush1.bf16.msra.mxu0 %v21247_v26  ;;  %15360 = vmatprep.subr.bf16.mxu1 %v21258_v28  ;;  %v21335_v26 = vld [vmem:[#allocation5 + $0x3aa8] ss:$16 sps:$4 sm:$0xff]   ;;  %v21338_v28 = vld [vmem:[#allocation5 + $0x3ec0] ss:$16 sps:$4 sm:$0xff]  }
 0x7cf   :  { %14130 = vmatprep.subr.bf16.mxu0 %v21255_v48  ;;  %v21343_v48 = vld [vmem:[#allocation5 + $0x3acc] ss:$16 sps:$4 sm:$0xff]  }
 0x7d1   :  { %15361 = vmatpush1.bf16.msra.mxu1 %v21256_v22  ;;  %v21346_v22 = vld [vmem:[#allocation5 + $0x3ee4] ss:$16 sps:$4 sm:$0xff]  }
 0x7d2   :  { %14131 = vmatpush1.bf16.msra.mxu0 %v21253_v25  ;;  %15362 = vmatprep.subr.bf16.mxu1 %v21264_v24  ;;  %v21341_v25 = vld [vmem:[#allocation5 + $0x3ac8] ss:$16 sps:$4 sm:$0xff]   ;;  %v21344_v24 = vld [vmem:[#allocation5 + $0x3ee0] ss:$16 sps:$4 sm:$0xff]  }
 0x7d3   :  { %14132 = vmatprep.subr.bf16.mxu0 %v21261_v59  ;;  %v21349_v59 = vld [vmem:[#allocation5 + $0x3aec] ss:$16 sps:$4 sm:$0xff]  }
 0x7d5   :  { %15363 = vmatpush1.bf16.msra.mxu1 %v21262_v61  ;;  %v21352_v61 = vld [vmem:[#allocation5 + $0x3f04] ss:$16 sps:$4 sm:$0xff]  }
 0x7d6   :  { %14133 = vmatpush1.bf16.msra.mxu0 %v21259_v62  ;;  %15364 = vmatprep.subr.bf16.mxu1 %v21270_v0  ;;  %v21347_v62 = vld [vmem:[#allocation5 + $0x3ae8] ss:$16 sps:$4 sm:$0xff]   ;;  %v21350_v0 = vld [vmem:[#allocation5 + $0x3f00] ss:$16 sps:$4 sm:$0xff]  }
 0x7d7   :  { %14134 = vmatprep.subr.bf16.mxu0 %v21267_v58  ;;  %v21355_v58 = vld [vmem:[#allocation5 + $0x3b0c] ss:$16 sps:$4 sm:$0xff]  }
 0x7d9   :  { %15365 = vmatpush1.bf16.msra.mxu1 %v21268_v42  ;;  %v21358_v42 = vld [vmem:[#allocation5 + $0x3f24] ss:$16 sps:$4 sm:$0xff]  }
 0x7da   :  { %14135 = vmatpush1.bf16.msra.mxu0 %v21265_v2  ;;  %15366 = vmatprep.subr.bf16.mxu1 %v21276_v8  ;;  %v21353_v2 = vld [vmem:[#allocation5 + $0x3b08] ss:$16 sps:$4 sm:$0xff]   ;;  %v21356_v8 = vld [vmem:[#allocation5 + $0x3f20] ss:$16 sps:$4 sm:$0xff]  }
 0x7db   :  { %14136 = vmatprep.subr.bf16.mxu0 %v21273_v38  ;;  %v21361_v38 = vld [vmem:[#allocation5 + $0x3b2c] ss:$16 sps:$4 sm:$0xff]  }
 0x7dd   :  { %15367 = vmatpush1.bf16.msra.mxu1 %v21274_v10  ;;  %v21364_v10 = vld [vmem:[#allocation5 + $0x3f44] ss:$16 sps:$4 sm:$0xff]  }
 0x7de   :  { %14137 = vmatpush1.bf16.msra.mxu0 %v21271_v57  ;;  %15368 = vmatprep.subr.bf16.mxu1 %v21282_v44  ;;  %v21359_v57 = vld [vmem:[#allocation5 + $0x3b28] ss:$16 sps:$4 sm:$0xff]   ;;  %v21362_v44 = vld [vmem:[#allocation5 + $0x3f40] ss:$16 sps:$4 sm:$0xff]  }
 0x7df   :  { %14138 = vmatprep.subr.bf16.mxu0 %v21279_v14  ;;  %v21367_v14 = vld [vmem:[#allocation5 + $0x3b4c] ss:$16 sps:$4 sm:$0xff]  }
 0x7e1   :  { %15369 = vmatpush1.bf16.msra.mxu1 %v21280_v41  ;;  %v21370_v41 = vld [vmem:[#allocation5 + $0x3f64] ss:$16 sps:$4 sm:$0xff]  }
 0x7e2   :  { %14139 = vmatpush1.bf16.msra.mxu0 %v21277_v18  ;;  %15370 = vmatprep.subr.bf16.mxu1 %v21288_v23  ;;  %v21365_v18 = vld [vmem:[#allocation5 + $0x3b48] ss:$16 sps:$4 sm:$0xff]   ;;  %v21368_v23 = vld [vmem:[#allocation5 + $0x3f60] ss:$16 sps:$4 sm:$0xff]  }
 0x7e3   :  { %14140 = vmatprep.subr.bf16.mxu0 %v21285_v55  ;;  %v21373_v55 = vld [vmem:[#allocation5 + $0x3b6c] ss:$16 sps:$4 sm:$0xff]  }
 0x7e5   :  { %15371 = vmatpush1.bf16.msra.mxu1 %v21286_v21  ;;  %v21376_v21 = vld [vmem:[#allocation5 + $0x3f84] ss:$16 sps:$4 sm:$0xff]  }
 0x7e6   :  { %14141 = vmatpush1.bf16.msra.mxu0 %v21283_v20  ;;  %15372 = vmatprep.subr.bf16.mxu1 %v21294_v33  ;;  %v21371_v20 = vld [vmem:[#allocation5 + $0x3b68] ss:$16 sps:$4 sm:$0xff]   ;;  %v21374_v33 = vld [vmem:[#allocation5 + $0x3f80] ss:$16 sps:$4 sm:$0xff]  }
 0x7e7   :  { %14142 = vmatprep.subr.bf16.mxu0 %v21291_v52  ;;  %v21379_v52 = vld [vmem:[#allocation5 + $0x3b8c] ss:$16 sps:$4 sm:$0xff]  }
 0x7e9   :  { %15373 = vmatpush1.bf16.msra.mxu1 %v21292_v31  ;;  %v21382_v31 = vld [vmem:[#allocation5 + $0x3fa4] ss:$16 sps:$4 sm:$0xff]  }
 0x7ea   :  { %14143 = vmatpush1.bf16.msra.mxu0 %v21289_v51  ;;  %15374 = vmatprep.subr.bf16.mxu1 %v21300_v12  ;;  %v21377_v51 = vld [vmem:[#allocation5 + $0x3b88] ss:$16 sps:$4 sm:$0xff]   ;;  %v21380_v12 = vld [vmem:[#allocation5 + $0x3fa0] ss:$16 sps:$4 sm:$0xff]  }
 0x7eb   :  { %14144 = vmatprep.subr.bf16.mxu0 %v21297_v17  ;;  %v21385_v17 = vld [vmem:[#allocation5 + $0x3bac] ss:$16 sps:$4 sm:$0xff]  }
 0x7ed   :  { %15375 = vmatpush1.bf16.msra.mxu1 %v21298_v11  ;;  %v21388_v11 = vld [vmem:[#allocation5 + $0x3fc4] ss:$16 sps:$4 sm:$0xff]  }
 0x7ee   :  { %14145 = vmatpush1.bf16.msra.mxu0 %v21295_v30  ;;  %15385 = vmatprep.subr.bf16.mxu1 %v21307_v34  ;;  %v21383_v30 = vld [vmem:[#allocation5 + $0x3ba8] ss:$16 sps:$4 sm:$0xff]   ;;  %v21386_v34 = vld [vmem:[#allocation5 + $0x3fc0] ss:$16 sps:$4 sm:$0xff]  }
 0x7ef   :  { %14155 = vmatprep.subr.bf16.mxu0 %v21304_v36  ;;  %v21391_v36 = vld [vmem:[#allocation5 + $0x3bcc] ss:$16 sps:$4 sm:$0xff]  }
 0x7f0   :  { %15377 = vmatmul.mubr.bf16.vlgmr.msra.gmra.mrb[4].mxu1 %v22275_v9  ;;  %v21325_v9 = vld [vmem:[#allocation5 + $0x3a6c] ss:$16 sps:$4 sm:$0xff]  }
 0x7f1   :  { %14147 = vmatmul.mubr.bf16.vlgmr.msra.gmra.mrb[0].mxu0 %v22305_v35  ;;  %15386 = vmatpush1.bf16.msra.mxu1 %v21305_v27  ;;  %v21394_v27 = vld [vmem:[#allocation5 + $0x3fe4] ss:$16 sps:$4 sm:$0xff]  }
 0x7f2   :  { %14156 = vmatpush1.bf16.msra.mxu0 %v21302_v60  ;;  %15387 = vmatprep.subr.bf16.mxu1 %v21313_v39  ;;  %v21389_v60 = vld [vmem:[#allocation5 + $0x3bc8] ss:$16 sps:$4 sm:$0xff]   ;;  %v21392_v39 = vld [vmem:[#allocation5 + $0x3fe0] ss:$16 sps:$4 sm:$0xff]  }
 0x7f3   :  { %14157 = vmatprep.subr.bf16.mxu0 %v21310_v32  ;;  %14187 = vmatprep.mubr.bf16.mxu0 %v22309_v63  ;;  %v21397_v32 = vld [vmem:[#allocation5 + $0x3bec] ss:$16 sps:$4 sm:$0xff]  }
 0x7f4   :  { %15417 = vmatprep.mubr.bf16.mxu1 %v22279_v15  ;;  %v21329_v15 = vld [vmem:[#allocation5 + $0x3a88] ss:$16 sps:$4 sm:$0xff]  }
 0x7f5   :  { %15388 = vmatpush1.bf16.msra.mxu1 %v21311_v3  ;;  %v21400_v3 = vld [vmem:[#allocation5 + $0x3c0c] ss:$16 sps:$4 sm:$0xff]  }
 0x7f6   :  { %14158 = vmatpush1.bf16.msra.mxu0 %v21308_v50  ;;  %15389 = vmatprep.subr.bf16.mxu1 %v21319_v47  ;;  %v21395_v50 = vld [vmem:[#allocation5 + $0x3be8] ss:$16 sps:$4 sm:$0xff]  }
 0x7f7   :  { %14159 = vmatprep.subr.bf16.mxu0 %v21316_v40  ;;  %v22317_v40 = vcombine.high %v22305_v35, %v22305_v35  ;;  %v21398_v47 = vld [vmem:[#allocation5 + $0x3c08] ss:$16 sps:$4 sm:$0xff]  }
 0x7f9   :  { %15390 = vmatpush1.bf16.msra.mxu1 %v21317_v7  ;;  %v21494_v7 = vld [vmem:[#allocation8] ss:$8 sps:$4 sm:$0xff]  }
 0x7fa   :  { %14160 = vmatpush1.bf16.msra.mxu0 %v21314_v13  ;;  %15391 = vmatprep.subr.bf16.mxu1 %v21325_v9  ;;  %v21403_v13 = vld [vmem:[#allocation5 + $0x3c2c] ss:$16 sps:$4 sm:$0xff]   ;;  %v21401_v9 = vld [vmem:[#allocation5 + $0x3c28] ss:$16 sps:$4 sm:$0xff]  }
 0x7fb   :  { %14161 = vmatprep.subr.bf16.mxu0 %v21322_v4  ;;  %v21496_v4 = vld [vmem:[#allocation8 + $0x4] ss:$8 sps:$4 sm:$0xff]  }
 0x7fd   :  { %15392 = vmatpush1.bf16.msra.mxu1 %v21323_v45  ;;  %v21406_v45 = vld [vmem:[#allocation5 + $0x3c4c] ss:$16 sps:$4 sm:$0xff]  }
 0x7fe   :  { %14162 = vmatpush1.bf16.msra.mxu0 %v21320_v37  ;;  %15393 = vmatprep.subr.bf16.mxu1 %v21331_v54  ;;  %v21499_v37 = vld [vmem:[#allocation8 + $0x14] ss:$8 sps:$4 sm:$0xff]   ;;  %v21502_v54 = vld [vmem:[#allocation8 + $0x24] ss:$8 sps:$4 sm:$0xff]  }
 0x7ff   :  { %14163 = vmatprep.subr.bf16.mxu0 %v21328_v46  ;;  %v21497_v46 = vld [vmem:[#allocation8 + $0x10] ss:$8 sps:$4 sm:$0xff]  }
 0x801   :  { %15394 = vmatpush1.bf16.msra.mxu1 %v21329_v15  ;;  %v21409_v15 = vld [vmem:[#allocation5 + $0x3c6c] ss:$16 sps:$4 sm:$0xff]  }
 0x802   :  { %14164 = vmatpush1.bf16.msra.mxu0 %v21326_v19  ;;  %15395 = vmatprep.subr.bf16.mxu1 %v21337_v53  ;;  %v21404_v19 = vld [vmem:[#allocation5 + $0x3c48] ss:$16 sps:$4 sm:$0xff]  }
 0x803   :  { %14165 = vmatprep.subr.bf16.mxu0 %v21334_v1  ;;  %v21505_v1 = vld [vmem:[#allocation8 + $0x34] ss:$8 sps:$4 sm:$0xff]  }
 0x804   :  { %v21407_v53 = vld [vmem:[#allocation5 + $0x3c68] ss:$16 sps:$4 sm:$0xff]  }
 0x805   :  { %15396 = vmatpush1.bf16.msra.mxu1 %v21335_v26  ;;  %v21508_v26 = vld [vmem:[#allocation8 + $0x44] ss:$8 sps:$4 sm:$0xff]  }
 0x806   :  { %14166 = vmatpush1.bf16.msra.mxu0 %v21332_v16  ;;  %15397 = vmatprep.subr.bf16.mxu1 %v21343_v48  ;;  %v21503_v16 = vld [vmem:[#allocation8 + $0x30] ss:$8 sps:$4 sm:$0xff]  }
 0x807   :  { %14167 = vmatprep.subr.bf16.mxu0 %v21340_v56  ;;  %v21410_v56 = vld [vmem:[#allocation5 + $0x3c88] ss:$16 sps:$4 sm:$0xff]   ;;  %v21415_v48 = vld [vmem:[#allocation5 + $0x3cac] ss:$16 sps:$4 sm:$0xff]  }
 0x809   :  { %15398 = vmatpush1.bf16.msra.mxu1 %v21341_v25  ;;  %v21511_v25 = vld [vmem:[#allocation8 + $0x54] ss:$8 sps:$4 sm:$0xff]  }
 0x80a   :  { %14168 = vmatpush1.bf16.msra.mxu0 %v21338_v28  ;;  %15399 = vmatprep.subr.bf16.mxu1 %v21349_v59  ;;  %v21506_v28 = vld [vmem:[#allocation8 + $0x40] ss:$8 sps:$4 sm:$0xff]  }
 0x80b   :  { %14169 = vmatprep.subr.bf16.mxu0 %v21346_v22  ;;  %v21413_v22 = vld [vmem:[#allocation5 + $0x3ca8] ss:$16 sps:$4 sm:$0xff]   ;;  %v21418_v59 = vld [vmem:[#allocation5 + $0x3ccc] ss:$16 sps:$4 sm:$0xff]  }
 0x80d   :  { %15400 = vmatpush1.bf16.msra.mxu1 %v21347_v62  ;;  %v21514_v62 = vld [vmem:[#allocation8 + $0x64] ss:$8 sps:$4 sm:$0xff]  }
 0x80e   :  { %14170 = vmatpush1.bf16.msra.mxu0 %v21344_v24  ;;  %15401 = vmatprep.subr.bf16.mxu1 %v21355_v58  ;;  %v21509_v24 = vld [vmem:[#allocation8 + $0x50] ss:$8 sps:$4 sm:$0xff]  }
 0x80f   :  { %14171 = vmatprep.subr.bf16.mxu0 %v21352_v61  ;;  %v21416_v61 = vld [vmem:[#allocation5 + $0x3cc8] ss:$16 sps:$4 sm:$0xff]   ;;  %v21421_v58 = vld [vmem:[#allocation5 + $0x3cec] ss:$16 sps:$4 sm:$0xff]  }
 0x811   :  { %15402 = vmatpush1.bf16.msra.mxu1 %v21353_v2  ;;  %v21517_v2 = vld [vmem:[#allocation8 + $0x74] ss:$8 sps:$4 sm:$0xff]  }
 0x812   :  { %14172 = vmatpush1.bf16.msra.mxu0 %v21350_v0  ;;  %15403 = vmatprep.subr.bf16.mxu1 %v21361_v38  ;;  %v21512_v0 = vld [vmem:[#allocation8 + $0x60] ss:$8 sps:$4 sm:$0xff]  }
 0x813   :  { %14173 = vmatprep.subr.bf16.mxu0 %v21358_v42  ;;  %v21419_v42 = vld [vmem:[#allocation5 + $0x3ce8] ss:$16 sps:$4 sm:$0xff]   ;;  %v21424_v38 = vld [vmem:[#allocation5 + $0x3d0c] ss:$16 sps:$4 sm:$0xff]  }
 0x815   :  { %15404 = vmatpush1.bf16.msra.mxu1 %v21359_v57  ;;  %v21520_v57 = vld [vmem:[#allocation8 + $0x84] ss:$8 sps:$4 sm:$0xff]  }
 0x816   :  { %14174 = vmatpush1.bf16.msra.mxu0 %v21356_v8  ;;  %15405 = vmatprep.subr.bf16.mxu1 %v21367_v14  ;;  %v21515_v8 = vld [vmem:[#allocation8 + $0x70] ss:$8 sps:$4 sm:$0xff]  }
 0x817   :  { %14175 = vmatprep.subr.bf16.mxu0 %v21364_v10  ;;  %v21422_v10 = vld [vmem:[#allocation5 + $0x3d08] ss:$16 sps:$4 sm:$0xff]   ;;  %v21427_v14 = vld [vmem:[#allocation5 + $0x3d2c] ss:$16 sps:$4 sm:$0xff]  }
 0x819   :  { %15406 = vmatpush1.bf16.msra.mxu1 %v21365_v18  ;;  %v21523_v18 = vld [vmem:[#allocation8 + $0x94] ss:$8 sps:$4 sm:$0xff]  }
 0x81a   :  { %14176 = vmatpush1.bf16.msra.mxu0 %v21362_v44  ;;  %15407 = vmatprep.subr.bf16.mxu1 %v21373_v55  ;;  %v21518_v44 = vld [vmem:[#allocation8 + $0x80] ss:$8 sps:$4 sm:$0xff]  }
 0x81b   :  { %14177 = vmatprep.subr.bf16.mxu0 %v21370_v41  ;;  %v21425_v41 = vld [vmem:[#allocation5 + $0x3d28] ss:$16 sps:$4 sm:$0xff]   ;;  %v21430_v55 = vld [vmem:[#allocation5 + $0x3d4c] ss:$16 sps:$4 sm:$0xff]  }
 0x81d   :  { %15408 = vmatpush1.bf16.msra.mxu1 %v21371_v20  ;;  %v21526_v20 = vld [vmem:[#allocation8 + $0xa4] ss:$8 sps:$4 sm:$0xff]  }
 0x81e   :  { %14178 = vmatpush1.bf16.msra.mxu0 %v21368_v23  ;;  %15409 = vmatprep.subr.bf16.mxu1 %v21379_v52  ;;  %v21521_v23 = vld [vmem:[#allocation8 + $0x90] ss:$8 sps:$4 sm:$0xff]  }
 0x81f   :  { %14179 = vmatprep.subr.bf16.mxu0 %v21376_v21  ;;  %v21428_v21 = vld [vmem:[#allocation5 + $0x3d48] ss:$16 sps:$4 sm:$0xff]   ;;  %v21433_v52 = vld [vmem:[#allocation5 + $0x3d6c] ss:$16 sps:$4 sm:$0xff]  }
 0x821   :  { %15410 = vmatpush1.bf16.msra.mxu1 %v21377_v51  ;;  %v21529_v51 = vld [vmem:[#allocation8 + $0xb4] ss:$8 sps:$4 sm:$0xff]  }
 0x822   :  { %14180 = vmatpush1.bf16.msra.mxu0 %v21374_v33  ;;  %15411 = vmatprep.subr.bf16.mxu1 %v21385_v17  ;;  %v21524_v33 = vld [vmem:[#allocation8 + $0xa0] ss:$8 sps:$4 sm:$0xff]  }
 0x823   :  { %14181 = vmatprep.subr.bf16.mxu0 %v21382_v31  ;;  %v21431_v31 = vld [vmem:[#allocation5 + $0x3d68] ss:$16 sps:$4 sm:$0xff]   ;;  %v21436_v17 = vld [vmem:[#allocation5 + $0x3d8c] ss:$16 sps:$4 sm:$0xff]  }
 0x825   :  { %15412 = vmatpush1.bf16.msra.mxu1 %v21383_v30  ;;  %v21532_v30 = vld [vmem:[#allocation8 + $0xc4] ss:$8 sps:$4 sm:$0xff]  }
 0x826   :  { %14182 = vmatpush1.bf16.msra.mxu0 %v21380_v12  ;;  %15413 = vmatprep.subr.bf16.mxu1 %v21391_v36  ;;  %v21527_v12 = vld [vmem:[#allocation8 + $0xb0] ss:$8 sps:$4 sm:$0xff]  }
 0x827   :  { %14183 = vmatprep.subr.bf16.mxu0 %v21388_v11  ;;  %v21434_v11 = vld [vmem:[#allocation5 + $0x3d88] ss:$16 sps:$4 sm:$0xff]   ;;  %v21439_v36 = vld [vmem:[#allocation5 + $0x3dac] ss:$16 sps:$4 sm:$0xff]  }
 0x829   :  { %15414 = vmatpush1.bf16.msra.mxu1 %v21389_v60  ;;  %v21535_v60 = vld [vmem:[#allocation8 + $0xd4] ss:$8 sps:$4 sm:$0xff]  }
 0x82a   :  { %14184 = vmatpush1.bf16.msra.mxu0 %v21386_v34  ;;  %15415 = vmatprep.subr.bf16.mxu1 %v21397_v32  ;;  %v21530_v34 = vld [vmem:[#allocation8 + $0xc0] ss:$8 sps:$4 sm:$0xff]  }
 0x82b   :  { %14185 = vmatprep.subr.bf16.mxu0 %v21394_v27  ;;  %v21437_v27 = vld [vmem:[#allocation5 + $0x3da8] ss:$16 sps:$4 sm:$0xff]   ;;  %v21442_v32 = vld [vmem:[#allocation5 + $0x3dcc] ss:$16 sps:$4 sm:$0xff]  }
 0x82d   :  { %15416 = vmatpush1.bf16.msra.mxu1 %v21395_v50  ;;  %v21440_v50 = vld [vmem:[#allocation5 + $0x3dc8] ss:$16 sps:$4 sm:$0xff]  }
 0x82e   :  { %14186 = vmatpush1.bf16.msra.mxu0 %v21392_v39  ;;  %15426 = vmatprep.subr.bf16.mxu1 %v21400_v3  ;;  %v21533_v39 = vld [vmem:[#allocation8 + $0xd0] ss:$8 sps:$4 sm:$0xff]  }
 0x82f   :  { %15912 = vmatprep.subr.bf16.mxu0 %v21496_v4  ;;  %v21445_v3 = vld [vmem:[#allocation5 + $0x3dec] ss:$16 sps:$4 sm:$0xff]  }
 0x830   :  { %15418 = vmatmul.mubr.bf16.vlgmr.msra.gmra.mrb[4].mxu1 %v22294_v49  ;;  %v21500_v49 = vld [vmem:[#allocation8 + $0x20] ss:$8 sps:$4 sm:$0xff]  }
 0x831   :  { %14188 = vmatmul.mubr.bf16.vlgmr.msra.gmra.mrb[0].mxu0 %v22317_v40  ;;  %15427 = vmatpush1.bf16.msra.mxu1 %v21398_v47  ;;  %v21443_v47 = vld [vmem:[#allocation5 + $0x3de8] ss:$16 sps:$4 sm:$0xff]   ;;  %v21451_v4 = vld [vmem:[#allocation5 + $0x3e2c] ss:$16 sps:$4 sm:$0xff]  }
 0x832   :  { %15458 = vmatprep.mubr.bf16.mxu1 %v22297_v29  ;;  %15428 = vmatprep.subr.bf16.mxu1 %v21403_v13  ;;  %v21412_v29 = vld [vmem:[#allocation5 + $0x3c8c] ss:$16 sps:$4 sm:$0xff]  }
 0x833   :  { %15913 = vmatpush1.bf16.msra.mxu0 %v21494_v7  ;;  %v21448_v13 = vld [vmem:[#allocation5 + $0x3e0c] ss:$16 sps:$4 sm:$0xff]   ;;  %v21446_v7 = vld [vmem:[#allocation5 + $0x3e08] ss:$16 sps:$4 sm:$0xff]  }
 0x834   :  { %15914 = vmatprep.subr.bf16.mxu0 %v21499_v37  ;;  %v21454_v37 = vld [vmem:[#allocation5 + $0x3e4c] ss:$16 sps:$4 sm:$0xff]  }
 0x835   :  { %15429 = vmatpush1.bf16.msra.mxu1 %v21401_v9  ;;  %v21449_v9 = vld [vmem:[#allocation5 + $0x3e28] ss:$16 sps:$4 sm:$0xff]  }
 0x836   :  { %15430 = vmatprep.subr.bf16.mxu1 %v21406_v45  ;;  %v21452_v45 = vld [vmem:[#allocation5 + $0x3e48] ss:$16 sps:$4 sm:$0xff]  }
 0x837   :  { %15915 = vmatpush1.bf16.msra.mxu0 %v21497_v46  ;;  %v21457_v46 = vld [vmem:[#allocation5 + $0x3e6c] ss:$16 sps:$4 sm:$0xff]  }
 0x838   :  { %15916 = vmatprep.subr.bf16.mxu0 %v21502_v54  ;;  %v21455_v54 = vld [vmem:[#allocation5 + $0x3e68] ss:$16 sps:$4 sm:$0xff]  }
 0x839   :  { %15431 = vmatpush1.bf16.msra.mxu1 %v21404_v19  ;;  %v21460_v19 = vld [vmem:[#allocation5 + $0x3e8c] ss:$16 sps:$4 sm:$0xff]  }
 0x83a   :  { %15432 = vmatprep.subr.bf16.mxu1 %v21409_v15  ;;  %v21458_v15 = vld [vmem:[#allocation5 + $0x3e88] ss:$16 sps:$4 sm:$0xff]  }
 0x83b   :  { %15917 = vmatpush1.bf16.msra.mxu0 %v21500_v49  ;;  %v21463_v49 = vld [vmem:[#allocation5 + $0x3eac] ss:$16 sps:$4 sm:$0xff]  }
 0x83c   :  { %15918 = vmatprep.subr.bf16.mxu0 %v21505_v1  ;;  %v21466_v1 = vld [vmem:[#allocation5 + $0x3ecc] ss:$16 sps:$4 sm:$0xff]  }
 0x83d   :  { %15433 = vmatpush1.bf16.msra.mxu1 %v21407_v53  ;;  %v21538_v53 = vld [vmem:[#allocation8 + $0xe4] ss:$8 sps:$4 sm:$0xff]  }
 0x83e   :  { %15434 = vmatprep.subr.bf16.mxu1 %v21412_v29  ;;  %v21464_v29 = vld [vmem:[#allocation5 + $0x3ec8] ss:$16 sps:$4 sm:$0xff]  }
 0x83f   :  { %15919 = vmatpush1.bf16.msra.mxu0 %v21503_v16  ;;  %v21469_v16 = vld [vmem:[#allocation5 + $0x3eec] ss:$16 sps:$4 sm:$0xff]  }
 0x840   :  { %15920 = vmatprep.subr.bf16.mxu0 %v21508_v26  ;;  %v21541_v26 = vld [vmem:[#allocation8 + $0xf4] ss:$8 sps:$4 sm:$0xff]  }
 0x841   :  { %15435 = vmatpush1.bf16.msra.mxu1 %v21410_v56  ;;  %v21539_v56 = vld [vmem:[#allocation8 + $0xf0] ss:$8 sps:$4 sm:$0xff]  }
 0x842   :  { %15436 = vmatprep.subr.bf16.mxu1 %v21415_v48  ;;  %v21467_v48 = vld [vmem:[#allocation5 + $0x3ee8] ss:$16 sps:$4 sm:$0xff]  }
 0x843   :  { %15921 = vmatpush1.bf16.msra.mxu0 %v21506_v28  ;;  %v21472_v28 = vld [vmem:[#allocation5 + $0x3f0c] ss:$16 sps:$4 sm:$0xff]  }
 0x844   :  { %15922 = vmatprep.subr.bf16.mxu0 %v21511_v25  ;;  %v21544_v25 = vld [vmem:[#allocation8 + $0x104] ss:$8 sps:$4 sm:$0xff]  }
 0x845   :  { %15437 = vmatpush1.bf16.msra.mxu1 %v21413_v22  ;;  %v21470_v22 = vld [vmem:[#allocation5 + $0x3f08] ss:$16 sps:$4 sm:$0xff]  }
 0x846   :  { %15438 = vmatprep.subr.bf16.mxu1 %v21418_v59  ;;  %v21475_v59 = vld [vmem:[#allocation5 + $0x3f2c] ss:$16 sps:$4 sm:$0xff]  }
 0x847   :  { %15923 = vmatpush1.bf16.msra.mxu0 %v21509_v24  ;;  %v21473_v24 = vld [vmem:[#allocation5 + $0x3f28] ss:$16 sps:$4 sm:$0xff]  }
 0x848   :  { %15924 = vmatprep.subr.bf16.mxu0 %v21514_v62  ;;  %v21478_v62 = vld [vmem:[#allocation5 + $0x3f4c] ss:$16 sps:$4 sm:$0xff]  }
 0x849   :  { %15439 = vmatpush1.bf16.msra.mxu1 %v21416_v61  ;;  %v21476_v61 = vld [vmem:[#allocation5 + $0x3f48] ss:$16 sps:$4 sm:$0xff]  }
 0x84a   :  { %15440 = vmatprep.subr.bf16.mxu1 %v21421_v58  ;;  %v21481_v58 = vld [vmem:[#allocation5 + $0x3f6c] ss:$16 sps:$4 sm:$0xff]  }
 0x84b   :  { %15925 = vmatpush1.bf16.msra.mxu0 %v21512_v0  ;;  %v21479_v0 = vld [vmem:[#allocation5 + $0x3f68] ss:$16 sps:$4 sm:$0xff]  }
 0x84c   :  { %15926 = vmatprep.subr.bf16.mxu0 %v21517_v2  ;;  %v21484_v2 = vld [vmem:[#allocation5 + $0x3f8c] ss:$16 sps:$4 sm:$0xff]  }
 0x84d   :  { %15441 = vmatpush1.bf16.msra.mxu1 %v21419_v42  ;;  %v21482_v42 = vld [vmem:[#allocation5 + $0x3f88] ss:$16 sps:$4 sm:$0xff]  }
 0x84e   :  { %15442 = vmatprep.subr.bf16.mxu1 %v21424_v38  ;;  %v21487_v38 = vld [vmem:[#allocation5 + $0x3fac] ss:$16 sps:$4 sm:$0xff]  }
 0x84f   :  { %15927 = vmatpush1.bf16.msra.mxu0 %v21515_v8  ;;  %v21485_v8 = vld [vmem:[#allocation5 + $0x3fa8] ss:$16 sps:$4 sm:$0xff]  }
 0x850   :  { %15928 = vmatprep.subr.bf16.mxu0 %v21520_v57  ;;  %v21490_v57 = vld [vmem:[#allocation5 + $0x3fcc] ss:$16 sps:$4 sm:$0xff]  }
 0x851   :  { %15443 = vmatpush1.bf16.msra.mxu1 %v21422_v10  ;;  %v21488_v10 = vld [vmem:[#allocation5 + $0x3fc8] ss:$16 sps:$4 sm:$0xff]  }
 0x852   :  { %15444 = vmatprep.subr.bf16.mxu1 %v21427_v14  ;;  %v21493_v14 = vld [vmem:[#allocation5 + $0x3fec] ss:$16 sps:$4 sm:$0xff]  }
 0x853   :  { %15929 = vmatpush1.bf16.msra.mxu0 %v21518_v44  ;;  %v21491_v44 = vld [vmem:[#allocation5 + $0x3fe8] ss:$16 sps:$4 sm:$0xff]  }
 0x854   :  { %15930 = vmatprep.subr.bf16.mxu0 %v21523_v18  ;;  %v22326_v18 = vsub.s32 0, %v21862_v43 }
 0x855   :  { %15445 = vmatpush1.bf16.msra.mxu1 %v21425_v41  ;;  %v22328_v41 = vld [vmem:[#allocation7] sm:$0xf] }
 0x856   :  { %15446 = vmatprep.subr.bf16.mxu1 %v21430_v55  ;;  %v22331_v55 = vsub.s32 1, %v21862_v43 }
 0x857   :  { %15931 = vmatpush1.bf16.msra.mxu0 %v21521_v23  ;;  %v2163_v23 = vrot.slane %v22328_v41, %v22326_v18 }
 0x858   :  { %15932 = vmatprep.subr.bf16.mxu0 %v21526_v20  ;;  %v2167_v20 = vrot.slane %v22328_v41, %v22331_v55 }
 0x859   :  { %15447 = vmatpush1.bf16.msra.mxu1 %v21428_v21  ;;  %v12919_v21 = vadd.f32 %v21933_v5, %v2163_v23  ;;  %v21550_v5 = vld [vmem:[#allocation8 + $0x124] ss:$8 sps:$4 sm:$0xff]  }
 0x85a   :  { %15448 = vmatprep.subr.bf16.mxu1 %v21433_v52  ;;  %v12921_v52 = vadd.f32 %v21935_v6, %v2167_v20  ;;  %v21548_v6 = vld [vmem:[#allocation8 + $0x120] ss:$8 sps:$4 sm:$0xff]  }
 0x85b   :  { %15933 = vmatpush1.bf16.msra.mxu0 %v21524_v33  ;;  %v15996_v20 = vld [vmem:[#allocation11] sm:$0x3] }
 0x85c   :  { %15934 = vmatprep.subr.bf16.mxu0 %v21529_v51 }
 0x85d   :  { %15449 = vmatpush1.bf16.msra.mxu1 %v21431_v31 }
 0x85e   :  { %15450 = vmatprep.subr.bf16.mxu1 %v21436_v17 }
 0x85f   :  { %15935 = vmatpush1.bf16.msra.mxu0 %v21527_v12 }
 0x860   :  { %15936 = vmatprep.subr.bf16.mxu0 %v21532_v30 }
 0x861   :  { %15451 = vmatpush1.bf16.msra.mxu1 %v21434_v11 }
 0x862   :  { %15452 = vmatprep.subr.bf16.mxu1 %v21439_v36 }
 0x863   :  { %15937 = vmatpush1.bf16.msra.mxu0 %v21530_v34  ;;  %v21542_v34 = vld [vmem:[#allocation8 + $0x100] ss:$8 sps:$4 sm:$0xff]  }
 0x864   :  { %15938 = vmatprep.subr.bf16.mxu0 %v21535_v60 }
 0x865   :  { %15453 = vmatpush1.bf16.msra.mxu1 %v21437_v27  ;;  %v21547_v27 = vld [vmem:[#allocation8 + $0x114] ss:$8 sps:$4 sm:$0xff]  }
 0x866   :  { %15454 = vmatprep.subr.bf16.mxu1 %v21442_v32  ;;  %v21545_v32 = vld [vmem:[#allocation8 + $0x110] ss:$8 sps:$4 sm:$0xff]  }
 0x867   :  { %15939 = vmatpush1.bf16.msra.mxu0 %v21533_v39  ;;  %v21553_v39 = vld [vmem:[#allocation8 + $0x134] ss:$8 sps:$4 sm:$0xff]  }
 0x868   :  { %15940 = vmatprep.subr.bf16.mxu0 %v21538_v53  ;;  %v21575_v53 = vld [vmem:[#allocation8 + $0x1b0] ss:$8 sps:$4 sm:$0xff]  }
 0x869   :  { %15455 = vmatpush1.bf16.msra.mxu1 %v21440_v50  ;;  %v21551_v50 = vld [vmem:[#allocation8 + $0x130] ss:$8 sps:$4 sm:$0xff]  }
 0x86a   :  { %15456 = vmatprep.subr.bf16.mxu1 %v21445_v3  ;;  %v21556_v3 = vld [vmem:[#allocation8 + $0x144] ss:$8 sps:$4 sm:$0xff]  }
 0x86d   :  { %15457 = vmatpush1.bf16.msra.mxu1 %v21443_v47  ;;  %v21554_v47 = vld [vmem:[#allocation8 + $0x140] ss:$8 sps:$4 sm:$0xff]  }
 0x86e   :  { %15467 = vmatprep.subr.bf16.mxu1 %v21448_v13  ;;  %v21559_v13 = vld [vmem:[#allocation8 + $0x154] ss:$8 sps:$4 sm:$0xff]  }
 0x870   :  { %15459 = vmatmul.mubr.bf16.vlgmr.msra.gmra.mrb[4].mxu1 %v22305_v35  ;;  %v21461_v35 = vld [vmem:[#allocation5 + $0x3ea8] ss:$16 sps:$4 sm:$0xff]  }
 0x871   :  { %15468 = vmatpush1.bf16.msra.mxu1 %v21446_v7  ;;  %15499 = vmatprep.mubr.bf16.mxu1 %v22309_v63  ;;  %v21536_v63 = vld [vmem:[#allocation8 + $0xe0] ss:$8 sps:$4 sm:$0xff]   ;;  %v21557_v7 = vld [vmem:[#allocation8 + $0x150] ss:$8 sps:$4 sm:$0xff]  }
 0x872   :  { %15469 = vmatprep.subr.bf16.mxu1 %v21451_v4  ;;  %15941 = vmatpush1.bf16.msra.mxu0 %v21536_v63  ;;  %v21562_v4 = vld [vmem:[#allocation8 + $0x164] ss:$8 sps:$4 sm:$0xff]  }
 0x873   :  { %15942 = vmatprep.subr.bf16.mxu0 %v21541_v26  ;;  %v21580_v63 = vld [vmem:[#allocation8 + $0x1c4] ss:$8 sps:$4 sm:$0xff]   ;;  %v21581_v26 = vld [vmem:[#allocation8 + $0x1d0] ss:$8 sps:$4 sm:$0xff]  }
 0x875   :  { %15470 = vmatpush1.bf16.msra.mxu1 %v21449_v9  ;;  %v21560_v9 = vld [vmem:[#allocation8 + $0x160] ss:$8 sps:$4 sm:$0xff]  }
 0x876   :  { %15471 = vmatprep.subr.bf16.mxu1 %v21454_v37  ;;  %15943 = vmatpush1.bf16.msra.mxu0 %v21539_v56  ;;  %v21565_v37 = vld [vmem:[#allocation8 + $0x174] ss:$8 sps:$4 sm:$0xff]   ;;  %v21586_v56 = vld [vmem:[#allocation8 + $0x1e4] ss:$8 sps:$4 sm:$0xff]  }
 0x877   :  { %15953 = vmatprep.subr.bf16.mxu0 %v21544_v25  ;;  %v21587_v25 = vld [vmem:[#allocation8 + $0x1f0] ss:$8 sps:$4 sm:$0xff]  }
 0x879   :  { %15472 = vmatpush1.bf16.msra.mxu1 %v21452_v45  ;;  %v21563_v45 = vld [vmem:[#allocation8 + $0x170] ss:$8 sps:$4 sm:$0xff]  }
 0x87a   :  { %15473 = vmatprep.subr.bf16.mxu1 %v21457_v46  ;;  %v21568_v46 = vld [vmem:[#allocation8 + $0x184] ss:$8 sps:$4 sm:$0xff]  }
 0x87d   :  { %15474 = vmatpush1.bf16.msra.mxu1 %v21455_v54  ;;  %v21566_v54 = vld [vmem:[#allocation8 + $0x180] ss:$8 sps:$4 sm:$0xff]  }
 0x87e   :  { %15475 = vmatprep.subr.bf16.mxu1 %v21460_v19  ;;  %v21571_v19 = vld [vmem:[#allocation8 + $0x194] ss:$8 sps:$4 sm:$0xff]  }
 0x881   :  { %15476 = vmatpush1.bf16.msra.mxu1 %v21458_v15  ;;  %v21569_v15 = vld [vmem:[#allocation8 + $0x190] ss:$8 sps:$4 sm:$0xff]  }
 0x882   :  { %15477 = vmatprep.subr.bf16.mxu1 %v21463_v49  ;;  %v21574_v49 = vld [vmem:[#allocation8 + $0x1a4] ss:$8 sps:$4 sm:$0xff]  }
 0x885   :  { %15478 = vmatpush1.bf16.msra.mxu1 %v21461_v35  ;;  %v21572_v35 = vld [vmem:[#allocation8 + $0x1a0] ss:$8 sps:$4 sm:$0xff]  }
 0x886   :  { %15479 = vmatprep.subr.bf16.mxu1 %v21466_v1  ;;  %v21577_v1 = vld [vmem:[#allocation8 + $0x1b4] ss:$8 sps:$4 sm:$0xff]  }
 0x889   :  { %15480 = vmatpush1.bf16.msra.mxu1 %v21464_v29  ;;  %v21578_v29 = vld [vmem:[#allocation8 + $0x1c0] ss:$8 sps:$4 sm:$0xff]  }
 0x88a   :  { %15481 = vmatprep.subr.bf16.mxu1 %v21469_v16  ;;  %v21583_v16 = vld [vmem:[#allocation8 + $0x1d4] ss:$8 sps:$4 sm:$0xff]  }
 0x88d   :  { %15482 = vmatpush1.bf16.msra.mxu1 %v21467_v48  ;;  %v21584_v48 = vld [vmem:[#allocation8 + $0x1e0] ss:$8 sps:$4 sm:$0xff]  }
 0x88e   :  { %15483 = vmatprep.subr.bf16.mxu1 %v21472_v28  ;;  %v21589_v28 = vld [vmem:[#allocation8 + $0x1f4] ss:$8 sps:$4 sm:$0xff]  }
 0x891   :  { %15484 = vmatpush1.bf16.msra.mxu1 %v21470_v22  ;;  %v2170_v22 = vsub.s32 2, %v21862_v43 }
 0x892   :  { %15485 = vmatprep.subr.bf16.mxu1 %v21475_v59  ;;  %v2174_v59 = vsub.s32 3, %v21862_v43 }
 0x895   :  { %15486 = vmatpush1.bf16.msra.mxu1 %v21473_v24  ;;  %v2171_v24 = vrot.slane %v22328_v41, %v2170_v22 }
 0x896   :  { %15487 = vmatprep.subr.bf16.mxu1 %v21478_v62  ;;  %v2175_v62 = vrot.slane %v22328_v41, %v2174_v59 }
 0x899   :  { %15488 = vmatpush1.bf16.msra.mxu1 %v21476_v61 }
 0x89a   :  { %15489 = vmatprep.subr.bf16.mxu1 %v21481_v58 }
 0x89d   :  { %15490 = vmatpush1.bf16.msra.mxu1 %v21479_v0 }
 0x89e   :  { %15491 = vmatprep.subr.bf16.mxu1 %v21484_v2 }
 0x8a1   :  { %15492 = vmatpush1.bf16.msra.mxu1 %v21482_v42 }
 0x8a2   :  { %15493 = vmatprep.subr.bf16.mxu1 %v21487_v38 }
 0x8a5   :  { %15494 = vmatpush1.bf16.msra.mxu1 %v21485_v8 }
 0x8a6   :  { %15495 = vmatprep.subr.bf16.mxu1 %v21490_v57 }
 0x8a9   :  { %15496 = vmatpush1.bf16.msra.mxu1 %v21488_v10 }
 0x8aa   :  { %15497 = vmatprep.subr.bf16.mxu1 %v21493_v14 }
 0x8ad   :  { %15498 = vmatpush1.bf16.msra.mxu1 %v21491_v44  ;;  %v15580_v44 = vld [vmem:[#allocation10] sm:$0x3] }
 0x8ae   :  { %v15585_v23 = vrot.slane %v15580_v44, %v22326_v18  ;;  %v15589_v43 = vrot.slane %v15580_v44, %v22331_v55 }
 0x8b0   :  { %15500 = vmatmul.mubr.bf16.vlgmr.msra.gmra.mrb[4].mxu1 %v22317_v40 }
 0x904   :  { %v14189_v33 = vpop.f32.mrb[0].mxu0 }
 0x905   :  { %v18148_v40 = vadd.f32 %v14189_v33, %v12919_v21  ;;  %v14191_v51 = vpop.f32.mrb[1].mxu0  ;;  %v16001_v33 = vrot.slane %v15996_v20, %v22326_v18 }
 0x906   :  { %v18150_v31 = vadd.f32 %v14191_v51, %v12921_v52  ;;  %v14193_v17 = vpop.f32.mrb[2].mxu0 }
 0x907   :  { %v15508_v12 = vmax.f32 %v18148_v40, 0.0  ;;  %v14194_v30 = vpop.f32.mrb[3].mxu0 }
 0x908   :  { %v15509_v11 = vmax.f32 %v18150_v31, 0.0  ;;  %v16005_v31 = vrot.slane %v15996_v20, %v22331_v55 }
 0x909   :  { %v15512_v60 = vpack.c.bf16 %v15508_v12, %v15508_v12 }
 0x90a   :  { %v15513_v36 = vpack.c.bf16 %v15509_v11, %v15509_v11 }
 0x90c   :  { %15944 = vmatprep.mubr.bf16.mxu0 %v15513_v36 }
 0x90d   :  { %15945 = vmatmul.mubr.bf16.vlgmr.msra.gmra.mrb[4].mxu0 %v15512_v60 }
 0x90e   :  { %15954 = vmatpush1.bf16.msra.mxu0 %v21542_v34 }
 0x90f   :  { %15955 = vmatprep.subr.bf16.mxu0 %v21547_v27 }
 0x912   :  { %15956 = vmatpush1.bf16.msra.mxu0 %v21545_v32  ;;  %v18146_v32 = vld [vmem:[#allocation2] ss:$0 sm:$0xff] }
 0x913   :  { %15957 = vmatprep.subr.bf16.mxu0 %v21550_v5 }
 0x916   :  { %15958 = vmatpush1.bf16.msra.mxu0 %v21548_v6 }
 0x917   :  { %15959 = vmatprep.subr.bf16.mxu0 %v21553_v39 }
 0x91a   :  { %15960 = vmatpush1.bf16.msra.mxu0 %v21551_v50 }
 0x91b   :  { %15961 = vmatprep.subr.bf16.mxu0 %v21556_v3 }
 0x91e   :  { %15962 = vmatpush1.bf16.msra.mxu0 %v21554_v47 }
 0x91f   :  { %15963 = vmatprep.subr.bf16.mxu0 %v21559_v13 }
 0x922   :  { %15964 = vmatpush1.bf16.msra.mxu0 %v21557_v7 }
 0x923   :  { %15965 = vmatprep.subr.bf16.mxu0 %v21562_v4 }
 0x926   :  { %15966 = vmatpush1.bf16.msra.mxu0 %v21560_v9 }
 0x927   :  { %15967 = vmatprep.subr.bf16.mxu0 %v21565_v37 }
 0x92a   :  { %15968 = vmatpush1.bf16.msra.mxu0 %v21563_v45 }
 0x92b   :  { %15969 = vmatprep.subr.bf16.mxu0 %v21568_v46 }
 0x92e   :  { %15970 = vmatpush1.bf16.msra.mxu0 %v21566_v54 }
 0x92f   :  { %15971 = vmatprep.subr.bf16.mxu0 %v21571_v19 }
 0x932   :  { %15972 = vmatpush1.bf16.msra.mxu0 %v21569_v15 }
 0x933   :  { %15973 = vmatprep.subr.bf16.mxu0 %v21574_v49 }
 0x936   :  { %15974 = vmatpush1.bf16.msra.mxu0 %v21572_v35 }
 0x937   :  { %15975 = vmatprep.subr.bf16.mxu0 %v21577_v1 }
 0x93a   :  { %15976 = vmatpush1.bf16.msra.mxu0 %v21575_v53 }
 0x93b   :  { %15977 = vmatprep.subr.bf16.mxu0 %v21580_v63 }
 0x93e   :  { %15978 = vmatpush1.bf16.msra.mxu0 %v21578_v29 }
 0x93f   :  { %15979 = vmatprep.subr.bf16.mxu0 %v21583_v16 }
 0x942   :  { %15980 = vmatpush1.bf16.msra.mxu0 %v21581_v26 }
 0x943   :  { %15981 = vmatprep.subr.bf16.mxu0 %v21586_v56 }
 0x946   :  { %15982 = vmatpush1.bf16.msra.mxu0 %v21584_v48 }
 0x947   :  { %15983 = vmatprep.subr.bf16.mxu0 %v21589_v28 }
 0x94a   :  { %15984 = vmatpush1.bf16.msra.mxu0 %v21587_v25 }
 0x983   :  { %v15501_v61 = vpop.f32.mrb[4].mxu1 }
 0x984   :  { %v18151_v58 = vadd.f32 %v15501_v61, %v2171_v24  ;;  %v15503_v0 = vpop.f32.mrb[5].mxu1 }
 0x985   :  { %v18152_v2 = vadd.f32 %v15503_v0, %v2175_v62  ;;  %v15505_v42 = vpop.f32.mrb[6].mxu1 }
 0x986   :  { %v15510_v38 = vmax.f32 %v18151_v58, 0.0  ;;  %v15506_v8 = vpop.f32.mrb[7].mxu1 }
 0x987   :  { %v15511_v57 = vmax.f32 %v18152_v2, 0.0 }
 0x988   :  { %v15514_v14 = vpack.c.bf16 %v15510_v38, %v15510_v38 }
 0x989   :  { %v15515_v10 = vpack.c.bf16 %v15511_v57, %v15511_v57 }
 0x98b   :  { %15985 = vmatprep.mubr.bf16.mxu0 %v15515_v10 }
 0x98c   :  { %15986 = vmatmul.mubr.bf16.vlgmr.msra.gmra.mrb[4].mxu0 %v15514_v14 }
 0xa5f   :  { %v15987_v21 = vpop.f32.mrb[4].mxu0 }
 0xa60   :  { %v18153_v41 = vadd.f32 %v15987_v21, %v15585_v23  ;;  %v15989_v52 = vpop.f32.mrb[5].mxu0 }
 0xa61   :  { %v18154_v40 = vadd.f32 %v15989_v52, %v15589_v43  ;;  %v15991_v51 = vpop.f32.mrb[6].mxu0 }
 0xa62   :  { %v15994_v17 = vmax.f32 %v18153_v41, 0.0  ;;  %v15992_v12 = vpop.f32.mrb[7].mxu0 }
 0xa63   :  { %v15995_v30 = vmax.f32 %v18154_v40, 0.0 }
 0xa64   :  { %v16008_v11 = vmul.f32 %v16001_v33, %v15994_v17 }
 0xa65   :  { %v16009_v36 = vmul.f32 %v16005_v31, %v15995_v30 }
 0xa66   :  { %v16011_v34 = vsel %vm16010_vm0, %v16008_v11, 0.0 }
 0xa67   :  { %v16012_v60 = vsel %vm16010_vm0, %v16009_v36, 0.0 }
 0xa68   :  { %v16013_v27 = vadd.f32 %v16012_v60, %v16011_v34 }
 0xa6a   :  { %16014 = vadd.xlane.f32.xlu0 %v16013_v27 }
 0xaf7   :  { %v16015_v5 = vpop.xlane.xlu0 %16014 }
 0xaf8   :  { %v16023_v6 = vadd.f32 %v18146_v32, %v16015_v5 }
 0xafa   :  { %16025 = vst.msk [vmem:[%s22357_s7] sm:$0x3] %vm16024_vm1, %v16023_v6 }
 0xafb   :  { %16030 = vsyncpa [#allocation4], 1 }
 0xafc   :  { %16031 = vsyncpa [#allocation6], 1 }
 0xafd   :  { %16032 = vsyncpa [#allocation9], 1 }
 0xafe   :  { %16033 = vsyncpa [#allocation12], 1 }

</bundles_post_ra>
